<compile_context>
chip_gen: v5e
topology: v5e:2x2
jax: 0.10.0
libtpu: 0.0.40
codegen_flags: <defaults>
</compile_context>

<pallas_src>
import jax
import jax.numpy as jnp
from jax.experimental import pallas as pl
from jax.experimental.pallas import tpu as pltpu

EPS = 1e-5


# --------------------------------------------------------------------------- #
# Kernel
# --------------------------------------------------------------------------- #
def _pair_classifier_kernel(e1_ref, e2_ref, w1_ref, w2_ref, p1_ref, p2_ref, o_ref):
    B = e1_ref.shape[0]
    emb = e1_ref.shape[1]
    inv_n = 1.0 / B  # static python float (whole batch resident in this block)

    # ---- fc1: (e1|e2) @ W1  ==  e1 @ W1a + e2 @ W1b (bf16 MXU, f32 acc) ----
    e1 = e1_ref[...].astype(jnp.bfloat16)
    e2 = e2_ref[...].astype(jnp.bfloat16)
    h = (
        jnp.dot(e1, w1_ref[pl.ds(0, emb), :], preferred_element_type=jnp.float32)
        + jnp.dot(e2, w1_ref[pl.ds(emb, emb), :], preferred_element_type=jnp.float32)
    )

    # ---- bn1 (training-mode batch stats, centered variance) + relu ----
    p1 = p1_ref[...]                       # (2, hidden): [gamma1; beta1]
    mean = jnp.sum(h, axis=0, keepdims=True) * inv_n
    d = h - mean
    var = jnp.sum(d * d, axis=0, keepdims=True) * inv_n
    scale = p1[0:1, :] * jax.lax.rsqrt(var + EPS)
    h = jnp.maximum(d * scale + p1[1:2, :], 0.0)

    # ---- fc2 (bias folded out; cancelled by bn2) ----
    h2 = jnp.dot(h.astype(jnp.bfloat16), w2_ref[...],
                 preferred_element_type=jnp.float32)

    # ---- bn2 + relu ----
    p2 = p2_ref[...]                       # (4, half): [gamma2; beta2; w3; b3(pad)]
    mean2 = jnp.sum(h2, axis=0, keepdims=True) * inv_n
    d2 = h2 - mean2
    var2 = jnp.sum(d2 * d2, axis=0, keepdims=True) * inv_n
    scale2 = p2[0:1, :] * jax.lax.rsqrt(var2 + EPS)
    h2 = jnp.maximum(d2 * scale2 + p2[1:2, :], 0.0)

    # ---- out (half -> 1): VPU multiply + lane reduction, no N=1 MXU matmul ----
    w3 = p2[2:3, :]
    b3 = p2[3:4, 0:1]
    o_ref[...] = jnp.sum(h2 * w3, axis=-1, keepdims=True) + b3


# --------------------------------------------------------------------------- #
# Wrapper
# --------------------------------------------------------------------------- #
def prepare_params(params):
    """One-time conversion of PyTorch-layout params into kernel-ready arrays.

    Do this ONCE (not per forward call): it is the dominant per-call HBM cost
    otherwise (weight transpose + bf16 cast + many small reshapes).
    """
    hidden = params["w1"].shape[0]
    half = params["w2"].shape[0]
    del hidden  # (only used implicitly via shapes)

    # nn.Linear weight is (out, in); transpose to (in, out) for x @ W.
    w1_t = params["w1"].T.astype(jnp.bfloat16)        # (2*emb, hidden)
    w2_t = params["w2"].T.astype(jnp.bfloat16)        # (hidden, half)

    p1 = jnp.stack([params["gamma1"], params["beta1"]]).astype(jnp.float32)  # (2, hidden)
    b3_row = jnp.zeros((half,), jnp.float32).at[0].set(params["b3"][0])
    p2 = jnp.stack(
        [params["gamma2"], params["beta2"], params["w3"].reshape(-1), b3_row]
    ).astype(jnp.float32)                              # (4, half)

    # fc1/fc2 biases intentionally dropped (cancelled by training-mode BN).
    return {"w1": w1_t, "w2": w2_t, "p1": p1, "p2": p2}


def _vmem_limit_bytes(B, emb, hidden, half):
    weights = (2 * emb * hidden + hidden * half) * 2       # bf16 weights
    acts = B * 2 * emb * 4                                  # e1, e2 (f32)
    inter = B * (hidden + half) * 4                         # h1, h2 (f32)
    small = (2 * hidden + 4 * half) * 4
    est = 2 * (weights + acts + small) + 2 * inter + (2 << 20)  # 2x: double-buffering + slack
    return int(min(max(est, 8 << 20), 48 << 20))            # never exceed ~48 MiB (v7x)


def pair_classifier_forward(e1, e2, prep):
    """PairClassifier forward in one fused Pallas kernel.

    e1, e2 : (B, emb_dim) float32 (bf16 also accepted)
    prep   : output of prepare_params()
    returns: (B,) float32 logits
    """
    B, emb = e1.shape
    hidden = prep["p1"].shape[1]
    half = prep["p2"].shape[1]

    inputs = (e1, e2, prep["w1"], prep["w2"], prep["p1"], prep["p2"])

    def full_spec(x):
        nd = x.ndim
        return pl.BlockSpec(x.shape, lambda i, nd=nd: (0,) * nd)

    weight_bytes = prep["w1"].size * 2 + prep["w2"].size * 2
    small_bytes = (prep["p1"].size + prep["p2"].size) * 4
    cost = pl.CostEstimate(
        flops=2 * B * (2 * emb * hidden + hidden * half + half),
        transcendentals=hidden + half,                       # two rsqrt rows
        bytes_accessed=B * 2 * emb * e1.dtype.itemsize
        + weight_bytes + small_bytes + B * 4,
    )

    out = pl.pallas_call(
        _pair_classifier_kernel,
        out_shape=jax.ShapeDtypeStruct((B, 1), jnp.float32),
        grid=(1,),
        in_specs=[full_spec(x) for x in inputs],
        out_specs=pl.BlockSpec((B, 1), lambda i: (0, 0)),
        compiler_params=pltpu.CompilerParams(
            dimension_semantics=("arbitrary",),
            vmem_limit_bytes=_vmem_limit_bytes(B, emb, hidden, half),
        ),
        cost_estimate=cost,
    )(*inputs)

    return out.reshape(B)  # .squeeze(1)


# --------------------------------------------------------------------------- #
# Pure-JAX reference (same numerics: bf16 matmuls, f32 epilogue, centered var)
# --------------------------------------------------------------------------- #
def reference_forward(e1, e2, params):
    emb = e1.shape[1]
    w1_t = params["w1"].T.astype(jnp.bfloat16)
    w2_t = params["w2"].T.astype(jnp.bfloat16)

    def bn_relu(x, gamma, beta):
        mean = jnp.mean(x, axis=0, keepdims=True)
        d = x - mean
        var = jnp.mean(d * d, axis=0, keepdims=True)
        return jnp.maximum(d * (gamma * jax.lax.rsqrt(var + EPS)) + beta, 0.0)

    h = (jnp.dot(e1.astype(jnp.bfloat16), w1_t[:emb], preferred_element_type=jnp.float32)
         + jnp.dot(e2.astype(jnp.bfloat16), w1_t[emb:], preferred_element_type=jnp.float32))
    h = bn_relu(h, params["gamma1"], params["beta1"])
    h2 = jnp.dot(h.astype(jnp.bfloat16), w2_t, preferred_element_type=jnp.float32)
    h2 = bn_relu(h2, params["gamma2"], params["beta2"])
    return jnp.sum(h2 * params["w3"], axis=-1) + params["b3"]


# --------------------------------------------------------------------------- #
# Params init (PyTorch layout) + demo
# --------------------------------------------------------------------------- #
def init_params(key, emb_dim=256, hidden_dim=512):
    half = hidden_dim // 2
    ks = jax.random.split(key, 6)
    scale = 0.02
    return {
        # PyTorch convention: Linear weight (out_features, in_features).
        # b1/b2 kept as module parameters but are mathematically dead in the
        # training-mode forward (cancelled by BN) and not passed to the kernel.
        "w1": scale * jax.random.normal(ks[0], (hidden_dim, emb_dim * 2), jnp.float32),
        "b1": scale * jax.random.normal(ks[1], (hidden_dim,), jnp.float32),
        "gamma1": jnp.ones((hidden_dim,), jnp.float32),
        "beta1": jnp.zeros((hidden_dim,), jnp.float32),
        "w2": scale * jax.random.normal(ks[2], (half, hidden_dim), jnp.float32),
        "b2": scale * jax.random.normal(ks[3], (half,), jnp.float32),
        "gamma2": jnp.ones((half,), jnp.float32),
        "beta2": jnp.zeros((half,), jnp.float32),
        "w3": scale * jax.random.normal(ks[4], (1, half), jnp.float32),
        "b3": scale * jax.random.normal(ks[5], (1,), jnp.float32),
    }


if __name__ == "__main__":
    key = jax.random.PRNGKey(0)
    k_e1, k_e2, k_p = jax.random.split(key, 3)

    # B=256 fills the 256-row MXU on v6e/v7x and amortizes the ~0.75 MiB bf16
    # weight DMA over the batch.
    B, EMB, HIDDEN = 256, 256, 512
    e1 = jax.random.normal(k_e1, (B, EMB), jnp.float32)
    e2 = jax.random.normal(k_e2, (B, EMB), jnp.float32)
    params = init_params(k_p, emb_dim=EMB, hidden_dim=HIDDEN)

    # One-time weight prep (transpose / bf16 / packing) — NOT in the hot path.
    prep = prepare_params(params)
    fwd = jax.jit(pair_classifier_forward)

    logits = fwd(e1, e2, prep)
    jax.block_until_ready(logits)

    assert logits.shape == (B,), logits.shape
    assert logits.dtype == jnp.float32
    assert bool(jnp.all(jnp.isfinite(logits)))

    ref = reference_forward(e1, e2, params)
    assert bool(jnp.allclose(logits, ref, atol=1e-2, rtol=1e-2)), (
        float(jnp.max(jnp.abs(logits - ref)))
    )

    print("KERNEL_OK")
</pallas_src>

<mosaic_0001>
module attributes {stable_mosaic.version = 11 : i64} {
  func.func @_pair_classifier_kernel(%arg0: i32, %arg1: memref<256x256xf32, #tpu.memory_space<vmem>>, %arg2: memref<256x256xf32, #tpu.memory_space<vmem>>, %arg3: memref<512x512xbf16, #tpu.memory_space<vmem>>, %arg4: memref<512x256xbf16, #tpu.memory_space<vmem>>, %arg5: memref<2x512xf32, #tpu.memory_space<vmem>>, %arg6: memref<4x256xf32, #tpu.memory_space<vmem>>, %arg7: memref<256x1xf32, #tpu.memory_space<vmem>>) attributes {dimension_semantics = [#tpu.dimension_semantics<arbitrary>], iteration_bounds = array<i64: 1>, scalar_prefetch = 0 : i64, scratch_operands = 0 : i64, tpu.core_type = #tpu.core_type<tc>, window_params = [{pipeline_mode = #tpu.pipeline_mode<synchronous>, transform_indices = @transform_0, window_bounds = array<i64: 256, 256>}, {pipeline_mode = #tpu.pipeline_mode<synchronous>, transform_indices = @transform_1, window_bounds = array<i64: 256, 256>}, {pipeline_mode = #tpu.pipeline_mode<synchronous>, transform_indices = @transform_2, window_bounds = array<i64: 512, 512>}, {pipeline_mode = #tpu.pipeline_mode<synchronous>, transform_indices = @transform_3, window_bounds = array<i64: 512, 256>}, {pipeline_mode = #tpu.pipeline_mode<synchronous>, transform_indices = @transform_4, window_bounds = array<i64: 2, 512>}, {pipeline_mode = #tpu.pipeline_mode<synchronous>, transform_indices = @transform_5, window_bounds = array<i64: 4, 256>}, {pipeline_mode = #tpu.pipeline_mode<synchronous>, transform_indices = @transform_6, window_bounds = array<i64: 256, 1>}]} {
    %c0 = arith.constant 0 : index
    %c0_0 = arith.constant 0 : index
    %0 = vector.load %arg1[%c0, %c0_0] : memref<256x256xf32, #tpu.memory_space<vmem>>, vector<256x256xf32>
    %1 = arith.truncf %0 : vector<256x256xf32> to vector<256x256xbf16>
    %c0_1 = arith.constant 0 : index
    %c0_2 = arith.constant 0 : index
    %2 = vector.load %arg2[%c0_1, %c0_2] : memref<256x256xf32, #tpu.memory_space<vmem>>, vector<256x256xf32>
    %3 = arith.truncf %2 : vector<256x256xf32> to vector<256x256xbf16>
    %c0_3 = arith.constant 0 : index
    %c0_4 = arith.constant 0 : index
    %4 = vector.load %arg3[%c0_3, %c0_4] : memref<512x512xbf16, #tpu.memory_space<vmem>>, vector<256x512xbf16>
    %cst = arith.constant dense<0.000000e+00> : vector<256x512xf32>
    %5 = tpu.matmul %1, %4, %cst {dimension_numbers = #tpu.dot_dimension_numbers<[1], [0], [0], [1], [0, 0, 1, 1], [], []>} : vector<256x256xbf16>, vector<256x512xbf16>, vector<256x512xf32> -> vector<256x512xf32>
    %c256 = arith.constant 256 : index
    %c0_5 = arith.constant 0 : index
    %6 = vector.load %arg3[%c256, %c0_5] : memref<512x512xbf16, #tpu.memory_space<vmem>>, vector<256x512xbf16>
    %cst_6 = arith.constant dense<0.000000e+00> : vector<256x512xf32>
    %7 = tpu.matmul %3, %6, %cst_6 {dimension_numbers = #tpu.dot_dimension_numbers<[1], [0], [0], [1], [0, 0, 1, 1], [], []>} : vector<256x256xbf16>, vector<256x512xbf16>, vector<256x512xf32> -> vector<256x512xf32>
    %8 = arith.addf %5, %7 : vector<256x512xf32>
    %c0_7 = arith.constant 0 : index
    %c0_8 = arith.constant 0 : index
    %9 = vector.load %arg5[%c0_7, %c0_8] : memref<2x512xf32, #tpu.memory_space<vmem>>, vector<2x512xf32>
    %cst_9 = arith.constant dense<0.000000e+00> : vector<512xf32>
    %10 = vector.multi_reduction <add>, %8, %cst_9 [0] : vector<256x512xf32> to vector<512xf32>
    %11 = vector.shape_cast %10 : vector<512xf32> to vector<1x512xf32>
    %cst_10 = arith.constant 3.906250e-03 : f32
    %12 = vector.broadcast %cst_10 : f32 to vector<1x512xf32>
    %13 = arith.mulf %11, %12 : vector<1x512xf32>
    %14 = vector.broadcast %13 : vector<1x512xf32> to vector<256x512xf32>
    %15 = arith.subf %8, %14 : vector<256x512xf32>
    %16 = arith.mulf %15, %15 : vector<256x512xf32>
    %cst_11 = arith.constant dense<0.000000e+00> : vector<512xf32>
    %17 = vector.multi_reduction <add>, %16, %cst_11 [0] : vector<256x512xf32> to vector<512xf32>
    %18 = vector.shape_cast %17 : vector<512xf32> to vector<1x512xf32>
    %cst_12 = arith.constant 3.906250e-03 : f32
    %19 = vector.broadcast %cst_12 : f32 to vector<1x512xf32>
    %20 = arith.mulf %18, %19 : vector<1x512xf32>
    %21 = vector.extract_strided_slice %9 {offsets = [0, 0], sizes = [1, 512], strides = [1, 1]} : vector<2x512xf32> to vector<1x512xf32>
    %cst_13 = arith.constant 9.99999974E-6 : f32
    %22 = vector.broadcast %cst_13 : f32 to vector<1x512xf32>
    %23 = arith.addf %20, %22 : vector<1x512xf32>
    %24 = math.rsqrt %23 : vector<1x512xf32>
    %25 = arith.mulf %21, %24 : vector<1x512xf32>
    %26 = vector.broadcast %25 : vector<1x512xf32> to vector<256x512xf32>
    %27 = arith.mulf %15, %26 : vector<256x512xf32>
    %28 = vector.extract_strided_slice %9 {offsets = [1, 0], sizes = [1, 512], strides = [1, 1]} : vector<2x512xf32> to vector<1x512xf32>
    %29 = vector.broadcast %28 : vector<1x512xf32> to vector<256x512xf32>
    %30 = arith.addf %27, %29 : vector<256x512xf32>
    %cst_14 = arith.constant 0.000000e+00 : f32
    %31 = vector.broadcast %cst_14 : f32 to vector<256x512xf32>
    %32 = arith.maximumf %30, %31 : vector<256x512xf32>
    %33 = arith.truncf %32 : vector<256x512xf32> to vector<256x512xbf16>
    %c0_15 = arith.constant 0 : index
    %c0_16 = arith.constant 0 : index
    %34 = vector.load %arg4[%c0_15, %c0_16] : memref<512x256xbf16, #tpu.memory_space<vmem>>, vector<512x256xbf16>
    %cst_17 = arith.constant dense<0.000000e+00> : vector<256x256xf32>
    %35 = tpu.matmul %33, %34, %cst_17 {dimension_numbers = #tpu.dot_dimension_numbers<[1], [0], [0], [1], [0, 0, 1, 1], [], []>} : vector<256x512xbf16>, vector<512x256xbf16>, vector<256x256xf32> -> vector<256x256xf32>
    %c0_18 = arith.constant 0 : index
    %c0_19 = arith.constant 0 : index
    %36 = vector.load %arg6[%c0_18, %c0_19] : memref<4x256xf32, #tpu.memory_space<vmem>>, vector<4x256xf32>
    %cst_20 = arith.constant dense<0.000000e+00> : vector<256xf32>
    %37 = vector.multi_reduction <add>, %35, %cst_20 [0] : vector<256x256xf32> to vector<256xf32>
    %38 = vector.shape_cast %37 : vector<256xf32> to vector<1x256xf32>
    %cst_21 = arith.constant 3.906250e-03 : f32
    %39 = vector.broadcast %cst_21 : f32 to vector<1x256xf32>
    %40 = arith.mulf %38, %39 : vector<1x256xf32>
    %41 = vector.broadcast %40 : vector<1x256xf32> to vector<256x256xf32>
    %42 = arith.subf %35, %41 : vector<256x256xf32>
    %43 = arith.mulf %42, %42 : vector<256x256xf32>
    %cst_22 = arith.constant dense<0.000000e+00> : vector<256xf32>
    %44 = vector.multi_reduction <add>, %43, %cst_22 [0] : vector<256x256xf32> to vector<256xf32>
    %45 = vector.shape_cast %44 : vector<256xf32> to vector<1x256xf32>
    %cst_23 = arith.constant 3.906250e-03 : f32
    %46 = vector.broadcast %cst_23 : f32 to vector<1x256xf32>
    %47 = arith.mulf %45, %46 : vector<1x256xf32>
    %48 = vector.extract_strided_slice %36 {offsets = [0, 0], sizes = [1, 256], strides = [1, 1]} : vector<4x256xf32> to vector<1x256xf32>
    %cst_24 = arith.constant 9.99999974E-6 : f32
    %49 = vector.broadcast %cst_24 : f32 to vector<1x256xf32>
    %50 = arith.addf %47, %49 : vector<1x256xf32>
    %51 = math.rsqrt %50 : vector<1x256xf32>
    %52 = arith.mulf %48, %51 : vector<1x256xf32>
    %53 = vector.broadcast %52 : vector<1x256xf32> to vector<256x256xf32>
    %54 = arith.mulf %42, %53 : vector<256x256xf32>
    %55 = vector.extract_strided_slice %36 {offsets = [1, 0], sizes = [1, 256], strides = [1, 1]} : vector<4x256xf32> to vector<1x256xf32>
    %56 = vector.broadcast %55 : vector<1x256xf32> to vector<256x256xf32>
    %57 = arith.addf %54, %56 : vector<256x256xf32>
    %cst_25 = arith.constant 0.000000e+00 : f32
    %58 = vector.broadcast %cst_25 : f32 to vector<256x256xf32>
    %59 = arith.maximumf %57, %58 : vector<256x256xf32>
    %60 = vector.extract_strided_slice %36 {offsets = [2, 0], sizes = [1, 256], strides = [1, 1]} : vector<4x256xf32> to vector<1x256xf32>
    %61 = vector.extract_strided_slice %36 {offsets = [3, 0], sizes = [1, 1], strides = [1, 1]} : vector<4x256xf32> to vector<1x1xf32>
    %62 = vector.broadcast %60 : vector<1x256xf32> to vector<256x256xf32>
    %63 = arith.mulf %59, %62 : vector<256x256xf32>
    %cst_26 = arith.constant dense<0.000000e+00> : vector<256xf32>
    %64 = vector.multi_reduction <add>, %63, %cst_26 [1] : vector<256x256xf32> to vector<256xf32>
    %65 = vector.shape_cast %64 : vector<256xf32> to vector<256x1xf32>
    %66 = vector.broadcast %61 : vector<1x1xf32> to vector<256x1xf32>
    %67 = arith.addf %65, %66 : vector<256x1xf32>
    %c0_27 = arith.constant 0 : index
    %c0_28 = arith.constant 0 : index
    %68 = vector.load %arg7[%c0_27, %c0_28] : memref<256x1xf32, #tpu.memory_space<vmem>>, vector<256x1xf32>
    tpu.vector_store %arg7[%c0_27, %c0_28], %67 {strides = array<i32>} : memref<256x1xf32, #tpu.memory_space<vmem>>, vector<256x1xf32>,
    return
  }
  func.func @transform_0(%arg0: i32) -> (i32, i32) {
    %c0_i32 = arith.constant 0 : i32
    %c0_i32_0 = arith.constant 0 : i32
    %c0_i32_1 = arith.constant 0 : i32
    return %c0_i32, %c0_i32_0 : i32, i32
  }
  func.func @transform_1(%arg0: i32) -> (i32, i32) {
    %c0_i32 = arith.constant 0 : i32
    %c0_i32_0 = arith.constant 0 : i32
    %c0_i32_1 = arith.constant 0 : i32
    return %c0_i32, %c0_i32_0 : i32, i32
  }
  func.func @transform_2(%arg0: i32) -> (i32, i32) {
    %c0_i32 = arith.constant 0 : i32
    %c0_i32_0 = arith.constant 0 : i32
    %c0_i32_1 = arith.constant 0 : i32
    return %c0_i32, %c0_i32_0 : i32, i32
  }
  func.func @transform_3(%arg0: i32) -> (i32, i32) {
    %c0_i32 = arith.constant 0 : i32
    %c0_i32_0 = arith.constant 0 : i32
    %c0_i32_1 = arith.constant 0 : i32
    return %c0_i32, %c0_i32_0 : i32, i32
  }
  func.func @transform_4(%arg0: i32) -> (i32, i32) {
    %c0_i32 = arith.constant 0 : i32
    %c0_i32_0 = arith.constant 0 : i32
    %c0_i32_1 = arith.constant 0 : i32
    return %c0_i32, %c0_i32_0 : i32, i32
  }
  func.func @transform_5(%arg0: i32) -> (i32, i32) {
    %c0_i32 = arith.constant 0 : i32
    %c0_i32_0 = arith.constant 0 : i32
    %c0_i32_1 = arith.constant 0 : i32
    return %c0_i32, %c0_i32_0 : i32, i32
  }
  func.func @transform_6(%arg0: i32) -> (i32, i32) {
    %c0_i32 = arith.constant 0 : i32
    %c0_i32_0 = arith.constant 0 : i32
    %c0_i32_1 = arith.constant 0 : i32
    return %c0_i32, %c0_i32_0 : i32, i32
  }
}

</mosaic_0001>

<bundles_post_ra>
// kernel: pair_classifier_forward.1
= control target key start
LH: loop header
LB: loop body
LE: loop exit
PB: predicated region body
PF: predicated region fallthrough
CT: control target
= control target key end

     0   :  { %11 = vsyncpa [#allocation3], 0  ;;  %s10640_s0 = inlined_call_operand.hbm [shape: f32[256,256], index: 0, kind: input, shape index: {}]   ;;  %s10641_s1 = inlined_call_operand.hbm [shape: f32[256,256], index: 1, kind: input, shape index: {}]   ;;  %s10642_s2 = inlined_call_operand.hbm [shape: bf16[512,512], index: 2, kind: input, shape index: {}]   ;;  %s10643_s3 = inlined_call_operand.hbm [shape: bf16[512,256], index: 3, kind: input, shape index: {}]   ;;  %s10644_s4 = inlined_call_operand.hbm [shape: f32[2,512], index: 4, kind: input, shape index: {}]   ;;  %s10645_s5 = inlined_call_operand.hbm [shape: f32[4,256], index: 5, kind: input, shape index: {}]   ;;  %s10646_s6 = inlined_call_operand.vmem [shape: f32[256,1], index: 6, kind: output, shape index: {}]  }
   0x1   :  { %12 = vsyncpa [#allocation5], 0 }
   0x2   :  { %13 = vsyncpa [#allocation8], 0 }
   0x3   :  { %14 = vsyncpa [#allocation11], 0  ;;  %s32_s23 = sshll.u32 %s10641_s1, 4  ;;  %s6576_s24 = smov [#allocation4]   ;;  %s33_s23 = int_to_ptr.hbm [resolvable:$true] %s32_s23 }
   0x4   :  { %s34_s25 = sshll.u32 %s6576_s24, 4  ;;  %s58_s28 = sshll.u32 %s10643_s3, 4  ;;  %s35_s25 = int_to_ptr.vmem [resolvable:$true] %s34_s25  ;;  %s59_s28 = int_to_ptr.hbm [resolvable:$true] %s58_s28 }
   0x5   :  { %s6577_s29 = smov 256   ;;  %s6578_s30 = smov 16  }
   0x6   :  { %40 = dma.hbm_to_vmem [thread:$0]  %s33_s23, 8192, %s35_s25, [#allocation5], %s6577_s29, %s6577_s29, %s6578_s30  }
   0x7   :  { %s6579_s7 = smov [#allocation7]   ;;  %s6580_s9 = smov 128  }
   0x8   :  { %s60_s8 = sshll.u32 %s6579_s7, 4  ;;  %s6581_s10 = smov 8   ;;  %s61_s8 = int_to_ptr.vmem [resolvable:$true] %s60_s8 }
   0x9   :  { %66 = dma.hbm_to_vmem [thread:$0]  %s59_s28, 8192, %s61_s8, [#allocation8], %s6580_s9, %s6580_s9, %s6581_s10  }
   0xa   :  { %s19_s12 = sshll.u32 %s10640_s0, 4  ;;  %s6582_s13 = smov [#allocation2]   ;;  %s20_s12 = int_to_ptr.hbm [resolvable:$true] %s19_s12 }
   0xb   :  { %s21_s14 = sshll.u32 %s6582_s13, 4  ;;  %s45_s16 = sshll.u32 %s10642_s2, 4  ;;  %s22_s14 = int_to_ptr.vmem [resolvable:$true] %s21_s14  ;;  %s46_s16 = int_to_ptr.hbm [resolvable:$true] %s45_s16 }
   0xc   :  { %27 = dma.hbm_to_vmem [thread:$0]  %s20_s12, 8192, %s22_s14, [#allocation3], %s6577_s29, %s6577_s29, %s6578_s30  }
   0xd   :  { %s6583_s17 = smov [#allocation6]   ;;  %s72_s21 = sshll.u32 %s10644_s4, 4  ;;  %s73_s21 = int_to_ptr.hbm [resolvable:$true] %s72_s21 }
   0xe   :  { %s47_s18 = sshll.u32 %s6583_s17, 4  ;;  %s83_s23 = sshll.u32 %s10645_s5, 4  ;;  %s48_s18 = int_to_ptr.vmem [resolvable:$true] %s47_s18  ;;  %s84_s23 = int_to_ptr.hbm [resolvable:$true] %s83_s23 }
   0xf   :  { %53 = dma.hbm_to_vmem [thread:$0]  %s46_s16, 16384, %s48_s18, [#allocation5], %s6577_s29, %s6577_s29, %s6578_s30  }
  0x10   :  { %s6584_s24 = smov [#allocation9]   ;;  %s6585_s2 = smov [#allocation10]  }
  0x11   :  { %s74_s25 = sshll.u32 %s6584_s24, 4  ;;  %s85_s26 = sshll.u32 %s6585_s2, 4  ;;  %s75_s25 = int_to_ptr.vmem [resolvable:$true] %s74_s25  ;;  %s86_s26 = int_to_ptr.vmem [resolvable:$true] %s85_s26 }
  0x12   :  { %77 = dma.hbm_to_vmem [thread:$0]  %s73_s21, 128, %s75_s25, [#allocation8]  }
  0x13   :  { %88 = dma.hbm_to_vmem [thread:$0]  %s84_s23, 128, %s86_s26, [#allocation11]  }
  0x14   :  { %6568 = dma.done.wait [#allocation3], 8192  }
  0x15   :  { %6569 = vsyncadd [#allocation3], 4294959104 }
  0x16   :  { %6570 = dma.done.wait [#allocation5], 24576  }
  0x17   :  { %6571 = vsyncadd [#allocation5], 4294942720 }
  0x18   :  { %6572 = dma.done.wait [#allocation8], 8320  }
  0x19   :  { %6573 = vsyncadd [#allocation8], 4294958976 }
  0x1a   :  { %6574 = dma.done.wait [#allocation11], 128  }
  0x1b   :  { %6575 = vsyncadd [#allocation11], 4294967168  ;;  %v5556_v0 = vld [vmem:[#allocation6 + $0x2e0] sm:$0xf]  ;;  %v6304_v1 = vld [vmem:[#allocation6 + $0x2ec] sm:$0xf0] }
  0x1c   :  { %v5684_v2 = vld [vmem:[#allocation6 + $0x3e0] sm:$0xf]  ;;  %v5557_v3 = vor.u32 %v6304_v1, %v5556_v0  ;;  %v6336_v4 = vld [vmem:[#allocation6 + $0x3ec] sm:$0xf0]  ;;  %v6302_v5 = vld [vmem:[#allocation6 + $0x2e4] sm:$0xf] }
  0x1d   :  { %v5558_v6 = vld [vmem:[#allocation6 + $0x2f0] sm:$0xf0]  ;;  %v5685_v7 = vor.u32 %v6336_v4, %v5684_v2  ;;  %v6334_v9 = vld [vmem:[#allocation6 + $0x3e4] sm:$0xf]  ;;  %v5540_v11 = vld [vmem:[#allocation6 + $0x2c0] sm:$0xf] }
  0x1e   :  { %v5561_v8 = vor.u32 %v6302_v5, %v5558_v6  ;;  %v5686_v10 = vld [vmem:[#allocation6 + $0x3f0] sm:$0xf0]  ;;  %753 = vmatpush.bf16.msra.mxu0 %v5557_v3  ;;  %v6300_v13 = vld [vmem:[#allocation6 + $0x2cc] sm:$0xf0]  ;;  %v5668_v14 = vld [vmem:[#allocation6 + $0x3c0] sm:$0xf] }
  0x1f   :  { %v5689_v12 = vor.u32 %v6334_v9, %v5686_v10  ;;  %v6332_v15 = vld [vmem:[#allocation6 + $0x3cc] sm:$0xf0]  ;;  %842 = vmatpush.bf16.msra.mxu1 %v5685_v7  ;;  %v5541_v16 = vor.u32 %v6300_v13, %v5540_v11  ;;  %v6298_v18 = vld [vmem:[#allocation6 + $0x2c4] sm:$0xf]  ;;  %v5542_v19 = vld [vmem:[#allocation6 + $0x2d0] sm:$0xf0] }
  0x20   :  { %931 = vmatpush.bf16.msra.mxu2 %v5561_v8  ;;  %v5669_v17 = vor.u32 %v6332_v15, %v5668_v14  ;;  %v6330_v20 = vld [vmem:[#allocation6 + $0x3c4] sm:$0xf]  ;;  %v5545_v21 = vor.u32 %v6298_v18, %v5542_v19  ;;  %v5670_v22 = vld [vmem:[#allocation6 + $0x3d0] sm:$0xf0]  ;;  %v5524_v23 = vld [vmem:[#allocation6 + $0x2a0] sm:$0xf] }
  0x21   :  { %1020 = vmatpush.bf16.msra.mxu3 %v5689_v12  ;;  %v6296_v24 = vld [vmem:[#allocation6 + $0x2ac] sm:$0xf0]  ;;  %v5673_v25 = vor.u32 %v6330_v20, %v5670_v22  ;;  %v5652_v26 = vld [vmem:[#allocation6 + $0x3a0] sm:$0xf]  ;;  %v6294_v28 = vld [vmem:[#allocation6 + $0x2a4] sm:$0xf] }
  0x22   :  { %v6328_v27 = vld [vmem:[#allocation6 + $0x3ac] sm:$0xf0]  ;;  %754 = vmatpush.bf16.msra.mxu0 %v5541_v16  ;;  %v5525_v29 = vor.u32 %v6296_v24, %v5524_v23  ;;  %v5526_v30 = vld [vmem:[#allocation6 + $0x2b0] sm:$0xf0]  ;;  %v6326_v31 = vld [vmem:[#allocation6 + $0x3a4] sm:$0xf] }
  0x23   :  { %v5654_v32 = vld [vmem:[#allocation6 + $0x3b0] sm:$0xf0]  ;;  %843 = vmatpush.bf16.msra.mxu1 %v5669_v17  ;;  %v5653_v33 = vor.u32 %v6328_v27, %v5652_v26  ;;  %v5529_v34 = vor.u32 %v6294_v28, %v5526_v30  ;;  %v5508_v35 = vld [vmem:[#allocation6 + $0x280] sm:$0xf]  ;;  %v6292_v36 = vld [vmem:[#allocation6 + $0x28c] sm:$0xf0] }
  0x24   :  { %932 = vmatpush.bf16.msra.mxu2 %v5545_v21  ;;  %v5636_v37 = vld [vmem:[#allocation6 + $0x380] sm:$0xf]  ;;  %v5657_v38 = vor.u32 %v6326_v31, %v5654_v32  ;;  %v6324_v39 = vld [vmem:[#allocation6 + $0x38c] sm:$0xf0]  ;;  %v6290_v40 = vld [vmem:[#allocation6 + $0x284] sm:$0xf]  ;;  %v5509_v44 = vor.u32 %v6292_v36, %v5508_v35 }
  0x25   :  { %1021 = vmatpush.bf16.msra.mxu3 %v5673_v25  ;;  %v5510_v41 = vld [vmem:[#allocation6 + $0x290] sm:$0xf0]  ;;  %v6322_v42 = vld [vmem:[#allocation6 + $0x384] sm:$0xf]  ;;  %v5637_v45 = vor.u32 %v6324_v39, %v5636_v37  ;;  %v5492_v47 = vld [vmem:[#allocation6 + $0x260] sm:$0xf] }
  0x26   :  { %v5638_v43 = vld [vmem:[#allocation6 + $0x390] sm:$0xf0]  ;;  %755 = vmatpush.bf16.msra.mxu0 %v5525_v29  ;;  %v5513_v46 = vor.u32 %v6290_v40, %v5510_v41  ;;  %v6288_v48 = vld [vmem:[#allocation6 + $0x26c] sm:$0xf0]  ;;  %v5620_v49 = vld [vmem:[#allocation6 + $0x360] sm:$0xf] }
  0x27   :  { %844 = vmatpush.bf16.msra.mxu1 %v5653_v33  ;;  %v5641_v50 = vor.u32 %v6322_v42, %v5638_v43  ;;  %v6320_v51 = vld [vmem:[#allocation6 + $0x36c] sm:$0xf0]  ;;  %v6286_v52 = vld [vmem:[#allocation6 + $0x264] sm:$0xf]  ;;  %v5494_v53 = vld [vmem:[#allocation6 + $0x270] sm:$0xf0]  ;;  %v5493_v56 = vor.u32 %v6288_v48, %v5492_v47 }
  0x28   :  { %933 = vmatpush.bf16.msra.mxu2 %v5529_v34  ;;  %v6318_v54 = vld [vmem:[#allocation6 + $0x364] sm:$0xf]  ;;  %v5622_v55 = vld [vmem:[#allocation6 + $0x370] sm:$0xf0]  ;;  %v5621_v57 = vor.u32 %v6320_v51, %v5620_v49  ;;  %v5497_v58 = vor.u32 %v6286_v52, %v5494_v53  ;;  %v5476_v59 = vld [vmem:[#allocation6 + $0x240] sm:$0xf] }
  0x29   :  { %1022 = vmatpush.bf16.msra.mxu3 %v5657_v38  ;;  %v6284_v60 = vld [vmem:[#allocation6 + $0x24c] sm:$0xf0]  ;;  %v5604_v61 = vld [vmem:[#allocation6 + $0x340] sm:$0xf]  ;;  %v5625_v62 = vor.u32 %v6318_v54, %v5622_v55  ;;  %v6282_v0 = vld [vmem:[#allocation6 + $0x244] sm:$0xf] }
  0x2a   :  { %756 = vmatpush.bf16.msra.mxu0 %v5509_v44  ;;  %v6316_v63 = vld [vmem:[#allocation6 + $0x34c] sm:$0xf0]  ;;  %v5478_v1 = vld [vmem:[#allocation6 + $0x250] sm:$0xf0]  ;;  %v6314_v2 = vld [vmem:[#allocation6 + $0x344] sm:$0xf]  ;;  %v5477_v4 = vor.u32 %v6284_v60, %v5476_v59 }
  0x2b   :  { %845 = vmatpush.bf16.msra.mxu1 %v5637_v45  ;;  %v5606_v3 = vld [vmem:[#allocation6 + $0x350] sm:$0xf0]  ;;  %v5605_v5 = vor.u32 %v6316_v63, %v5604_v61  ;;  %v5481_v6 = vor.u32 %v6282_v0, %v5478_v1  ;;  %v5460_v7 = vld [vmem:[#allocation6 + $0x220] sm:$0xf]  ;;  %v6280_v8 = vld [vmem:[#allocation6 + $0x22c] sm:$0xf0] }
  0x2c   :  { %934 = vmatpush.bf16.msra.mxu2 %v5513_v46  ;;  %v5588_v9 = vld [vmem:[#allocation6 + $0x320] sm:$0xf]  ;;  %v5609_v10 = vor.u32 %v6314_v2, %v5606_v3  ;;  %v6312_v11 = vld [vmem:[#allocation6 + $0x32c] sm:$0xf0]  ;;  %v6278_v12 = vld [vmem:[#allocation6 + $0x224] sm:$0xf]  ;;  %v5461_v16 = vor.u32 %v6280_v8, %v5460_v7 }
  0x2d   :  { %1023 = vmatpush.bf16.msra.mxu3 %v5641_v50  ;;  %v5462_v13 = vld [vmem:[#allocation6 + $0x230] sm:$0xf0]  ;;  %v6310_v14 = vld [vmem:[#allocation6 + $0x324] sm:$0xf]  ;;  %v5444_v17 = vld [vmem:[#allocation6 + $0x200] sm:$0xf]  ;;  %v5589_v19 = vor.u32 %v6312_v11, %v5588_v9 }
  0x2e   :  { %757 = vmatpush.bf16.msra.mxu0 %v5493_v56  ;;  %v5590_v15 = vld [vmem:[#allocation6 + $0x330] sm:$0xf0]  ;;  %v6276_v18 = vld [vmem:[#allocation6 + $0x20c] sm:$0xf0]  ;;  %v5465_v20 = vor.u32 %v6278_v12, %v5462_v13  ;;  %v5572_v21 = vld [vmem:[#allocation6 + $0x300] sm:$0xf] }
  0x2f   :  { %846 = vmatpush.bf16.msra.mxu1 %v5621_v57  ;;  %v6308_v22 = vld [vmem:[#allocation6 + $0x30c] sm:$0xf0]  ;;  %v6274_v23 = vld [vmem:[#allocation6 + $0x204] sm:$0xf]  ;;  %v5593_v24 = vor.u32 %v6310_v14, %v5590_v15  ;;  %v5446_v25 = vld [vmem:[#allocation6 + $0x210] sm:$0xf0]  ;;  %v5445_v31 = vor.u32 %v6276_v18, %v5444_v17 }
  0x30   :  { %935 = vmatpush.bf16.msra.mxu2 %v5497_v58  ;;  %v6306_v26 = vld [vmem:[#allocation6 + $0x304] sm:$0xf]  ;;  %v5574_v27 = vld [vmem:[#allocation6 + $0x310] sm:$0xf0]  ;;  %v6303_v29 = vld [vmem:[#allocation6 + $0x2ec] sm:$0xf]  ;;  %v5573_v35 = vor.u32 %v6308_v22, %v5572_v21  ;;  %v5449_v36 = vor.u32 %v6274_v23, %v5446_v25 }
  0x31   :  { %1024 = vmatpush.bf16.msra.mxu3 %v5625_v62  ;;  %v209_v28 = vld [vmem:[#allocation4] sm:$0xff]  ;;  %v5566_v30 = vld [vmem:[#allocation6 + $0x2f8] sm:$0xf0]  ;;  %v211_v32 = vld [vmem:[#allocation4 + $0x10] sm:$0xff]  ;;  %v5577_v39 = vor.u32 %v6306_v26, %v5574_v27  ;;  %vm3111_vm10 = vcmask 1045508   ;;  %vm3109_vm12 = vcmask 1041408  }
  0x32   :  { %758 = vmatpush.bf16.msra.mxu0 %v5477_v4  ;;  %v6335_v33 = vld [vmem:[#allocation6 + $0x3ec] sm:$0xf]  ;;  %v5694_v34 = vld [vmem:[#allocation6 + $0x3f8] sm:$0xf0]  ;;  %v5569_v40 = vor.u32 %v6303_v29, %v5566_v30  ;;  %v5564_v41 = vld [vmem:[#allocation6 + $0x2e8] sm:$0xf]  ;;  %v6639_v43 = vpack.c.bf16 %v211_v32, %v209_v28 }
  0x33   :  { %847 = vmatpush.bf16.msra.mxu1 %v5605_v5  ;;  %v210_v37 = vld [vmem:[#allocation4 + $0x8] sm:$0xff]  ;;  %v212_v38 = vld [vmem:[#allocation4 + $0x18] sm:$0xff]  ;;  %v5697_v44 = vor.u32 %v6335_v33, %v5694_v34  ;;  %v213_v62 = vld [vmem:[#allocation4 + $0x20] sm:$0xff]  ;;  %vm3113_vm14 = vcmask 1043456  }
  0x34   :  { %936 = vmatpush.bf16.msra.mxu2 %v5481_v6  ;;  %v6305_v42 = vld [vmem:[#allocation6 + $0x2f4] sm:$0xf0]  ;;  %v5692_v45 = vld [vmem:[#allocation6 + $0x3e8] sm:$0xf]  ;;  %v6641_v47 = vpack.c.bf16 %v212_v38, %v210_v37  ;;  %v6299_v50 = vld [vmem:[#allocation6 + $0x2cc] sm:$0xf] }
  0x35   :  { %1025 = vmatpush.bf16.msra.mxu3 %v5609_v10  ;;  %v6337_v46 = vld [vmem:[#allocation6 + $0x3f4] sm:$0xf0]  ;;  %v5565_v48 = vor.u32 %v6305_v42, %v5564_v41  ;;  %v5550_v51 = vld [vmem:[#allocation6 + $0x2d8] sm:$0xf0]  ;;  %v6331_v52 = vld [vmem:[#allocation6 + $0x3cc] sm:$0xf] }
  0x36   :  { %759 = vmatpush.bf16.msra.mxu0 %v5461_v16  ;;  %v5693_v49 = vor.u32 %v6337_v46, %v5692_v45  ;;  %v5553_v53 = vor.u32 %v6299_v50, %v5550_v51  ;;  %v5678_v54 = vld [vmem:[#allocation6 + $0x3d8] sm:$0xf0]  ;;  %v5548_v55 = vld [vmem:[#allocation6 + $0x2c8] sm:$0xf]  ;;  %v6301_v56 = vld [vmem:[#allocation6 + $0x2d4] sm:$0xf0] }
  0x37   :  { %848 = vmatpush.bf16.msra.mxu1 %v5589_v19  ;;  %v5681_v57 = vor.u32 %v6331_v52, %v5678_v54  ;;  %v5549_v58 = vor.u32 %v6301_v56, %v5548_v55  ;;  %v5676_v59 = vld [vmem:[#allocation6 + $0x3c8] sm:$0xf]  ;;  %v6333_v60 = vld [vmem:[#allocation6 + $0x3d4] sm:$0xf0]  ;;  %v215_v63 = vld [vmem:[#allocation4 + $0x30] sm:$0xff] }
  0x38   :  { %937 = vmatpush.bf16.msra.mxu2 %v5465_v20  ;;  %v5677_v61 = vor.u32 %v6333_v60, %v5676_v59  ;;  %v214_v0 = vld [vmem:[#allocation4 + $0x28] sm:$0xff]  ;;  %v216_v1 = vld [vmem:[#allocation4 + $0x38] sm:$0xff]  ;;  %v6647_v2 = vpack.c.bf16 %v215_v63, %v213_v62  ;;  %v217_v4 = vld [vmem:[#allocation4 + $0x40] sm:$0xff] }
  0x39   :  { %1026 = vmatpush.bf16.msra.mxu3 %v5593_v24  ;;  %v6649_v3 = vpack.c.bf16 %v216_v1, %v214_v0  ;;  %v219_v5 = vld [vmem:[#allocation4 + $0x50] sm:$0xff]  ;;  %v218_v6 = vld [vmem:[#allocation4 + $0x48] sm:$0xff]  ;;  %v220_v7 = vld [vmem:[#allocation4 + $0x58] sm:$0xff] }
  0x3a   :  { %760 = vmatpush.bf16.msra.mxu0 %v5445_v31  ;;  %v6655_v8 = vpack.c.bf16 %v219_v5, %v217_v4  ;;  %v6657_v9 = vpack.c.bf16 %v220_v7, %v218_v6  ;;  %v6295_v10 = vld [vmem:[#allocation6 + $0x2ac] sm:$0xf]  ;;  %v5534_v11 = vld [vmem:[#allocation6 + $0x2b8] sm:$0xf0]  ;;  %v5532_v15 = vld [vmem:[#allocation6 + $0x2a8] sm:$0xf] }
  0x3b   :  { %849 = vmatpush.bf16.msra.mxu1 %v5573_v35  ;;  %v6327_v12 = vld [vmem:[#allocation6 + $0x3ac] sm:$0xf]  ;;  %v5537_v13 = vor.u32 %v6295_v10, %v5534_v11  ;;  %v5662_v14 = vld [vmem:[#allocation6 + $0x3b8] sm:$0xf0]  ;;  %v6297_v16 = vld [vmem:[#allocation6 + $0x2b4] sm:$0xf0] }
  0x3c   :  { %938 = vmatpush.bf16.msra.mxu2 %v5449_v36  ;;  %v5665_v17 = vor.u32 %v6327_v12, %v5662_v14  ;;  %v5533_v18 = vor.u32 %v6297_v16, %v5532_v15  ;;  %v5660_v19 = vld [vmem:[#allocation6 + $0x3a8] sm:$0xf]  ;;  %v6329_v20 = vld [vmem:[#allocation6 + $0x3b4] sm:$0xf0]  ;;  %v221_v22 = vld [vmem:[#allocation4 + $0x60] sm:$0xff] }
  0x3d   :  { %1027 = vmatpush.bf16.msra.mxu3 %v5577_v39  ;;  %761 = vmatmul.bf16.vlgmr.msra.gmra.mxu0 %v6639_v43  ;;  %v5661_v21 = vor.u32 %v6329_v20, %v5660_v19  ;;  %v223_v23 = vld [vmem:[#allocation4 + $0x70] sm:$0xff]  ;;  %v222_v24 = vld [vmem:[#allocation4 + $0x68] sm:$0xff]  ;;  %v224_v25 = vld [vmem:[#allocation4 + $0x78] sm:$0xff] }
  0x3e   :  { %850 = vmatmul.bf16.vlgmr.msra.gmra.mxu1 %v6641_v47  ;;  %1109 = vmatpush.bf16.msrb.mxu0 %v5565_v48  ;;  %v6663_v26 = vpack.c.bf16 %v223_v23, %v221_v22  ;;  %v6665_v27 = vpack.c.bf16 %v224_v25, %v222_v24  ;;  %v225_v28 = vld [vmem:[#allocation4 + $0x80] sm:$0xff]  ;;  %v227_v29 = vld [vmem:[#allocation4 + $0x90] sm:$0xff]  ;;  %v226_v30 = vld [vmem:[#allocation4 + $0x88] sm:$0xff] }
  0x3f   :  { %939 = vmatmul.bf16.vlgmr.msra.gmra.mxu2 %v6639_v43  ;;  %1198 = vmatpush.bf16.msrb.mxu1 %v5693_v49  ;;  %v228_v31 = vld [vmem:[#allocation4 + $0x98] sm:$0xff]  ;;  %v6671_v32 = vpack.c.bf16 %v227_v29, %v225_v28  ;;  %v6291_v34 = vld [vmem:[#allocation6 + $0x28c] sm:$0xf]  ;;  %v5516_v39 = vld [vmem:[#allocation6 + $0x288] sm:$0xf] }
  0x40   :  { %1287 = vmatpush.bf16.msrb.mxu2 %v5569_v40  ;;  %1028 = vmatmul.bf16.vlgmr.msra.gmra.mxu3 %v6641_v47  ;;  %v6673_v33 = vpack.c.bf16 %v228_v31, %v226_v30  ;;  %v5518_v35 = vld [vmem:[#allocation6 + $0x298] sm:$0xf0]  ;;  %v6323_v36 = vld [vmem:[#allocation6 + $0x38c] sm:$0xf]  ;;  %v6293_v40 = vld [vmem:[#allocation6 + $0x294] sm:$0xf0] }
  0x41   :  { %1376 = vmatpush.bf16.msrb.mxu3 %v5697_v44  ;;  %v5521_v37 = vor.u32 %v6291_v34, %v5518_v35  ;;  %v5646_v38 = vld [vmem:[#allocation6 + $0x398] sm:$0xf0]  ;;  %v5517_v42 = vor.u32 %v6293_v40, %v5516_v39  ;;  %v5644_v44 = vld [vmem:[#allocation6 + $0x388] sm:$0xf]  ;;  %v6325_v45 = vld [vmem:[#allocation6 + $0x394] sm:$0xf0] }
  0x42   :  { %1110 = vmatpush.bf16.msrb.mxu0 %v5549_v58  ;;  %v5649_v41 = vor.u32 %v6323_v36, %v5646_v38  ;;  %v5645_v46 = vor.u32 %v6325_v45, %v5644_v44  ;;  %v229_v48 = vld [vmem:[#allocation4 + $0xa0] sm:$0xff]  ;;  %v231_v49 = vld [vmem:[#allocation4 + $0xb0] sm:$0xff]  ;;  %v230_v50 = vld [vmem:[#allocation4 + $0xa8] sm:$0xff] }
  0x43   :  { %1199 = vmatpush.bf16.msrb.mxu1 %v5677_v61  ;;  %v232_v51 = vld [vmem:[#allocation4 + $0xb8] sm:$0xff]  ;;  %v6679_v52 = vpack.c.bf16 %v231_v49, %v229_v48  ;;  %v233_v54 = vld [vmem:[#allocation4 + $0xc0] sm:$0xff]  ;;  %v235_v55 = vld [vmem:[#allocation4 + $0xd0] sm:$0xff] }
  0x44   :  { %1288 = vmatpush.bf16.msrb.mxu2 %v5553_v53  ;;  %v6681_v53 = vpack.c.bf16 %v232_v51, %v230_v50  ;;  %v234_v56 = vld [vmem:[#allocation4 + $0xc8] sm:$0xff]  ;;  %v6687_v58 = vpack.c.bf16 %v235_v55, %v233_v54  ;;  %v5502_v61 = vld [vmem:[#allocation6 + $0x278] sm:$0xf0]  ;;  %v6289_v5 = vld [vmem:[#allocation6 + $0x274] sm:$0xf0] }
  0x45   :  { %1377 = vmatpush.bf16.msrb.mxu3 %v5681_v57  ;;  %v236_v57 = vld [vmem:[#allocation4 + $0xd8] sm:$0xff]  ;;  %v6287_v60 = vld [vmem:[#allocation6 + $0x26c] sm:$0xf]  ;;  %v5500_v4 = vld [vmem:[#allocation6 + $0x268] sm:$0xf] }
  0x46   :  { %1111 = vmatpush.bf16.msrb.mxu0 %v5533_v18  ;;  %v6689_v59 = vpack.c.bf16 %v236_v57, %v234_v56  ;;  %v6319_v62 = vld [vmem:[#allocation6 + $0x36c] sm:$0xf]  ;;  %v5505_v63 = vor.u32 %v6287_v60, %v5502_v61  ;;  %v5630_v0 = vld [vmem:[#allocation6 + $0x378] sm:$0xf0]  ;;  %v5628_v6 = vld [vmem:[#allocation6 + $0x368] sm:$0xf]  ;;  %v5501_v7 = vor.u32 %v6289_v5, %v5500_v4 }
  0x47   :  { %1200 = vmatpush.bf16.msrb.mxu1 %v5661_v21  ;;  %v5633_v1 = vor.u32 %v6319_v62, %v5630_v0  ;;  %v6321_v10 = vld [vmem:[#allocation6 + $0x374] sm:$0xf0]  ;;  %v237_v11 = vld [vmem:[#allocation4 + $0xe0] sm:$0xff]  ;;  %v239_v12 = vld [vmem:[#allocation4 + $0xf0] sm:$0xff] }
  0x48   :  { %1289 = vmatpush.bf16.msrb.mxu2 %v5537_v13  ;;  %v5629_v13 = vor.u32 %v6321_v10, %v5628_v6  ;;  %v238_v14 = vld [vmem:[#allocation4 + $0xe8] sm:$0xff]  ;;  %v240_v15 = vld [vmem:[#allocation4 + $0xf8] sm:$0xff]  ;;  %v6695_v16 = vpack.c.bf16 %v239_v12, %v237_v11  ;;  %v241_v18 = vld [vmem:[#allocation4 + $0x100] sm:$0xff] }
  0x49   :  { %1378 = vmatpush.bf16.msrb.mxu3 %v5665_v17  ;;  %v6697_v17 = vpack.c.bf16 %v240_v15, %v238_v14  ;;  %v243_v19 = vld [vmem:[#allocation4 + $0x110] sm:$0xff]  ;;  %v242_v20 = vld [vmem:[#allocation4 + $0x108] sm:$0xff]  ;;  %v244_v21 = vld [vmem:[#allocation4 + $0x118] sm:$0xff] }
  0x4a   :  { %1112 = vmatpush.bf16.msrb.mxu0 %v5517_v42  ;;  %v6703_v22 = vpack.c.bf16 %v243_v19, %v241_v18  ;;  %v6705_v24 = vpack.c.bf16 %v244_v21, %v242_v20  ;;  %v6283_v29 = vld [vmem:[#allocation6 + $0x24c] sm:$0xf]  ;;  %v5486_v30 = vld [vmem:[#allocation6 + $0x258] sm:$0xf0]  ;;  %v5484_v44 = vld [vmem:[#allocation6 + $0x248] sm:$0xf] }
  0x4b   :  { %1201 = vmatpush.bf16.msrb.mxu1 %v5645_v46  ;;  %v6315_v31 = vld [vmem:[#allocation6 + $0x34c] sm:$0xf]  ;;  %v5489_v34 = vor.u32 %v6283_v29, %v5486_v30  ;;  %v5614_v35 = vld [vmem:[#allocation6 + $0x358] sm:$0xf0]  ;;  %v6285_v45 = vld [vmem:[#allocation6 + $0x254] sm:$0xf0] }
  0x4c   :  { %1290 = vmatpush.bf16.msrb.mxu2 %v5521_v37  ;;  %v5617_v37 = vor.u32 %v6315_v31, %v5614_v35  ;;  %v5612_v46 = vld [vmem:[#allocation6 + $0x348] sm:$0xf]  ;;  %v5485_v48 = vor.u32 %v6285_v45, %v5484_v44  ;;  %v6317_v49 = vld [vmem:[#allocation6 + $0x354] sm:$0xf0]  ;;  %v245_v50 = vld [vmem:[#allocation4 + $0x120] sm:$0xff] }
  0x4d   :  { %766 = vmatmul.bf16.gmra.mxu0 %v6647_v2  ;;  %1379 = vmatpush.bf16.msrb.mxu3 %v5649_v41  ;;  %v247_v51 = vld [vmem:[#allocation4 + $0x130] sm:$0xff]  ;;  %v5613_v54 = vor.u32 %v6317_v49, %v5612_v46  ;;  %v246_v55 = vld [vmem:[#allocation4 + $0x128] sm:$0xff]  ;;  %v248_v56 = vld [vmem:[#allocation4 + $0x138] sm:$0xff] }
  0x4e   :  { %855 = vmatmul.bf16.gmra.mxu1 %v6649_v3  ;;  %1113 = vmatpush.bf16.msrb.mxu0 %v5501_v7  ;;  %v6717_v60 = vpack.c.bf16 %v247_v51, %v245_v50  ;;  %v251_v14 = vld [vmem:[#allocation4 + $0x150] sm:$0xff]  ;;  %v250_v15 = vld [vmem:[#allocation4 + $0x148] sm:$0xff]  ;;  %v252_v18 = vld [vmem:[#allocation4 + $0x158] sm:$0xff] }
  0x4f   :  { %944 = vmatmul.bf16.gmra.mxu2 %v6647_v2  ;;  %1202 = vmatpush.bf16.msrb.mxu1 %v5629_v13  ;;  %v249_v13 = vld [vmem:[#allocation4 + $0x140] sm:$0xff]  ;;  %v5470_v35 = vld [vmem:[#allocation6 + $0x238] sm:$0xf0]  ;;  %v5468_v50 = vld [vmem:[#allocation6 + $0x228] sm:$0xf] }
  0x50   :  { %1033 = vmatmul.bf16.gmra.mxu3 %v6649_v3  ;;  %1291 = vmatpush.bf16.msrb.mxu2 %v5505_v63  ;;  %v6719_v63 = vpack.c.bf16 %v248_v56, %v246_v55  ;;  %v6733_v20 = vpack.c.bf16 %v251_v14, %v249_v13  ;;  %v6281_v51 = vld [vmem:[#allocation6 + $0x234] sm:$0xf0] }
  0x51   :  { %1380 = vmatpush.bf16.msrb.mxu3 %v5633_v1  ;;  %v5469_v55 = vor.u32 %v6281_v51, %v5468_v50  ;;  %v6313_v56 = vld [vmem:[#allocation6 + $0x334] sm:$0xf0] }
  0x52   :  { %1114 = vmatpush.bf16.msrb.mxu0 %v5485_v48 }
  0x53   :  { %1203 = vmatpush.bf16.msrb.mxu1 %v5613_v54  ;;  %v5596_v54 = vld [vmem:[#allocation6 + $0x328] sm:$0xf] }
  0x54   :  { %1292 = vmatpush.bf16.msrb.mxu2 %v5489_v34  ;;  %v6279_v34 = vld [vmem:[#allocation6 + $0x22c] sm:$0xf] }
  0x55   :  { %1381 = vmatpush.bf16.msrb.mxu3 %v5617_v37  ;;  %v5473_v37 = vor.u32 %v6279_v34, %v5470_v35 }
  0x56   :  { %1115 = vmatpush.bf16.msrb.mxu0 %v5469_v55 }
  0x58   :  { %1293 = vmatpush.bf16.msrb.mxu2 %v5473_v37  ;;  %v257_v37 = vld [vmem:[#allocation4 + $0x180] sm:$0xff] }
  0x5d   :  { %771 = vmatmul.bf16.gmra.mxu0 %v6655_v8 }
  0x5e   :  { %860 = vmatmul.bf16.gmra.mxu1 %v6657_v9 }
  0x5f   :  { %949 = vmatmul.bf16.gmra.mxu2 %v6655_v8 }
  0x60   :  { %1038 = vmatmul.bf16.gmra.mxu3 %v6657_v9 }
  0x6d   :  { %776 = vmatmul.bf16.gmra.mxu0 %v6663_v26 }
  0x6e   :  { %865 = vmatmul.bf16.gmra.mxu1 %v6665_v27 }
  0x6f   :  { %954 = vmatmul.bf16.gmra.mxu2 %v6663_v26 }
  0x70   :  { %1043 = vmatmul.bf16.gmra.mxu3 %v6665_v27 }
  0x7d   :  { %781 = vmatmul.bf16.gmra.mxu0 %v6671_v32 }
  0x7e   :  { %870 = vmatmul.bf16.gmra.mxu1 %v6673_v33 }
  0x7f   :  { %959 = vmatmul.bf16.gmra.mxu2 %v6671_v32 }
  0x80   :  { %1048 = vmatmul.bf16.gmra.mxu3 %v6673_v33 }
  0x8d   :  { %786 = vmatmul.bf16.gmra.mxu0 %v6679_v52 }
  0x8e   :  { %875 = vmatmul.bf16.gmra.mxu1 %v6681_v53 }
  0x8f   :  { %964 = vmatmul.bf16.gmra.mxu2 %v6679_v52 }
  0x90   :  { %1053 = vmatmul.bf16.gmra.mxu3 %v6681_v53 }
  0x9d   :  { %791 = vmatmul.bf16.gmra.mxu0 %v6687_v58 }
  0x9e   :  { %880 = vmatmul.bf16.gmra.mxu1 %v6689_v59 }
  0x9f   :  { %969 = vmatmul.bf16.gmra.mxu2 %v6687_v58 }
  0xa0   :  { %1058 = vmatmul.bf16.gmra.mxu3 %v6689_v59 }
  0xad   :  { %796 = vmatmul.bf16.gmra.mxu0 %v6695_v16 }
  0xae   :  { %885 = vmatmul.bf16.gmra.mxu1 %v6697_v17 }
  0xaf   :  { %974 = vmatmul.bf16.gmra.mxu2 %v6695_v16 }
  0xb0   :  { %1063 = vmatmul.bf16.gmra.mxu3 %v6697_v17 }
  0xba   :  { %v762_v23 = vpop.f32.mrf.mxu0 }
  0xbb   :  { %v851_v25 = vpop.f32.mrf.mxu1 }
  0xbc   :  { %v6707_v28 = vadd.f32 %v851_v25, %v762_v23  ;;  %v6735_v25 = vpack.c.bf16 %v252_v18, %v250_v15 }
  0xbd   :  { %801 = vmatmul.bf16.gmra.mxu0 %v6703_v22 }
  0xbe   :  { %890 = vmatmul.bf16.gmra.mxu1 %v6705_v24 }
  0xbf   :  { %979 = vmatmul.bf16.gmra.mxu2 %v6703_v22 }
  0xc0   :  { %1068 = vmatmul.bf16.gmra.mxu3 %v6705_v24 }
  0xc2   :  { %v940_v36 = vpop.f32.mrf.mxu2  ;;  %v764_v39 = vpop.f32.mrf.mxu0 }
  0xc3   :  { %v1029_v38 = vpop.f32.mrf.mxu3  ;;  %v853_v41 = vpop.f32.mrf.mxu1 }
  0xc4   :  { %v6713_v40 = vadd.f32 %v1029_v38, %v940_v36  ;;  %v6715_v42 = vadd.f32 %v853_v41, %v764_v39  ;;  %v6311_v36 = vld [vmem:[#allocation6 + $0x32c] sm:$0xf]  ;;  %v5598_v38 = vld [vmem:[#allocation6 + $0x338] sm:$0xf0] }
  0xc5   :  { %v5601_v41 = vor.u32 %v6311_v36, %v5598_v38  ;;  %v259_v38 = vld [vmem:[#allocation4 + $0x190] sm:$0xff] }
  0xc7   :  { %1382 = vmatpush.bf16.msrb.mxu3 %v5601_v41  ;;  %v260_v41 = vld [vmem:[#allocation4 + $0x198] sm:$0xff] }
  0xca   :  { %v942_v57 = vpop.f32.mrf.mxu2  ;;  %v767_v62 = vpop.f32.mrf.mxu0 }
  0xcb   :  { %v1031_v61 = vpop.f32.mrf.mxu3  ;;  %v856_v1 = vpop.f32.mrf.mxu1 }
  0xcc   :  { %v6721_v0 = vadd.f32 %v1031_v61, %v942_v57  ;;  %v6723_v4 = vadd.f32 %v856_v1, %v767_v62  ;;  %v253_v57 = vld [vmem:[#allocation4 + $0x160] sm:$0xff]  ;;  %v255_v61 = vld [vmem:[#allocation4 + $0x170] sm:$0xff]  ;;  %v5597_v62 = vor.u32 %v6313_v56, %v5596_v54  ;;  %v254_v1 = vld [vmem:[#allocation4 + $0x168] sm:$0xff] }
  0xcd   :  { %806 = vmatmul.bf16.gmra.mxu0 %v6717_v60 }
  0xce   :  { %895 = vmatmul.bf16.gmra.mxu1 %v6719_v63 }
  0xcf   :  { %984 = vmatmul.bf16.gmra.mxu2 %v6717_v60  ;;  %1204 = vmatpush.bf16.msrb.mxu1 %v5597_v62  ;;  %v6307_v62 = vld [vmem:[#allocation6 + $0x30c] sm:$0xf] }
  0xd0   :  { %1073 = vmatmul.bf16.gmra.mxu3 %v6719_v63 }
  0xd2   :  { %v945_v5 = vpop.f32.mrf.mxu2  ;;  %v769_v7 = vpop.f32.mrf.mxu0 }
  0xd3   :  { %v1034_v6 = vpop.f32.mrf.mxu3  ;;  %v858_v11 = vpop.f32.mrf.mxu1 }
  0xd4   :  { %v6729_v10 = vadd.f32 %v1034_v6, %v945_v5  ;;  %v6731_v12 = vadd.f32 %v858_v11, %v769_v7  ;;  %v256_v5 = vld [vmem:[#allocation4 + $0x178] sm:$0xff]  ;;  %v6749_v7 = vpack.c.bf16 %v255_v61, %v253_v57  ;;  %v6275_v57 = vld [vmem:[#allocation6 + $0x20c] sm:$0xf] }
  0xd5   :  { %v6751_v14 = vpack.c.bf16 %v256_v5, %v254_v1  ;;  %v5454_v61 = vld [vmem:[#allocation6 + $0x218] sm:$0xf0] }
  0xd6   :  { %v5457_v1 = vor.u32 %v6275_v57, %v5454_v61  ;;  %v5582_v5 = vld [vmem:[#allocation6 + $0x318] sm:$0xf0] }
  0xd7   :  { %v264_v57 = vld [vmem:[#allocation4 + $0x1b8] sm:$0xff] }
  0xd8   :  { %1294 = vmatpush.bf16.msrb.mxu2 %v5457_v1 }
  0xda   :  { %v947_v19 = vpop.f32.mrf.mxu2  ;;  %v772_v23 = vpop.f32.mrf.mxu0 }
  0xdb   :  { %v1036_v21 = vpop.f32.mrf.mxu3  ;;  %v861_v30 = vpop.f32.mrf.mxu1 }
  0xdc   :  { %v6737_v29 = vadd.f32 %v1036_v21, %v947_v19  ;;  %v6739_v31 = vadd.f32 %v861_v30, %v772_v23 }
  0xdd   :  { %811 = vmatmul.bf16.gmra.mxu0 %v6733_v20 }
  0xde   :  { %900 = vmatmul.bf16.gmra.mxu1 %v6735_v25 }
  0xdf   :  { %989 = vmatmul.bf16.gmra.mxu2 %v6733_v20 }
  0xe0   :  { %1078 = vmatmul.bf16.gmra.mxu3 %v6735_v25 }
  0xe2   :  { %v950_v39 = vpop.f32.mrf.mxu2  ;;  %v774_v45 = vpop.f32.mrf.mxu0 }
  0xe3   :  { %v1039_v44 = vpop.f32.mrf.mxu3  ;;  %v863_v48 = vpop.f32.mrf.mxu1 }
  0xe4   :  { %v6745_v46 = vadd.f32 %v1039_v44, %v950_v39  ;;  %v6747_v49 = vadd.f32 %v863_v48, %v774_v45  ;;  %v258_v39 = vld [vmem:[#allocation4 + $0x188] sm:$0xff]  ;;  %v6765_v45 = vpack.c.bf16 %v259_v38, %v257_v37  ;;  %v6277_v37 = vld [vmem:[#allocation6 + $0x214] sm:$0xf0] }
  0xe5   :  { %v6767_v51 = vpack.c.bf16 %v260_v41, %v258_v39  ;;  %v5580_v38 = vld [vmem:[#allocation6 + $0x308] sm:$0xf]  ;;  %v6309_v41 = vld [vmem:[#allocation6 + $0x314] sm:$0xf0] }
  0xea   :  { %v952_v6 = vpop.f32.mrf.mxu2  ;;  %v777_v13 = vpop.f32.mrf.mxu0 }
  0xeb   :  { %v1041_v11 = vpop.f32.mrf.mxu3  ;;  %v866_v18 = vpop.f32.mrf.mxu1 }
  0xec   :  { %v6753_v15 = vadd.f32 %v1041_v11, %v952_v6  ;;  %v6755_v19 = vadd.f32 %v866_v18, %v777_v13  ;;  %v5585_v11 = vor.u32 %v6307_v62, %v5582_v5 }
  0xed   :  { %816 = vmatmul.bf16.gmra.mxu0 %v6749_v7 }
  0xee   :  { %905 = vmatmul.bf16.gmra.mxu1 %v6751_v14  ;;  %1383 = vmatpush.bf16.msrb.mxu3 %v5585_v11 }
  0xef   :  { %994 = vmatmul.bf16.gmra.mxu2 %v6749_v7 }
  0xf0   :  { %1083 = vmatmul.bf16.gmra.mxu3 %v6751_v14 }
  0xf2   :  { %v955_v21 = vpop.f32.mrf.mxu2  ;;  %v779_v30 = vpop.f32.mrf.mxu0 }
  0xf3   :  { %v1044_v23 = vpop.f32.mrf.mxu3  ;;  %v868_v35 = vpop.f32.mrf.mxu1 }
  0xf4   :  { %v6761_v34 = vadd.f32 %v1044_v23, %v955_v21  ;;  %v6763_v36 = vadd.f32 %v868_v35, %v779_v30  ;;  %v5452_v35 = vld [vmem:[#allocation6 + $0x208] sm:$0xf] }
  0xf5   :  { %v5453_v39 = vor.u32 %v6277_v37, %v5452_v35 }
  0xf6   :  { %10965 = vst [vmem:[#allocation16_spill] sm:$0xff] %v6763_v36  ;;  %v272_v36 = vld [vmem:[#allocation4 + $0x1f8] sm:$0xff] }
  0xf7   :  { %1116 = vmatpush.bf16.msrb.mxu0 %v5453_v39 }
  0xfa   :  { %v957_v44 = vpop.f32.mrf.mxu2  ;;  %v782_v50 = vpop.f32.mrf.mxu0 }
  0xfb   :  { %v1046_v48 = vpop.f32.mrf.mxu3  ;;  %v871_v55 = vpop.f32.mrf.mxu1 }
  0xfc   :  { %v6769_v54 = vadd.f32 %v1046_v48, %v957_v44  ;;  %v6771_v56 = vadd.f32 %v871_v55, %v782_v50  ;;  %v261_v44 = vld [vmem:[#allocation4 + $0x1a0] sm:$0xff]  ;;  %v263_v48 = vld [vmem:[#allocation4 + $0x1b0] sm:$0xff]  ;;  %v5581_v50 = vor.u32 %v6309_v41, %v5580_v38  ;;  %v262_v55 = vld [vmem:[#allocation4 + $0x1a8] sm:$0xff] }
  0xfd   :  { %821 = vmatmul.bf16.gmra.mxu0 %v6765_v45  ;;  %v6781_v62 = vpack.c.bf16 %v263_v48, %v261_v44  ;;  %v265_v44 = vld [vmem:[#allocation4 + $0x1c0] sm:$0xff]  ;;  %v267_v48 = vld [vmem:[#allocation4 + $0x1d0] sm:$0xff] }
  0xfe   :  { %10966 = vst [vmem:[#allocation17_spill] sm:$0xff] %v6769_v54  ;;  %910 = vmatmul.bf16.gmra.mxu1 %v6767_v51  ;;  %v271_v54 = vld [vmem:[#allocation4 + $0x1f0] sm:$0xff] }
  0xff   :  { %10967 = vst [vmem:[#allocation18_spill] sm:$0xff] %v6771_v56  ;;  %999 = vmatmul.bf16.gmra.mxu2 %v6765_v45  ;;  %1205 = vmatpush.bf16.msrb.mxu1 %v5581_v50  ;;  %v266_v50 = vld [vmem:[#allocation4 + $0x1c8] sm:$0xff]  ;;  %v269_v56 = vld [vmem:[#allocation4 + $0x1e0] sm:$0xff] }
 0x100   :  { %1088 = vmatmul.bf16.gmra.mxu3 %v6767_v51 }
 0x102   :  { %v960_v6 = vpop.f32.mrf.mxu2  ;;  %v784_v18 = vpop.f32.mrf.mxu0 }
 0x103   :  { %v1049_v13 = vpop.f32.mrf.mxu3  ;;  %v873_v23 = vpop.f32.mrf.mxu1 }
 0x104   :  { %v6777_v21 = vadd.f32 %v1049_v13, %v960_v6  ;;  %v6779_v30 = vadd.f32 %v873_v23, %v784_v18  ;;  %v6783_v6 = vpack.c.bf16 %v264_v57, %v262_v55  ;;  %v268_v55 = vld [vmem:[#allocation4 + $0x1d8] sm:$0xff] }
 0x106   :  { %10968 = vst [vmem:[#allocation19_spill] sm:$0xff] %v6777_v21  ;;  %v6272_v21 = vld [vmem:[#allocation6 + $0x1ec] sm:$0xf0] }
 0x107   :  { %10969 = vst [vmem:[#allocation20_spill] sm:$0xff] %v6779_v30 }
 0x10a   :  { %v962_v61 = vpop.f32.mrf.mxu2  ;;  %v787_v5 = vpop.f32.mrf.mxu0 }
 0x10b   :  { %v1051_v1 = vpop.f32.mrf.mxu3  ;;  %v876_v13 = vpop.f32.mrf.mxu1 }
 0x10c   :  { %v6785_v11 = vadd.f32 %v1051_v1, %v962_v61  ;;  %v6787_v18 = vadd.f32 %v876_v13, %v787_v5  ;;  %v6797_v61 = vpack.c.bf16 %v267_v48, %v265_v44  ;;  %v6799_v13 = vpack.c.bf16 %v268_v55, %v266_v50  ;;  %v5942_v44 = vld [vmem:[#allocation6 + $0x1f0] sm:$0xf0] }
 0x10d   :  { %826 = vmatmul.bf16.gmra.mxu0 %v6781_v62 }
 0x10e   :  { %10970 = vst [vmem:[#allocation21_spill] sm:$0xff] %v6785_v11  ;;  %915 = vmatmul.bf16.gmra.mxu1 %v6783_v6 }
 0x10f   :  { %10971 = vst [vmem:[#allocation22_spill] sm:$0xff] %v6787_v18  ;;  %1004 = vmatmul.bf16.gmra.mxu2 %v6781_v62 }
 0x110   :  { %1093 = vmatmul.bf16.gmra.mxu3 %v6783_v6 }
 0x112   :  { %v965_v23 = vpop.f32.mrf.mxu2  ;;  %v789_v37 = vpop.f32.mrf.mxu0 }
 0x113   :  { %v1054_v35 = vpop.f32.mrf.mxu3  ;;  %v878_v39 = vpop.f32.mrf.mxu1 }
 0x114   :  { %v6793_v38 = vadd.f32 %v1054_v35, %v965_v23  ;;  %v6795_v41 = vadd.f32 %v878_v39, %v789_v37  ;;  %v6238_v23 = vld [vmem:[#allocation6 + $0xe4] sm:$0xf]  ;;  %v5814_v35 = vld [vmem:[#allocation6 + $0xf0] sm:$0xf0] }
 0x115   :  { %v6270_v37 = vld [vmem:[#allocation6 + $0x1e4] sm:$0xf]  ;;  %v5817_v39 = vor.u32 %v6238_v23, %v5814_v35  ;;  %v270_v35 = vld [vmem:[#allocation4 + $0x1e8] sm:$0xff] }
 0x116   :  { %10972 = vst [vmem:[#allocation23_spill] sm:$0xff] %v6793_v38  ;;  %v5945_v50 = vor.u32 %v6270_v37, %v5942_v44 }
 0x117   :  { %10973 = vst [vmem:[#allocation24_spill] sm:$0xff] %v6795_v41  ;;  %1963 = vmatpush.bf16.msra.mxu2 %v5817_v39  ;;  %v5940_v41 = vld [vmem:[#allocation6 + $0x1e0] sm:$0xf]  ;;  %v6813_v39 = vpack.c.bf16 %v271_v54, %v269_v56 }
 0x118   :  { %2052 = vmatpush.bf16.msra.mxu3 %v5945_v50  ;;  %v5941_v23 = vor.u32 %v6272_v21, %v5940_v41  ;;  %v6815_v50 = vpack.c.bf16 %v272_v36, %v270_v35 }
 0x11a   :  { %v967_v57 = vpop.f32.mrf.mxu2  ;;  %v792_v5 = vpop.f32.mrf.mxu0  ;;  %1874 = vmatpush.bf16.msra.mxu1 %v5941_v23 }
 0x11b   :  { %v1056_v1 = vpop.f32.mrf.mxu3  ;;  %v881_v11 = vpop.f32.mrf.mxu1 }
 0x11c   :  { %v6801_v18 = vadd.f32 %v1056_v1, %v967_v57  ;;  %v6803_v30 = vadd.f32 %v881_v11, %v792_v5 }
 0x11d   :  { %831 = vmatmul.bf16.gmra.mxu0 %v6797_v61 }
 0x11e   :  { %10974 = vst [vmem:[#allocation25_spill] sm:$0xff] %v6801_v18  ;;  %920 = vmatmul.bf16.gmra.mxu1 %v6799_v13  ;;  %v6240_v18 = vld [vmem:[#allocation6 + $0xec] sm:$0xf0] }
 0x11f   :  { %10975 = vst [vmem:[#allocation26_spill] sm:$0xff] %v6803_v30  ;;  %1009 = vmatmul.bf16.gmra.mxu2 %v6797_v61  ;;  %v5812_v30 = vld [vmem:[#allocation6 + $0xe0] sm:$0xf] }
 0x120   :  { %1098 = vmatmul.bf16.gmra.mxu3 %v6799_v13  ;;  %v5813_v38 = vor.u32 %v6240_v18, %v5812_v30 }
 0x122   :  { %v970_v48 = vpop.f32.mrf.mxu2  ;;  %v794_v57 = vpop.f32.mrf.mxu0  ;;  %1785 = vmatpush.bf16.msra.mxu0 %v5813_v38 }
 0x123   :  { %v1059_v55 = vpop.f32.mrf.mxu3  ;;  %v883_v1 = vpop.f32.mrf.mxu1 }
 0x124   :  { %v6809_v11 = vadd.f32 %v1059_v55, %v970_v48  ;;  %v6811_v5 = vadd.f32 %v883_v1, %v794_v57 }
 0x12a   :  { %v972_v37 = vpop.f32.mrf.mxu2  ;;  %v797_v48 = vpop.f32.mrf.mxu0 }
 0x12b   :  { %v1061_v44 = vpop.f32.mrf.mxu3  ;;  %v886_v57 = vpop.f32.mrf.mxu1 }
 0x12c   :  { %v6817_v55 = vadd.f32 %v1061_v44, %v972_v37  ;;  %v6819_v1 = vadd.f32 %v886_v57, %v797_v48  ;;  %v6234_v48 = vld [vmem:[#allocation6 + $0xc4] sm:$0xf]  ;;  %v5798_v57 = vld [vmem:[#allocation6 + $0xd0] sm:$0xf0] }
 0x12d   :  { %836 = vmatmul.bf16.gmra.mxu0 %v6813_v39 }
 0x12e   :  { %10976 = vst [vmem:[#allocation27_spill] sm:$0xff] %v6817_v55  ;;  %925 = vmatmul.bf16.gmra.mxu1 %v6815_v50 }
 0x12f   :  { %10977 = vst [vmem:[#allocation28_spill] sm:$0xff] %v6819_v1  ;;  %1014 = vmatmul.bf16.gmra.mxu2 %v6813_v39  ;;  %v6268_v1 = vld [vmem:[#allocation6 + $0x1cc] sm:$0xf0] }
 0x130   :  { %1103 = vmatmul.bf16.gmra.mxu3 %v6815_v50 }
 0x132   :  { %v975_v21 = vpop.f32.mrf.mxu2  ;;  %v799_v56 = vpop.f32.mrf.mxu0 }
 0x133   :  { %v1064_v54 = vpop.f32.mrf.mxu3  ;;  %v888_v36 = vpop.f32.mrf.mxu1 }
 0x134   :  { %v6825_v30 = vadd.f32 %v1064_v54, %v975_v21  ;;  %v6827_v18 = vadd.f32 %v888_v36, %v799_v56  ;;  %v6266_v21 = vld [vmem:[#allocation6 + $0x1c4] sm:$0xf]  ;;  %v5801_v54 = vor.u32 %v6234_v48, %v5798_v57  ;;  %v5926_v56 = vld [vmem:[#allocation6 + $0x1d0] sm:$0xf0] }
 0x136   :  { %10978 = vst [vmem:[#allocation29_spill] sm:$0xff] %v6825_v30  ;;  %1964 = vmatpush.bf16.msra.mxu2 %v5801_v54  ;;  %v5924_v30 = vld [vmem:[#allocation6 + $0x1c0] sm:$0xf] }
 0x137   :  { %10979 = vst [vmem:[#allocation30_spill] sm:$0xff] %v6827_v18  ;;  %v5929_v18 = vor.u32 %v6266_v21, %v5926_v56  ;;  %v5925_v55 = vor.u32 %v6268_v1, %v5924_v30 }
 0x139   :  { %2053 = vmatpush.bf16.msra.mxu3 %v5929_v18  ;;  %1875 = vmatpush.bf16.msra.mxu1 %v5925_v55 }
 0x13a   :  { %v977_v38 = vpop.f32.mrf.mxu2  ;;  %v802_v23 = vpop.f32.mrf.mxu0 }
 0x13b   :  { %v1066_v41 = vpop.f32.mrf.mxu3  ;;  %v891_v37 = vpop.f32.mrf.mxu1 }
 0x13c   :  { %v6829_v35 = vadd.f32 %v1066_v41, %v977_v38  ;;  %v6831_v44 = vadd.f32 %v891_v37, %v802_v23 }
 0x13d   :  { %1117 = vmatmul.bf16.vlgmr.msrb.gmra.mxu0 %v6639_v43 }
 0x13e   :  { %10980 = vst [vmem:[#allocation31_spill] sm:$0xff] %v6829_v35  ;;  %1206 = vmatmul.bf16.vlgmr.msrb.gmra.mxu1 %v6641_v47  ;;  %v5796_v35 = vld [vmem:[#allocation6 + $0xc0] sm:$0xf] }
 0x13f   :  { %10981 = vst [vmem:[#allocation32_spill] sm:$0xff] %v6831_v44  ;;  %1295 = vmatmul.bf16.vlgmr.msrb.gmra.mxu2 %v6639_v43  ;;  %v6236_v43 = vld [vmem:[#allocation6 + $0xcc] sm:$0xf0] }
 0x140   :  { %1384 = vmatmul.bf16.vlgmr.msrb.gmra.mxu3 %v6641_v47  ;;  %v5797_v47 = vor.u32 %v6236_v43, %v5796_v35 }
 0x142   :  { %v980_v36 = vpop.f32.mrf.mxu2  ;;  %v804_v41 = vpop.f32.mrf.mxu0  ;;  %1786 = vmatpush.bf16.msra.mxu0 %v5797_v47 }
 0x143   :  { %v1069_v38 = vpop.f32.mrf.mxu3  ;;  %v893_v37 = vpop.f32.mrf.mxu1 }
 0x144   :  { %v6837_v23 = vadd.f32 %v1069_v38, %v980_v36  ;;  %v6839_v44 = vadd.f32 %v893_v37, %v804_v41 }
 0x14a   :  { %v982_v48 = vpop.f32.mrf.mxu2  ;;  %v807_v21 = vpop.f32.mrf.mxu0 }
 0x14b   :  { %v1071_v57 = vpop.f32.mrf.mxu3  ;;  %v896_v54 = vpop.f32.mrf.mxu1 }
 0x14c   :  { %v6841_v56 = vadd.f32 %v1071_v57, %v982_v48  ;;  %v6843_v36 = vadd.f32 %v896_v54, %v807_v21  ;;  %v6262_v21 = vld [vmem:[#allocation6 + $0x1a4] sm:$0xf] }
 0x14d   :  { %1122 = vmatmul.bf16.gmra.mxu0 %v6647_v2 }
 0x14e   :  { %1211 = vmatmul.bf16.gmra.mxu1 %v6649_v3 }
 0x14f   :  { %1300 = vmatmul.bf16.gmra.mxu2 %v6647_v2  ;;  %v6230_v2 = vld [vmem:[#allocation6 + $0xa4] sm:$0xf] }
 0x150   :  { %1389 = vmatmul.bf16.gmra.mxu3 %v6649_v3  ;;  %v5782_v3 = vld [vmem:[#allocation6 + $0xb0] sm:$0xf0] }
 0x151   :  { %v5785_v54 = vor.u32 %v6230_v2, %v5782_v3 }
 0x152   :  { %v985_v18 = vpop.f32.mrf.mxu2  ;;  %v809_v30 = vpop.f32.mrf.mxu0 }
 0x153   :  { %v1074_v1 = vpop.f32.mrf.mxu3  ;;  %v898_v35 = vpop.f32.mrf.mxu1  ;;  %1965 = vmatpush.bf16.msra.mxu2 %v5785_v54 }
 0x154   :  { %v6849_v55 = vadd.f32 %v1074_v1, %v985_v18  ;;  %v6851_v38 = vadd.f32 %v898_v35, %v809_v30  ;;  %v5910_v18 = vld [vmem:[#allocation6 + $0x1b0] sm:$0xf0] }
 0x155   :  { %v5913_v30 = vor.u32 %v6262_v21, %v5910_v18 }
 0x156   :  { %10982 = vst [vmem:[#allocation33_spill] sm:$0xff] %v6849_v55 }
 0x157   :  { %10983 = vst [vmem:[#allocation34_spill] sm:$0xff] %v6851_v38  ;;  %2054 = vmatpush.bf16.msra.mxu3 %v5913_v30  ;;  %v6264_v38 = vld [vmem:[#allocation6 + $0x1ac] sm:$0xf0] }
 0x15a   :  { %v987_v41 = vpop.f32.mrf.mxu2  ;;  %v812_v43 = vpop.f32.mrf.mxu0 }
 0x15b   :  { %v1076_v37 = vpop.f32.mrf.mxu3  ;;  %v901_v48 = vpop.f32.mrf.mxu1 }
 0x15c   :  { %v6853_v47 = vadd.f32 %v1076_v37, %v987_v41  ;;  %v6855_v57 = vadd.f32 %v901_v48, %v812_v43 }
 0x15d   :  { %1127 = vmatmul.bf16.gmra.mxu0 %v6655_v8 }
 0x15e   :  { %10984 = vst [vmem:[#allocation35_spill] sm:$0xff] %v6853_v47  ;;  %1216 = vmatmul.bf16.gmra.mxu1 %v6657_v9  ;;  %v5908_v47 = vld [vmem:[#allocation6 + $0x1a0] sm:$0xf] }
 0x15f   :  { %10985 = vst [vmem:[#allocation36_spill] sm:$0xff] %v6855_v57  ;;  %1305 = vmatmul.bf16.gmra.mxu2 %v6655_v8  ;;  %v5780_v57 = vld [vmem:[#allocation6 + $0xa0] sm:$0xf]  ;;  %v6232_v8 = vld [vmem:[#allocation6 + $0xac] sm:$0xf0]  ;;  %v5909_v55 = vor.u32 %v6264_v38, %v5908_v47 }
 0x160   :  { %1394 = vmatmul.bf16.gmra.mxu3 %v6657_v9  ;;  %v5781_v9 = vor.u32 %v6232_v8, %v5780_v57 }
 0x161   :  { %1876 = vmatpush.bf16.msra.mxu1 %v5909_v55 }
 0x162   :  { %v990_v1 = vpop.f32.mrf.mxu2  ;;  %v814_v41 = vpop.f32.mrf.mxu0  ;;  %1787 = vmatpush.bf16.msra.mxu0 %v5781_v9 }
 0x163   :  { %v1079_v35 = vpop.f32.mrf.mxu3  ;;  %v903_v43 = vpop.f32.mrf.mxu1 }
 0x164   :  { %v6861_v37 = vadd.f32 %v1079_v35, %v990_v1  ;;  %v6863_v48 = vadd.f32 %v903_v43, %v814_v41 }
 0x16a   :  { %v992_v2 = vpop.f32.mrf.mxu2  ;;  %v817_v21 = vpop.f32.mrf.mxu0 }
 0x16b   :  { %v1081_v3 = vpop.f32.mrf.mxu3  ;;  %v906_v54 = vpop.f32.mrf.mxu1 }
 0x16c   :  { %v6865_v18 = vadd.f32 %v1081_v3, %v992_v2  ;;  %v6867_v1 = vadd.f32 %v906_v54, %v817_v21  ;;  %v6258_v21 = vld [vmem:[#allocation6 + $0x184] sm:$0xf] }
 0x16d   :  { %1132 = vmatmul.bf16.gmra.mxu0 %v6663_v26 }
 0x16e   :  { %1221 = vmatmul.bf16.gmra.mxu1 %v6665_v27 }
 0x16f   :  { %1310 = vmatmul.bf16.gmra.mxu2 %v6663_v26  ;;  %v6226_v26 = vld [vmem:[#allocation6 + $0x84] sm:$0xf] }
 0x170   :  { %1399 = vmatmul.bf16.gmra.mxu3 %v6665_v27  ;;  %v5766_v27 = vld [vmem:[#allocation6 + $0x90] sm:$0xf0] }
 0x171   :  { %v5769_v54 = vor.u32 %v6226_v26, %v5766_v27 }
 0x172   :  { %v995_v57 = vpop.f32.mrf.mxu2  ;;  %v819_v47 = vpop.f32.mrf.mxu0 }
 0x173   :  { %v1084_v38 = vpop.f32.mrf.mxu3  ;;  %v908_v30 = vpop.f32.mrf.mxu1  ;;  %1966 = vmatpush.bf16.msra.mxu2 %v5769_v54 }
 0x174   :  { %v6873_v55 = vadd.f32 %v1084_v38, %v995_v57  ;;  %v6875_v35 = vadd.f32 %v908_v30, %v819_v47  ;;  %v5894_v57 = vld [vmem:[#allocation6 + $0x190] sm:$0xf0] }
 0x175   :  { %v5897_v47 = vor.u32 %v6258_v21, %v5894_v57 }
 0x176   :  { %10986 = vst [vmem:[#allocation37_spill] sm:$0xff] %v6873_v55 }
 0x177   :  { %10987 = vst [vmem:[#allocation38_spill] sm:$0xff] %v6875_v35  ;;  %2055 = vmatpush.bf16.msra.mxu3 %v5897_v47  ;;  %v6260_v35 = vld [vmem:[#allocation6 + $0x18c] sm:$0xf0] }
 0x17a   :  { %v997_v41 = vpop.f32.mrf.mxu2  ;;  %v822_v8 = vpop.f32.mrf.mxu0 }
 0x17b   :  { %v1086_v43 = vpop.f32.mrf.mxu3  ;;  %v911_v2 = vpop.f32.mrf.mxu1 }
 0x17c   :  { %v6877_v9 = vadd.f32 %v1086_v43, %v997_v41  ;;  %v6879_v3 = vadd.f32 %v911_v2, %v822_v8 }
 0x17d   :  { %1137 = vmatmul.bf16.gmra.mxu0 %v6671_v32 }
 0x17e   :  { %10988 = vst [vmem:[#allocation39_spill] sm:$0xff] %v6877_v9  ;;  %1226 = vmatmul.bf16.gmra.mxu1 %v6673_v33  ;;  %v5892_v9 = vld [vmem:[#allocation6 + $0x180] sm:$0xf] }
 0x17f   :  { %10989 = vst [vmem:[#allocation40_spill] sm:$0xff] %v6879_v3  ;;  %1315 = vmatmul.bf16.gmra.mxu2 %v6671_v32  ;;  %v5764_v3 = vld [vmem:[#allocation6 + $0x80] sm:$0xf]  ;;  %v6228_v32 = vld [vmem:[#allocation6 + $0x8c] sm:$0xf0]  ;;  %v5893_v55 = vor.u32 %v6260_v35, %v5892_v9 }
 0x180   :  { %1404 = vmatmul.bf16.gmra.mxu3 %v6673_v33  ;;  %v5765_v33 = vor.u32 %v6228_v32, %v5764_v3 }
 0x181   :  { %1877 = vmatpush.bf16.msra.mxu1 %v5893_v55 }
 0x182   :  { %v1000_v38 = vpop.f32.mrf.mxu2  ;;  %v824_v41 = vpop.f32.mrf.mxu0  ;;  %1788 = vmatpush.bf16.msra.mxu0 %v5765_v33 }
 0x183   :  { %v1089_v30 = vpop.f32.mrf.mxu3  ;;  %v913_v8 = vpop.f32.mrf.mxu1 }
 0x184   :  { %v6885_v43 = vadd.f32 %v1089_v30, %v1000_v38  ;;  %v6887_v2 = vadd.f32 %v913_v8, %v824_v41 }
 0x18a   :  { %v1002_v26 = vpop.f32.mrf.mxu2  ;;  %v827_v21 = vpop.f32.mrf.mxu0 }
 0x18b   :  { %v1091_v27 = vpop.f32.mrf.mxu3  ;;  %v916_v54 = vpop.f32.mrf.mxu1 }
 0x18c   :  { %v6889_v57 = vadd.f32 %v1091_v27, %v1002_v26  ;;  %v6891_v38 = vadd.f32 %v916_v54, %v827_v21  ;;  %v6254_v21 = vld [vmem:[#allocation6 + $0x164] sm:$0xf] }
 0x18d   :  { %1142 = vmatmul.bf16.gmra.mxu0 %v6679_v52 }
 0x18e   :  { %10990 = vst [vmem:[#allocation41_spill] sm:$0xff] %v6889_v57  ;;  %1231 = vmatmul.bf16.gmra.mxu1 %v6681_v53 }
 0x18f   :  { %10991 = vst [vmem:[#allocation42_spill] sm:$0xff] %v6891_v38  ;;  %1320 = vmatmul.bf16.gmra.mxu2 %v6679_v52  ;;  %v6222_v52 = vld [vmem:[#allocation6 + $0x64] sm:$0xf] }
 0x190   :  { %1409 = vmatmul.bf16.gmra.mxu3 %v6681_v53  ;;  %v5750_v53 = vld [vmem:[#allocation6 + $0x70] sm:$0xf0] }
 0x191   :  { %v5753_v54 = vor.u32 %v6222_v52, %v5750_v53 }
 0x192   :  { %v1005_v3 = vpop.f32.mrf.mxu2  ;;  %v829_v9 = vpop.f32.mrf.mxu0 }
 0x193   :  { %v1094_v35 = vpop.f32.mrf.mxu3  ;;  %v918_v47 = vpop.f32.mrf.mxu1  ;;  %1967 = vmatpush.bf16.msra.mxu2 %v5753_v54 }
 0x194   :  { %v6897_v55 = vadd.f32 %v1094_v35, %v1005_v3  ;;  %v6899_v30 = vadd.f32 %v918_v47, %v829_v9  ;;  %v5878_v3 = vld [vmem:[#allocation6 + $0x170] sm:$0xf0] }
 0x195   :  { %v5881_v9 = vor.u32 %v6254_v21, %v5878_v3 }
 0x196   :  { %10992 = vst [vmem:[#allocation43_spill] sm:$0xff] %v6897_v55 }
 0x197   :  { %10993 = vst [vmem:[#allocation44_spill] sm:$0xff] %v6899_v30  ;;  %2056 = vmatpush.bf16.msra.mxu3 %v5881_v9  ;;  %v6256_v30 = vld [vmem:[#allocation6 + $0x16c] sm:$0xf0] }
 0x19a   :  { %v1007_v41 = vpop.f32.mrf.mxu2  ;;  %v832_v32 = vpop.f32.mrf.mxu0 }
 0x19b   :  { %v1096_v8 = vpop.f32.mrf.mxu3  ;;  %v921_v26 = vpop.f32.mrf.mxu1 }
 0x19c   :  { %v6901_v33 = vadd.f32 %v1096_v8, %v1007_v41  ;;  %v6903_v27 = vadd.f32 %v921_v26, %v832_v32 }
 0x19d   :  { %1147 = vmatmul.bf16.gmra.mxu0 %v6687_v58 }
 0x19e   :  { %10994 = vst [vmem:[#allocation45_spill] sm:$0xff] %v6901_v33  ;;  %1236 = vmatmul.bf16.gmra.mxu1 %v6689_v59  ;;  %v5876_v33 = vld [vmem:[#allocation6 + $0x160] sm:$0xf] }
 0x19f   :  { %10995 = vst [vmem:[#allocation46_spill] sm:$0xff] %v6903_v27  ;;  %1325 = vmatmul.bf16.gmra.mxu2 %v6687_v58  ;;  %v5748_v27 = vld [vmem:[#allocation6 + $0x60] sm:$0xf]  ;;  %v6224_v58 = vld [vmem:[#allocation6 + $0x6c] sm:$0xf0]  ;;  %v5877_v55 = vor.u32 %v6256_v30, %v5876_v33 }
 0x1a0   :  { %1414 = vmatmul.bf16.gmra.mxu3 %v6689_v59  ;;  %v5749_v59 = vor.u32 %v6224_v58, %v5748_v27 }
 0x1a1   :  { %1878 = vmatpush.bf16.msra.mxu1 %v5877_v55 }
 0x1a2   :  { %v1010_v35 = vpop.f32.mrf.mxu2  ;;  %v834_v41 = vpop.f32.mrf.mxu0  ;;  %1789 = vmatpush.bf16.msra.mxu0 %v5749_v59 }
 0x1a3   :  { %v1099_v47 = vpop.f32.mrf.mxu3  ;;  %v923_v32 = vpop.f32.mrf.mxu1 }
 0x1a4   :  { %v6909_v8 = vadd.f32 %v1099_v47, %v1010_v35  ;;  %v6911_v26 = vadd.f32 %v923_v32, %v834_v41 }
 0x1a6   :  { %10996 = vst [vmem:[#allocation47_spill] sm:$0xff] %v6909_v8  ;;  %v166_v8 = vld [vmem:[#allocation2 + $0x1a8] sm:$0xff] }
 0x1a7   :  { %10997 = vst [vmem:[#allocation48_spill] sm:$0xff] %v6911_v26  ;;  %v167_v26 = vld [vmem:[#allocation2 + $0x1b0] sm:$0xff] }
 0x1aa   :  { %v1012_v52 = vpop.f32.mrf.mxu2  ;;  %v837_v21 = vpop.f32.mrf.mxu0 }
 0x1ab   :  { %v1101_v53 = vpop.f32.mrf.mxu3  ;;  %v926_v54 = vpop.f32.mrf.mxu1 }
 0x1ac   :  { %v6913_v3 = vadd.f32 %v1101_v53, %v1012_v52  ;;  %v6915_v35 = vadd.f32 %v926_v54, %v837_v21  ;;  %v6250_v21 = vld [vmem:[#allocation6 + $0x144] sm:$0xf] }
 0x1ad   :  { %1152 = vmatmul.bf16.gmra.mxu0 %v6695_v16 }
 0x1ae   :  { %10998 = vst [vmem:[#allocation49_spill] sm:$0xff] %v6913_v3  ;;  %1241 = vmatmul.bf16.gmra.mxu1 %v6697_v17 }
 0x1af   :  { %10999 = vst [vmem:[#allocation50_spill] sm:$0xff] %v6915_v35  ;;  %1330 = vmatmul.bf16.gmra.mxu2 %v6695_v16  ;;  %v6218_v16 = vld [vmem:[#allocation6 + $0x44] sm:$0xf]  ;;  %v5884_v35 = vld [vmem:[#allocation6 + $0x168] sm:$0xf] }
 0x1b0   :  { %1419 = vmatmul.bf16.gmra.mxu3 %v6697_v17  ;;  %v5734_v17 = vld [vmem:[#allocation6 + $0x50] sm:$0xf0] }
 0x1b1   :  { %v5737_v54 = vor.u32 %v6218_v16, %v5734_v17 }
 0x1b2   :  { %v1015_v27 = vpop.f32.mrf.mxu2  ;;  %v839_v33 = vpop.f32.mrf.mxu0 }
 0x1b3   :  { %v1104_v30 = vpop.f32.mrf.mxu3  ;;  %v928_v9 = vpop.f32.mrf.mxu1  ;;  %1968 = vmatpush.bf16.msra.mxu2 %v5737_v54 }
 0x1b4   :  { %v6921_v55 = vadd.f32 %v1104_v30, %v1015_v27  ;;  %v6923_v47 = vadd.f32 %v928_v9, %v839_v33  ;;  %v5862_v27 = vld [vmem:[#allocation6 + $0x150] sm:$0xf0] }
 0x1b5   :  { %v5865_v33 = vor.u32 %v6250_v21, %v5862_v27 }
 0x1b6   :  { %11000 = vst [vmem:[#allocation51_spill] sm:$0xff] %v6921_v55 }
 0x1b7   :  { %11001 = vst [vmem:[#allocation52_spill] sm:$0xff] %v6923_v47  ;;  %2057 = vmatpush.bf16.msra.mxu3 %v5865_v33  ;;  %v6252_v47 = vld [vmem:[#allocation6 + $0x14c] sm:$0xf0] }
 0x1ba   :  { %v1017_v41 = vpop.f32.mrf.mxu2  ;;  %v1118_v58 = vpop.f32.mrf.mxu0 }
 0x1bb   :  { %v1106_v32 = vpop.f32.mrf.mxu3  ;;  %v1207_v52 = vpop.f32.mrf.mxu1 }
 0x1bc   :  { %v6925_v59 = vadd.f32 %v1106_v32, %v1017_v41  ;;  %v6927_v53 = vadd.f32 %v1207_v52, %v1118_v58 }
 0x1bd   :  { %1157 = vmatmul.bf16.gmra.mxu0 %v6703_v22 }
 0x1be   :  { %11002 = vst [vmem:[#allocation53_spill] sm:$0xff] %v6925_v59  ;;  %1246 = vmatmul.bf16.gmra.mxu1 %v6705_v24  ;;  %v5860_v59 = vld [vmem:[#allocation6 + $0x140] sm:$0xf] }
 0x1bf   :  { %11003 = vst [vmem:[#allocation54_spill] sm:$0xff] %v6927_v53  ;;  %1335 = vmatmul.bf16.gmra.mxu2 %v6703_v22  ;;  %v5732_v53 = vld [vmem:[#allocation6 + $0x40] sm:$0xf]  ;;  %v6220_v22 = vld [vmem:[#allocation6 + $0x4c] sm:$0xf0]  ;;  %v5861_v55 = vor.u32 %v6252_v47, %v5860_v59 }
 0x1c0   :  { %1424 = vmatmul.bf16.gmra.mxu3 %v6705_v24  ;;  %v5733_v24 = vor.u32 %v6220_v22, %v5732_v53 }
 0x1c1   :  { %1879 = vmatpush.bf16.msra.mxu1 %v5861_v55 }
 0x1c2   :  { %v1296_v30 = vpop.f32.mrf.mxu2  ;;  %v1120_v41 = vpop.f32.mrf.mxu0  ;;  %1790 = vmatpush.bf16.msra.mxu0 %v5733_v24 }
 0x1c3   :  { %v1385_v9 = vpop.f32.mrf.mxu3  ;;  %v1209_v58 = vpop.f32.mrf.mxu1 }
 0x1c4   :  { %v6933_v32 = vadd.f32 %v1385_v9, %v1296_v30  ;;  %v6935_v52 = vadd.f32 %v1209_v58, %v1120_v41 }
 0x1c6   :  { %11004 = vst [vmem:[#allocation55_spill] sm:$0xff] %v6933_v32  ;;  %v6225_v32 = vld [vmem:[#allocation6 + $0x74] sm:$0xf0] }
 0x1c7   :  { %11005 = vst [vmem:[#allocation56_spill] sm:$0xff] %v6935_v52  ;;  %v5756_v52 = vld [vmem:[#allocation6 + $0x68] sm:$0xf] }
 0x1ca   :  { %v1298_v16 = vpop.f32.mrf.mxu2  ;;  %v1123_v21 = vpop.f32.mrf.mxu0 }
 0x1cb   :  { %v1387_v17 = vpop.f32.mrf.mxu3  ;;  %v1212_v54 = vpop.f32.mrf.mxu1 }
 0x1cc   :  { %v6937_v27 = vadd.f32 %v1387_v17, %v1298_v16  ;;  %v6939_v30 = vadd.f32 %v1212_v54, %v1123_v21  ;;  %v6246_v21 = vld [vmem:[#allocation6 + $0x124] sm:$0xf] }
 0x1cd   :  { %1162 = vmatmul.bf16.gmra.mxu0 %v6717_v60 }
 0x1ce   :  { %11006 = vst [vmem:[#allocation57_spill] sm:$0xff] %v6937_v27  ;;  %1251 = vmatmul.bf16.gmra.mxu1 %v6719_v63  ;;  %v136_v27 = vld [vmem:[#allocation2 + $0xb8] sm:$0xff] }
 0x1cf   :  { %11007 = vst [vmem:[#allocation58_spill] sm:$0xff] %v6939_v30  ;;  %1340 = vmatmul.bf16.gmra.mxu2 %v6717_v60  ;;  %v6214_v60 = vld [vmem:[#allocation6 + $0x24] sm:$0xf]  ;;  %v135_v30 = vld [vmem:[#allocation2 + $0xb0] sm:$0xff] }
 0x1d0   :  { %1429 = vmatmul.bf16.gmra.mxu3 %v6719_v63  ;;  %v5718_v63 = vld [vmem:[#allocation6 + $0x30] sm:$0xf0] }
 0x1d1   :  { %v5721_v54 = vor.u32 %v6214_v60, %v5718_v63 }
 0x1d2   :  { %v1301_v53 = vpop.f32.mrf.mxu2  ;;  %v1125_v59 = vpop.f32.mrf.mxu0 }
 0x1d3   :  { %v1390_v47 = vpop.f32.mrf.mxu3  ;;  %v1214_v33 = vpop.f32.mrf.mxu1  ;;  %1969 = vmatpush.bf16.msra.mxu2 %v5721_v54 }
 0x1d4   :  { %v6945_v55 = vadd.f32 %v1390_v47, %v1301_v53  ;;  %v6947_v9 = vadd.f32 %v1214_v33, %v1125_v59  ;;  %v5846_v53 = vld [vmem:[#allocation6 + $0x130] sm:$0xf0] }
 0x1d5   :  { %v5849_v59 = vor.u32 %v6246_v21, %v5846_v53 }
 0x1d6   :  { %11008 = vst [vmem:[#allocation59_spill] sm:$0xff] %v6945_v55 }
 0x1d7   :  { %11009 = vst [vmem:[#allocation60_spill] sm:$0xff] %v6947_v9  ;;  %2058 = vmatpush.bf16.msra.mxu3 %v5849_v59  ;;  %v6248_v9 = vld [vmem:[#allocation6 + $0x12c] sm:$0xf0] }
 0x1da   :  { %v1303_v41 = vpop.f32.mrf.mxu2  ;;  %v1128_v22 = vpop.f32.mrf.mxu0 }
 0x1db   :  { %v1392_v58 = vpop.f32.mrf.mxu3  ;;  %v1217_v16 = vpop.f32.mrf.mxu1 }
 0x1dc   :  { %v6949_v24 = vadd.f32 %v1392_v58, %v1303_v41  ;;  %v6951_v17 = vadd.f32 %v1217_v16, %v1128_v22 }
 0x1dd   :  { %1167 = vmatmul.bf16.gmra.mxu0 %v6733_v20 }
 0x1de   :  { %11010 = vst [vmem:[#allocation61_spill] sm:$0xff] %v6949_v24  ;;  %1256 = vmatmul.bf16.gmra.mxu1 %v6735_v25  ;;  %v5844_v24 = vld [vmem:[#allocation6 + $0x120] sm:$0xf] }
 0x1df   :  { %11011 = vst [vmem:[#allocation62_spill] sm:$0xff] %v6951_v17  ;;  %1345 = vmatmul.bf16.gmra.mxu2 %v6733_v20  ;;  %v5716_v17 = vld [vmem:[#allocation6 + $0x20] sm:$0xf]  ;;  %v6216_v20 = vld [vmem:[#allocation6 + $0x2c] sm:$0xf0]  ;;  %v5845_v55 = vor.u32 %v6248_v9, %v5844_v24 }
 0x1e0   :  { %1434 = vmatmul.bf16.gmra.mxu3 %v6735_v25  ;;  %v5717_v25 = vor.u32 %v6216_v20, %v5716_v17 }
 0x1e1   :  { %1880 = vmatpush.bf16.msra.mxu1 %v5845_v55 }
 0x1e2   :  { %v1306_v47 = vpop.f32.mrf.mxu2  ;;  %v1130_v41 = vpop.f32.mrf.mxu0  ;;  %1791 = vmatpush.bf16.msra.mxu0 %v5717_v25 }
 0x1e3   :  { %v1395_v33 = vpop.f32.mrf.mxu3  ;;  %v1219_v22 = vpop.f32.mrf.mxu1 }
 0x1e4   :  { %v6957_v58 = vadd.f32 %v1395_v33, %v1306_v47  ;;  %v6959_v16 = vadd.f32 %v1219_v22, %v1130_v41 }
 0x1e6   :  { %11012 = vst [vmem:[#allocation63_spill] sm:$0xff] %v6957_v58  ;;  %v133_v58 = vld [vmem:[#allocation2 + $0xa0] sm:$0xff] }
 0x1e7   :  { %11013 = vst [vmem:[#allocation64_spill] sm:$0xff] %v6959_v16  ;;  %v6261_v16 = vld [vmem:[#allocation6 + $0x194] sm:$0xf0] }
 0x1ea   :  { %v1308_v60 = vpop.f32.mrf.mxu2  ;;  %v1133_v21 = vpop.f32.mrf.mxu0 }
 0x1eb   :  { %v1397_v63 = vpop.f32.mrf.mxu3  ;;  %v1222_v54 = vpop.f32.mrf.mxu1 }
 0x1ec   :  { %v6961_v53 = vadd.f32 %v1397_v63, %v1308_v60  ;;  %v6963_v47 = vadd.f32 %v1222_v54, %v1133_v21  ;;  %v6242_v21 = vld [vmem:[#allocation6 + $0x104] sm:$0xf] }
 0x1ed   :  { %1172 = vmatmul.bf16.gmra.mxu0 %v6749_v7 }
 0x1ee   :  { %11014 = vst [vmem:[#allocation65_spill] sm:$0xff] %v6961_v53  ;;  %1261 = vmatmul.bf16.gmra.mxu1 %v6751_v14  ;;  %v128_v53 = vld [vmem:[#allocation2 + $0x78] sm:$0xff] }
 0x1ef   :  { %11015 = vst [vmem:[#allocation66_spill] sm:$0xff] %v6963_v47  ;;  %1350 = vmatmul.bf16.gmra.mxu2 %v6749_v7  ;;  %v6210_v7 = vld [vmem:[#allocation6 + $0x4] sm:$0xf]  ;;  %v127_v47 = vld [vmem:[#allocation2 + $0x70] sm:$0xff] }
 0x1f0   :  { %1439 = vmatmul.bf16.gmra.mxu3 %v6751_v14  ;;  %v5702_v14 = vld [vmem:[#allocation6 + $0x10] sm:$0xf0] }
 0x1f1   :  { %v5705_v54 = vor.u32 %v6210_v7, %v5702_v14 }
 0x1f2   :  { %v1311_v17 = vpop.f32.mrf.mxu2  ;;  %v1135_v24 = vpop.f32.mrf.mxu0 }
 0x1f3   :  { %v1400_v9 = vpop.f32.mrf.mxu3  ;;  %v1224_v59 = vpop.f32.mrf.mxu1  ;;  %1970 = vmatpush.bf16.msra.mxu2 %v5705_v54 }
 0x1f4   :  { %v6969_v55 = vadd.f32 %v1400_v9, %v1311_v17  ;;  %v6971_v33 = vadd.f32 %v1224_v59, %v1135_v24  ;;  %v5830_v17 = vld [vmem:[#allocation6 + $0x110] sm:$0xf0] }
 0x1f5   :  { %v5833_v24 = vor.u32 %v6242_v21, %v5830_v17 }
 0x1f6   :  { %11016 = vst [vmem:[#allocation67_spill] sm:$0xff] %v6969_v55 }
 0x1f7   :  { %11017 = vst [vmem:[#allocation68_spill] sm:$0xff] %v6971_v33  ;;  %2059 = vmatpush.bf16.msra.mxu3 %v5833_v24  ;;  %v6244_v33 = vld [vmem:[#allocation6 + $0x10c] sm:$0xf0] }
 0x1fa   :  { %v1313_v41 = vpop.f32.mrf.mxu2  ;;  %v1138_v20 = vpop.f32.mrf.mxu0 }
 0x1fb   :  { %v1402_v22 = vpop.f32.mrf.mxu3  ;;  %v1227_v60 = vpop.f32.mrf.mxu1 }
 0x1fc   :  { %v6973_v25 = vadd.f32 %v1402_v22, %v1313_v41  ;;  %v6975_v63 = vadd.f32 %v1227_v60, %v1138_v20 }
 0x1fd   :  { %1177 = vmatmul.bf16.gmra.mxu0 %v6765_v45 }
 0x1fe   :  { %11018 = vst [vmem:[#allocation69_spill] sm:$0xff] %v6973_v25  ;;  %1266 = vmatmul.bf16.gmra.mxu1 %v6767_v51  ;;  %v5828_v25 = vld [vmem:[#allocation6 + $0x100] sm:$0xf] }
 0x1ff   :  { %11019 = vst [vmem:[#allocation70_spill] sm:$0xff] %v6975_v63  ;;  %1355 = vmatmul.bf16.gmra.mxu2 %v6765_v45  ;;  %v5700_v63 = vld [vmem:[#allocation6] sm:$0xf]  ;;  %v6212_v45 = vld [vmem:[#allocation6 + $0xc] sm:$0xf0]  ;;  %v5829_v55 = vor.u32 %v6244_v33, %v5828_v25 }
 0x200   :  { %1444 = vmatmul.bf16.gmra.mxu3 %v6767_v51  ;;  %v5701_v51 = vor.u32 %v6212_v45, %v5700_v63 }
 0x201   :  { %1881 = vmatpush.bf16.msra.mxu1 %v5829_v55 }
 0x202   :  { %v1316_v9 = vpop.f32.mrf.mxu2  ;;  %v1140_v41 = vpop.f32.mrf.mxu0  ;;  %1792 = vmatpush.bf16.msra.mxu0 %v5701_v51 }
 0x203   :  { %v1405_v59 = vpop.f32.mrf.mxu3  ;;  %v1229_v20 = vpop.f32.mrf.mxu1 }
 0x204   :  { %v6981_v22 = vadd.f32 %v1405_v59, %v1316_v9  ;;  %v6983_v60 = vadd.f32 %v1229_v20, %v1140_v41 }
 0x206   :  { %11020 = vst [vmem:[#allocation71_spill] sm:$0xff] %v6981_v22  ;;  %v125_v22 = vld [vmem:[#allocation2 + $0x60] sm:$0xff] }
 0x207   :  { %11021 = vst [vmem:[#allocation72_spill] sm:$0xff] %v6983_v60 }
 0x20a   :  { %v1318_v7 = vpop.f32.mrf.mxu2  ;;  %v1143_v21 = vpop.f32.mrf.mxu0 }
 0x20b   :  { %v1407_v14 = vpop.f32.mrf.mxu3  ;;  %v1232_v54 = vpop.f32.mrf.mxu1 }
 0x20c   :  { %v6985_v17 = vadd.f32 %v1407_v14, %v1318_v7  ;;  %v6987_v9 = vadd.f32 %v1232_v54, %v1143_v21  ;;  %v6271_v21 = vld [vmem:[#allocation6 + $0x1ec] sm:$0xf] }
 0x20d   :  { %1182 = vmatmul.bf16.gmra.mxu0 %v6781_v62 }
 0x20e   :  { %11022 = vst [vmem:[#allocation73_spill] sm:$0xff] %v6985_v17  ;;  %1271 = vmatmul.bf16.gmra.mxu1 %v6783_v6  ;;  %v5948_v17 = vld [vmem:[#allocation6 + $0x1e8] sm:$0xf] }
 0x20f   :  { %11023 = vst [vmem:[#allocation74_spill] sm:$0xff] %v6987_v9  ;;  %1360 = vmatmul.bf16.gmra.mxu2 %v6781_v62  ;;  %v6239_v62 = vld [vmem:[#allocation6 + $0xec] sm:$0xf]  ;;  %v6265_v9 = vld [vmem:[#allocation6 + $0x1b4] sm:$0xf0] }
 0x210   :  { %1449 = vmatmul.bf16.gmra.mxu3 %v6783_v6  ;;  %v5822_v6 = vld [vmem:[#allocation6 + $0xf8] sm:$0xf0] }
 0x211   :  { %v5825_v54 = vor.u32 %v6239_v62, %v5822_v6 }
 0x212   :  { %v1321_v63 = vpop.f32.mrf.mxu2  ;;  %v1145_v25 = vpop.f32.mrf.mxu0 }
 0x213   :  { %v1410_v33 = vpop.f32.mrf.mxu3  ;;  %v1234_v24 = vpop.f32.mrf.mxu1  ;;  %2319 = vmatpush.bf16.msrb.mxu2 %v5825_v54 }
 0x214   :  { %v6993_v55 = vadd.f32 %v1410_v33, %v1321_v63  ;;  %v6995_v59 = vadd.f32 %v1234_v24, %v1145_v25  ;;  %v5950_v63 = vld [vmem:[#allocation6 + $0x1f8] sm:$0xf0] }
 0x215   :  { %v5953_v25 = vor.u32 %v6271_v21, %v5950_v63 }
 0x216   :  { %11024 = vst [vmem:[#allocation75_spill] sm:$0xff] %v6993_v55  ;;  %v120_v55 = vld [vmem:[#allocation2 + $0x38] sm:$0xff] }
 0x217   :  { %11025 = vst [vmem:[#allocation76_spill] sm:$0xff] %v6995_v59  ;;  %2408 = vmatpush.bf16.msrb.mxu3 %v5953_v25  ;;  %v6273_v59 = vld [vmem:[#allocation6 + $0x1f4] sm:$0xf0] }
 0x218   :  { %v5949_v60 = vor.u32 %v6273_v59, %v5948_v17 }
 0x21a   :  { %v1323_v41 = vpop.f32.mrf.mxu2  ;;  %v1148_v45 = vpop.f32.mrf.mxu0  ;;  %2230 = vmatpush.bf16.msrb.mxu1 %v5949_v60 }
 0x21b   :  { %v1412_v20 = vpop.f32.mrf.mxu3  ;;  %v1237_v7 = vpop.f32.mrf.mxu1 }
 0x21c   :  { %v6997_v51 = vadd.f32 %v1412_v20, %v1323_v41  ;;  %v6999_v14 = vadd.f32 %v1237_v7, %v1148_v45 }
 0x21d   :  { %1187 = vmatmul.bf16.gmra.mxu0 %v6797_v61 }
 0x21e   :  { %11026 = vst [vmem:[#allocation77_spill] sm:$0xff] %v6997_v51  ;;  %1276 = vmatmul.bf16.gmra.mxu1 %v6799_v13  ;;  %v5820_v51 = vld [vmem:[#allocation6 + $0xe8] sm:$0xf] }
 0x21f   :  { %11027 = vst [vmem:[#allocation78_spill] sm:$0xff] %v6999_v14  ;;  %1365 = vmatmul.bf16.gmra.mxu2 %v6797_v61  ;;  %v6241_v61 = vld [vmem:[#allocation6 + $0xf4] sm:$0xf0]  ;;  %v119_v14 = vld [vmem:[#allocation2 + $0x30] sm:$0xff] }
 0x220   :  { %1454 = vmatmul.bf16.gmra.mxu3 %v6799_v13  ;;  %v5821_v13 = vor.u32 %v6241_v61, %v5820_v51  ;;  %v114_v61 = vld [vmem:[#allocation2 + $0x8] sm:$0xff] }
 0x222   :  { %v1326_v33 = vpop.f32.mrf.mxu2  ;;  %v1150_v41 = vpop.f32.mrf.mxu0  ;;  %2141 = vmatpush.bf16.msrb.mxu0 %v5821_v13  ;;  %v116_v13 = vld [vmem:[#allocation2 + $0x18] sm:$0xff] }
 0x223   :  { %v1415_v24 = vpop.f32.mrf.mxu3  ;;  %v1239_v45 = vpop.f32.mrf.mxu1 }
 0x224   :  { %v7005_v20 = vadd.f32 %v1415_v24, %v1326_v33  ;;  %v7007_v7 = vadd.f32 %v1239_v45, %v1150_v41  ;;  %v113_v41 = vld [vmem:[#allocation2] sm:$0xff]  ;;  %v115_v45 = vld [vmem:[#allocation2 + $0x10] sm:$0xff] }
 0x226   :  { %11028 = vst [vmem:[#allocation79_spill] sm:$0xff] %v7005_v20  ;;  %v117_v20 = vld [vmem:[#allocation2 + $0x20] sm:$0xff] }
 0x227   :  { %11029 = vst [vmem:[#allocation80_spill] sm:$0xff] %v7007_v7 }
 0x22a   :  { %v1328_v62 = vpop.f32.mrf.mxu2  ;;  %v1153_v21 = vpop.f32.mrf.mxu0 }
 0x22b   :  { %v1417_v6 = vpop.f32.mrf.mxu3  ;;  %v1242_v54 = vpop.f32.mrf.mxu1 }
 0x22c   :  { %v7009_v63 = vadd.f32 %v1417_v6, %v1328_v62  ;;  %v7011_v33 = vadd.f32 %v1242_v54, %v1153_v21  ;;  %v7021_v6 = vpack.c.bf16 %v115_v45, %v113_v41  ;;  %v5934_v41 = vld [vmem:[#allocation6 + $0x1d8] sm:$0xf0] }
 0x22d   :  { %1192 = vmatmul.bf16.gmra.mxu0 %v6813_v39 }
 0x22e   :  { %11030 = vst [vmem:[#allocation81_spill] sm:$0xff] %v7009_v63  ;;  %1281 = vmatmul.bf16.gmra.mxu1 %v6815_v50 }
 0x22f   :  { %11031 = vst [vmem:[#allocation82_spill] sm:$0xff] %v7011_v33  ;;  %1370 = vmatmul.bf16.gmra.mxu2 %v6813_v39  ;;  %v7023_v39 = vpack.c.bf16 %v116_v13, %v114_v61  ;;  %v6269_v33 = vld [vmem:[#allocation6 + $0x1d4] sm:$0xf0] }
 0x230   :  { %1459 = vmatmul.bf16.gmra.mxu3 %v6815_v50 }
 0x232   :  { %v1331_v51 = vpop.f32.mrf.mxu2  ;;  %v1155_v59 = vpop.f32.mrf.mxu0 }
 0x233   :  { %v1420_v17 = vpop.f32.mrf.mxu3  ;;  %v1244_v25 = vpop.f32.mrf.mxu1 }
 0x234   :  { %v7017_v60 = vadd.f32 %v1420_v17, %v1331_v51  ;;  %v7019_v24 = vadd.f32 %v1244_v25, %v1155_v59  ;;  %v6235_v51 = vld [vmem:[#allocation6 + $0xcc] sm:$0xf]  ;;  %v5806_v17 = vld [vmem:[#allocation6 + $0xd8] sm:$0xf0] }
 0x235   :  { %v6267_v59 = vld [vmem:[#allocation6 + $0x1cc] sm:$0xf]  ;;  %v5809_v25 = vor.u32 %v6235_v51, %v5806_v17 }
 0x236   :  { %11032 = vst [vmem:[#allocation83_spill] sm:$0xff] %v7017_v60  ;;  %v5937_v61 = vor.u32 %v6267_v59, %v5934_v41  ;;  %v118_v17 = vld [vmem:[#allocation2 + $0x28] sm:$0xff] }
 0x237   :  { %11033 = vst [vmem:[#allocation84_spill] sm:$0xff] %v7019_v24  ;;  %2320 = vmatpush.bf16.msrb.mxu2 %v5809_v25  ;;  %v6237_v24 = vld [vmem:[#allocation6 + $0xd4] sm:$0xf0]  ;;  %v7037_v25 = vpack.c.bf16 %v119_v14, %v117_v20 }
 0x238   :  { %2409 = vmatpush.bf16.msrb.mxu3 %v5937_v61  ;;  %v7039_v61 = vpack.c.bf16 %v120_v55, %v118_v17  ;;  %v124_v17 = vld [vmem:[#allocation2 + $0x58] sm:$0xff] }
 0x23a   :  { %v1333_v62 = vpop.f32.mrf.mxu2  ;;  %v1158_v54 = vpop.f32.mrf.mxu0 }
 0x23b   :  { %v1422_v21 = vpop.f32.mrf.mxu3  ;;  %v1247_v63 = vpop.f32.mrf.mxu1 }
 0x23c   :  { %v7025_v50 = vadd.f32 %v1422_v21, %v1333_v62  ;;  %v7027_v7 = vadd.f32 %v1247_v63, %v1158_v54 }
 0x23d   :  { %1793 = vmatmul.bf16.vlgmr.msra.gmra.mxu0 %v7021_v6 }
 0x23e   :  { %11034 = vst [vmem:[#allocation85_spill] sm:$0xff] %v7025_v50  ;;  %1882 = vmatmul.bf16.vlgmr.msra.gmra.mxu1 %v7023_v39  ;;  %v5804_v50 = vld [vmem:[#allocation6 + $0xc8] sm:$0xf] }
 0x23f   :  { %11035 = vst [vmem:[#allocation86_spill] sm:$0xff] %v7027_v7  ;;  %1971 = vmatmul.bf16.vlgmr.msra.gmra.mxu2 %v7021_v6  ;;  %v5932_v7 = vld [vmem:[#allocation6 + $0x1c8] sm:$0xf]  ;;  %v5805_v60 = vor.u32 %v6237_v24, %v5804_v50  ;;  %v121_v24 = vld [vmem:[#allocation2 + $0x40] sm:$0xff]  ;;  %v123_v50 = vld [vmem:[#allocation2 + $0x50] sm:$0xff] }
 0x240   :  { %2060 = vmatmul.bf16.vlgmr.msra.gmra.mxu3 %v7023_v39  ;;  %v5933_v51 = vor.u32 %v6269_v33, %v5932_v7 }
 0x241   :  { %2142 = vmatpush.bf16.msrb.mxu0 %v5805_v60 }
 0x242   :  { %v1336_v45 = vpop.f32.mrf.mxu2  ;;  %v1160_v62 = vpop.f32.mrf.mxu0  ;;  %2231 = vmatpush.bf16.msrb.mxu1 %v5933_v51  ;;  %v122_v51 = vld [vmem:[#allocation2 + $0x48] sm:$0xff] }
 0x243   :  { %v1425_v13 = vpop.f32.mrf.mxu3  ;;  %v1249_v21 = vpop.f32.mrf.mxu1 }
 0x244   :  { %v7033_v63 = vadd.f32 %v1425_v13, %v1336_v45  ;;  %v7035_v54 = vadd.f32 %v1249_v21, %v1160_v62 }
 0x246   :  { %11036 = vst [vmem:[#allocation87_spill] sm:$0xff] %v7033_v63 }
 0x247   :  { %11037 = vst [vmem:[#allocation88_spill] sm:$0xff] %v7035_v54 }
 0x24a   :  { %v1338_v59 = vpop.f32.mrf.mxu2  ;;  %v1163_v45 = vpop.f32.mrf.mxu0 }
 0x24b   :  { %v1427_v41 = vpop.f32.mrf.mxu3  ;;  %v1252_v62 = vpop.f32.mrf.mxu1 }
 0x24c   :  { %v7041_v13 = vadd.f32 %v1427_v41, %v1338_v59  ;;  %v7043_v21 = vadd.f32 %v1252_v62, %v1163_v45  ;;  %v7053_v41 = vpack.c.bf16 %v123_v50, %v121_v24  ;;  %v5918_v24 = vld [vmem:[#allocation6 + $0x1b8] sm:$0xf0] }
 0x24d   :  { %1798 = vmatmul.bf16.gmra.mxu0 %v7037_v25 }
 0x24e   :  { %11038 = vst [vmem:[#allocation89_spill] sm:$0xff] %v7041_v13  ;;  %1887 = vmatmul.bf16.gmra.mxu1 %v7039_v61  ;;  %v7055_v13 = vpack.c.bf16 %v124_v17, %v122_v51 }
 0x24f   :  { %11039 = vst [vmem:[#allocation90_spill] sm:$0xff] %v7043_v21  ;;  %1976 = vmatmul.bf16.gmra.mxu2 %v7037_v25 }
 0x250   :  { %2065 = vmatmul.bf16.gmra.mxu3 %v7039_v61 }
 0x252   :  { %v1341_v7 = vpop.f32.mrf.mxu2  ;;  %v1165_v20 = vpop.f32.mrf.mxu0 }
 0x253   :  { %v1430_v14 = vpop.f32.mrf.mxu3  ;;  %v1254_v55 = vpop.f32.mrf.mxu1 }
 0x254   :  { %v7049_v33 = vadd.f32 %v1430_v14, %v1341_v7  ;;  %v7051_v60 = vadd.f32 %v1254_v55, %v1165_v20  ;;  %v6231_v7 = vld [vmem:[#allocation6 + $0xac] sm:$0xf]  ;;  %v5790_v14 = vld [vmem:[#allocation6 + $0xb8] sm:$0xf0] }
 0x255   :  { %v6263_v20 = vld [vmem:[#allocation6 + $0x1ac] sm:$0xf]  ;;  %v5793_v55 = vor.u32 %v6231_v7, %v5790_v14 }
 0x256   :  { %11040 = vst [vmem:[#allocation91_spill] sm:$0xff] %v7049_v33  ;;  %v5921_v51 = vor.u32 %v6263_v20, %v5918_v24  ;;  %v126_v14 = vld [vmem:[#allocation2 + $0x68] sm:$0xff] }
 0x257   :  { %11041 = vst [vmem:[#allocation92_spill] sm:$0xff] %v7051_v60  ;;  %2321 = vmatpush.bf16.msrb.mxu2 %v5793_v55  ;;  %v6233_v60 = vld [vmem:[#allocation6 + $0xb4] sm:$0xf0]  ;;  %v7069_v55 = vpack.c.bf16 %v127_v47, %v125_v22 }
 0x258   :  { %2410 = vmatpush.bf16.msrb.mxu3 %v5921_v51  ;;  %v7071_v51 = vpack.c.bf16 %v128_v53, %v126_v14  ;;  %v132_v14 = vld [vmem:[#allocation2 + $0x98] sm:$0xff] }
 0x25a   :  { %v1343_v59 = vpop.f32.mrf.mxu2  ;;  %v1168_v62 = vpop.f32.mrf.mxu0 }
 0x25b   :  { %v1432_v45 = vpop.f32.mrf.mxu3  ;;  %v1257_v21 = vpop.f32.mrf.mxu1 }
 0x25c   :  { %v7057_v54 = vadd.f32 %v1432_v45, %v1343_v59  ;;  %v7059_v63 = vadd.f32 %v1257_v21, %v1168_v62 }
 0x25d   :  { %1803 = vmatmul.bf16.gmra.mxu0 %v7053_v41 }
 0x25e   :  { %11042 = vst [vmem:[#allocation93_spill] sm:$0xff] %v7057_v54  ;;  %1892 = vmatmul.bf16.gmra.mxu1 %v7055_v13  ;;  %v5788_v54 = vld [vmem:[#allocation6 + $0xa8] sm:$0xf] }
 0x25f   :  { %11043 = vst [vmem:[#allocation94_spill] sm:$0xff] %v7059_v63  ;;  %1981 = vmatmul.bf16.gmra.mxu2 %v7053_v41  ;;  %v5916_v63 = vld [vmem:[#allocation6 + $0x1a8] sm:$0xf]  ;;  %v5789_v33 = vor.u32 %v6233_v60, %v5788_v54  ;;  %v131_v60 = vld [vmem:[#allocation2 + $0x90] sm:$0xff] }
 0x260   :  { %2070 = vmatmul.bf16.gmra.mxu3 %v7055_v13  ;;  %v5917_v7 = vor.u32 %v6265_v9, %v5916_v63 }
 0x261   :  { %2143 = vmatpush.bf16.msrb.mxu0 %v5789_v33  ;;  %v129_v33 = vld [vmem:[#allocation2 + $0x80] sm:$0xff] }
 0x262   :  { %v1346_v50 = vpop.f32.mrf.mxu2  ;;  %v1170_v59 = vpop.f32.mrf.mxu0  ;;  %2232 = vmatpush.bf16.msrb.mxu1 %v5917_v7  ;;  %v130_v7 = vld [vmem:[#allocation2 + $0x88] sm:$0xff] }
 0x263   :  { %v1435_v17 = vpop.f32.mrf.mxu3  ;;  %v1259_v45 = vpop.f32.mrf.mxu1 }
 0x264   :  { %v7065_v21 = vadd.f32 %v1435_v17, %v1346_v50  ;;  %v7067_v62 = vadd.f32 %v1259_v45, %v1170_v59 }
 0x266   :  { %11044 = vst [vmem:[#allocation95_spill] sm:$0xff] %v7065_v21 }
 0x267   :  { %11045 = vst [vmem:[#allocation96_spill] sm:$0xff] %v7067_v62 }
 0x26a   :  { %v1348_v20 = vpop.f32.mrf.mxu2  ;;  %v1173_v50 = vpop.f32.mrf.mxu0 }
 0x26b   :  { %v1437_v24 = vpop.f32.mrf.mxu3  ;;  %v1262_v59 = vpop.f32.mrf.mxu1 }
 0x26c   :  { %v7073_v17 = vadd.f32 %v1437_v24, %v1348_v20  ;;  %v7075_v45 = vadd.f32 %v1262_v59, %v1173_v50  ;;  %v7085_v24 = vpack.c.bf16 %v131_v60, %v129_v33  ;;  %v5902_v33 = vld [vmem:[#allocation6 + $0x198] sm:$0xf0] }
 0x26d   :  { %1808 = vmatmul.bf16.gmra.mxu0 %v7069_v55 }
 0x26e   :  { %11046 = vst [vmem:[#allocation97_spill] sm:$0xff] %v7073_v17  ;;  %1897 = vmatmul.bf16.gmra.mxu1 %v7071_v51  ;;  %v7087_v17 = vpack.c.bf16 %v132_v14, %v130_v7 }
 0x26f   :  { %11047 = vst [vmem:[#allocation98_spill] sm:$0xff] %v7075_v45  ;;  %1986 = vmatmul.bf16.gmra.mxu2 %v7069_v55 }
 0x270   :  { %2075 = vmatmul.bf16.gmra.mxu3 %v7071_v51 }
 0x272   :  { %v1351_v9 = vpop.f32.mrf.mxu2  ;;  %v1175_v22 = vpop.f32.mrf.mxu0 }
 0x273   :  { %v1440_v47 = vpop.f32.mrf.mxu3  ;;  %v1264_v53 = vpop.f32.mrf.mxu1 }
 0x274   :  { %v7081_v63 = vadd.f32 %v1440_v47, %v1351_v9  ;;  %v7083_v54 = vadd.f32 %v1264_v53, %v1175_v22  ;;  %v6227_v9 = vld [vmem:[#allocation6 + $0x8c] sm:$0xf]  ;;  %v5774_v47 = vld [vmem:[#allocation6 + $0x98] sm:$0xf0] }
 0x275   :  { %v6259_v22 = vld [vmem:[#allocation6 + $0x18c] sm:$0xf]  ;;  %v5777_v53 = vor.u32 %v6227_v9, %v5774_v47 }
 0x276   :  { %11048 = vst [vmem:[#allocation99_spill] sm:$0xff] %v7081_v63  ;;  %v5905_v7 = vor.u32 %v6259_v22, %v5902_v33  ;;  %v6229_v63 = vld [vmem:[#allocation6 + $0x94] sm:$0xf0]  ;;  %v134_v47 = vld [vmem:[#allocation2 + $0xa8] sm:$0xff] }
 0x277   :  { %11049 = vst [vmem:[#allocation100_spill] sm:$0xff] %v7083_v54  ;;  %2322 = vmatpush.bf16.msrb.mxu2 %v5777_v53  ;;  %v7101_v53 = vpack.c.bf16 %v135_v30, %v133_v58 }
 0x278   :  { %2411 = vmatpush.bf16.msrb.mxu3 %v5905_v7  ;;  %v7103_v7 = vpack.c.bf16 %v136_v27, %v134_v47  ;;  %v140_v47 = vld [vmem:[#allocation2 + $0xd8] sm:$0xff] }
 0x279   :  { %11054 = vst [vmem:[#allocation105_spill] sm:$0xff] %v7101_v53 }
 0x27a   :  { %v1353_v20 = vpop.f32.mrf.mxu2  ;;  %v1178_v59 = vpop.f32.mrf.mxu0  ;;  %11055 = vst [vmem:[#allocation106_spill] sm:$0xff] %v7103_v7 }
 0x27b   :  { %v1442_v50 = vpop.f32.mrf.mxu3  ;;  %v1267_v62 = vpop.f32.mrf.mxu1 }
 0x27c   :  { %v7089_v45 = vadd.f32 %v1442_v50, %v1353_v20  ;;  %v7091_v21 = vadd.f32 %v1267_v62, %v1178_v59 }
 0x27d   :  { %1813 = vmatmul.bf16.gmra.mxu0 %v7085_v24 }
 0x27e   :  { %11050 = vst [vmem:[#allocation101_spill] sm:$0xff] %v7089_v45  ;;  %1902 = vmatmul.bf16.gmra.mxu1 %v7087_v17  ;;  %v5772_v45 = vld [vmem:[#allocation6 + $0x88] sm:$0xf] }
 0x27f   :  { %11051 = vst [vmem:[#allocation102_spill] sm:$0xff] %v7091_v21  ;;  %1991 = vmatmul.bf16.gmra.mxu2 %v7085_v24  ;;  %v5900_v21 = vld [vmem:[#allocation6 + $0x188] sm:$0xf]  ;;  %v5773_v54 = vor.u32 %v6229_v63, %v5772_v45  ;;  %v137_v63 = vld [vmem:[#allocation2 + $0xc0] sm:$0xff] }
 0x280   :  { %2080 = vmatmul.bf16.gmra.mxu3 %v7087_v17  ;;  %v5901_v9 = vor.u32 %v6261_v16, %v5900_v21 }
 0x281   :  { %2144 = vmatpush.bf16.msrb.mxu0 %v5773_v54  ;;  %v139_v54 = vld [vmem:[#allocation2 + $0xd0] sm:$0xff] }
 0x282   :  { %v1356_v60 = vpop.f32.mrf.mxu2  ;;  %v1180_v20 = vpop.f32.mrf.mxu0  ;;  %2233 = vmatpush.bf16.msrb.mxu1 %v5901_v9  ;;  %v138_v9 = vld [vmem:[#allocation2 + $0xc8] sm:$0xff] }
 0x283   :  { %v1445_v14 = vpop.f32.mrf.mxu3  ;;  %v1269_v50 = vpop.f32.mrf.mxu1 }
 0x284   :  { %v7097_v62 = vadd.f32 %v1445_v14, %v1356_v60  ;;  %v7099_v59 = vadd.f32 %v1269_v50, %v1180_v20 }
 0x286   :  { %11052 = vst [vmem:[#allocation103_spill] sm:$0xff] %v7097_v62 }
 0x287   :  { %11053 = vst [vmem:[#allocation104_spill] sm:$0xff] %v7099_v59 }
 0x28a   :  { %v1358_v22 = vpop.f32.mrf.mxu2  ;;  %v1183_v60 = vpop.f32.mrf.mxu0 }
 0x28b   :  { %v1447_v33 = vpop.f32.mrf.mxu3  ;;  %v1272_v20 = vpop.f32.mrf.mxu1 }
 0x28c   :  { %v7105_v14 = vadd.f32 %v1447_v33, %v1358_v22  ;;  %v7107_v50 = vadd.f32 %v1272_v20, %v1183_v60  ;;  %v7117_v33 = vpack.c.bf16 %v139_v54, %v137_v63  ;;  %v5886_v63 = vld [vmem:[#allocation6 + $0x178] sm:$0xf0] }
 0x28d   :  { %1818 = vmatmul.bf16.gmra.mxu0 %v7101_v53 }
 0x28e   :  { %11056 = vst [vmem:[#allocation107_spill] sm:$0xff] %v7105_v14  ;;  %1907 = vmatmul.bf16.gmra.mxu1 %v7103_v7  ;;  %v7119_v14 = vpack.c.bf16 %v140_v47, %v138_v9 }
 0x28f   :  { %11057 = vst [vmem:[#allocation108_spill] sm:$0xff] %v7107_v50  ;;  %1996 = vmatmul.bf16.gmra.mxu2 %v7101_v53 }
 0x290   :  { %2085 = vmatmul.bf16.gmra.mxu3 %v7103_v7  ;;  %11060 = vst [vmem:[#allocation111_spill] sm:$0xff] %v7117_v33 }
 0x291   :  { %11061 = vst [vmem:[#allocation112_spill] sm:$0xff] %v7119_v14 }
 0x292   :  { %v1361_v16 = vpop.f32.mrf.mxu2  ;;  %v1185_v58 = vpop.f32.mrf.mxu0 }
 0x293   :  { %v1450_v30 = vpop.f32.mrf.mxu3  ;;  %v1274_v27 = vpop.f32.mrf.mxu1 }
 0x294   :  { %v7113_v21 = vadd.f32 %v1450_v30, %v1361_v16  ;;  %v7115_v45 = vadd.f32 %v1274_v27, %v1185_v58  ;;  %v6223_v16 = vld [vmem:[#allocation6 + $0x6c] sm:$0xf]  ;;  %v5758_v30 = vld [vmem:[#allocation6 + $0x78] sm:$0xf0] }
 0x295   :  { %v6255_v58 = vld [vmem:[#allocation6 + $0x16c] sm:$0xf]  ;;  %v5761_v27 = vor.u32 %v6223_v16, %v5758_v30  ;;  %v5757_v16 = vor.u32 %v6225_v32, %v5756_v52  ;;  %v6257_v30 = vld [vmem:[#allocation6 + $0x174] sm:$0xf0] }
 0x296   :  { %11058 = vst [vmem:[#allocation109_spill] sm:$0xff] %v7113_v21  ;;  %v5889_v9 = vor.u32 %v6255_v58, %v5886_v63  ;;  %v143_v21 = vld [vmem:[#allocation2 + $0xf0] sm:$0xff]  ;;  %v5885_v63 = vor.u32 %v6257_v30, %v5884_v35  ;;  %v148_v30 = vld [vmem:[#allocation2 + $0x118] sm:$0xff] }
 0x297   :  { %11059 = vst [vmem:[#allocation110_spill] sm:$0xff] %v7115_v45  ;;  %2323 = vmatpush.bf16.msrb.mxu2 %v5761_v27  ;;  %v144_v45 = vld [vmem:[#allocation2 + $0xf8] sm:$0xff]  ;;  %2145 = vmatpush.bf16.msrb.mxu0 %v5757_v16  ;;  %v146_v16 = vld [vmem:[#allocation2 + $0x108] sm:$0xff] }
 0x298   :  { %2412 = vmatpush.bf16.msrb.mxu3 %v5889_v9  ;;  %2234 = vmatpush.bf16.msrb.mxu1 %v5885_v63 }
 0x29a   :  { %v1363_v22 = vpop.f32.mrf.mxu2  ;;  %v1188_v20 = vpop.f32.mrf.mxu0 }
 0x29b   :  { %v1452_v60 = vpop.f32.mrf.mxu3  ;;  %v1277_v50 = vpop.f32.mrf.mxu1 }
 0x29c   :  { %v7121_v62 = vadd.f32 %v1452_v60, %v1363_v22  ;;  %v7123_v59 = vadd.f32 %v1277_v50, %v1188_v20 }
 0x29d   :  { %1823 = vmatmul.bf16.gmra.mxu0 %v7117_v33 }
 0x29e   :  { %11062 = vst [vmem:[#allocation113_spill] sm:$0xff] %v7121_v62  ;;  %1912 = vmatmul.bf16.gmra.mxu1 %v7119_v14  ;;  %v141_v62 = vld [vmem:[#allocation2 + $0xe0] sm:$0xff] }
 0x29f   :  { %11063 = vst [vmem:[#allocation114_spill] sm:$0xff] %v7123_v59  ;;  %2001 = vmatmul.bf16.gmra.mxu2 %v7117_v33  ;;  %v142_v59 = vld [vmem:[#allocation2 + $0xe8] sm:$0xff]  ;;  %v7133_v58 = vpack.c.bf16 %v143_v21, %v141_v62  ;;  %v145_v21 = vld [vmem:[#allocation2 + $0x100] sm:$0xff] }
 0x2a0   :  { %2090 = vmatmul.bf16.gmra.mxu3 %v7119_v14  ;;  %v6213_v14 = vld [vmem:[#allocation6 + $0x14] sm:$0xf0] }
 0x2a1   :  { %11066 = vst [vmem:[#allocation117_spill] sm:$0xff] %v7133_v58 }
 0x2a2   :  { %v1366_v54 = vpop.f32.mrf.mxu2  ;;  %v1190_v22 = vpop.f32.mrf.mxu0 }
 0x2a3   :  { %v1455_v47 = vpop.f32.mrf.mxu3  ;;  %v1279_v60 = vpop.f32.mrf.mxu1 }
 0x2a4   :  { %v7129_v50 = vadd.f32 %v1455_v47, %v1366_v54  ;;  %v7131_v20 = vadd.f32 %v1279_v60, %v1190_v22  ;;  %v7135_v47 = vpack.c.bf16 %v144_v45, %v142_v59  ;;  %v147_v45 = vld [vmem:[#allocation2 + $0x110] sm:$0xff] }
 0x2a6   :  { %11064 = vst [vmem:[#allocation115_spill] sm:$0xff] %v7129_v50 }
 0x2a7   :  { %11065 = vst [vmem:[#allocation116_spill] sm:$0xff] %v7131_v20  ;;  %v151_v20 = vld [vmem:[#allocation2 + $0x130] sm:$0xff] }
 0x2a8   :  { %11067 = vst [vmem:[#allocation118_spill] sm:$0xff] %v7135_v47 }
 0x2aa   :  { %v1368_v3 = vpop.f32.mrf.mxu2  ;;  %v1193_v54 = vpop.f32.mrf.mxu0 }
 0x2ab   :  { %v1457_v27 = vpop.f32.mrf.mxu3  ;;  %v1282_v22 = vpop.f32.mrf.mxu1 }
 0x2ac   :  { %v7137_v9 = vadd.f32 %v1457_v27, %v1368_v3  ;;  %v7139_v60 = vadd.f32 %v1282_v22, %v1193_v54  ;;  %v7149_v27 = vpack.c.bf16 %v147_v45, %v145_v21  ;;  %v6251_v21 = vld [vmem:[#allocation6 + $0x14c] sm:$0xf] }
 0x2ad   :  { %1828 = vmatmul.bf16.gmra.mxu0 %v7133_v58 }
 0x2ae   :  { %11068 = vst [vmem:[#allocation119_spill] sm:$0xff] %v7137_v9  ;;  %1917 = vmatmul.bf16.gmra.mxu1 %v7135_v47 }
 0x2af   :  { %11069 = vst [vmem:[#allocation120_spill] sm:$0xff] %v7139_v60  ;;  %2006 = vmatmul.bf16.gmra.mxu2 %v7133_v58  ;;  %v7151_v60 = vpack.c.bf16 %v148_v30, %v146_v16  ;;  %v5870_v16 = vld [vmem:[#allocation6 + $0x158] sm:$0xf0] }
 0x2b0   :  { %2095 = vmatmul.bf16.gmra.mxu3 %v7135_v47  ;;  %11072 = vst [vmem:[#allocation123_spill] sm:$0xff] %v7149_v27 }
 0x2b1   :  { %11073 = vst [vmem:[#allocation124_spill] sm:$0xff] %v7151_v60 }
 0x2b2   :  { %v1371_v35 = vpop.f32.mrf.mxu2  ;;  %v1195_v52 = vpop.f32.mrf.mxu0 }
 0x2b3   :  { %v1460_v32 = vpop.f32.mrf.mxu3  ;;  %v1284_v59 = vpop.f32.mrf.mxu1 }
 0x2b4   :  { %v7145_v62 = vadd.f32 %v1460_v32, %v1371_v35  ;;  %v7147_v3 = vadd.f32 %v1284_v59, %v1195_v52  ;;  %v6219_v52 = vld [vmem:[#allocation6 + $0x4c] sm:$0xf]  ;;  %v5742_v59 = vld [vmem:[#allocation6 + $0x58] sm:$0xf0] }
 0x2b5   :  { %v5745_v45 = vor.u32 %v6219_v52, %v5742_v59  ;;  %v152_v52 = vld [vmem:[#allocation2 + $0x138] sm:$0xff]  ;;  %v5740_v59 = vld [vmem:[#allocation6 + $0x48] sm:$0xf] }
 0x2b6   :  { %11070 = vst [vmem:[#allocation121_spill] sm:$0xff] %v7145_v62  ;;  %v149_v62 = vld [vmem:[#allocation2 + $0x120] sm:$0xff] }
 0x2b7   :  { %11071 = vst [vmem:[#allocation122_spill] sm:$0xff] %v7147_v3  ;;  %2324 = vmatpush.bf16.msrb.mxu2 %v5745_v45  ;;  %v7168_v47 = vpack.c.bf16 %v151_v20, %v149_v62 }
 0x2b9   :  { %11078 = vst [vmem:[#allocation129_spill] sm:$0xff] %v7168_v47 }
 0x2ba   :  { %v1373_v63 = vpop.f32.mrf.mxu2  ;;  %v1794_v22 = vpop.f32.mrf.mxu0 }
 0x2bb   :  { %v1462_v54 = vpop.f32.mrf.mxu3  ;;  %v1795_v50 = vadd.f32 %v1794_v22, %v6707_v28  ;;  %v1883_v35 = vpop.f32.mrf.mxu1 }
 0x2bc   :  { %v7153_v9 = vadd.f32 %v1462_v54, %v1373_v63  ;;  %v5873_v63 = vor.u32 %v6251_v21, %v5870_v16  ;;  %v5868_v21 = vld [vmem:[#allocation6 + $0x148] sm:$0xf] }
 0x2bd   :  { %v7156_v32 = vadd.f32 %v1883_v35, %v1795_v50  ;;  %1833 = vmatmul.bf16.gmra.mxu0 %v7149_v27 }
 0x2be   :  { %11074 = vst [vmem:[#allocation125_spill] sm:$0xff] %v7153_v9  ;;  %1922 = vmatmul.bf16.gmra.mxu1 %v7151_v60  ;;  %2413 = vmatpush.bf16.msrb.mxu3 %v5873_v63 }
 0x2bf   :  { %11075 = vst [vmem:[#allocation126_spill] sm:$0xff] %v7156_v32  ;;  %2011 = vmatmul.bf16.gmra.mxu2 %v7149_v27  ;;  %v6221_v27 = vld [vmem:[#allocation6 + $0x54] sm:$0xf0] }
 0x2c0   :  { %2100 = vmatmul.bf16.gmra.mxu3 %v7151_v60  ;;  %v150_v60 = vld [vmem:[#allocation2 + $0x128] sm:$0xff]  ;;  %v5741_v16 = vor.u32 %v6221_v27, %v5740_v59 }
 0x2c2   :  { %v1972_v30 = vpop.f32.mrf.mxu2  ;;  %v1796_v50 = vpop.f32.mrf.mxu0  ;;  %2146 = vmatpush.bf16.msrb.mxu0 %v5741_v16  ;;  %v155_v16 = vld [vmem:[#allocation2 + $0x150] sm:$0xff] }
 0x2c3   :  { %v1973_v28 = vadd.f32 %v1972_v30, %v6713_v40  ;;  %v2061_v54 = vpop.f32.mrf.mxu3  ;;  %v1797_v22 = vadd.f32 %v1796_v50, %v6715_v42  ;;  %v1885_v35 = vpop.f32.mrf.mxu1  ;;  %v6253_v40 = vld [vmem:[#allocation6 + $0x154] sm:$0xf0] }
 0x2c4   :  { %v5869_v45 = vor.u32 %v6253_v40, %v5868_v21  ;;  %v153_v21 = vld [vmem:[#allocation2 + $0x140] sm:$0xff]  ;;  %v154_v40 = vld [vmem:[#allocation2 + $0x148] sm:$0xff] }
 0x2c5   :  { %v7164_v9 = vadd.f32 %v2061_v54, %v1973_v28  ;;  %v7166_v3 = vadd.f32 %v1885_v35, %v1797_v22  ;;  %v7171_v54 = vpack.c.bf16 %v152_v52, %v150_v60 }
 0x2c6   :  { %2235 = vmatpush.bf16.msrb.mxu1 %v5869_v45 }
 0x2c7   :  { %11076 = vst [vmem:[#allocation127_spill] sm:$0xff] %v7164_v9 }
 0x2c8   :  { %11077 = vst [vmem:[#allocation128_spill] sm:$0xff] %v7166_v3 }
 0x2c9   :  { %11079 = vst [vmem:[#allocation130_spill] sm:$0xff] %v7171_v54 }
 0x2ca   :  { %v1974_v30 = vpop.f32.mrf.mxu2  ;;  %v1799_v28 = vpop.f32.mrf.mxu0 }
 0x2cb   :  { %v1975_v42 = vadd.f32 %v1974_v30, %v6721_v0  ;;  %v2063_v63 = vpop.f32.mrf.mxu3  ;;  %v1800_v50 = vadd.f32 %v1799_v28, %v6723_v4  ;;  %v1888_v22 = vpop.f32.mrf.mxu1  ;;  %v156_v30 = vld [vmem:[#allocation2 + $0x158] sm:$0xff] }
 0x2cd   :  { %v7174_v35 = vadd.f32 %v2063_v63, %v1975_v42  ;;  %v7176_v58 = vadd.f32 %v1888_v22, %v1800_v50  ;;  %1838 = vmatmul.bf16.gmra.mxu0 %v7168_v47  ;;  %v7188_v42 = vpack.c.bf16 %v155_v16, %v153_v21  ;;  %v7191_v50 = vpack.c.bf16 %v156_v30, %v154_v40 }
 0x2ce   :  { %1927 = vmatmul.bf16.gmra.mxu1 %v7171_v54 }
 0x2cf   :  { %11080 = vst [vmem:[#allocation131_spill] sm:$0xff] %v7174_v35  ;;  %2016 = vmatmul.bf16.gmra.mxu2 %v7168_v47 }
 0x2d0   :  { %11081 = vst [vmem:[#allocation132_spill] sm:$0xff] %v7176_v58  ;;  %2105 = vmatmul.bf16.gmra.mxu3 %v7171_v54 }
 0x2d1   :  { %11084 = vst [vmem:[#allocation135_spill] sm:$0xff] %v7188_v42 }
 0x2d2   :  { %v1977_v0 = vpop.f32.mrf.mxu2  ;;  %v1801_v62 = vpop.f32.mrf.mxu0  ;;  %11085 = vst [vmem:[#allocation136_spill] sm:$0xff] %v7191_v50 }
 0x2d3   :  { %v1978_v20 = vadd.f32 %v1977_v0, %v6729_v10  ;;  %v2066_v60 = vpop.f32.mrf.mxu3  ;;  %v1802_v4 = vadd.f32 %v1801_v62, %v6731_v12  ;;  %v1890_v27 = vpop.f32.mrf.mxu1  ;;  %v6247_v62 = vld [vmem:[#allocation6 + $0x12c] sm:$0xf] }
 0x2d5   :  { %v7184_v52 = vadd.f32 %v2066_v60, %v1978_v20  ;;  %v7186_v59 = vadd.f32 %v1890_v27, %v1802_v4  ;;  %v5726_v60 = vld [vmem:[#allocation6 + $0x38] sm:$0xf0] }
 0x2d6   :  { %v5854_v27 = vld [vmem:[#allocation6 + $0x138] sm:$0xf0] }
 0x2d7   :  { %11082 = vst [vmem:[#allocation133_spill] sm:$0xff] %v7184_v52 }
 0x2d8   :  { %11083 = vst [vmem:[#allocation134_spill] sm:$0xff] %v7186_v59 }
 0x2da   :  { %v1979_v45 = vpop.f32.mrf.mxu2  ;;  %v1804_v10 = vpop.f32.mrf.mxu0 }
 0x2db   :  { %v1980_v63 = vadd.f32 %v1979_v45, %v6737_v29  ;;  %v2068_v28 = vpop.f32.mrf.mxu3  ;;  %v1805_v12 = vadd.f32 %v1804_v10, %v6739_v31  ;;  %v1893_v22 = vpop.f32.mrf.mxu1  ;;  %v6215_v29 = vld [vmem:[#allocation6 + $0x2c] sm:$0xf]  ;;  %v5857_v31 = vor.u32 %v6247_v62, %v5854_v27  ;;  %v5852_v62 = vld [vmem:[#allocation6 + $0x128] sm:$0xf] }
 0x2dc   :  { %v5729_v4 = vor.u32 %v6215_v29, %v5726_v60  ;;  %v160_v29 = vld [vmem:[#allocation2 + $0x178] sm:$0xff]  ;;  %v5724_v60 = vld [vmem:[#allocation6 + $0x28] sm:$0xf] }
 0x2dd   :  { %v7194_v0 = vadd.f32 %v2068_v28, %v1980_v63  ;;  %v7196_v20 = vadd.f32 %v1893_v22, %v1805_v12  ;;  %1843 = vmatmul.bf16.gmra.mxu0 %v7188_v42  ;;  %2414 = vmatpush.bf16.msrb.mxu3 %v5857_v31  ;;  %v157_v12 = vld [vmem:[#allocation2 + $0x160] sm:$0xff]  ;;  %v159_v22 = vld [vmem:[#allocation2 + $0x170] sm:$0xff] }
 0x2de   :  { %1932 = vmatmul.bf16.gmra.mxu1 %v7191_v50  ;;  %2325 = vmatpush.bf16.msrb.mxu2 %v5729_v4  ;;  %v7208_v54 = vpack.c.bf16 %v159_v22, %v157_v12 }
 0x2df   :  { %11086 = vst [vmem:[#allocation137_spill] sm:$0xff] %v7194_v0  ;;  %2021 = vmatmul.bf16.gmra.mxu2 %v7188_v42  ;;  %v6217_v42 = vld [vmem:[#allocation6 + $0x34] sm:$0xf0] }
 0x2e0   :  { %11087 = vst [vmem:[#allocation138_spill] sm:$0xff] %v7196_v20  ;;  %2110 = vmatmul.bf16.gmra.mxu3 %v7191_v50  ;;  %v158_v50 = vld [vmem:[#allocation2 + $0x168] sm:$0xff]  ;;  %v5725_v27 = vor.u32 %v6217_v42, %v5724_v60 }
 0x2e1   :  { %11090 = vst [vmem:[#allocation141_spill] sm:$0xff] %v7208_v54 }
 0x2e2   :  { %v1982_v21 = vpop.f32.mrf.mxu2  ;;  %v1806_v30 = vpop.f32.mrf.mxu0  ;;  %2147 = vmatpush.bf16.msrb.mxu0 %v5725_v27  ;;  %v161_v27 = vld [vmem:[#allocation2 + $0x180] sm:$0xff] }
 0x2e3   :  { %v1983_v16 = vadd.f32 %v1982_v21, %v6745_v46  ;;  %v2071_v40 = vpop.f32.mrf.mxu3  ;;  %v1807_v45 = vadd.f32 %v1806_v30, %v6747_v49  ;;  %v1895_v63 = vpop.f32.mrf.mxu1  ;;  %v6249_v46 = vld [vmem:[#allocation6 + $0x134] sm:$0xf0] }
 0x2e4   :  { %v5853_v4 = vor.u32 %v6249_v46, %v5852_v62  ;;  %v163_v46 = vld [vmem:[#allocation2 + $0x190] sm:$0xff] }
 0x2e5   :  { %v7204_v28 = vadd.f32 %v2071_v40, %v1983_v16  ;;  %v7206_v10 = vadd.f32 %v1895_v63, %v1807_v45  ;;  %v7211_v40 = vpack.c.bf16 %v160_v29, %v158_v50 }
 0x2e6   :  { %2236 = vmatpush.bf16.msrb.mxu1 %v5853_v4  ;;  %v164_v4 = vld [vmem:[#allocation2 + $0x198] sm:$0xff] }
 0x2e7   :  { %11088 = vst [vmem:[#allocation139_spill] sm:$0xff] %v7204_v28 }
 0x2e8   :  { %11089 = vst [vmem:[#allocation140_spill] sm:$0xff] %v7206_v10 }
 0x2e9   :  { %11091 = vst [vmem:[#allocation142_spill] sm:$0xff] %v7211_v40 }
 0x2ea   :  { %v1984_v21 = vpop.f32.mrf.mxu2  ;;  %v1809_v16 = vpop.f32.mrf.mxu0 }
 0x2eb   :  { %v1985_v49 = vadd.f32 %v1984_v21, %v6753_v15  ;;  %v2073_v31 = vpop.f32.mrf.mxu3  ;;  %v1810_v30 = vadd.f32 %v1809_v16, %v6755_v19  ;;  %v1898_v45 = vpop.f32.mrf.mxu1  ;;  %v11094_v19 = vld [vmem:[#allocation16_spill] sm:$0xff]  ;;  %v162_v21 = vld [vmem:[#allocation2 + $0x188] sm:$0xff]  ;;  %v11098_v16 = vld [vmem:[#allocation17_spill] sm:$0xff] }
 0x2ed   :  { %v7214_v63 = vadd.f32 %v2073_v31, %v1985_v49  ;;  %v7216_v47 = vadd.f32 %v1898_v45, %v1810_v30  ;;  %1848 = vmatmul.bf16.gmra.mxu0 %v7208_v54  ;;  %v7228_v31 = vpack.c.bf16 %v163_v46, %v161_v27  ;;  %v6243_v27 = vld [vmem:[#allocation6 + $0x10c] sm:$0xf] }
 0x2ee   :  { %1937 = vmatmul.bf16.gmra.mxu1 %v7211_v40 }
 0x2ef   :  { %11092 = vst [vmem:[#allocation143_spill] sm:$0xff] %v7214_v63  ;;  %2026 = vmatmul.bf16.gmra.mxu2 %v7208_v54 }
 0x2f0   :  { %11093 = vst [vmem:[#allocation144_spill] sm:$0xff] %v7216_v47  ;;  %2115 = vmatmul.bf16.gmra.mxu3 %v7211_v40  ;;  %v11100_v40 = vld [vmem:[#allocation18_spill] sm:$0xff] }
 0x2f1   :  { %11097 = vst [vmem:[#allocation146_spill] sm:$0xff] %v7228_v31 }
 0x2f2   :  { %v1987_v15 = vpop.f32.mrf.mxu2  ;;  %v1811_v12 = vpop.f32.mrf.mxu0 }
 0x2f3   :  { %v1988_v42 = vadd.f32 %v1987_v15, %v6761_v34  ;;  %v2076_v50 = vpop.f32.mrf.mxu3  ;;  %v1812_v22 = vadd.f32 %v1811_v12, %v11094_v19  ;;  %v1900_v29 = vpop.f32.mrf.mxu1  ;;  %v7231_v15 = vpack.c.bf16 %v164_v4, %v162_v21  ;;  %v5838_v21 = vld [vmem:[#allocation6 + $0x118] sm:$0xf0] }
 0x2f5   :  { %v7224_v60 = vadd.f32 %v2076_v50, %v1988_v42  ;;  %v7226_v62 = vadd.f32 %v1900_v29, %v1812_v22  ;;  %11099 = vst [vmem:[#allocation17_spill] sm:$0xff] %v7231_v15  ;;  %v6211_v22 = vld [vmem:[#allocation6 + $0xc] sm:$0xf]  ;;  %v5710_v29 = vld [vmem:[#allocation6 + $0x18] sm:$0xf0] }
 0x2f6   :  { %v5713_v46 = vor.u32 %v6211_v22, %v5710_v29  ;;  %v168_v22 = vld [vmem:[#allocation2 + $0x1b8] sm:$0xff]  ;;  %v5708_v29 = vld [vmem:[#allocation6 + $0x8] sm:$0xf] }
 0x2f7   :  { %11095 = vst [vmem:[#allocation16_spill] sm:$0xff] %v7224_v60 }
 0x2f8   :  { %11096 = vst [vmem:[#allocation145_spill] sm:$0xff] %v7226_v62  ;;  %2326 = vmatpush.bf16.msrb.mxu2 %v5713_v46 }
 0x2fa   :  { %v1989_v49 = vpop.f32.mrf.mxu2  ;;  %v1814_v34 = vpop.f32.mrf.mxu0 }
 0x2fb   :  { %v1990_v30 = vadd.f32 %v1989_v49, %v11098_v16  ;;  %v2078_v45 = vpop.f32.mrf.mxu3  ;;  %v1815_v12 = vadd.f32 %v1814_v34, %v11100_v40  ;;  %v1903_v19 = vpop.f32.mrf.mxu1  ;;  %v5841_v40 = vor.u32 %v6243_v27, %v5838_v21  ;;  %v11103_v49 = vld [vmem:[#allocation19_spill] sm:$0xff]  ;;  %v11104_v34 = vld [vmem:[#allocation20_spill] sm:$0xff]  ;;  %v5709_v21 = vor.u32 %v6213_v14, %v5708_v29 }
 0x2fc   :  { %v5836_v27 = vld [vmem:[#allocation6 + $0x108] sm:$0xf]  ;;  %v11114_v29 = vld [vmem:[#allocation24_spill] sm:$0xff] }
 0x2fd   :  { %v7234_v42 = vadd.f32 %v2078_v45, %v1990_v30  ;;  %v7236_v50 = vadd.f32 %v1903_v19, %v1815_v12  ;;  %1853 = vmatmul.bf16.gmra.mxu0 %v7228_v31  ;;  %2415 = vmatpush.bf16.msrb.mxu3 %v5841_v40 }
 0x2fe   :  { %1942 = vmatmul.bf16.gmra.mxu1 %v7231_v15  ;;  %2148 = vmatpush.bf16.msrb.mxu0 %v5709_v21 }
 0x2ff   :  { %11101 = vst [vmem:[#allocation18_spill] sm:$0xff] %v7234_v42  ;;  %2031 = vmatmul.bf16.gmra.mxu2 %v7228_v31 }
 0x300   :  { %11102 = vst [vmem:[#allocation147_spill] sm:$0xff] %v7236_v50  ;;  %2120 = vmatmul.bf16.gmra.mxu3 %v7231_v15  ;;  %v165_v15 = vld [vmem:[#allocation2 + $0x1a0] sm:$0xff] }
 0x301   :  { %v7248_v33 = vpack.c.bf16 %v167_v26, %v165_v15 }
 0x302   :  { %v1992_v4 = vpop.f32.mrf.mxu2  ;;  %v1816_v45 = vpop.f32.mrf.mxu0 }
 0x303   :  { %v1993_v16 = vadd.f32 %v1992_v4, %v11103_v49  ;;  %v2081_v30 = vpop.f32.mrf.mxu3  ;;  %v1817_v12 = vadd.f32 %v1816_v45, %v11104_v34  ;;  %v1905_v19 = vpop.f32.mrf.mxu1  ;;  %v6245_v4 = vld [vmem:[#allocation6 + $0x114] sm:$0xf0]  ;;  %11107 = vst [vmem:[#allocation148_spill] sm:$0xff] %v7248_v33 }
 0x304   :  { %v5837_v46 = vor.u32 %v6245_v4, %v5836_v27  ;;  %v11108_v45 = vld [vmem:[#allocation21_spill] sm:$0xff] }
 0x305   :  { %v7244_v54 = vadd.f32 %v2081_v30, %v1993_v16  ;;  %v7246_v31 = vadd.f32 %v1905_v19, %v1817_v12  ;;  %v7251_v30 = vpack.c.bf16 %v168_v22, %v166_v8  ;;  %v11110_v12 = vld [vmem:[#allocation22_spill] sm:$0xff]  ;;  %v11113_v8 = vld [vmem:[#allocation23_spill] sm:$0xff] }
 0x306   :  { %2237 = vmatpush.bf16.msrb.mxu1 %v5837_v46  ;;  %v171_v46 = vld [vmem:[#allocation2 + $0x1d0] sm:$0xff] }
 0x307   :  { %11105 = vst [vmem:[#allocation19_spill] sm:$0xff] %v7244_v54 }
 0x308   :  { %11106 = vst [vmem:[#allocation20_spill] sm:$0xff] %v7246_v31 }
 0x309   :  { %11109 = vst [vmem:[#allocation21_spill] sm:$0xff] %v7251_v30 }
 0x30a   :  { %v1994_v49 = vpop.f32.mrf.mxu2  ;;  %v1819_v16 = vpop.f32.mrf.mxu0 }
 0x30b   :  { %v1995_v34 = vadd.f32 %v1994_v49, %v11108_v45  ;;  %v2083_v40 = vpop.f32.mrf.mxu3  ;;  %v1820_v19 = vadd.f32 %v1819_v16, %v11110_v12  ;;  %v1908_v7 = vpop.f32.mrf.mxu1  ;;  %v169_v49 = vld [vmem:[#allocation2 + $0x1c0] sm:$0xff]  ;;  %v170_v45 = vld [vmem:[#allocation2 + $0x1c8] sm:$0xff]  ;;  %v11118_v12 = vld [vmem:[#allocation25_spill] sm:$0xff] }
 0x30c   :  { %v7268_v16 = vpack.c.bf16 %v171_v46, %v169_v49 }
 0x30d   :  { %v7254_v53 = vadd.f32 %v2083_v40, %v1995_v34  ;;  %v7256_v38 = vadd.f32 %v1908_v7, %v1820_v19  ;;  %1858 = vmatmul.bf16.gmra.mxu0 %v7248_v33  ;;  %v172_v34 = vld [vmem:[#allocation2 + $0x1d8] sm:$0xff] }
 0x30e   :  { %1947 = vmatmul.bf16.gmra.mxu1 %v7251_v30  ;;  %11117 = vst [vmem:[#allocation150_spill] sm:$0xff] %v7268_v16 }
 0x30f   :  { %11111 = vst [vmem:[#allocation22_spill] sm:$0xff] %v7254_v53  ;;  %2036 = vmatmul.bf16.gmra.mxu2 %v7248_v33  ;;  %v11120_v33 = vld [vmem:[#allocation26_spill] sm:$0xff] }
 0x310   :  { %11112 = vst [vmem:[#allocation149_spill] sm:$0xff] %v7256_v38  ;;  %2125 = vmatmul.bf16.gmra.mxu3 %v7251_v30 }
 0x312   :  { %v1997_v26 = vpop.f32.mrf.mxu2  ;;  %v1821_v22 = vpop.f32.mrf.mxu0 }
 0x313   :  { %v1998_v14 = vadd.f32 %v1997_v26, %v11113_v8  ;;  %v2086_v15 = vpop.f32.mrf.mxu3  ;;  %v1822_v27 = vadd.f32 %v1821_v22, %v11114_v29  ;;  %v1910_v21 = vpop.f32.mrf.mxu1  ;;  %v7271_v8 = vpack.c.bf16 %v172_v34, %v170_v45 }
 0x315   :  { %v7264_v4 = vadd.f32 %v2086_v15, %v1998_v14  ;;  %v7266_v7 = vadd.f32 %v1910_v21, %v1822_v27  ;;  %11119 = vst [vmem:[#allocation25_spill] sm:$0xff] %v7271_v8 }
 0x317   :  { %11115 = vst [vmem:[#allocation23_spill] sm:$0xff] %v7264_v4 }
 0x318   :  { %11116 = vst [vmem:[#allocation24_spill] sm:$0xff] %v7266_v7 }
 0x31a   :  { %v1999_v40 = vpop.f32.mrf.mxu2  ;;  %v1824_v26 = vpop.f32.mrf.mxu0 }
 0x31b   :  { %v2000_v19 = vadd.f32 %v1999_v40, %v11118_v12  ;;  %v2088_v30 = vpop.f32.mrf.mxu3  ;;  %v1825_v22 = vadd.f32 %v1824_v26, %v11120_v33  ;;  %v1913_v29 = vpop.f32.mrf.mxu1  ;;  %v173_v40 = vld [vmem:[#allocation2 + $0x1e0] sm:$0xff]  ;;  %v175_v12 = vld [vmem:[#allocation2 + $0x1f0] sm:$0xff]  ;;  %v176_v26 = vld [vmem:[#allocation2 + $0x1f8] sm:$0xff] }
 0x31d   :  { %v7274_v14 = vadd.f32 %v2088_v30, %v2000_v19  ;;  %v7276_v15 = vadd.f32 %v1913_v29, %v1825_v22  ;;  %1863 = vmatmul.bf16.gmra.mxu0 %v7268_v16  ;;  %v174_v19 = vld [vmem:[#allocation2 + $0x1e8] sm:$0xff]  ;;  %v7288_v29 = vpack.c.bf16 %v175_v12, %v173_v40 }
 0x31e   :  { %1952 = vmatmul.bf16.gmra.mxu1 %v7271_v8 }
 0x31f   :  { %11121 = vst [vmem:[#allocation26_spill] sm:$0xff] %v7274_v14  ;;  %2041 = vmatmul.bf16.gmra.mxu2 %v7268_v16  ;;  %v11128_v14 = vld [vmem:[#allocation28_spill] sm:$0xff] }
 0x320   :  { %11122 = vst [vmem:[#allocation151_spill] sm:$0xff] %v7276_v15  ;;  %2130 = vmatmul.bf16.gmra.mxu3 %v7271_v8  ;;  %v11126_v8 = vld [vmem:[#allocation27_spill] sm:$0xff] }
 0x321   :  { %11125 = vst [vmem:[#allocation154_spill] sm:$0xff] %v7288_v29 }
 0x322   :  { %v2002_v27 = vpop.f32.mrf.mxu2  ;;  %v1826_v46 = vpop.f32.mrf.mxu0 }
 0x323   :  { %v2003_v21 = vadd.f32 %v2002_v27, %v6809_v11  ;;  %v2091_v49 = vpop.f32.mrf.mxu3  ;;  %v1827_v33 = vadd.f32 %v1826_v46, %v6811_v5  ;;  %v1915_v45 = vpop.f32.mrf.mxu1  ;;  %v7291_v27 = vpack.c.bf16 %v176_v26, %v174_v19  ;;  %v11132_v19 = vld [vmem:[#allocation30_spill] sm:$0xff] }
 0x325   :  { %v7284_v30 = vadd.f32 %v2091_v49, %v2003_v21  ;;  %v7286_v34 = vadd.f32 %v1915_v45, %v1827_v33  ;;  %11127 = vst [vmem:[#allocation27_spill] sm:$0xff] %v7291_v27  ;;  %v11131_v33 = vld [vmem:[#allocation29_spill] sm:$0xff] }
 0x327   :  { %11123 = vst [vmem:[#allocation152_spill] sm:$0xff] %v7284_v30 }
 0x328   :  { %11124 = vst [vmem:[#allocation153_spill] sm:$0xff] %v7286_v34 }
 0x32a   :  { %v2004_v22 = vpop.f32.mrf.mxu2  ;;  %v1829_v11 = vpop.f32.mrf.mxu0 }
 0x32b   :  { %v2005_v16 = vadd.f32 %v2004_v22, %v11126_v8  ;;  %v2093_v57 = vpop.f32.mrf.mxu3  ;;  %v1830_v5 = vadd.f32 %v1829_v11, %v11128_v14  ;;  %v1918_v46 = vpop.f32.mrf.mxu1  ;;  %v11135_v11 = vld [vmem:[#allocation31_spill] sm:$0xff] }
 0x32d   :  { %v7294_v21 = vadd.f32 %v2093_v57, %v2005_v16  ;;  %v7296_v49 = vadd.f32 %v1918_v46, %v1830_v5  ;;  %1868 = vmatmul.bf16.gmra.mxu0 %v7288_v29 }
 0x32e   :  { %1957 = vmatmul.bf16.gmra.mxu1 %v7291_v27 }
 0x32f   :  { %11129 = vst [vmem:[#allocation28_spill] sm:$0xff] %v7294_v21  ;;  %2046 = vmatmul.bf16.gmra.mxu2 %v7288_v29  ;;  %v11136_v29 = vld [vmem:[#allocation32_spill] sm:$0xff] }
 0x330   :  { %11130 = vst [vmem:[#allocation155_spill] sm:$0xff] %v7296_v49  ;;  %2135 = vmatmul.bf16.gmra.mxu3 %v7291_v27 }
 0x332   :  { %v2007_v8 = vpop.f32.mrf.mxu2  ;;  %v1831_v12 = vpop.f32.mrf.mxu0 }
 0x333   :  { %v2008_v45 = vadd.f32 %v2007_v8, %v11131_v33  ;;  %v2096_v40 = vpop.f32.mrf.mxu3  ;;  %v1832_v14 = vadd.f32 %v1831_v12, %v11132_v19  ;;  %v1920_v26 = vpop.f32.mrf.mxu1 }
 0x335   :  { %v7304_v57 = vadd.f32 %v2096_v40, %v2008_v45  ;;  %v7306_v16 = vadd.f32 %v1920_v26, %v1832_v14 }
 0x337   :  { %11133 = vst [vmem:[#allocation29_spill] sm:$0xff] %v7304_v57 }
 0x338   :  { %11134 = vst [vmem:[#allocation30_spill] sm:$0xff] %v7306_v16 }
 0x33a   :  { %v2009_v22 = vpop.f32.mrf.mxu2  ;;  %v1834_v21 = vpop.f32.mrf.mxu0 }
 0x33b   :  { %v2010_v5 = vadd.f32 %v2009_v22, %v11135_v11  ;;  %v2098_v46 = vpop.f32.mrf.mxu3  ;;  %v1835_v30 = vadd.f32 %v1834_v21, %v11136_v29  ;;  %v1923_v27 = vpop.f32.mrf.mxu1 }
 0x33d   :  { %v7310_v4 = vadd.f32 %v2098_v46, %v2010_v5  ;;  %v7312_v8 = vadd.f32 %v1923_v27, %v1835_v30  ;;  %2149 = vmatmul.bf16.vlgmr.msrb.gmra.mxu0 %v7021_v6  ;;  %v11143_v5 = vld [vmem:[#allocation33_spill] sm:$0xff] }
 0x33e   :  { %2238 = vmatmul.bf16.vlgmr.msrb.gmra.mxu1 %v7023_v39 }
 0x33f   :  { %11137 = vst [vmem:[#allocation31_spill] sm:$0xff] %v7310_v4  ;;  %2327 = vmatmul.bf16.vlgmr.msrb.gmra.mxu2 %v7021_v6 }
 0x340   :  { %11138 = vst [vmem:[#allocation32_spill] sm:$0xff] %v7312_v8  ;;  %2416 = vmatmul.bf16.vlgmr.msrb.gmra.mxu3 %v7023_v39 }
 0x342   :  { %v2012_v33 = vpop.f32.mrf.mxu2  ;;  %v1836_v12 = vpop.f32.mrf.mxu0 }
 0x343   :  { %v2013_v45 = vadd.f32 %v2012_v33, %v6837_v23  ;;  %v2101_v40 = vpop.f32.mrf.mxu3  ;;  %v1837_v29 = vadd.f32 %v1836_v12, %v6839_v44  ;;  %v1925_v21 = vpop.f32.mrf.mxu1 }
 0x345   :  { %v7320_v19 = vadd.f32 %v2101_v40, %v2013_v45  ;;  %v7322_v30 = vadd.f32 %v1925_v21, %v1837_v29  ;;  %v11144_v45 = vld [vmem:[#allocation34_spill] sm:$0xff] }
 0x347   :  { %11139 = vst [vmem:[#allocation156_spill] sm:$0xff] %v7320_v19 }
 0x348   :  { %11140 = vst [vmem:[#allocation157_spill] sm:$0xff] %v7322_v30 }
 0x34a   :  { %v2014_v27 = vpop.f32.mrf.mxu2  ;;  %v1839_v22 = vpop.f32.mrf.mxu0 }
 0x34b   :  { %v2015_v14 = vadd.f32 %v2014_v27, %v6841_v56  ;;  %v2103_v26 = vpop.f32.mrf.mxu3  ;;  %v1840_v6 = vadd.f32 %v1839_v22, %v6843_v36  ;;  %v1928_v39 = vpop.f32.mrf.mxu1  ;;  %v11147_v27 = vld [vmem:[#allocation35_spill] sm:$0xff] }
 0x34d   :  { %v7326_v11 = vadd.f32 %v2103_v26, %v2015_v14  ;;  %v7328_v23 = vadd.f32 %v1928_v39, %v1840_v6  ;;  %2154 = vmatmul.bf16.gmra.mxu0 %v7037_v25 }
 0x34e   :  { %2243 = vmatmul.bf16.gmra.mxu1 %v7039_v61 }
 0x34f   :  { %11141 = vst [vmem:[#allocation158_spill] sm:$0xff] %v7326_v11  ;;  %2332 = vmatmul.bf16.gmra.mxu2 %v7037_v25  ;;  %v11148_v25 = vld [vmem:[#allocation36_spill] sm:$0xff] }
 0x350   :  { %11142 = vst [vmem:[#allocation159_spill] sm:$0xff] %v7328_v23  ;;  %2421 = vmatmul.bf16.gmra.mxu3 %v7039_v61 }
 0x352   :  { %v2017_v44 = vpop.f32.mrf.mxu2  ;;  %v1841_v33 = vpop.f32.mrf.mxu0 }
 0x353   :  { %v2018_v56 = vadd.f32 %v2017_v44, %v11143_v5  ;;  %v2106_v46 = vpop.f32.mrf.mxu3  ;;  %v1842_v36 = vadd.f32 %v1841_v33, %v11144_v45  ;;  %v1930_v40 = vpop.f32.mrf.mxu1  ;;  %v2498_v45 = vadd.f32 %v7166_v3, %v7156_v32  ;;  %v6004_v3 = vld [vmem:[#allocation7 + $0x60] sm:$0xf]  ;;  %v6367_v32 = vld [vmem:[#allocation7 + $0xe4] sm:$0xf0] }
 0x355   :  { %v7336_v12 = vadd.f32 %v2106_v46, %v2018_v56  ;;  %v7338_v29 = vadd.f32 %v1930_v40, %v1842_v36 }
 0x357   :  { %11145 = vst [vmem:[#allocation33_spill] sm:$0xff] %v7336_v12 }
 0x358   :  { %11146 = vst [vmem:[#allocation34_spill] sm:$0xff] %v7338_v29 }
 0x35a   :  { %v2019_v21 = vpop.f32.mrf.mxu2  ;;  %v1844_v22 = vpop.f32.mrf.mxu0 }
 0x35b   :  { %v2020_v14 = vadd.f32 %v2019_v21, %v11147_v27  ;;  %v2108_v26 = vpop.f32.mrf.mxu3  ;;  %v1845_v6 = vadd.f32 %v1844_v22, %v11148_v25  ;;  %v1933_v61 = vpop.f32.mrf.mxu1  ;;  %v2499_v27 = vadd.f32 %v2498_v45, %v7176_v58  ;;  %v11155_v45 = vld [vmem:[#allocation37_spill] sm:$0xff] }
 0x35d   :  { %v7342_v39 = vadd.f32 %v2108_v26, %v2020_v14  ;;  %v7344_v44 = vadd.f32 %v1933_v61, %v1845_v6  ;;  %2159 = vmatmul.bf16.gmra.mxu0 %v7053_v41 }
 0x35e   :  { %2248 = vmatmul.bf16.gmra.mxu1 %v7055_v13 }
 0x35f   :  { %11149 = vst [vmem:[#allocation35_spill] sm:$0xff] %v7342_v39  ;;  %2337 = vmatmul.bf16.gmra.mxu2 %v7053_v41  ;;  %v2500_v41 = vadd.f32 %v2499_v27, %v7186_v59 }
 0x360   :  { %11150 = vst [vmem:[#allocation36_spill] sm:$0xff] %v7344_v44  ;;  %2426 = vmatmul.bf16.gmra.mxu3 %v7055_v13 }
 0x361   :  { %v2501_v13 = vadd.f32 %v2500_v41, %v7196_v20  ;;  %v6076_v20 = vld [vmem:[#allocation7 + $0xf0] sm:$0xf] }
 0x362   :  { %v2022_v5 = vpop.f32.mrf.mxu2  ;;  %v1846_v33 = vpop.f32.mrf.mxu0 }
 0x363   :  { %v2023_v56 = vadd.f32 %v2022_v5, %v6861_v37  ;;  %v2111_v46 = vpop.f32.mrf.mxu3  ;;  %v1847_v36 = vadd.f32 %v1846_v33, %v6863_v48  ;;  %v1935_v40 = vpop.f32.mrf.mxu1  ;;  %v2502_v6 = vadd.f32 %v2501_v13, %v7206_v10  ;;  %v11156_v13 = vld [vmem:[#allocation38_spill] sm:$0xff]  ;;  %v6012_v10 = vld [vmem:[#allocation7 + $0x70] sm:$0xf] }
 0x365   :  { %v7354_v21 = vadd.f32 %v2111_v46, %v2023_v56  ;;  %v7357_v14 = vadd.f32 %v1935_v40, %v1847_v36  ;;  %v2503_v56 = vadd.f32 %v2502_v6, %v7216_v47 }
 0x367   :  { %11151 = vst [vmem:[#allocation160_spill] sm:$0xff] %v7354_v21 }
 0x368   :  { %11152 = vst [vmem:[#allocation161_spill] sm:$0xff] %v7357_v14 }
 0x36a   :  { %v2024_v26 = vpop.f32.mrf.mxu2  ;;  %v1849_v25 = vpop.f32.mrf.mxu0 }
 0x36b   :  { %v2025_v37 = vadd.f32 %v2024_v26, %v6865_v18  ;;  %v2113_v22 = vpop.f32.mrf.mxu3  ;;  %v1850_v48 = vadd.f32 %v1849_v25, %v6867_v1  ;;  %v1938_v61 = vpop.f32.mrf.mxu1  ;;  %v2504_v18 = vadd.f32 %v2503_v56, %v7226_v62 }
 0x36d   :  { %v7364_v5 = vadd.f32 %v2113_v22, %v2025_v37  ;;  %v7367_v46 = vadd.f32 %v1938_v61, %v1850_v48  ;;  %2164 = vmatmul.bf16.gmra.mxu0 %v7069_v55  ;;  %v2505_v33 = vadd.f32 %v2504_v18, %v7236_v50 }
 0x36e   :  { %2253 = vmatmul.bf16.gmra.mxu1 %v7071_v51 }
 0x36f   :  { %11153 = vst [vmem:[#allocation162_spill] sm:$0xff] %v7364_v5  ;;  %2342 = vmatmul.bf16.gmra.mxu2 %v7069_v55  ;;  %v2506_v41 = vadd.f32 %v2505_v33, %v7246_v31  ;;  %v11159_v33 = vld [vmem:[#allocation39_spill] sm:$0xff]  ;;  %v11249_v31 = vld [vmem:[#allocation82_spill] sm:$0xff] }
 0x370   :  { %11154 = vst [vmem:[#allocation163_spill] sm:$0xff] %v7367_v46  ;;  %2431 = vmatmul.bf16.gmra.mxu3 %v7071_v51  ;;  %v2535_v51 = vadd.f32 %v7174_v35, %v7164_v9 }
 0x371   :  { %v2507_v55 = vadd.f32 %v2506_v41, %v7256_v38 }
 0x372   :  { %v2027_v1 = vpop.f32.mrf.mxu2  ;;  %v1851_v27 = vpop.f32.mrf.mxu0  ;;  %v2536_v48 = vadd.f32 %v2535_v51, %v7184_v52 }
 0x373   :  { %v2028_v36 = vadd.f32 %v2027_v1, %v11155_v45  ;;  %v2116_v40 = vpop.f32.mrf.mxu3  ;;  %v1852_v26 = vadd.f32 %v1851_v27, %v11156_v13  ;;  %v1940_v37 = vpop.f32.mrf.mxu1  ;;  %v2508_v6 = vadd.f32 %v2507_v55, %v7266_v7  ;;  %v11160_v27 = vld [vmem:[#allocation40_spill] sm:$0xff] }
 0x374   :  { %v2537_v18 = vadd.f32 %v2536_v48, %v7194_v0  ;;  %v6399_v0 = vld [vmem:[#allocation7 + $0x1e4] sm:$0xf0] }
 0x375   :  { %v7378_v22 = vadd.f32 %v2116_v40, %v2028_v36  ;;  %v7381_v25 = vadd.f32 %v1940_v37, %v1852_v26  ;;  %v2509_v61 = vadd.f32 %v2508_v6, %v7276_v15  ;;  %v11245_v15 = vld [vmem:[#allocation78_spill] sm:$0xff] }
 0x376   :  { %v2538_v26 = vadd.f32 %v2537_v18, %v7204_v28 }
 0x377   :  { %11157 = vst [vmem:[#allocation37_spill] sm:$0xff] %v7378_v22  ;;  %v2510_v40 = vadd.f32 %v2509_v61, %v7286_v34 }
 0x378   :  { %11158 = vst [vmem:[#allocation38_spill] sm:$0xff] %v7381_v25  ;;  %v2539_v6 = vadd.f32 %v2538_v26, %v7214_v63  ;;  %v6369_v63 = vld [vmem:[#allocation7 + $0xf4] sm:$0xf0] }
 0x379   :  { %v2511_v55 = vadd.f32 %v2510_v40, %v7296_v49  ;;  %v11213_v49 = vld [vmem:[#allocation61_spill] sm:$0xff]  ;;  %v6077_v59 = vor.u32 %v6369_v63, %v6076_v20  ;;  %v6383_v63 = vld [vmem:[#allocation7 + $0x164] sm:$0xf0] }
 0x37a   :  { %v2029_v56 = vpop.f32.mrf.mxu2  ;;  %v1854_v36 = vpop.f32.mrf.mxu0  ;;  %v2540_v61 = vadd.f32 %v2539_v6, %v7224_v60  ;;  %v6353_v60 = vld [vmem:[#allocation7 + $0x74] sm:$0xf0] }
 0x37b   :  { %v2030_v1 = vadd.f32 %v2029_v56, %v11159_v33  ;;  %v2118_v45 = vpop.f32.mrf.mxu3  ;;  %v1855_v41 = vadd.f32 %v1854_v36, %v11160_v27  ;;  %v1943_v13 = vpop.f32.mrf.mxu1  ;;  %v2512_v48 = vadd.f32 %v2511_v55, %v7306_v16  ;;  %4064 = vmatpush.bf16.msra.mxu1 %v6077_v59  ;;  %v6132_v59 = vld [vmem:[#allocation7 + $0x160] sm:$0xf] }
 0x37c   :  { %v2541_v33 = vadd.f32 %v2540_v61, %v7234_v42 }
 0x37d   :  { %v7393_v37 = vadd.f32 %v2118_v45, %v2030_v1  ;;  %v7396_v51 = vadd.f32 %v1943_v13, %v1855_v41  ;;  %2169 = vmatmul.bf16.gmra.mxu0 %v7085_v24  ;;  %v2513_v56 = vadd.f32 %v2512_v48, %v7312_v8 }
 0x37e   :  { %2258 = vmatmul.bf16.gmra.mxu1 %v7087_v17  ;;  %v2542_v41 = vadd.f32 %v2541_v33, %v7244_v54 }
 0x37f   :  { %11161 = vst [vmem:[#allocation39_spill] sm:$0xff] %v7393_v37  ;;  %2347 = vmatmul.bf16.gmra.mxu2 %v7085_v24  ;;  %v2514_v40 = vadd.f32 %v2513_v56, %v7322_v30 }
 0x380   :  { %11162 = vst [vmem:[#allocation40_spill] sm:$0xff] %v7396_v51  ;;  %2436 = vmatmul.bf16.gmra.mxu3 %v7087_v17  ;;  %v2543_v55 = vadd.f32 %v2542_v41, %v7254_v53  ;;  %v11252_v53 = vld [vmem:[#allocation83_spill] sm:$0xff] }
 0x381   :  { %v2515_v17 = vadd.f32 %v2514_v40, %v7328_v23  ;;  %v11168_v40 = vld [vmem:[#allocation42_spill] sm:$0xff]  ;;  %v11169_v23 = vld [vmem:[#allocation152_spill] sm:$0xff] }
 0x382   :  { %v2032_v18 = vpop.f32.mrf.mxu2  ;;  %v1856_v36 = vpop.f32.mrf.mxu0 }
 0x383   :  { %v2033_v1 = vadd.f32 %v2032_v18, %v6885_v43  ;;  %v2121_v45 = vpop.f32.mrf.mxu3  ;;  %v1857_v27 = vadd.f32 %v1856_v36, %v6887_v2  ;;  %v1945_v24 = vpop.f32.mrf.mxu1  ;;  %v2516_v6 = vadd.f32 %v2515_v17, %v7338_v29  ;;  %v11165_v43 = vld [vmem:[#allocation23_spill] sm:$0xff]  ;;  %v11166_v18 = vld [vmem:[#allocation26_spill] sm:$0xff]  ;;  %v11167_v36 = vld [vmem:[#allocation41_spill] sm:$0xff] }
 0x384   :  { %v2544_v48 = vadd.f32 %v2543_v55, %v11165_v43 }
 0x385   :  { %v7411_v13 = vadd.f32 %v2121_v45, %v2033_v1  ;;  %v7414_v26 = vadd.f32 %v1945_v24, %v1857_v27  ;;  %v2517_v61 = vadd.f32 %v2516_v6, %v7344_v44  ;;  %v11171_v6 = vld [vmem:[#allocation105_spill] sm:$0xff] }
 0x386   :  { %v2545_v2 = vadd.f32 %v2544_v48, %v11166_v18  ;;  %v11172_v48 = vld [vmem:[#allocation28_spill] sm:$0xff] }
 0x387   :  { %11163 = vst [vmem:[#allocation164_spill] sm:$0xff] %v7411_v13  ;;  %v2518_v45 = vadd.f32 %v2517_v61, %v7357_v14  ;;  %v11191_v14 = vld [vmem:[#allocation54_spill] sm:$0xff] }
 0x388   :  { %11164 = vst [vmem:[#allocation165_spill] sm:$0xff] %v7414_v26  ;;  %v2546_v41 = vadd.f32 %v2545_v2, %v11169_v23 }
 0x389   :  { %v2519_v17 = vadd.f32 %v2518_v45, %v7367_v46 }
 0x38a   :  { %v2034_v56 = vpop.f32.mrf.mxu2  ;;  %v1859_v1 = vpop.f32.mrf.mxu0  ;;  %v2547_v44 = vadd.f32 %v2546_v41, %v11172_v48  ;;  %v11175_v41 = vld [vmem:[#allocation44_spill] sm:$0xff] }
 0x38b   :  { %v2035_v30 = vadd.f32 %v2034_v56, %v11167_v36  ;;  %v2123_v33 = vpop.f32.mrf.mxu3  ;;  %v1860_v27 = vadd.f32 %v1859_v1, %v11168_v40  ;;  %v1948_v24 = vpop.f32.mrf.mxu1  ;;  %v11173_v56 = vld [vmem:[#allocation106_spill] sm:$0xff]  ;;  %v2520_v61 = vadd.f32 %v2519_v17, %v7381_v25  ;;  %v11174_v1 = vld [vmem:[#allocation43_spill] sm:$0xff] }
 0x38c   :  { %v2548_v2 = vadd.f32 %v2547_v44, %v7304_v57 }
 0x38d   :  { %v7425_v8 = vadd.f32 %v2123_v33, %v2035_v30  ;;  %v7428_v55 = vadd.f32 %v1948_v24, %v1860_v27  ;;  %2174 = vmatmul.bf16.gmra.mxu0 %v11171_v6  ;;  %v2521_v30 = vadd.f32 %v2520_v61, %v7396_v51 }
 0x38e   :  { %2263 = vmatmul.bf16.gmra.mxu1 %v11173_v56  ;;  %v2549_v33 = vadd.f32 %v2548_v2, %v7310_v4 }
 0x38f   :  { %11170 = vst [vmem:[#allocation41_spill] sm:$0xff] %v7425_v8  ;;  %2352 = vmatmul.bf16.gmra.mxu2 %v11171_v6  ;;  %v2522_v24 = vadd.f32 %v2521_v30, %v7414_v26  ;;  %v11177_v26 = vld [vmem:[#allocation45_spill] sm:$0xff] }
 0x390   :  { %2441 = vmatmul.bf16.gmra.mxu3 %v11173_v56  ;;  %v2550_v17 = vadd.f32 %v2549_v33, %v7320_v19  ;;  %v11178_v33 = vld [vmem:[#allocation46_spill] sm:$0xff] }
 0x391   :  { %v2523_v44 = vadd.f32 %v2522_v24, %v7428_v55 }
 0x392   :  { %v2037_v36 = vpop.f32.mrf.mxu2  ;;  %v1861_v27 = vpop.f32.mrf.mxu0  ;;  %v2551_v61 = vadd.f32 %v2550_v17, %v7326_v11  ;;  %v11180_v17 = vld [vmem:[#allocation111_spill] sm:$0xff] }
 0x393   :  { %v2038_v45 = vadd.f32 %v2037_v36, %v11174_v1  ;;  %v2126_v40 = vpop.f32.mrf.mxu3  ;;  %v1862_v46 = vadd.f32 %v1861_v27, %v11175_v41  ;;  %v1950_v6 = vpop.f32.mrf.mxu1 }
 0x394   :  { %v2552_v36 = vadd.f32 %v2551_v61, %v7336_v12  ;;  %v11181_v61 = vld [vmem:[#allocation112_spill] sm:$0xff] }
 0x395   :  { %v7443_v25 = vadd.f32 %v2126_v40, %v2038_v45  ;;  %v7446_v56 = vadd.f32 %v1950_v6, %v1862_v46 }
 0x396   :  { %v2553_v30 = vadd.f32 %v2552_v36, %v7342_v39 }
 0x397   :  { %11176 = vst [vmem:[#allocation42_spill] sm:$0xff] %v7443_v25  ;;  %v2524_v2 = vadd.f32 %v2523_v44, %v7446_v56 }
 0x398   :  { %v2554_v24 = vadd.f32 %v2553_v30, %v7354_v21  ;;  %v11182_v30 = vld [vmem:[#allocation47_spill] sm:$0xff] }
 0x39a   :  { %v2039_v1 = vpop.f32.mrf.mxu2  ;;  %v1864_v51 = vpop.f32.mrf.mxu0  ;;  %v2555_v44 = vadd.f32 %v2554_v24, %v7364_v5 }
 0x39b   :  { %v2040_v27 = vadd.f32 %v2039_v1, %v11177_v26  ;;  %v2128_v41 = vpop.f32.mrf.mxu3  ;;  %v1865_v45 = vadd.f32 %v1864_v51, %v11178_v33  ;;  %v1953_v40 = vpop.f32.mrf.mxu1 }
 0x39c   :  { %v2556_v51 = vadd.f32 %v2555_v44, %v7378_v22 }
 0x39d   :  { %v7455_v46 = vadd.f32 %v2128_v41, %v2040_v27  ;;  %v7457_v6 = vadd.f32 %v1953_v40, %v1865_v45  ;;  %2179 = vmatmul.bf16.gmra.mxu0 %v11180_v17  ;;  %v11183_v45 = vld [vmem:[#allocation48_spill] sm:$0xff] }
 0x39e   :  { %2268 = vmatmul.bf16.gmra.mxu1 %v11181_v61  ;;  %v2557_v1 = vadd.f32 %v2556_v51, %v7393_v37 }
 0x39f   :  { %11179 = vst [vmem:[#allocation105_spill] sm:$0xff] %v7455_v46  ;;  %2357 = vmatmul.bf16.gmra.mxu2 %v11180_v17  ;;  %v2525_v26 = vadd.f32 %v2524_v2, %v7457_v6 }
 0x3a0   :  { %2446 = vmatmul.bf16.gmra.mxu3 %v11181_v61  ;;  %v2558_v5 = vadd.f32 %v2557_v1, %v7411_v13 }
 0x3a2   :  { %v2042_v36 = vpop.f32.mrf.mxu2  ;;  %v1866_v33 = vpop.f32.mrf.mxu0  ;;  %v2559_v2 = vadd.f32 %v2558_v5, %v7425_v8  ;;  %v11186_v5 = vld [vmem:[#allocation117_spill] sm:$0xff] }
 0x3a3   :  { %v2043_v27 = vadd.f32 %v2042_v36, %v11182_v30  ;;  %v2131_v41 = vpop.f32.mrf.mxu3  ;;  %v1867_v40 = vadd.f32 %v1866_v33, %v11183_v45  ;;  %v1955_v24 = vpop.f32.mrf.mxu1  ;;  %v11184_v30 = vld [vmem:[#allocation49_spill] sm:$0xff]  ;;  %v11185_v45 = vld [vmem:[#allocation50_spill] sm:$0xff] }
 0x3a4   :  { %v2560_v61 = vadd.f32 %v2559_v2, %v7443_v25 }
 0x3a5   :  { %v7470_v21 = vadd.f32 %v2131_v41, %v2043_v27  ;;  %v7472_v17 = vadd.f32 %v1955_v24, %v1867_v40  ;;  %v11187_v24 = vld [vmem:[#allocation118_spill] sm:$0xff] }
 0x3a6   :  { %v2561_v36 = vadd.f32 %v2560_v61, %v7455_v46 }
 0x3a7   :  { %v2526_v44 = vadd.f32 %v2525_v26, %v7472_v17 }
 0x3a8   :  { %v2562_v27 = vadd.f32 %v2561_v36, %v7470_v21  ;;  %v11189_v36 = vld [vmem:[#allocation52_spill] sm:$0xff] }
 0x3aa   :  { %v2044_v51 = vpop.f32.mrf.mxu2  ;;  %v1869_v33 = vpop.f32.mrf.mxu0 }
 0x3ab   :  { %v2045_v37 = vadd.f32 %v2044_v51, %v11184_v30  ;;  %v2133_v22 = vpop.f32.mrf.mxu3  ;;  %v1870_v39 = vadd.f32 %v1869_v33, %v11185_v45  ;;  %v1958_v1 = vpop.f32.mrf.mxu1  ;;  %v11188_v51 = vld [vmem:[#allocation51_spill] sm:$0xff] }
 0x3ad   :  { %v7481_v41 = vadd.f32 %v2133_v22, %v2045_v37  ;;  %v1959_v40 = vadd.f32 %v1958_v1, %v1870_v39  ;;  %2184 = vmatmul.bf16.gmra.mxu0 %v11186_v5 }
 0x3ae   :  { %2273 = vmatmul.bf16.gmra.mxu1 %v11187_v24 }
 0x3af   :  { %v2563_v26 = vadd.f32 %v2562_v27, %v7481_v41  ;;  %2362 = vmatmul.bf16.gmra.mxu2 %v11186_v5  ;;  %v2527_v2 = vadd.f32 %v2526_v44, %v1959_v40  ;;  %v11190_v5 = vld [vmem:[#allocation53_spill] sm:$0xff] }
 0x3b0   :  { %2451 = vmatmul.bf16.gmra.mxu3 %v11187_v24 }
 0x3b2   :  { %v2047_v61 = vpop.f32.mrf.mxu2  ;;  %v1871_v45 = vpop.f32.mrf.mxu0 }
 0x3b3   :  { %v2048_v30 = vadd.f32 %v2047_v61, %v11188_v51  ;;  %v2136_v33 = vpop.f32.mrf.mxu3  ;;  %v1872_v22 = vadd.f32 %v1871_v45, %v11189_v36  ;;  %v1960_v37 = vpop.f32.mrf.mxu1 }
 0x3b5   :  { %v7490_v39 = vadd.f32 %v2136_v33, %v2048_v30  ;;  %v1961_v1 = vadd.f32 %v1960_v37, %v1872_v22  ;;  %v11193_v30 = vld [vmem:[#allocation123_spill] sm:$0xff]  ;;  %v11196_v37 = vld [vmem:[#allocation56_spill] sm:$0xff] }
 0x3b7   :  { %v2564_v27 = vadd.f32 %v2563_v26, %v7490_v39  ;;  %v2528_v46 = vadd.f32 %v2527_v2, %v1961_v1  ;;  %v11194_v2 = vld [vmem:[#allocation124_spill] sm:$0xff] }
 0x3b9   :  { %v2529_v25 = vrot.slane %v2528_v46, 4 }
 0x3ba   :  { %v2049_v8 = vpop.f32.mrf.mxu2  ;;  %v2150_v24 = vpop.f32.mrf.mxu0 }
 0x3bb   :  { %v2050_v44 = vadd.f32 %v2049_v8, %v11190_v5  ;;  %v2138_v13 = vpop.f32.mrf.mxu3  ;;  %v2530_v12 = vadd.f32 %v2529_v25, %v2528_v46  ;;  %v2151_v61 = vadd.f32 %v2150_v24, %v11191_v14  ;;  %v2239_v51 = vpop.f32.mrf.mxu1  ;;  %v11195_v14 = vld [vmem:[#allocation55_spill] sm:$0xff] }
 0x3bd   :  { %v7495_v11 = vadd.f32 %v2138_v13, %v2050_v44  ;;  %v2531_v45 = vrot.slane %v2530_v12, 2  ;;  %v7497_v36 = vadd.f32 %v2239_v51, %v2151_v61  ;;  %2189 = vmatmul.bf16.gmra.mxu0 %v11193_v30 }
 0x3be   :  { %2278 = vmatmul.bf16.gmra.mxu1 %v11194_v2 }
 0x3bf   :  { %11192 = vst [vmem:[#allocation106_spill] sm:$0xff] %v7497_v36  ;;  %v2565_v26 = vadd.f32 %v2564_v27, %v7495_v11  ;;  %2367 = vmatmul.bf16.gmra.mxu2 %v11193_v30  ;;  %v2532_v8 = vadd.f32 %v2531_v45, %v2530_v12 }
 0x3c0   :  { %2456 = vmatmul.bf16.gmra.mxu3 %v11194_v2 }
 0x3c1   :  { %v2533_v25 = vrot.slane %v2532_v8, 1  ;;  %v2566_v30 = vrot.slane %v2565_v26, 4 }
 0x3c2   :  { %v2328_v46 = vpop.f32.mrf.mxu2  ;;  %v2152_v22 = vpop.f32.mrf.mxu0 }
 0x3c3   :  { %v2329_v33 = vadd.f32 %v2328_v46, %v11195_v14  ;;  %v2417_v13 = vpop.f32.mrf.mxu3  ;;  %v2153_v5 = vadd.f32 %v2152_v22, %v11196_v37  ;;  %v2241_v44 = vpop.f32.mrf.mxu1  ;;  %v2534_v61 = vadd.f32 %v2533_v25, %v2532_v8  ;;  %v11206_v37 = vld [vmem:[#allocation130_spill] sm:$0xff] }
 0x3c5   :  { %v7506_v24 = vadd.f32 %v2417_v13, %v2329_v33  ;;  %v7508_v27 = vadd.f32 %v2241_v44, %v2153_v5  ;;  %v7510_v51 = vmul.f32 0.00390625, %v2534_v61  ;;  %v2567_v33 = vadd.f32 %v2566_v30, %v2565_v26  ;;  %v11201_v13 = vld [vmem:[#allocation129_spill] sm:$0xff] }
 0x3c7   :  { %11197 = vst [vmem:[#allocation43_spill] sm:$0xff] %v7508_v27  ;;  %v7514_v46 = vsub.f32 %v7428_v55, %v7510_v51  ;;  %v7518_v14 = vsub.f32 %v7446_v56, %v7510_v51  ;;  %v7523_v8 = vsub.f32 %v7457_v6, %v7510_v51  ;;  %v7527_v25 = vsub.f32 %v7472_v17, %v7510_v51  ;;  %v11207_v17 = vld [vmem:[#allocation57_spill] sm:$0xff] }
 0x3c8   :  { %11198 = vst [vmem:[#allocation44_spill] sm:$0xff] %v7510_v51  ;;  %v7530_v22 = vsub.f32 %v1959_v40, %v7510_v51  ;;  %v7533_v55 = vsub.f32 %v1961_v1, %v7510_v51  ;;  %v2568_v56 = vrot.slane %v2567_v33, 2  ;;  %v11210_v1 = vld [vmem:[#allocation60_spill] sm:$0xff] }
 0x3c9   :  { %11199 = vst [vmem:[#allocation45_spill] sm:$0xff] %v7514_v46 }
 0x3ca   :  { %v2330_v12 = vpop.f32.mrf.mxu2  ;;  %v2155_v2 = vpop.f32.mrf.mxu0  ;;  %11200 = vst [vmem:[#allocation46_spill] sm:$0xff] %v7518_v14  ;;  %v2569_v61 = vadd.f32 %v2568_v56, %v2567_v33 }
 0x3cb   :  { %v2419_v45 = vpop.f32.mrf.mxu3  ;;  %v2244_v29 = vpop.f32.mrf.mxu1  ;;  %11202 = vst [vmem:[#allocation111_spill] sm:$0xff] %v7523_v8  ;;  %v2331_v30 = vadd.f32 %v2330_v12, %v11207_v17  ;;  %v11214_v17 = vld [vmem:[#allocation62_spill] sm:$0xff] }
 0x3cc   :  { %11203 = vst [vmem:[#allocation112_spill] sm:$0xff] %v7527_v25  ;;  %v11208_v25 = vld [vmem:[#allocation58_spill] sm:$0xff]  ;;  %v2570_v14 = vrot.slane %v2569_v61, 1 }
 0x3cd   :  { %2194 = vmatmul.bf16.gmra.mxu0 %v11201_v13  ;;  %11204 = vst [vmem:[#allocation47_spill] sm:$0xff] %v7530_v22  ;;  %v2156_v40 = vadd.f32 %v2155_v2, %v11208_v25  ;;  %v11209_v22 = vld [vmem:[#allocation59_spill] sm:$0xff]  ;;  %v7542_v46 = vadd.f32 %v2419_v45, %v2331_v30  ;;  %v11216_v45 = vld [vmem:[#allocation136_spill] sm:$0xff] }
 0x3ce   :  { %11205 = vst [vmem:[#allocation48_spill] sm:$0xff] %v7533_v55  ;;  %2283 = vmatmul.bf16.gmra.mxu1 %v11206_v37 }
 0x3cf   :  { %2372 = vmatmul.bf16.gmra.mxu2 %v11201_v13  ;;  %v7544_v19 = vadd.f32 %v2244_v29, %v2156_v40 }
 0x3d0   :  { %2461 = vmatmul.bf16.gmra.mxu3 %v11206_v37 }
 0x3d1   :  { %11211 = vst [vmem:[#allocation49_spill] sm:$0xff] %v7544_v19 }
 0x3d2   :  { %v2333_v26 = vpop.f32.mrf.mxu2  ;;  %v2157_v5 = vpop.f32.mrf.mxu0 }
 0x3d3   :  { %v2422_v6 = vpop.f32.mrf.mxu3  ;;  %v2246_v44 = vpop.f32.mrf.mxu1  ;;  %v2334_v8 = vadd.f32 %v2333_v26, %v11209_v22  ;;  %v2158_v55 = vadd.f32 %v2157_v5, %v11210_v1  ;;  %v2571_v26 = vadd.f32 %v2570_v14, %v2569_v61  ;;  %v11215_v5 = vld [vmem:[#allocation135_spill] sm:$0xff] }
 0x3d5   :  { %v7546_v37 = vadd.f32 %v2422_v6, %v2334_v8  ;;  %v7548_v16 = vadd.f32 %v2246_v44, %v2158_v55  ;;  %v7558_v29 = vmul.f32 0.00390625, %v2571_v26 }
 0x3d7   :  { %11212 = vst [vmem:[#allocation50_spill] sm:$0xff] %v7548_v16  ;;  %v7562_v44 = vsub.f32 %v7470_v21, %v7558_v29  ;;  %v7566_v14 = vsub.f32 %v7481_v41, %v7558_v29  ;;  %v7570_v61 = vsub.f32 %v7490_v39, %v7558_v29  ;;  %v7574_v30 = vsub.f32 %v7495_v11, %v7558_v29  ;;  %v11223_v21 = vld [vmem:[#allocation142_spill] sm:$0xff]  ;;  %v11225_v39 = vld [vmem:[#allocation64_spill] sm:$0xff]  ;;  %v11226_v11 = vld [vmem:[#allocation65_spill] sm:$0xff] }
 0x3d8   :  { %11217 = vst [vmem:[#allocation117_spill] sm:$0xff] %v7558_v29 }
 0x3d9   :  { %11218 = vst [vmem:[#allocation118_spill] sm:$0xff] %v7562_v44 }
 0x3da   :  { %v2335_v13 = vpop.f32.mrf.mxu2  ;;  %v2160_v12 = vpop.f32.mrf.mxu0  ;;  %11219 = vst [vmem:[#allocation51_spill] sm:$0xff] %v7566_v14  ;;  %v11228_v14 = vld [vmem:[#allocation66_spill] sm:$0xff] }
 0x3db   :  { %v2336_v33 = vadd.f32 %v2335_v13, %v11213_v49  ;;  %v2424_v56 = vpop.f32.mrf.mxu3  ;;  %v2161_v2 = vadd.f32 %v2160_v12, %v11214_v17  ;;  %v2249_v25 = vpop.f32.mrf.mxu1  ;;  %11220 = vst [vmem:[#allocation52_spill] sm:$0xff] %v7570_v61  ;;  %v11224_v12 = vld [vmem:[#allocation63_spill] sm:$0xff] }
 0x3dc   :  { %11221 = vst [vmem:[#allocation53_spill] sm:$0xff] %v7574_v30 }
 0x3dd   :  { %v7552_v22 = vadd.f32 %v2424_v56, %v2336_v33  ;;  %2199 = vmatmul.bf16.gmra.mxu0 %v11215_v5  ;;  %v11222_v56 = vld [vmem:[#allocation141_spill] sm:$0xff]  ;;  %v7579_v41 = vadd.f32 %v2249_v25, %v2161_v2  ;;  %v11230_v2 = vld [vmem:[#allocation67_spill] sm:$0xff] }
 0x3de   :  { %2288 = vmatmul.bf16.gmra.mxu1 %v11216_v45 }
 0x3df   :  { %2377 = vmatmul.bf16.gmra.mxu2 %v11215_v5 }
 0x3e0   :  { %2466 = vmatmul.bf16.gmra.mxu3 %v11216_v45 }
 0x3e2   :  { %v2338_v8 = vpop.f32.mrf.mxu2  ;;  %v2162_v55 = vpop.f32.mrf.mxu0 }
 0x3e3   :  { %v2427_v49 = vpop.f32.mrf.mxu3  ;;  %v2251_v6 = vpop.f32.mrf.mxu1  ;;  %v2339_v17 = vadd.f32 %v2338_v8, %v11224_v12  ;;  %v2163_v26 = vadd.f32 %v2162_v55, %v11225_v39  ;;  %v11231_v55 = vld [vmem:[#allocation68_spill] sm:$0xff] }
 0x3e5   :  { %v7585_v30 = vadd.f32 %v2427_v49, %v2339_v17  ;;  %v7587_v61 = vadd.f32 %v2251_v6, %v2163_v26  ;;  %v11233_v6 = vld [vmem:[#allocation69_spill] sm:$0xff] }
 0x3e7   :  { %11227 = vst [vmem:[#allocation54_spill] sm:$0xff] %v7585_v30 }
 0x3ea   :  { %v2340_v40 = vpop.f32.mrf.mxu2  ;;  %v2165_v13 = vpop.f32.mrf.mxu0 }
 0x3eb   :  { %v2429_v1 = vpop.f32.mrf.mxu3  ;;  %v2254_v33 = vpop.f32.mrf.mxu1  ;;  %v2341_v5 = vadd.f32 %v2340_v40, %v11226_v11  ;;  %v2166_v44 = vadd.f32 %v2165_v13, %v11228_v14  ;;  %v11234_v13 = vld [vmem:[#allocation70_spill] sm:$0xff] }
 0x3ed   :  { %2204 = vmatmul.bf16.gmra.mxu0 %v11222_v56  ;;  %v7593_v12 = vadd.f32 %v2254_v33, %v2166_v44  ;;  %v11236_v44 = vld [vmem:[#allocation146_spill] sm:$0xff]  ;;  %v11237_v33 = vld [vmem:[#allocation17_spill] sm:$0xff] }
 0x3ee   :  { %2293 = vmatmul.bf16.gmra.mxu1 %v11223_v21 }
 0x3ef   :  { %2382 = vmatmul.bf16.gmra.mxu2 %v11222_v56  ;;  %v7590_v56 = vadd.f32 %v2429_v1, %v2341_v5 }
 0x3f0   :  { %2471 = vmatmul.bf16.gmra.mxu3 %v11223_v21 }
 0x3f1   :  { %11229 = vst [vmem:[#allocation123_spill] sm:$0xff] %v7590_v56 }
 0x3f2   :  { %v2343_v45 = vpop.f32.mrf.mxu2  ;;  %v2167_v34 = vpop.f32.mrf.mxu0 }
 0x3f3   :  { %v2432_v4 = vpop.f32.mrf.mxu3  ;;  %v2344_v25 = vadd.f32 %v2343_v45, %v11230_v2  ;;  %v2256_v8 = vpop.f32.mrf.mxu1  ;;  %v2168_v21 = vadd.f32 %v2167_v34, %v11231_v55  ;;  %v11238_v34 = vld [vmem:[#allocation71_spill] sm:$0xff] }
 0x3f5   :  { %v7596_v39 = vadd.f32 %v2432_v4, %v2344_v25  ;;  %v7598_v40 = vadd.f32 %v2256_v8, %v2168_v21 }
 0x3f7   :  { %11232 = vst [vmem:[#allocation124_spill] sm:$0xff] %v7596_v39 }
 0x3fa   :  { %v2345_v49 = vpop.f32.mrf.mxu2  ;;  %v2170_v14 = vpop.f32.mrf.mxu0 }
 0x3fb   :  { %v2346_v17 = vadd.f32 %v2345_v49, %v11233_v6  ;;  %v2434_v26 = vpop.f32.mrf.mxu3  ;;  %v2171_v11 = vadd.f32 %v2170_v14, %v11234_v13  ;;  %v2259_v1 = vpop.f32.mrf.mxu1 }
 0x3fd   :  { %v7602_v5 = vadd.f32 %v2434_v26, %v2346_v17  ;;  %v7604_v45 = vadd.f32 %v2259_v1, %v2171_v11  ;;  %2209 = vmatmul.bf16.gmra.mxu0 %v11236_v44  ;;  %v11240_v26 = vld [vmem:[#allocation74_spill] sm:$0xff]  ;;  %v11241_v1 = vld [vmem:[#allocation148_spill] sm:$0xff] }
 0x3fe   :  { %2298 = vmatmul.bf16.gmra.mxu1 %v11237_v33 }
 0x3ff   :  { %11235 = vst [vmem:[#allocation55_spill] sm:$0xff] %v7602_v5  ;;  %2387 = vmatmul.bf16.gmra.mxu2 %v11236_v44  ;;  %v11242_v44 = vld [vmem:[#allocation21_spill] sm:$0xff] }
 0x400   :  { %2476 = vmatmul.bf16.gmra.mxu3 %v11237_v33 }
 0x402   :  { %v2348_v4 = vpop.f32.mrf.mxu2  ;;  %v7611_v8 = vpop.f32.mrf.mxu0 }
 0x403   :  { %v2349_v2 = vadd.f32 %v2348_v4, %v11238_v34  ;;  %v2437_v25 = vpop.f32.mrf.mxu3  ;;  %v7613_v55 = vpop.f32.mrf.mxu1  ;;  %v11243_v4 = vld [vmem:[#allocation75_spill] sm:$0xff] }
 0x405   :  { %v7615_v21 = vadd.f32 %v2437_v25, %v2349_v2 }
 0x407   :  { %11239 = vst [vmem:[#allocation56_spill] sm:$0xff] %v7615_v21 }
 0x40a   :  { %v7617_v49 = vpop.f32.mrf.mxu2  ;;  %v2175_v17 = vpop.f32.mrf.mxu0 }
 0x40b   :  { %v7619_v6 = vpop.f32.mrf.mxu3  ;;  %v2176_v14 = vadd.f32 %v2175_v17, %v11240_v26  ;;  %v2264_v13 = vpop.f32.mrf.mxu1 }
 0x40d   :  { %v7622_v11 = vadd.f32 %v2264_v13, %v2176_v14  ;;  %2214 = vmatmul.bf16.gmra.mxu0 %v11241_v1 }
 0x40e   :  { %2303 = vmatmul.bf16.gmra.mxu1 %v11242_v44 }
 0x40f   :  { %2392 = vmatmul.bf16.gmra.mxu2 %v11241_v1 }
 0x410   :  { %2481 = vmatmul.bf16.gmra.mxu3 %v11242_v44  ;;  %v11246_v44 = vld [vmem:[#allocation150_spill] sm:$0xff] }
 0x412   :  { %v2353_v33 = vpop.f32.mrf.mxu2  ;;  %v7629_v25 = vpop.f32.mrf.mxu0 }
 0x413   :  { %v2354_v34 = vadd.f32 %v2353_v33, %v11243_v4  ;;  %v2442_v2 = vpop.f32.mrf.mxu3  ;;  %v7631_v57 = vpop.f32.mrf.mxu1  ;;  %v11247_v33 = vld [vmem:[#allocation25_spill] sm:$0xff] }
 0x415   :  { %v7633_v17 = vadd.f32 %v2442_v2, %v2354_v34  ;;  %v11248_v34 = vld [vmem:[#allocation79_spill] sm:$0xff] }
 0x417   :  { %11244 = vst [vmem:[#allocation129_spill] sm:$0xff] %v7633_v17 }
 0x41a   :  { %v7635_v26 = vpop.f32.mrf.mxu2  ;;  %v2180_v13 = vpop.f32.mrf.mxu0 }
 0x41b   :  { %v7637_v14 = vpop.f32.mrf.mxu3  ;;  %v2181_v48 = vadd.f32 %v2180_v13, %v11245_v15  ;;  %v2269_v1 = vpop.f32.mrf.mxu1 }
 0x41d   :  { %v7640_v7 = vadd.f32 %v2269_v1, %v2181_v48  ;;  %2219 = vmatmul.bf16.gmra.mxu0 %v11246_v44 }
 0x41e   :  { %2308 = vmatmul.bf16.gmra.mxu1 %v11247_v33 }
 0x41f   :  { %2397 = vmatmul.bf16.gmra.mxu2 %v11246_v44 }
 0x420   :  { %2486 = vmatmul.bf16.gmra.mxu3 %v11247_v33  ;;  %v11250_v33 = vld [vmem:[#allocation154_spill] sm:$0xff] }
 0x422   :  { %v2358_v4 = vpop.f32.mrf.mxu2  ;;  %v7647_v38 = vpop.f32.mrf.mxu0 }
 0x423   :  { %v2359_v2 = vadd.f32 %v2358_v4, %v11248_v34  ;;  %v2447_v23 = vpop.f32.mrf.mxu3  ;;  %v7649_v18 = vpop.f32.mrf.mxu1  ;;  %v11251_v4 = vld [vmem:[#allocation27_spill] sm:$0xff]  ;;  %v6140_v34 = vld [vmem:[#allocation7 + $0x170] sm:$0xf] }
 0x425   :  { %v7651_v15 = vadd.f32 %v2447_v23, %v2359_v2  ;;  %v6385_v2 = vld [vmem:[#allocation7 + $0x174] sm:$0xf0] }
 0x42a   :  { %v7653_v48 = vpop.f32.mrf.mxu2  ;;  %v2185_v1 = vpop.f32.mrf.mxu0 }
 0x42b   :  { %v7655_v13 = vpop.f32.mrf.mxu3  ;;  %v2186_v43 = vadd.f32 %v2185_v1, %v11249_v31  ;;  %v2274_v44 = vpop.f32.mrf.mxu1  ;;  %v6141_v31 = vor.u32 %v6385_v2, %v6140_v34  ;;  %v6204_v1 = vld [vmem:[#allocation7 + $0x1f0] sm:$0xf]  ;;  %v11255_v2 = vld [vmem:[#allocation86_spill] sm:$0xff] }
 0x42d   :  { %v7658_v50 = vadd.f32 %v2274_v44, %v2186_v43  ;;  %2224 = vmatmul.bf16.gmra.mxu0 %v11250_v33  ;;  %v6401_v43 = vld [vmem:[#allocation7 + $0x1f4] sm:$0xf0]  ;;  %4153 = vmatpush.bf16.msra.mxu2 %v6141_v31 }
 0x42e   :  { %2313 = vmatmul.bf16.gmra.mxu1 %v11251_v4  ;;  %v6205_v42 = vor.u32 %v6401_v43, %v6204_v1 }
 0x42f   :  { %2402 = vmatmul.bf16.gmra.mxu2 %v11250_v33 }
 0x430   :  { %2491 = vmatmul.bf16.gmra.mxu3 %v11251_v4  ;;  %v6013_v4 = vor.u32 %v6353_v60, %v6012_v10 }
 0x431   :  { %4242 = vmatpush.bf16.msra.mxu3 %v6205_v42  ;;  %v6196_v42 = vld [vmem:[#allocation7 + $0x1e0] sm:$0xf] }
 0x432   :  { %v2363_v23 = vpop.f32.mrf.mxu2  ;;  %v7665_v47 = vpop.f32.mrf.mxu0  ;;  %3975 = vmatpush.bf16.msra.mxu0 %v6013_v4  ;;  %v6133_v4 = vor.u32 %v6383_v63, %v6132_v59 }
 0x433   :  { %v2364_v62 = vadd.f32 %v2363_v23, %v11252_v53  ;;  %v2452_v54 = vpop.f32.mrf.mxu3  ;;  %v7667_v44 = vpop.f32.mrf.mxu1 }
 0x434   :  { %4154 = vmatpush.bf16.msra.mxu2 %v6133_v4 }
 0x435   :  { %v7669_v33 = vadd.f32 %v2452_v54, %v2364_v62  ;;  %v11256_v54 = vld [vmem:[#allocation87_spill] sm:$0xff] }
 0x437   :  { %11253 = vst [vmem:[#allocation130_spill] sm:$0xff] %v7669_v33 }
 0x43a   :  { %v7671_v53 = vpop.f32.mrf.mxu2  ;;  %v2190_v34 = vpop.f32.mrf.mxu0 }
 0x43b   :  { %v7673_v23 = vpop.f32.mrf.mxu3  ;;  %v2191_v28 = vadd.f32 %v2190_v34, %v11255_v2  ;;  %v2279_v1 = vpop.f32.mrf.mxu1  ;;  %v6351_v2 = vld [vmem:[#allocation7 + $0x64] sm:$0xf0] }
 0x43c   :  { %11254 = vst [vmem:[#allocation57_spill] sm:$0xff] %v7673_v23  ;;  %v6005_v51 = vor.u32 %v6351_v2, %v6004_v3  ;;  %v2572_v2 = vadd.f32 %v7508_v27, %v7497_v36  ;;  %v6397_v36 = vld [vmem:[#allocation7 + $0x1d4] sm:$0xf0] }
 0x43d   :  { %v7676_v43 = vadd.f32 %v2279_v1, %v2191_v28  ;;  %v6197_v28 = vor.u32 %v6399_v0, %v6196_v42  ;;  %v6068_v1 = vld [vmem:[#allocation7 + $0xe0] sm:$0xf]  ;;  %v11261_v0 = vld [vmem:[#allocation91_spill] sm:$0xff] }
 0x43e   :  { %v6069_v52 = vor.u32 %v6367_v32, %v6068_v1  ;;  %3976 = vmatpush.bf16.msra.mxu0 %v6005_v51 }
 0x43f   :  { %4243 = vmatpush.bf16.msra.mxu3 %v6197_v28  ;;  %v11265_v28 = vld [vmem:[#allocation94_spill] sm:$0xff] }
 0x440   :  { %4065 = vmatpush.bf16.msra.mxu1 %v6069_v52 }
 0x442   :  { %v2368_v58 = vpop.f32.mrf.mxu2  ;;  %v7679_v10 = vpop.f32.mrf.mxu0 }
 0x443   :  { %v2369_v62 = vadd.f32 %v2368_v58, %v11256_v54  ;;  %v2457_v31 = vpop.f32.mrf.mxu3  ;;  %v7681_v60 = vpop.f32.mrf.mxu1 }
 0x445   :  { %v7683_v20 = vadd.f32 %v2457_v31, %v2369_v62  ;;  %v11260_v62 = vld [vmem:[#allocation90_spill] sm:$0xff] }
 0x447   :  { %11257 = vst [vmem:[#allocation58_spill] sm:$0xff] %v7683_v20 }
 0x44a   :  { %v7685_v34 = vpop.f32.mrf.mxu2  ;;  %v2195_v54 = vpop.f32.mrf.mxu0 }
 0x44b   :  { %11258 = vst [vmem:[#allocation59_spill] sm:$0xff] %v7685_v34  ;;  %v7687_v58 = vpop.f32.mrf.mxu3  ;;  %v2196_v31 = vadd.f32 %v2195_v54, %v11260_v62  ;;  %v2284_v35 = vpop.f32.mrf.mxu1  ;;  %v11266_v62 = vld [vmem:[#allocation95_spill] sm:$0xff]  ;;  %v6365_v34 = vld [vmem:[#allocation7 + $0xd4] sm:$0xf0] }
 0x44c   :  { %11259 = vst [vmem:[#allocation60_spill] sm:$0xff] %v7687_v58 }
 0x44d   :  { %v7690_v59 = vadd.f32 %v2284_v35, %v2196_v31 }
 0x452   :  { %v2373_v63 = vpop.f32.mrf.mxu2  ;;  %v7692_v9 = vpop.f32.mrf.mxu0 }
 0x453   :  { %v2374_v42 = vadd.f32 %v2373_v63, %v11261_v0  ;;  %v2462_v29 = vpop.f32.mrf.mxu3  ;;  %v7695_v20 = vpop.f32.mrf.mxu1  ;;  %v2573_v0 = vadd.f32 %v2572_v2, %v7544_v19  ;;  %v11268_v2 = vld [vmem:[#allocation72_spill] sm:$0xff] }
 0x455   :  { %v7697_v58 = vadd.f32 %v2462_v29, %v2374_v42 }
 0x457   :  { %11262 = vst [vmem:[#allocation61_spill] sm:$0xff] %v7697_v58 }
 0x45a   :  { %v7699_v3 = vpop.f32.mrf.mxu2  ;;  %v2200_v32 = vpop.f32.mrf.mxu0 }
 0x45b   :  { %11263 = vst [vmem:[#allocation62_spill] sm:$0xff] %v7699_v3  ;;  %v7701_v4 = vpop.f32.mrf.mxu3  ;;  %v2201_v51 = vadd.f32 %v2200_v32, %v11265_v28  ;;  %v2289_v52 = vpop.f32.mrf.mxu1  ;;  %v2574_v32 = vadd.f32 %v2573_v0, %v7548_v16  ;;  %v6124_v28 = vld [vmem:[#allocation7 + $0x150] sm:$0xf]  ;;  %v6349_v3 = vld [vmem:[#allocation7 + $0x54] sm:$0xf0] }
 0x45c   :  { %11264 = vst [vmem:[#allocation135_spill] sm:$0xff] %v7701_v4  ;;  %v5996_v4 = vld [vmem:[#allocation7 + $0x50] sm:$0xf] }
 0x45d   :  { %v7704_v35 = vadd.f32 %v2289_v52, %v2201_v51  ;;  %v6381_v51 = vld [vmem:[#allocation7 + $0x154] sm:$0xf0]  ;;  %v6188_v52 = vld [vmem:[#allocation7 + $0x1d0] sm:$0xf]  ;;  %v2575_v58 = vadd.f32 %v2574_v32, %v7579_v41 }
 0x45e   :  { %v6125_v27 = vor.u32 %v6381_v51, %v6124_v28  ;;  %v6189_v33 = vor.u32 %v6397_v36, %v6188_v52 }
 0x45f   :  { %v2576_v23 = vadd.f32 %v2575_v58, %v7587_v61 }
 0x460   :  { %4155 = vmatpush.bf16.msra.mxu2 %v6125_v27  ;;  %4244 = vmatpush.bf16.msra.mxu3 %v6189_v33  ;;  %v11270_v33 = vld [vmem:[#allocation80_spill] sm:$0xff] }
 0x461   :  { %v2577_v36 = vadd.f32 %v2576_v23, %v7593_v12  ;;  %v2183_v51 = vadd.f32 %v7647_v38, %v11270_v33 }
 0x462   :  { %v2378_v1 = vpop.f32.mrf.mxu2  ;;  %v7708_v54 = vpop.f32.mrf.mxu0 }
 0x463   :  { %v2379_v31 = vadd.f32 %v2378_v1, %v11266_v62  ;;  %v2467_v29 = vpop.f32.mrf.mxu3  ;;  %v7711_v63 = vpop.f32.mrf.mxu1  ;;  %v5997_v1 = vor.u32 %v6349_v3, %v5996_v4  ;;  %v6060_v62 = vld [vmem:[#allocation7 + $0xd0] sm:$0xf]  ;;  %v2578_v3 = vadd.f32 %v2577_v36, %v7598_v40 }
 0x464   :  { %v6061_v16 = vor.u32 %v6365_v34, %v6060_v62 }
 0x465   :  { %v7714_v42 = vadd.f32 %v2467_v29, %v2379_v31  ;;  %v2173_v31 = vadd.f32 %v7611_v8, %v11268_v2  ;;  %3977 = vmatpush.bf16.msra.mxu0 %v5997_v1  ;;  %v11269_v8 = vld [vmem:[#allocation76_spill] sm:$0xff]  ;;  %v2579_v27 = vadd.f32 %v2578_v3, %v7604_v45 }
 0x466   :  { %4066 = vmatpush.bf16.msra.mxu1 %v6061_v16  ;;  %v2178_v4 = vadd.f32 %v7629_v25, %v11269_v8  ;;  %v2609_v25 = vadd.f32 %v7542_v46, %v7506_v24  ;;  %v11271_v2 = vld [vmem:[#allocation84_spill] sm:$0xff] }
 0x467   :  { %11267 = vst [vmem:[#allocation136_spill] sm:$0xff] %v7714_v42  ;;  %v7730_v58 = vadd.f32 %v7613_v55, %v2173_v31  ;;  %v2188_v38 = vadd.f32 %v7665_v47, %v11271_v2  ;;  %v11273_v2 = vld [vmem:[#allocation73_spill] sm:$0xff] }
 0x468   :  { %v7737_v28 = vadd.f32 %v7631_v57, %v2178_v4  ;;  %v7752_v57 = vadd.f32 %v7649_v18, %v2183_v51  ;;  %v2610_v31 = vadd.f32 %v2609_v25, %v7546_v37 }
 0x469   :  { %v2580_v34 = vadd.f32 %v2579_v27, %v7730_v58  ;;  %v7761_v4 = vadd.f32 %v7667_v44, %v2188_v38  ;;  %v11272_v27 = vld [vmem:[#allocation88_spill] sm:$0xff] }
 0x46a   :  { %v7721_v29 = vpop.f32.mrf.mxu2  ;;  %v2205_v0 = vpop.f32.mrf.mxu0  ;;  %v2611_v3 = vadd.f32 %v2610_v31, %v7552_v22  ;;  %v2351_v31 = vadd.f32 %v7617_v49, %v11273_v2  ;;  %v11278_v2 = vld [vmem:[#allocation96_spill] sm:$0xff] }
 0x46b   :  { %v7723_v19 = vpop.f32.mrf.mxu3  ;;  %v7725_v32 = vpop.f32.mrf.mxu1  ;;  %v2581_v1 = vadd.f32 %v2580_v34, %v7622_v11  ;;  %v2193_v34 = vadd.f32 %v7679_v10, %v11272_v27  ;;  %v11274_v10 = vld [vmem:[#allocation92_spill] sm:$0xff] }
 0x46c   :  { %v2612_v51 = vadd.f32 %v2611_v3, %v7585_v30 }
 0x46d   :  { %v2582_v62 = vadd.f32 %v2581_v1, %v7737_v28  ;;  %v7776_v38 = vadd.f32 %v7681_v60, %v2193_v34 }
 0x46f   :  { %v2583_v36 = vadd.f32 %v2582_v62, %v7640_v7  ;;  %v2613_v62 = vadd.f32 %v2612_v51, %v7590_v56  ;;  %v11276_v51 = vld [vmem:[#allocation77_spill] sm:$0xff] }
 0x470   :  { %v2356_v49 = vadd.f32 %v7635_v26, %v11276_v51 }
 0x471   :  { %v2584_v8 = vadd.f32 %v2583_v36, %v7752_v57  ;;  %v2198_v36 = vadd.f32 %v7692_v9, %v11274_v10  ;;  %v2614_v3 = vadd.f32 %v2613_v62, %v7596_v39  ;;  %v2203_v62 = vadd.f32 %v7708_v54, %v11278_v2  ;;  %v11281_v2 = vld [vmem:[#allocation100_spill] sm:$0xff] }
 0x472   :  { %v7741_v23 = vpop.f32.mrf.mxu2  ;;  %v2207_v16 = vpop.f32.mrf.mxu0 }
 0x473   :  { %v7743_v52 = vpop.f32.mrf.mxu3  ;;  %v7745_v55 = vpop.f32.mrf.mxu1  ;;  %v2585_v25 = vadd.f32 %v2584_v8, %v7658_v50  ;;  %v2615_v30 = vadd.f32 %v2614_v3, %v7602_v5  ;;  %v7784_v8 = vadd.f32 %v7619_v6, %v2351_v31  ;;  %v7790_v60 = vadd.f32 %v7695_v20, %v2198_v36  ;;  %v11279_v3 = vld [vmem:[#allocation98_spill] sm:$0xff]  ;;  %v11280_v36 = vld [vmem:[#allocation81_spill] sm:$0xff] }
 0x474   :  { %v2206_v26 = vadd.f32 %v2205_v0, %v11279_v3  ;;  %v7803_v20 = vadd.f32 %v7637_v14, %v2356_v49  ;;  %v2361_v51 = vadd.f32 %v7653_v48, %v11280_v36  ;;  %v7809_v54 = vadd.f32 %v7711_v63, %v2203_v62  ;;  %v6395_v14 = vld [vmem:[#allocation7 + $0x1c4] sm:$0xf0]  ;;  %v5988_v49 = vld [vmem:[#allocation7 + $0x40] sm:$0xf] }
 0x475   :  { %v2586_v44 = vadd.f32 %v2585_v25, %v7761_v4  ;;  %11275 = vst [vmem:[#allocation141_spill] sm:$0xff] %v7784_v8  ;;  %v2616_v6 = vadd.f32 %v2615_v30, %v7615_v21  ;;  %v2208_v39 = vadd.f32 %v2207_v16, %v11281_v2  ;;  %v6116_v30 = vld [vmem:[#allocation7 + $0x140] sm:$0xf]  ;;  %v6379_v21 = vld [vmem:[#allocation7 + $0x144] sm:$0xf0] }
 0x476   :  { %11277 = vst [vmem:[#allocation142_spill] sm:$0xff] %v7790_v60  ;;  %v6117_v3 = vor.u32 %v6379_v21, %v6116_v30  ;;  %v7815_v48 = vadd.f32 %v7725_v32, %v2206_v26  ;;  %v6363_v16 = vld [vmem:[#allocation7 + $0xc4] sm:$0xf0]  ;;  %v7820_v56 = vadd.f32 %v7655_v13, %v2361_v51 }
 0x477   :  { %v2587_v27 = vadd.f32 %v2586_v44, %v7676_v43 }
 0x478   :  { %4156 = vmatpush.bf16.msra.mxu2 %v6117_v3  ;;  %v11286_v3 = vld [vmem:[#allocation57_spill] sm:$0xff] }
 0x479   :  { %v2588_v25 = vadd.f32 %v2587_v27, %v7776_v38  ;;  %v2617_v27 = vadd.f32 %v2616_v6, %v7784_v8  ;;  %v6347_v8 = vld [vmem:[#allocation7 + $0x44] sm:$0xf0] }
 0x47a   :  { %v7765_v33 = vpop.f32.mrf.mxu2  ;;  %v2210_v18 = vpop.f32.mrf.mxu0  ;;  %v5989_v62 = vor.u32 %v6347_v8, %v5988_v49  ;;  %v11284_v8 = vld [vmem:[#allocation104_spill] sm:$0xff] }
 0x47b   :  { %v7768_v47 = vpop.f32.mrf.mxu3  ;;  %v2299_v1 = vpop.f32.mrf.mxu1  ;;  %v2589_v31 = vadd.f32 %v2588_v25, %v7690_v59  ;;  %v6180_v25 = vld [vmem:[#allocation7 + $0x1c0] sm:$0xf]  ;;  %v2618_v0 = vadd.f32 %v2617_v27, %v7633_v17  ;;  %v11283_v27 = vld [vmem:[#allocation85_spill] sm:$0xff] }
 0x47c   :  { %v6181_v63 = vor.u32 %v6395_v14, %v6180_v25  ;;  %3978 = vmatpush.bf16.msra.mxu0 %v5989_v62  ;;  %v11289_v62 = vld [vmem:[#allocation130_spill] sm:$0xff] }
 0x47d   :  { %v2590_v5 = vadd.f32 %v2589_v31, %v7790_v60  ;;  %v11282_v31 = vld [vmem:[#allocation102_spill] sm:$0xff]  ;;  %v2619_v2 = vadd.f32 %v2618_v0, %v7803_v20  ;;  %v11285_v0 = vld [vmem:[#allocation108_spill] sm:$0xff] }
 0x47e   :  { %v2211_v36 = vadd.f32 %v2210_v18, %v11282_v31  ;;  %v6052_v60 = vld [vmem:[#allocation7 + $0xc0] sm:$0xf]  ;;  %v7826_v18 = vadd.f32 %v7745_v55, %v2208_v39  ;;  %4245 = vmatpush.bf16.msra.mxu3 %v6181_v63  ;;  %v11287_v55 = vld [vmem:[#allocation89_spill] sm:$0xff] }
 0x47f   :  { %v2591_v6 = vadd.f32 %v2590_v5, %v7704_v35  ;;  %v2366_v5 = vadd.f32 %v7671_v53, %v11283_v27  ;;  %v6053_v17 = vor.u32 %v6363_v16, %v6052_v60  ;;  %v2620_v13 = vadd.f32 %v2619_v2, %v7651_v15 }
 0x480   :  { %v7831_v51 = vadd.f32 %v2299_v1, %v2211_v36 }
 0x481   :  { %v2592_v32 = vadd.f32 %v2591_v6, %v7809_v54  ;;  %4067 = vmatpush.bf16.msra.mxu1 %v6053_v17  ;;  %v2621_v6 = vadd.f32 %v2620_v13, %v7820_v56  ;;  %v7836_v39 = vadd.f32 %v11286_v3, %v2366_v5  ;;  %v11295_v3 = vld [vmem:[#allocation58_spill] sm:$0xff] }
 0x482   :  { %v7792_v34 = vpop.f32.mrf.mxu2  ;;  %v2212_v9 = vpop.f32.mrf.mxu0 }
 0x483   :  { %v7796_v44 = vpop.f32.mrf.mxu3  ;;  %v2301_v10 = vpop.f32.mrf.mxu1  ;;  %v2213_v26 = vadd.f32 %v2212_v9, %v11284_v8  ;;  %v2593_v53 = vadd.f32 %v2592_v32, %v7815_v48  ;;  %v11288_v9 = vld [vmem:[#allocation59_spill] sm:$0xff]  ;;  %v2622_v17 = vadd.f32 %v2621_v6, %v11289_v62  ;;  %v11292_v32 = vld [vmem:[#allocation93_spill] sm:$0xff]  ;;  %v11293_v8 = vld [vmem:[#allocation62_spill] sm:$0xff] }
 0x484   :  { %v2371_v49 = vadd.f32 %v11288_v9, %v11287_v55  ;;  %v2376_v13 = vadd.f32 %v11293_v8, %v11292_v32  ;;  %v11299_v32 = vld [vmem:[#allocation61_spill] sm:$0xff] }
 0x485   :  { %v2594_v31 = vadd.f32 %v2593_v53, %v7826_v18  ;;  %v7841_v63 = vadd.f32 %v2301_v10, %v2213_v26  ;;  %v2623_v36 = vadd.f32 %v2622_v17, %v7836_v39  ;;  %v11294_v26 = vld [vmem:[#allocation110_spill] sm:$0xff]  ;;  %v11298_v17 = vld [vmem:[#allocation97_spill] sm:$0xff] }
 0x487   :  { %v2595_v16 = vadd.f32 %v2594_v31, %v7831_v51  ;;  %v2624_v55 = vadd.f32 %v2623_v36, %v11295_v3  ;;  %v11296_v31 = vld [vmem:[#allocation135_spill] sm:$0xff] }
 0x489   :  { %v2596_v53 = vadd.f32 %v2595_v16, %v7841_v63 }
 0x48a   :  { %v2390_v21 = vpop.f32.mrf.mxu2  ;;  %v2215_v30 = vpop.f32.mrf.mxu0 }
 0x48b   :  { %v2479_v25 = vpop.f32.mrf.mxu3  ;;  %v2304_v14 = vpop.f32.mrf.mxu1  ;;  %v2216_v60 = vadd.f32 %v2215_v30, %v11285_v0  ;;  %v11290_v30 = vld [vmem:[#allocation60_spill] sm:$0xff] }
 0x48c   :  { %v7849_v5 = vadd.f32 %v11290_v30, %v2371_v49  ;;  %v7861_v49 = vadd.f32 %v11296_v31, %v2376_v13  ;;  %v2381_v30 = vadd.f32 %v7721_v29, %v11298_v17  ;;  %v11303_v31 = vld [vmem:[#allocation114_spill] sm:$0xff] }
 0x48d   :  { %v7845_v1 = vadd.f32 %v2304_v14, %v2216_v60 }
 0x48e   :  { %11291 = vst [vmem:[#allocation63_spill] sm:$0xff] %v7849_v5  ;;  %v2625_v9 = vadd.f32 %v2624_v55, %v7849_v5  ;;  %v11305_v5 = vld [vmem:[#allocation127_spill] sm:$0xff] }
 0x48f   :  { %v2597_v14 = vadd.f32 %v2596_v53, %v7845_v1  ;;  %11297 = vst [vmem:[#allocation64_spill] sm:$0xff] %v7861_v49 }
 0x490   :  { %v2626_v8 = vadd.f32 %v2625_v9, %v11299_v32 }
 0x492   :  { %v2393_v2 = vpop.f32.mrf.mxu2  ;;  %v2217_v27 = vpop.f32.mrf.mxu0  ;;  %v2627_v53 = vadd.f32 %v2626_v8, %v7861_v49 }
 0x493   :  { %v2482_v10 = vpop.f32.mrf.mxu3  ;;  %v2218_v0 = vadd.f32 %v2217_v27, %v11294_v26  ;;  %v2306_v6 = vpop.f32.mrf.mxu1  ;;  %v11300_v27 = vld [vmem:[#allocation99_spill] sm:$0xff] }
 0x494   :  { %v2384_v26 = vadd.f32 %v7741_v23, %v11300_v27  ;;  %v11307_v23 = vld [vmem:[#allocation131_spill] sm:$0xff]  ;;  %v2628_v8 = vadd.f32 %v2627_v53, %v7714_v42 }
 0x495   :  { %v7857_v60 = vadd.f32 %v2306_v6, %v2218_v0  ;;  %v7871_v0 = vadd.f32 %v7723_v19, %v2381_v30  ;;  %v11302_v6 = vld [vmem:[#allocation101_spill] sm:$0xff]  ;;  %v11310_v30 = vld [vmem:[#allocation103_spill] sm:$0xff] }
 0x496   :  { %v2386_v13 = vadd.f32 %v7765_v33, %v11302_v6  ;;  %v7886_v19 = vadd.f32 %v7743_v52, %v2384_v26  ;;  %v2389_v33 = vadd.f32 %v7792_v34, %v11310_v30 }
 0x497   :  { %v2598_v16 = vadd.f32 %v2597_v14, %v7857_v60  ;;  %11301 = vst [vmem:[#allocation65_spill] sm:$0xff] %v7871_v0  ;;  %v11304_v14 = vld [vmem:[#allocation117_spill] sm:$0xff] }
 0x498   :  { %v7878_v9 = vsub.f32 %v11305_v5, %v11304_v14  ;;  %v7882_v27 = vsub.f32 %v11307_v23, %v11304_v14  ;;  %11309 = vst [vmem:[#allocation68_spill] sm:$0xff] %v7886_v19  ;;  %v11312_v5 = vld [vmem:[#allocation107_spill] sm:$0xff]  ;;  %v7904_v34 = vadd.f32 %v7796_v44, %v2389_v33  ;;  %v11320_v44 = vld [vmem:[#allocation44_spill] sm:$0xff]  ;;  %v11321_v33 = vld [vmem:[#allocation126_spill] sm:$0xff] }
 0x499   :  { %v2391_v49 = vadd.f32 %v2390_v21, %v11312_v5  ;;  %v11318_v5 = vld [vmem:[#allocation113_spill] sm:$0xff]  ;;  %v7918_v42 = vsub.f32 %v11321_v33, %v11320_v44 }
 0x49a   :  { %v2395_v36 = vpop.f32.mrf.mxu2  ;;  %v2220_v3 = vpop.f32.mrf.mxu0  ;;  %11306 = vst [vmem:[#allocation66_spill] sm:$0xff] %v7878_v9  ;;  %v2779_v53 = vmul.f32 %v7878_v9, %v7878_v9  ;;  %v2783_v52 = vmul.f32 %v7882_v27, %v7882_v27 }
 0x49b   :  { %v2484_v55 = vpop.f32.mrf.mxu3  ;;  %v2221_v29 = vadd.f32 %v2220_v3, %v11303_v31  ;;  %v2309_v17 = vpop.f32.mrf.mxu1  ;;  %11308 = vst [vmem:[#allocation67_spill] sm:$0xff] %v7882_v27  ;;  %v2629_v3 = vadd.f32 %v2628_v8, %v7871_v0  ;;  %v7894_v31 = vadd.f32 %v7768_v47, %v2386_v13  ;;  %v11315_v47 = vld [vmem:[#allocation133_spill] sm:$0xff]  ;;  %v7912_v30 = vadd.f32 %v2479_v25, %v2391_v49  ;;  %v11319_v0 = vld [vmem:[#allocation116_spill] sm:$0xff]  ;;  %v11326_v25 = vld [vmem:[#allocation115_spill] sm:$0xff] }
 0x49c   :  { %11313 = vst [vmem:[#allocation70_spill] sm:$0xff] %v7904_v34  ;;  %v7909_v13 = vsub.f32 %v11315_v47, %v11304_v14  ;;  %v2396_v9 = vadd.f32 %v2395_v36, %v11318_v5  ;;  %v2943_v47 = vadd.f32 %v2783_v52, %v2779_v53 }
 0x49d   :  { %v7890_v6 = vadd.f32 %v2309_v17, %v2221_v29  ;;  %11311 = vst [vmem:[#allocation69_spill] sm:$0xff] %v7894_v31  ;;  %v2630_v26 = vadd.f32 %v2629_v3, %v7886_v19  ;;  %v11314_v29 = vld [vmem:[#allocation109_spill] sm:$0xff] }
 0x49e   :  { %v2394_v17 = vadd.f32 %v2393_v2, %v11314_v29  ;;  %11316 = vst [vmem:[#allocation146_spill] sm:$0xff] %v7909_v13  ;;  %v11323_v2 = vld [vmem:[#allocation128_spill] sm:$0xff]  ;;  %v2787_v5 = vmul.f32 %v7909_v13, %v7909_v13 }
 0x49f   :  { %v2599_v23 = vadd.f32 %v2598_v16, %v7890_v6  ;;  %v2631_v16 = vadd.f32 %v2630_v26, %v7894_v31  ;;  %11317 = vst [vmem:[#allocation17_spill] sm:$0xff] %v7912_v30  ;;  %v7922_v29 = vsub.f32 %v11323_v2, %v11320_v44  ;;  %v7937_v2 = vadd.f32 %v2484_v55, %v2396_v9 }
 0x4a0   :  { %11322 = vst [vmem:[#allocation71_spill] sm:$0xff] %v7918_v42  ;;  %v7925_v26 = vadd.f32 %v2482_v10, %v2394_v17  ;;  %v2778_v10 = vmul.f32 %v7918_v42, %v7918_v42  ;;  %v2944_v52 = vadd.f32 %v2943_v47, %v2787_v5  ;;  %v11334_v47 = vld [vmem:[#allocation119_spill] sm:$0xff] }
 0x4a1   :  { %11324 = vst [vmem:[#allocation74_spill] sm:$0xff] %v7922_v29  ;;  %v2632_v32 = vadd.f32 %v2631_v16, %v7904_v34  ;;  %v11330_v16 = vld [vmem:[#allocation132_spill] sm:$0xff]  ;;  %v11348_v34 = vld [vmem:[#allocation18_spill] sm:$0xff] }
 0x4a2   :  { %v2398_v21 = vpop.f32.mrf.mxu2  ;;  %v2222_v8 = vpop.f32.mrf.mxu0  ;;  %11325 = vst [vmem:[#allocation148_spill] sm:$0xff] %v7925_v26  ;;  %v8003_v31 = vsub.f32 %v11348_v34, %v11304_v14 }
 0x4a3   :  { %v2487_v27 = vpop.f32.mrf.mxu3  ;;  %v2223_v3 = vadd.f32 %v2222_v8, %v11319_v0  ;;  %v2311_v19 = vpop.f32.mrf.mxu1  ;;  %v2399_v49 = vadd.f32 %v2398_v21, %v11326_v25  ;;  %v11327_v0 = vld [vmem:[#allocation137_spill] sm:$0xff]  ;;  %v2633_v33 = vadd.f32 %v2632_v32, %v7912_v30  ;;  %11329 = vst [vmem:[#allocation75_spill] sm:$0xff] %v7937_v2  ;;  %v11332_v32 = vld [vmem:[#allocation139_spill] sm:$0xff] }
 0x4a4   :  { %v7932_v8 = vsub.f32 %v11327_v0, %v11304_v14  ;;  %v7953_v55 = vsub.f32 %v11332_v32, %v11304_v14  ;;  %11349 = vst [vmem:[#allocation83_spill] sm:$0xff] %v8003_v31 }
 0x4a5   :  { %v7928_v36 = vadd.f32 %v2311_v19, %v2223_v3  ;;  %v2782_v19 = vmul.f32 %v7922_v29, %v7922_v29  ;;  %v2634_v17 = vadd.f32 %v2633_v33, %v7925_v26  ;;  %v7945_v21 = vadd.f32 %v2487_v27, %v2399_v49  ;;  %v11335_v27 = vld [vmem:[#allocation120_spill] sm:$0xff] }
 0x4a6   :  { %11328 = vst [vmem:[#allocation21_spill] sm:$0xff] %v7932_v8  ;;  %v7949_v3 = vsub.f32 %v11330_v16, %v11320_v44  ;;  %v2791_v9 = vmul.f32 %v7932_v8, %v7932_v8  ;;  %v11336_v8 = vld [vmem:[#allocation134_spill] sm:$0xff] }
 0x4a7   :  { %v2600_v53 = vadd.f32 %v2599_v23, %v7928_v36  ;;  %11333 = vst [vmem:[#allocation150_spill] sm:$0xff] %v7953_v55  ;;  %v2635_v0 = vadd.f32 %v2634_v17, %v7937_v2  ;;  %v2906_v29 = vadd.f32 %v2782_v19, %v2778_v10  ;;  %v7967_v30 = vsub.f32 %v11336_v8, %v11320_v44  ;;  %v11346_v2 = vld [vmem:[#allocation140_spill] sm:$0xff] }
 0x4a8   :  { %11331 = vst [vmem:[#allocation78_spill] sm:$0xff] %v7949_v3  ;;  %v2945_v16 = vadd.f32 %v2944_v52, %v2791_v9  ;;  %v2786_v17 = vmul.f32 %v7949_v3, %v7949_v3  ;;  %v2795_v10 = vmul.f32 %v7953_v55, %v7953_v55 }
 0x4a9   :  { %v2636_v42 = vadd.f32 %v2635_v0, %v7945_v21  ;;  %11337 = vst [vmem:[#allocation25_spill] sm:$0xff] %v7967_v30  ;;  %v2790_v0 = vmul.f32 %v7967_v30, %v7967_v30 }
 0x4aa   :  { %v2400_v23 = vpop.f32.mrf.mxu2  ;;  %v2225_v25 = vpop.f32.mrf.mxu0  ;;  %v2946_v9 = vadd.f32 %v2945_v16, %v2795_v10  ;;  %v11345_v16 = vld [vmem:[#allocation122_spill] sm:$0xff] }
 0x4ab   :  { %v2401_v5 = vadd.f32 %v2400_v23, %v11334_v47  ;;  %v2489_v33 = vpop.f32.mrf.mxu3  ;;  %v2226_v49 = vadd.f32 %v2225_v25, %v11335_v27  ;;  %v2314_v13 = vpop.f32.mrf.mxu1  ;;  %v11338_v23 = vld [vmem:[#allocation143_spill] sm:$0xff]  ;;  %v11340_v25 = vld [vmem:[#allocation138_spill] sm:$0xff] }
 0x4ac   :  { %v7973_v47 = vsub.f32 %v11338_v23, %v11304_v14  ;;  %v7981_v8 = vsub.f32 %v11340_v25, %v11320_v44  ;;  %v11344_v23 = vld [vmem:[#allocation121_spill] sm:$0xff] }
 0x4ad   :  { %v7961_v26 = vadd.f32 %v2489_v33, %v2401_v5  ;;  %v7963_v32 = vadd.f32 %v2314_v13, %v2226_v49  ;;  %v2907_v13 = vadd.f32 %v2906_v29, %v2786_v17  ;;  %v11342_v5 = vld [vmem:[#allocation16_spill] sm:$0xff] }
 0x4ae   :  { %11339 = vst [vmem:[#allocation79_spill] sm:$0xff] %v7973_v47  ;;  %v7987_v33 = vsub.f32 %v11342_v5, %v11304_v14  ;;  %v2799_v27 = vmul.f32 %v7973_v47, %v7973_v47  ;;  %v7997_v5 = vsub.f32 %v11346_v2, %v11320_v44  ;;  %v2794_v47 = vmul.f32 %v7981_v8, %v7981_v8 }
 0x4af   :  { %v2637_v19 = vadd.f32 %v2636_v42, %v7961_v26  ;;  %v2601_v52 = vadd.f32 %v2600_v53, %v7963_v32  ;;  %11341 = vst [vmem:[#allocation82_spill] sm:$0xff] %v7981_v8  ;;  %v2908_v10 = vadd.f32 %v2907_v13, %v2790_v0  ;;  %v11357_v8 = vld [vmem:[#allocation22_spill] sm:$0xff] }
 0x4b0   :  { %11343 = vst [vmem:[#allocation154_spill] sm:$0xff] %v7987_v33  ;;  %v2947_v25 = vadd.f32 %v2946_v9, %v2799_v27 }
 0x4b1   :  { %11347 = vst [vmem:[#allocation27_spill] sm:$0xff] %v7997_v5  ;;  %v2909_v0 = vadd.f32 %v2908_v10, %v2794_v47 }
 0x4b2   :  { %v2403_v49 = vpop.f32.mrf.mxu2  ;;  %v2227_v42 = vpop.f32.mrf.mxu0 }
 0x4b3   :  { %v2404_v53 = vadd.f32 %v2403_v49, %v11344_v23  ;;  %v2492_v29 = vpop.f32.mrf.mxu3  ;;  %v2228_v17 = vadd.f32 %v2227_v42, %v11345_v16  ;;  %v2316_v55 = vpop.f32.mrf.mxu1  ;;  %v2803_v49 = vmul.f32 %v7987_v33, %v7987_v33  ;;  %v11350_v42 = vld [vmem:[#allocation144_spill] sm:$0xff]  ;;  %v2798_v23 = vmul.f32 %v7997_v5, %v7997_v5  ;;  %v11355_v33 = vld [vmem:[#allocation145_spill] sm:$0xff] }
 0x4b4   :  { %v8010_v2 = vsub.f32 %v11350_v42, %v11320_v44  ;;  %v8025_v5 = vsub.f32 %v11355_v33, %v11320_v44 }
 0x4b5   :  { %v7993_v3 = vadd.f32 %v2492_v29, %v2404_v53  ;;  %v2317_v30 = vadd.f32 %v2316_v55, %v2228_v17  ;;  %v2948_v27 = vadd.f32 %v2947_v25, %v2803_v49  ;;  %v11352_v53 = vld [vmem:[#allocation19_spill] sm:$0xff]  ;;  %v2807_v29 = vmul.f32 %v8003_v31, %v8003_v31 }
 0x4b6   :  { %11351 = vst [vmem:[#allocation86_spill] sm:$0xff] %v8010_v2  ;;  %v8016_v34 = vsub.f32 %v11352_v53, %v11304_v14  ;;  %v2910_v17 = vadd.f32 %v2909_v0, %v2798_v23  ;;  %v2802_v53 = vmul.f32 %v8010_v2, %v8010_v2  ;;  %v8031_v31 = vsub.f32 %v11357_v8, %v11304_v14 }
 0x4b7   :  { %v2638_v13 = vadd.f32 %v2637_v19, %v7993_v3  ;;  %v2602_v9 = vadd.f32 %v2601_v52, %v2317_v30  ;;  %v11354_v52 = vld [vmem:[#allocation125_spill] sm:$0xff]  ;;  %v2949_v10 = vadd.f32 %v2948_v27, %v2807_v29  ;;  %11356 = vst [vmem:[#allocation90_spill] sm:$0xff] %v8025_v5 }
 0x4b8   :  { %11353 = vst [vmem:[#allocation87_spill] sm:$0xff] %v8016_v34 }
 0x4b9   :  { %v2603_v55 = vrot.slane %v2602_v9, 4  ;;  %11358 = vst [vmem:[#allocation91_spill] sm:$0xff] %v8031_v31 }
 0x4ba   :  { %v2405_v16 = vpop.f32.mrf.mxu2 }
 0x4bb   :  { %v2604_v19 = vadd.f32 %v2603_v55, %v2602_v9  ;;  %v2406_v47 = vadd.f32 %v2405_v16, %v11354_v52  ;;  %v2494_v25 = vpop.f32.mrf.mxu3  ;;  %v2811_v9 = vmul.f32 %v8016_v34, %v8016_v34  ;;  %v2911_v55 = vadd.f32 %v2910_v17, %v2802_v53  ;;  %v11359_v16 = vld [vmem:[#allocation147_spill] sm:$0xff]  ;;  %v11363_v17 = vld [vmem:[#allocation20_spill] sm:$0xff]  ;;  %v11367_v34 = vld [vmem:[#allocation149_spill] sm:$0xff] }
 0x4bc   :  { %v8038_v33 = vsub.f32 %v11359_v16, %v11320_v44  ;;  %v2806_v52 = vmul.f32 %v8025_v5, %v8025_v5 }
 0x4bd   :  { %v2605_v49 = vrot.slane %v2604_v19, 2  ;;  %v8021_v42 = vadd.f32 %v2494_v25, %v2406_v47  ;;  %v2950_v23 = vadd.f32 %v2949_v10, %v2811_v9  ;;  %v11361_v47 = vld [vmem:[#allocation23_spill] sm:$0xff]  ;;  %v2815_v25 = vmul.f32 %v8031_v31, %v8031_v31  ;;  %v11365_v9 = vld [vmem:[#allocation26_spill] sm:$0xff] }
 0x4be   :  { %11360 = vst [vmem:[#allocation94_spill] sm:$0xff] %v8038_v33  ;;  %v8044_v8 = vsub.f32 %v11361_v47, %v11304_v14  ;;  %v8050_v10 = vsub.f32 %v11363_v17, %v11320_v44  ;;  %v2810_v53 = vmul.f32 %v8038_v33, %v8038_v33  ;;  %v8056_v16 = vsub.f32 %v11365_v9, %v11304_v14 }
 0x4bf   :  { %v2606_v0 = vadd.f32 %v2605_v49, %v2604_v19  ;;  %v2639_v27 = vadd.f32 %v2638_v13, %v8021_v42  ;;  %v2912_v19 = vadd.f32 %v2911_v55, %v2806_v52  ;;  %v2951_v49 = vadd.f32 %v2950_v23, %v2815_v25  ;;  %v11369_v23 = vld [vmem:[#allocation152_spill] sm:$0xff] }
 0x4c0   :  { %11362 = vst [vmem:[#allocation95_spill] sm:$0xff] %v8044_v8  ;;  %v2819_v47 = vmul.f32 %v8044_v8, %v8044_v8  ;;  %v8062_v31 = vsub.f32 %v11367_v34, %v11320_v44  ;;  %v2814_v25 = vmul.f32 %v8050_v10, %v8050_v10  ;;  %v2823_v17 = vmul.f32 %v8056_v16, %v8056_v16  ;;  %v11371_v8 = vld [vmem:[#allocation24_spill] sm:$0xff] }
 0x4c1   :  { %v2607_v29 = vrot.slane %v2606_v0, 1  ;;  %11364 = vst [vmem:[#allocation72_spill] sm:$0xff] %v8050_v10  ;;  %v2913_v55 = vadd.f32 %v2912_v19, %v2810_v53  ;;  %v2640_v9 = vrot.slane %v2639_v27, 4  ;;  %v8076_v33 = vsub.f32 %v11371_v8, %v11320_v44  ;;  %v11373_v53 = vld [vmem:[#allocation28_spill] sm:$0xff] }
 0x4c2   :  { %11366 = vst [vmem:[#allocation76_spill] sm:$0xff] %v8056_v16  ;;  %v2818_v34 = vmul.f32 %v8062_v31, %v8062_v31 }
 0x4c3   :  { %v2608_v13 = vadd.f32 %v2607_v29, %v2606_v0  ;;  %11368 = vst [vmem:[#allocation80_spill] sm:$0xff] %v8062_v31  ;;  %v2952_v0 = vadd.f32 %v2951_v49, %v2819_v47  ;;  %v8066_v29 = vsub.f32 %v11369_v23, %v11304_v14  ;;  %v2914_v19 = vadd.f32 %v2913_v55, %v2814_v25 }
 0x4c4   :  { %11372 = vst [vmem:[#allocation88_spill] sm:$0xff] %v8076_v33 }
 0x4c5   :  { %11370 = vst [vmem:[#allocation84_spill] sm:$0xff] %v8066_v29  ;;  %v8068_v52 = vmul.f32 0.00390625, %v2608_v13  ;;  %v2953_v49 = vadd.f32 %v2952_v0, %v2823_v17  ;;  %v8082_v13 = vsub.f32 %v11373_v53, %v11304_v14  ;;  %v2827_v47 = vmul.f32 %v8066_v29, %v8066_v29 }
 0x4c6   :  { %v2915_v29 = vadd.f32 %v2914_v19, %v2818_v34 }
 0x4c7   :  { %11374 = vst [vmem:[#allocation73_spill] sm:$0xff] %v8082_v13  ;;  %v8088_v23 = vsub.f32 %v7845_v1, %v8068_v52  ;;  %v8092_v8 = vsub.f32 %v7857_v60, %v8068_v52  ;;  %v8096_v16 = vsub.f32 %v7890_v6, %v8068_v52  ;;  %v8100_v55 = vsub.f32 %v7928_v36, %v8068_v52  ;;  %v11381_v1 = vld [vmem:[#allocation106_spill] sm:$0xff]  ;;  %v11383_v60 = vld [vmem:[#allocation43_spill] sm:$0xff] }
 0x4c8   :  { %v8104_v0 = vsub.f32 %v7963_v32, %v8068_v52  ;;  %v8107_v25 = vsub.f32 %v2317_v30, %v8068_v52  ;;  %v8111_v17 = vsub.f32 %v11381_v1, %v8068_v52  ;;  %v8115_v53 = vsub.f32 %v11383_v60, %v8068_v52  ;;  %v11385_v36 = vld [vmem:[#allocation151_spill] sm:$0xff]  ;;  %v11387_v30 = vld [vmem:[#allocation29_spill] sm:$0xff] }
 0x4c9   :  { %11375 = vst [vmem:[#allocation92_spill] sm:$0xff] %v8088_v23  ;;  %v2641_v6 = vadd.f32 %v2640_v9, %v2639_v27  ;;  %v2954_v31 = vadd.f32 %v2953_v49, %v2827_v47  ;;  %v8119_v10 = vsub.f32 %v11385_v36, %v11320_v44  ;;  %v2822_v32 = vmul.f32 %v8076_v33, %v8076_v33  ;;  %v11389_v60 = vld [vmem:[#allocation49_spill] sm:$0xff]  ;;  %v11391_v47 = vld [vmem:[#allocation50_spill] sm:$0xff]  ;;  %v11395_v33 = vld [vmem:[#allocation31_spill] sm:$0xff] }
 0x4ca   :  { %11376 = vst [vmem:[#allocation77_spill] sm:$0xff] %v8092_v8  ;;  %v8125_v5 = vsub.f32 %v11387_v30, %v11304_v14  ;;  %v2831_v1 = vmul.f32 %v8082_v13, %v8082_v13  ;;  %v8131_v2 = vsub.f32 %v11389_v60, %v8068_v52  ;;  %v2780_v27 = vmul.f32 %v8111_v17, %v8111_v17  ;;  %v11393_v30 = vld [vmem:[#allocation153_spill] sm:$0xff] }
 0x4cb   :  { %11377 = vst [vmem:[#allocation96_spill] sm:$0xff] %v8096_v16  ;;  %v2784_v9 = vmul.f32 %v8115_v53, %v8115_v53  ;;  %v2642_v34 = vrot.slane %v2641_v6, 2  ;;  %v2916_v19 = vadd.f32 %v2915_v29, %v2822_v32  ;;  %v8139_v36 = vsub.f32 %v11391_v47, %v8068_v52 }
 0x4cc   :  { %11378 = vst [vmem:[#allocation98_spill] sm:$0xff] %v8100_v55  ;;  %v2955_v49 = vadd.f32 %v2954_v31, %v2831_v1  ;;  %v8143_v13 = vsub.f32 %v11393_v30, %v11320_v44  ;;  %v2826_v60 = vmul.f32 %v8119_v10, %v8119_v10  ;;  %v8155_v31 = vsub.f32 %v7579_v41, %v8068_v52 }
 0x4cd   :  { %11379 = vst [vmem:[#allocation81_spill] sm:$0xff] %v8104_v0  ;;  %v2788_v29 = vmul.f32 %v8131_v2, %v8131_v2  ;;  %v2980_v32 = vadd.f32 %v2784_v9, %v2780_v27  ;;  %v2643_v1 = vadd.f32 %v2642_v34, %v2641_v6  ;;  %v11401_v0 = vld [vmem:[#allocation30_spill] sm:$0xff] }
 0x4ce   :  { %11380 = vst [vmem:[#allocation100_spill] sm:$0xff] %v8107_v25  ;;  %v2917_v47 = vadd.f32 %v2916_v19, %v2826_v60  ;;  %v8171_v55 = vsub.f32 %v11401_v0, %v11320_v44  ;;  %v2830_v6 = vmul.f32 %v8143_v13, %v8143_v13  ;;  %v2796_v9 = vmul.f32 %v8155_v31, %v8155_v31  ;;  %v11405_v19 = vld [vmem:[#allocation32_spill] sm:$0xff]  ;;  %v11407_v60 = vld [vmem:[#allocation157_spill] sm:$0xff] }
 0x4cf   :  { %11382 = vst [vmem:[#allocation102_spill] sm:$0xff] %v8111_v17  ;;  %v8149_v17 = vsub.f32 %v11395_v33, %v11304_v14  ;;  %v8165_v33 = vsub.f32 %v7587_v61, %v8068_v52  ;;  %v2981_v41 = vadd.f32 %v2980_v32, %v2788_v29  ;;  %v8183_v61 = vsub.f32 %v7593_v12, %v8068_v52 }
 0x4d0   :  { %11384 = vst [vmem:[#allocation85_spill] sm:$0xff] %v8115_v53  ;;  %v2835_v53 = vmul.f32 %v8125_v5, %v8125_v5  ;;  %v2644_v0 = vrot.slane %v2643_v1, 1  ;;  %v8193_v29 = vsub.f32 %v11407_v60, %v11320_v44  ;;  %v2918_v32 = vadd.f32 %v2917_v47, %v2830_v6  ;;  %v11415_v60 = vld [vmem:[#allocation36_spill] sm:$0xff] }
 0x4d1   :  { %11386 = vst [vmem:[#allocation104_spill] sm:$0xff] %v8119_v10  ;;  %v11398_v10 = vld [vmem:[#allocation155_spill] sm:$0xff]  ;;  %v8201_v12 = vsub.f32 %v7598_v40, %v8068_v52  ;;  %v8219_v40 = vsub.f32 %v7604_v45, %v8068_v52  ;;  %v8237_v45 = vsub.f32 %v7730_v58, %v8068_v52  ;;  %v11423_v58 = vld [vmem:[#allocation38_spill] sm:$0xff] }
 0x4d2   :  { %11388 = vst [vmem:[#allocation108_spill] sm:$0xff] %v8125_v5  ;;  %v2956_v30 = vadd.f32 %v2955_v49, %v2835_v53  ;;  %v8161_v25 = vsub.f32 %v11398_v10, %v11320_v44  ;;  %v2792_v5 = vmul.f32 %v8139_v36, %v8139_v36  ;;  %v11403_v53 = vld [vmem:[#allocation156_spill] sm:$0xff]  ;;  %v2839_v10 = vmul.f32 %v8149_v17, %v8149_v17 }
 0x4d3   :  { %11390 = vst [vmem:[#allocation57_spill] sm:$0xff] %v8131_v2  ;;  %v8177_v27 = vsub.f32 %v11403_v53, %v11304_v14  ;;  %v8189_v49 = vsub.f32 %v11405_v19, %v11320_v44  ;;  %v11411_v19 = vld [vmem:[#allocation34_spill] sm:$0xff] }
 0x4d4   :  { %11392 = vst [vmem:[#allocation89_spill] sm:$0xff] %v8139_v36  ;;  %v2982_v34 = vadd.f32 %v2981_v41, %v2792_v5  ;;  %v2957_v53 = vadd.f32 %v2956_v30, %v2839_v10  ;;  %v2800_v5 = vmul.f32 %v8165_v33, %v8165_v33  ;;  %v2834_v47 = vmul.f32 %v8161_v25, %v8161_v25  ;;  %v11413_v30 = vld [vmem:[#allocation158_spill] sm:$0xff] }
 0x4d5   :  { %11394 = vst [vmem:[#allocation59_spill] sm:$0xff] %v8143_v13  ;;  %v8213_v6 = vsub.f32 %v11413_v30, %v11304_v14  ;;  %v2804_v10 = vmul.f32 %v8183_v61, %v8183_v61 }
 0x4d6   :  { %11396 = vst [vmem:[#allocation130_spill] sm:$0xff] %v8149_v17  ;;  %v11409_v17 = vld [vmem:[#allocation159_spill] sm:$0xff]  ;;  %v2983_v41 = vadd.f32 %v2982_v34, %v2796_v9  ;;  %v2645_v34 = vadd.f32 %v2644_v0, %v2643_v1  ;;  %v2808_v1 = vmul.f32 %v8201_v12, %v8201_v12 }
 0x4d7   :  { %11397 = vst [vmem:[#allocation60_spill] sm:$0xff] %v8155_v31  ;;  %v8197_v13 = vsub.f32 %v11409_v17, %v11320_v44  ;;  %v8207_v31 = vsub.f32 %v11411_v19, %v11320_v44  ;;  %v2843_v17 = vmul.f32 %v8177_v27, %v8177_v27  ;;  %v8225_v19 = vsub.f32 %v11415_v60, %v11320_v44 }
 0x4d8   :  { %11399 = vst [vmem:[#allocation93_spill] sm:$0xff] %v8161_v25  ;;  %v2984_v9 = vadd.f32 %v2983_v41, %v2800_v5  ;;  %v11417_v25 = vld [vmem:[#allocation161_spill] sm:$0xff]  ;;  %v2838_v5 = vmul.f32 %v8171_v55, %v8171_v55 }
 0x4d9   :  { %11400 = vst [vmem:[#allocation62_spill] sm:$0xff] %v8165_v33  ;;  %v8229_v30 = vsub.f32 %v11417_v25, %v11320_v44  ;;  %v2919_v33 = vadd.f32 %v2918_v32, %v2834_v47  ;;  %v2958_v36 = vadd.f32 %v2957_v53, %v2843_v17  ;;  %v11421_v25 = vld [vmem:[#allocation33_spill] sm:$0xff]  ;;  %v2847_v32 = vmul.f32 %v8213_v6, %v8213_v6 }
 0x4da   :  { %11402 = vst [vmem:[#allocation110_spill] sm:$0xff] %v8171_v55  ;;  %v2985_v0 = vadd.f32 %v2984_v9, %v2804_v10  ;;  %v8245_v41 = vsub.f32 %v11421_v25, %v11304_v14  ;;  %v8255_v53 = vsub.f32 %v11423_v58, %v11320_v44  ;;  %v2812_v47 = vmul.f32 %v8219_v40, %v8219_v40  ;;  %v11425_v9 = vld [vmem:[#allocation40_spill] sm:$0xff] }
 0x4db   :  { %11404 = vst [vmem:[#allocation135_spill] sm:$0xff] %v8177_v27  ;;  %v11419_v27 = vld [vmem:[#allocation163_spill] sm:$0xff]  ;;  %v8259_v10 = vmul.f32 0.00390625, %v2645_v34  ;;  %v8263_v60 = vsub.f32 %v11425_v9, %v11320_v44  ;;  %v2842_v25 = vmul.f32 %v8189_v49, %v8189_v49  ;;  %v2846_v55 = vmul.f32 %v8193_v29, %v8193_v29 }
 0x4dc   :  { %11406 = vst [vmem:[#allocation97_spill] sm:$0xff] %v8189_v49  ;;  %v8233_v2 = vsub.f32 %v11419_v27, %v11320_v44  ;;  %v8251_v27 = vsub.f32 %v7622_v11, %v8068_v52  ;;  %v2986_v17 = vadd.f32 %v2985_v0, %v2808_v1  ;;  %v2959_v11 = vadd.f32 %v2958_v36, %v2847_v32  ;;  %v11427_v0 = vld [vmem:[#allocation35_spill] sm:$0xff] }
 0x4dd   :  { %11408 = vst [vmem:[#allocation99_spill] sm:$0xff] %v8193_v29  ;;  %v8271_v58 = vsub.f32 %v7737_v28, %v8068_v52  ;;  %v2816_v34 = vmul.f32 %v8237_v45, %v8237_v45  ;;  %v8277_v9 = vsub.f32 %v11427_v0, %v11304_v14  ;;  %v2851_v49 = vmul.f32 %v8245_v41, %v8245_v41 }
 0x4de   :  { %11410 = vst [vmem:[#allocation101_spill] sm:$0xff] %v8197_v13  ;;  %v2987_v1 = vadd.f32 %v2986_v17, %v2812_v47  ;;  %v8283_v36 = vsub.f32 %v7640_v7, %v8068_v52  ;;  %v8293_v32 = vsub.f32 %v7961_v26, %v8259_v10  ;;  %v8297_v47 = vsub.f32 %v7993_v3, %v8259_v10 }
 0x4df   :  { %11412 = vst [vmem:[#allocation114_spill] sm:$0xff] %v8207_v31  ;;  %v2960_v0 = vadd.f32 %v2959_v11, %v2851_v49  ;;  %v8301_v7 = vsub.f32 %v7752_v57, %v8068_v52  ;;  %v8311_v26 = vsub.f32 %v7506_v24, %v8259_v10  ;;  %v8315_v3 = vsub.f32 %v7542_v46, %v8259_v10 }
 0x4e0   :  { %11414 = vst [vmem:[#allocation117_spill] sm:$0xff] %v8213_v6  ;;  %v2920_v6 = vadd.f32 %v2919_v33, %v2838_v5  ;;  %v2820_v33 = vmul.f32 %v8251_v27, %v8251_v27  ;;  %v2988_v28 = vadd.f32 %v2987_v1, %v2816_v34  ;;  %v8289_v5 = vsub.f32 %v7945_v21, %v8259_v10 }
 0x4e1   :  { %11416 = vst [vmem:[#allocation127_spill] sm:$0xff] %v8225_v19  ;;  %v8305_v34 = vsub.f32 %v8021_v42, %v8259_v10  ;;  %v2824_v21 = vmul.f32 %v8271_v58, %v8271_v58  ;;  %v2850_v57 = vmul.f32 %v8197_v13, %v8197_v13  ;;  %v2854_v49 = vmul.f32 %v8207_v31, %v8207_v31  ;;  %v11435_v42 = vld [vmem:[#allocation160_spill] sm:$0xff] }
 0x4e2   :  { %11418 = vst [vmem:[#allocation131_spill] sm:$0xff] %v8229_v30  ;;  %v2921_v17 = vadd.f32 %v2920_v6, %v2842_v25  ;;  %v2989_v1 = vadd.f32 %v2988_v28, %v2820_v33  ;;  %v8323_v6 = vsub.f32 %v11435_v42, %v11304_v14  ;;  %v2855_v25 = vmul.f32 %v8277_v9, %v8277_v9 }
 0x4e3   :  { %11420 = vst [vmem:[#allocation103_spill] sm:$0xff] %v8233_v2  ;;  %v2858_v24 = vmul.f32 %v8225_v19, %v8225_v19  ;;  %v8331_v46 = vsub.f32 %v7658_v50, %v8068_v52  ;;  %v2828_v11 = vmul.f32 %v8283_v36, %v8283_v36  ;;  %v8337_v42 = vsub.f32 %v7761_v4, %v8068_v52  ;;  %v11439_v4 = vld [vmem:[#allocation162_spill] sm:$0xff] }
 0x4e4   :  { %11422 = vst [vmem:[#allocation107_spill] sm:$0xff] %v8245_v41  ;;  %v2990_v33 = vadd.f32 %v2989_v1, %v2824_v21  ;;  %v2922_v28 = vadd.f32 %v2921_v17, %v2846_v55  ;;  %v2961_v31 = vadd.f32 %v2960_v0, %v2855_v25  ;;  %v8343_v19 = vsub.f32 %v7546_v37, %v8259_v10 }
 0x4e5   :  { %11424 = vst [vmem:[#allocation109_spill] sm:$0xff] %v8255_v53  ;;  %v2781_v50 = vmul.f32 %v8311_v26, %v8311_v26  ;;  %v2785_v21 = vmul.f32 %v8315_v3, %v8315_v3  ;;  %v2862_v55 = vmul.f32 %v8229_v30, %v8229_v30  ;;  %v8353_v17 = vsub.f32 %v11439_v4, %v11304_v14 }
 0x4e6   :  { %11426 = vst [vmem:[#allocation133_spill] sm:$0xff] %v8263_v60  ;;  %v2991_v41 = vadd.f32 %v2990_v33, %v2828_v11  ;;  %v2859_v0 = vmul.f32 %v8323_v6, %v8323_v6  ;;  %v8359_v37 = vsub.f32 %v7676_v43, %v8068_v52  ;;  %v8363_v1 = vmul.f32 %v8233_v2, %v8233_v2  ;;  %v11443_v2 = vld [vmem:[#allocation54_spill] sm:$0xff] }
 0x4e7   :  { %11428 = vst [vmem:[#allocation113_spill] sm:$0xff] %v8277_v9  ;;  %v2832_v9 = vmul.f32 %v8301_v7, %v8301_v7  ;;  %v2836_v25 = vmul.f32 %v8331_v46, %v8331_v46  ;;  %v8369_v33 = vsub.f32 %v7552_v22, %v8259_v10  ;;  %v2923_v4 = vadd.f32 %v2922_v28, %v2850_v57  ;;  %v11444_v22 = vld [vmem:[#allocation37_spill] sm:$0xff] }
 0x4e8   :  { %11429 = vst [vmem:[#allocation116_spill] sm:$0xff] %v8283_v36  ;;  %v2962_v30 = vadd.f32 %v2961_v31, %v2859_v0  ;;  %v2840_v43 = vmul.f32 %v8337_v42, %v8337_v42  ;;  %v8379_v29 = vsub.f32 %v11443_v2, %v8259_v10  ;;  %v8385_v57 = vsub.f32 %v11444_v22, %v11304_v14  ;;  %v11447_v0 = vld [vmem:[#allocation123_spill] sm:$0xff]  ;;  %v6078_v36 = vld [vmem:[#allocation7 + $0xf8] sm:$0xf0] }
 0x4e9   :  { %11430 = vst [vmem:[#allocation44_spill] sm:$0xff] %v8289_v5  ;;  %v2992_v11 = vadd.f32 %v2991_v41, %v2832_v9  ;;  %v2789_v41 = vmul.f32 %v8343_v19, %v8343_v19  ;;  %v3017_v9 = vadd.f32 %v2785_v21, %v2781_v50  ;;  %v8391_v31 = vsub.f32 %v7690_v59, %v8068_v52 }
 0x4ea   :  { %11431 = vst [vmem:[#allocation126_spill] sm:$0xff] %v8293_v32  ;;  %v2844_v28 = vmul.f32 %v8359_v37, %v8359_v37  ;;  %v2793_v50 = vmul.f32 %v8369_v33, %v8369_v33 }
 0x4eb   :  { %11432 = vst [vmem:[#allocation128_spill] sm:$0xff] %v8297_v47  ;;  %v2993_v13 = vadd.f32 %v2992_v11, %v2836_v25  ;;  %v8397_v25 = vsub.f32 %v11447_v0, %v8259_v10  ;;  %v3018_v21 = vadd.f32 %v3017_v9, %v2789_v41  ;;  %v2924_v11 = vadd.f32 %v2923_v4, %v2854_v49  ;;  %v11451_v41 = vld [vmem:[#allocation39_spill] sm:$0xff] }
 0x4ec   :  { %11433 = vst [vmem:[#allocation115_spill] sm:$0xff] %v8301_v7  ;;  %v2797_v0 = vmul.f32 %v8379_v29, %v8379_v29  ;;  %v8415_v49 = vsub.f32 %v11451_v41, %v11304_v14  ;;  %v2852_v4 = vmul.f32 %v8391_v31, %v8391_v31  ;;  %v8433_v41 = vsub.f32 %v7809_v54, %v8068_v52 }
 0x4ed   :  { %11434 = vst [vmem:[#allocation137_spill] sm:$0xff] %v8305_v34  ;;  %v2994_v2 = vadd.f32 %v2993_v13, %v2840_v43  ;;  %v11450_v13 = vld [vmem:[#allocation124_spill] sm:$0xff] }
 0x4ee   :  { %11436 = vst [vmem:[#allocation132_spill] sm:$0xff] %v8323_v6  ;;  %v8373_v6 = vsub.f32 %v7776_v38, %v8068_v52  ;;  %v2863_v38 = vmul.f32 %v8353_v17, %v8353_v17  ;;  %v8409_v43 = vsub.f32 %v11450_v13, %v8259_v10  ;;  %v2871_v54 = vmul.f32 %v8415_v49, %v8415_v49 }
 0x4ef   :  { %11437 = vst [vmem:[#allocation139_spill] sm:$0xff] %v8331_v46  ;;  %v2995_v46 = vadd.f32 %v2994_v2, %v2844_v28  ;;  %v2801_v2 = vmul.f32 %v8397_v25, %v8397_v25 }
 0x4f0   :  { %11438 = vst [vmem:[#allocation119_spill] sm:$0xff] %v8337_v42  ;;  %v2963_v22 = vadd.f32 %v2962_v30, %v2863_v38  ;;  %v2848_v59 = vmul.f32 %v8373_v6, %v8373_v6  ;;  %v2867_v30 = vmul.f32 %v8385_v57, %v8385_v57  ;;  %v11454_v38 = vld [vmem:[#allocation55_spill] sm:$0xff] }
 0x4f1   :  { %11440 = vst [vmem:[#allocation120_spill] sm:$0xff] %v8353_v17  ;;  %v11448_v17 = vld [vmem:[#allocation142_spill] sm:$0xff]  ;;  %v8427_v28 = vsub.f32 %v11454_v38, %v8259_v10  ;;  %v2805_v38 = vmul.f32 %v8409_v43, %v8409_v43 }
 0x4f2   :  { %11441 = vst [vmem:[#allocation134_spill] sm:$0xff] %v8359_v37  ;;  %v8403_v42 = vsub.f32 %v11448_v17, %v8068_v52  ;;  %v3019_v37 = vadd.f32 %v3018_v21, %v2793_v50  ;;  %v8421_v17 = vsub.f32 %v7704_v35, %v8068_v52  ;;  %v2996_v9 = vadd.f32 %v2995_v46, %v2848_v59  ;;  %v11456_v46 = vld [vmem:[#allocation56_spill] sm:$0xff] }
 0x4f3   :  { %11442 = vst [vmem:[#allocation143_spill] sm:$0xff] %v8373_v6  ;;  %v2925_v21 = vadd.f32 %v2924_v11, %v2858_v24  ;;  %v2964_v13 = vadd.f32 %v2963_v22, %v2867_v30  ;;  %v8439_v59 = vsub.f32 %v11456_v46, %v8259_v10  ;;  %v8451_v11 = vsub.f32 %v7815_v48, %v8068_v52  ;;  %v11460_v30 = vld [vmem:[#allocation141_spill] sm:$0xff] }
 0x4f4   :  { %11445 = vst [vmem:[#allocation138_spill] sm:$0xff] %v8385_v57  ;;  %v3020_v50 = vadd.f32 %v3019_v37, %v2797_v0  ;;  %v2856_v35 = vmul.f32 %v8403_v42, %v8403_v42  ;;  %v2997_v57 = vadd.f32 %v2996_v9, %v2852_v4  ;;  %v11457_v37 = vld [vmem:[#allocation164_spill] sm:$0xff]  ;;  %v2860_v22 = vmul.f32 %v8421_v17, %v8421_v17 }
 0x4f5   :  { %11446 = vst [vmem:[#allocation16_spill] sm:$0xff] %v8391_v31  ;;  %v8445_v24 = vsub.f32 %v11457_v37, %v11304_v14  ;;  %v8457_v4 = vsub.f32 %v11460_v30, %v8259_v10  ;;  %v2809_v9 = vmul.f32 %v8427_v28, %v8427_v28  ;;  %v2965_v46 = vadd.f32 %v2964_v13, %v2871_v54 }
 0x4f6   :  { %11449 = vst [vmem:[#allocation121_spill] sm:$0xff] %v8403_v42  ;;  %v3021_v31 = vadd.f32 %v3020_v50, %v2801_v2  ;;  %v2998_v0 = vadd.f32 %v2997_v57, %v2856_v35  ;;  %v2926_v50 = vadd.f32 %v2925_v21, %v2862_v55  ;;  %v8463_v37 = vsub.f32 %v7826_v18, %v8068_v52  ;;  %v11462_v57 = vld [vmem:[#allocation129_spill] sm:$0xff] }
 0x4f7   :  { %11452 = vst [vmem:[#allocation122_spill] sm:$0xff] %v8415_v49  ;;  %v2864_v48 = vmul.f32 %v8433_v41, %v8433_v41  ;;  %v8469_v35 = vsub.f32 %v11462_v57, %v8259_v10  ;;  %v2813_v30 = vmul.f32 %v8439_v59, %v8439_v59  ;;  %v2875_v18 = vmul.f32 %v8445_v24, %v8445_v24 }
 0x4f8   :  { %11453 = vst [vmem:[#allocation140_spill] sm:$0xff] %v8421_v17  ;;  %v3022_v2 = vadd.f32 %v3021_v31, %v2805_v38  ;;  %v2999_v49 = vadd.f32 %v2998_v0, %v2860_v22  ;;  %v11463_v31 = vld [vmem:[#allocation41_spill] sm:$0xff]  ;;  %v8481_v21 = vsub.f32 %v7831_v51, %v8068_v52  ;;  %v2868_v13 = vmul.f32 %v8451_v11, %v8451_v11 }
 0x4f9   :  { %11455 = vst [vmem:[#allocation18_spill] sm:$0xff] %v8433_v41  ;;  %v8475_v55 = vsub.f32 %v11463_v31, %v11304_v14  ;;  %v8487_v54 = vsub.f32 %v7803_v20, %v8259_v10  ;;  %v2817_v22 = vmul.f32 %v8457_v4, %v8457_v4  ;;  %v8494_v57 = vsub.f32 %v7841_v63, %v8068_v52 }
 0x4fa   :  { %11458 = vst [vmem:[#allocation144_spill] sm:$0xff] %v8445_v24  ;;  %v3023_v17 = vadd.f32 %v3022_v2, %v2809_v9  ;;  %v3000_v38 = vadd.f32 %v2999_v49, %v2864_v48  ;;  %v2927_v9 = vadd.f32 %v2926_v50, %v8363_v1  ;;  %v2966_v2 = vadd.f32 %v2965_v46, %v2875_v18 }
 0x4fb   :  { %11459 = vst [vmem:[#allocation19_spill] sm:$0xff] %v8451_v11  ;;  %v2872_v51 = vmul.f32 %v8463_v37, %v8463_v37  ;;  %v8500_v49 = vsub.f32 %v7651_v15, %v8259_v10  ;;  %v2821_v20 = vmul.f32 %v8469_v35, %v8469_v35  ;;  %v2870_v1 = vmul.f32 %v8255_v53, %v8255_v53 }
 0x4fc   :  { %11461 = vst [vmem:[#allocation125_spill] sm:$0xff] %v8463_v37  ;;  %v3024_v0 = vadd.f32 %v3023_v17, %v2813_v30  ;;  %v3001_v31 = vadd.f32 %v3000_v38, %v2868_v13  ;;  %v11469_v17 = vld [vmem:[#allocation42_spill] sm:$0xff]  ;;  %v2879_v63 = vmul.f32 %v8475_v55, %v8475_v55  ;;  %v2876_v52 = vmul.f32 %v8481_v21, %v8481_v21 }
 0x4fd   :  { %11464 = vst [vmem:[#allocation145_spill] sm:$0xff] %v8475_v55  ;;  %v8508_v50 = vsub.f32 %v11469_v17, %v11304_v14  ;;  %v8516_v15 = vsub.f32 %v7820_v56, %v8259_v10  ;;  %v2825_v30 = vmul.f32 %v8487_v54, %v8487_v54  ;;  %v2928_v13 = vadd.f32 %v2927_v9, %v2870_v1  ;;  %v11473_v56 = vld [vmem:[#allocation165_spill] sm:$0xff] }
 0x4fe   :  { %11465 = vst [vmem:[#allocation22_spill] sm:$0xff] %v8481_v21  ;;  %v3025_v48 = vadd.f32 %v3024_v0, %v2817_v22  ;;  %v3002_v46 = vadd.f32 %v3001_v31, %v2872_v51  ;;  %v2967_v38 = vadd.f32 %v2966_v2, %v2879_v63  ;;  %v2880_v22 = vmul.f32 %v8494_v57, %v8494_v57  ;;  %v11475_v2 = vld [vmem:[#allocation105_spill] sm:$0xff] }
 0x4ff   :  { %11466 = vst [vmem:[#allocation147_spill] sm:$0xff] %v8487_v54  ;;  %v8524_v17 = vsub.f32 %v11289_v62, %v8259_v10  ;;  %v2829_v51 = vmul.f32 %v8500_v49, %v8500_v49  ;;  %v8530_v55 = vsub.f32 %v11473_v56, %v11320_v44  ;;  %v2874_v9 = vmul.f32 %v8263_v60, %v8263_v60  ;;  %v11498_v60 = vld [vmem:[#allocation52_spill] sm:$0xff]  ;;  %v11505_v21 = vld [vmem:[#allocation53_spill] sm:$0xff] }
 0x500   :  { %11467 = vst [vmem:[#allocation23_spill] sm:$0xff] %v8494_v57  ;;  %v3026_v18 = vadd.f32 %v3025_v48, %v2821_v20  ;;  %v3003_v0 = vadd.f32 %v3002_v46, %v2876_v52  ;;  %v8536_v20 = vsub.f32 %v11475_v2, %v11304_v14  ;;  %v2883_v48 = vmul.f32 %v8508_v50, %v8508_v50  ;;  %v11478_v14 = vld [vmem:[#allocation58_spill] sm:$0xff] }
 0x501   :  { %11468 = vst [vmem:[#allocation20_spill] sm:$0xff] %v8500_v49  ;;  %v8542_v1 = vsub.f32 %v7836_v39, %v8259_v10  ;;  %v2833_v63 = vmul.f32 %v8516_v15, %v8516_v15  ;;  %v2929_v52 = vadd.f32 %v2928_v13, %v2874_v9  ;;  %v2884_v46 = vmul.f32 %v8088_v23, %v8088_v23  ;;  %v11480_v13 = vld [vmem:[#allocation63_spill] sm:$0xff]  ;;  %v11485_v23 = vld [vmem:[#allocation118_spill] sm:$0xff] }
 0x502   :  { %11470 = vst [vmem:[#allocation26_spill] sm:$0xff] %v8508_v50  ;;  %v3027_v31 = vadd.f32 %v3026_v18, %v2825_v30  ;;  %v3004_v62 = vadd.f32 %v3003_v0, %v2880_v22  ;;  %v2968_v30 = vadd.f32 %v2967_v38, %v2883_v48  ;;  %v8550_v18 = vsub.f32 %v11478_v14, %v8259_v10 }
 0x503   :  { %11471 = vst [vmem:[#allocation149_spill] sm:$0xff] %v8516_v15  ;;  %v2837_v22 = vmul.f32 %v8524_v17, %v8524_v17  ;;  %v2878_v39 = vmul.f32 %v8530_v55, %v8530_v55  ;;  %v2841_v38 = vmul.f32 %v8542_v1, %v8542_v1  ;;  %v2888_v48 = vmul.f32 %v8092_v8, %v8092_v8 }
 0x504   :  { %11472 = vst [vmem:[#allocation152_spill] sm:$0xff] %v8524_v17  ;;  %v3028_v44 = vadd.f32 %v3027_v31, %v2829_v51  ;;  %v3005_v56 = vadd.f32 %v3004_v62, %v2884_v46  ;;  %v2887_v51 = vmul.f32 %v8536_v20, %v8536_v20  ;;  %v8560_v31 = vsub.f32 %v11480_v13, %v8259_v10  ;;  %v6368_v17 = vld [vmem:[#allocation7 + $0xf4] sm:$0xf] }
 0x505   :  { %11474 = vst [vmem:[#allocation24_spill] sm:$0xff] %v8530_v55  ;;  %v2930_v2 = vadd.f32 %v2929_v52, %v2878_v39  ;;  %v2845_v62 = vmul.f32 %v8550_v18, %v8550_v18  ;;  %v11486_v52 = vld [vmem:[#allocation64_spill] sm:$0xff]  ;;  %v11491_v55 = vld [vmem:[#allocation51_spill] sm:$0xff] }
 0x506   :  { %11476 = vst [vmem:[#allocation28_spill] sm:$0xff] %v8536_v20  ;;  %v3029_v0 = vadd.f32 %v3028_v44, %v2833_v63  ;;  %v2969_v63 = vadd.f32 %v2968_v30, %v2887_v51  ;;  %v11482_v44 = vld [vmem:[#allocation61_spill] sm:$0xff]  ;;  %v3006_v50 = vadd.f32 %v3005_v56, %v2888_v48  ;;  %v2849_v30 = vmul.f32 %v8560_v31, %v8560_v31 }
 0x507   :  { %11477 = vst [vmem:[#allocation106_spill] sm:$0xff] %v8542_v1  ;;  %v8568_v14 = vsub.f32 %v11482_v44, %v8259_v10  ;;  %v11484_v20 = vld [vmem:[#allocation45_spill] sm:$0xff]  ;;  %v2892_v44 = vmul.f32 %v8096_v16, %v8096_v16  ;;  %v6352_v1 = vld [vmem:[#allocation7 + $0x74] sm:$0xf] }
 0x508   :  { %11479 = vst [vmem:[#allocation43_spill] sm:$0xff] %v8550_v18  ;;  %v3030_v9 = vadd.f32 %v3029_v0, %v2837_v22  ;;  %v2882_v13 = vmul.f32 %v11484_v20, %v11484_v20  ;;  %v2891_v22 = vmul.f32 %v11485_v23, %v11485_v23  ;;  %v8578_v0 = vsub.f32 %v11486_v52, %v8259_v10  ;;  %v11490_v23 = vld [vmem:[#allocation46_spill] sm:$0xff] }
 0x509   :  { %11481 = vst [vmem:[#allocation151_spill] sm:$0xff] %v8560_v31  ;;  %v2853_v56 = vmul.f32 %v8568_v14, %v8568_v14  ;;  %v2886_v52 = vmul.f32 %v11490_v23, %v11490_v23  ;;  %v3007_v8 = vadd.f32 %v3006_v50, %v2892_v44  ;;  %v6206_v31 = vld [vmem:[#allocation7 + $0x1f8] sm:$0xf0] }
 0x50a   :  { %11483 = vst [vmem:[#allocation29_spill] sm:$0xff] %v8568_v14  ;;  %v3031_v46 = vadd.f32 %v3030_v9, %v2841_v38  ;;  %v2931_v51 = vadd.f32 %v2930_v2, %v2882_v13  ;;  %v2970_v38 = vadd.f32 %v2969_v63, %v2891_v22  ;;  %v11488_v9 = vld [vmem:[#allocation136_spill] sm:$0xff]  ;;  %v11492_v2 = vld [vmem:[#allocation65_spill] sm:$0xff]  ;;  %v2857_v63 = vmul.f32 %v8578_v0, %v8578_v0 }
 0x50b   :  { %11487 = vst [vmem:[#allocation49_spill] sm:$0xff] %v8578_v0  ;;  %v8586_v20 = vsub.f32 %v11488_v9, %v8259_v10  ;;  %v11494_v9 = vld [vmem:[#allocation98_spill] sm:$0xff] }
 0x50c   :  { %v3032_v39 = vadd.f32 %v3031_v46, %v2845_v62  ;;  %v2895_v62 = vmul.f32 %v11491_v55, %v11491_v55  ;;  %v8596_v46 = vsub.f32 %v11492_v2, %v8259_v10  ;;  %v2932_v22 = vadd.f32 %v2931_v51, %v2886_v52  ;;  %v11497_v55 = vld [vmem:[#allocation111_spill] sm:$0xff]  ;;  %v11499_v51 = vld [vmem:[#allocation69_spill] sm:$0xff] }
 0x50d   :  { %11489 = vst [vmem:[#allocation50_spill] sm:$0xff] %v8586_v20  ;;  %v2896_v16 = vmul.f32 %v11494_v9, %v11494_v9  ;;  %v2861_v50 = vmul.f32 %v8586_v20, %v8586_v20  ;;  %v2890_v2 = vmul.f32 %v11497_v55, %v11497_v55  ;;  %v6142_v20 = vld [vmem:[#allocation7 + $0x178] sm:$0xf0] }
 0x50e   :  { %v3033_v48 = vadd.f32 %v3032_v39, %v2849_v30  ;;  %11493 = vst [vmem:[#allocation153_spill] sm:$0xff] %v8596_v46  ;;  %v2971_v30 = vadd.f32 %v2970_v38, %v2895_v62  ;;  %v11495_v39 = vld [vmem:[#allocation68_spill] sm:$0xff]  ;;  %v2865_v38 = vmul.f32 %v8596_v46, %v8596_v46 }
 0x50f   :  { %v8604_v23 = vsub.f32 %v11495_v39, %v8259_v10  ;;  %v3008_v24 = vadd.f32 %v3007_v8, %v2896_v16  ;;  %v2933_v62 = vadd.f32 %v2932_v22, %v2890_v2  ;;  %v11501_v39 = vld [vmem:[#allocation81_spill] sm:$0xff] }
 0x510   :  { %v3034_v13 = vadd.f32 %v3033_v48, %v2853_v56  ;;  %v2899_v56 = vmul.f32 %v11498_v60, %v11498_v60  ;;  %v8614_v48 = vsub.f32 %v11499_v51, %v8259_v10  ;;  %v2900_v9 = vmul.f32 %v11501_v39, %v11501_v39  ;;  %v11504_v60 = vld [vmem:[#allocation112_spill] sm:$0xff]  ;;  %v11506_v22 = vld [vmem:[#allocation17_spill] sm:$0xff] }
 0x511   :  { %11496 = vst [vmem:[#allocation31_spill] sm:$0xff] %v8604_v23  ;;  %v2869_v16 = vmul.f32 %v8604_v23, %v8604_v23  ;;  %v2894_v51 = vmul.f32 %v11504_v60, %v11504_v60  ;;  %v6164_v23 = vld [vmem:[#allocation7 + $0x1a0] sm:$0xf] }
 0x512   :  { %v3035_v44 = vadd.f32 %v3034_v13, %v2857_v63  ;;  %11500 = vst [vmem:[#allocation155_spill] sm:$0xff] %v8614_v48  ;;  %v2972_v63 = vadd.f32 %v2971_v30, %v2899_v56  ;;  %v11502_v13 = vld [vmem:[#allocation70_spill] sm:$0xff]  ;;  %v3009_v57 = vadd.f32 %v3008_v24, %v2900_v9  ;;  %v2873_v30 = vmul.f32 %v8614_v48, %v8614_v48  ;;  %v11512_v48 = vld [vmem:[#allocation75_spill] sm:$0xff] }
 0x513   :  { %v8622_v55 = vsub.f32 %v11502_v13, %v8259_v10  ;;  %v2934_v56 = vadd.f32 %v2933_v62, %v2894_v51  ;;  %v11508_v13 = vld [vmem:[#allocation100_spill] sm:$0xff] }
 0x514   :  { %v3036_v52 = vadd.f32 %v3035_v44, %v2861_v50  ;;  %v2903_v50 = vmul.f32 %v11505_v21, %v11505_v21  ;;  %v8632_v44 = vsub.f32 %v11506_v22, %v8259_v10  ;;  %v2904_v39 = vmul.f32 %v11508_v13, %v11508_v13  ;;  %v11511_v21 = vld [vmem:[#allocation47_spill] sm:$0xff]  ;;  %v11514_v13 = vld [vmem:[#allocation48_spill] sm:$0xff] }
 0x515   :  { %11503 = vst [vmem:[#allocation30_spill] sm:$0xff] %v8622_v55  ;;  %v2877_v24 = vmul.f32 %v8622_v55, %v8622_v55  ;;  %v2898_v22 = vmul.f32 %v11511_v21, %v11511_v21  ;;  %v2893_v21 = vmul.f32 %v8289_v5, %v8289_v5 }
 0x516   :  { %v3037_v8 = vadd.f32 %v3036_v52, %v2865_v38  ;;  %11507 = vst [vmem:[#allocation156_spill] sm:$0xff] %v8632_v44  ;;  %v2973_v38 = vadd.f32 %v2972_v63, %v2903_v50  ;;  %v11509_v52 = vld [vmem:[#allocation148_spill] sm:$0xff]  ;;  %v3010_v53 = vadd.f32 %v3009_v57, %v2904_v39  ;;  %v2881_v62 = vmul.f32 %v8632_v44, %v8632_v44 }
 0x517   :  { %v8640_v60 = vsub.f32 %v11509_v52, %v8259_v10 }
 0x518   :  { %v3038_v2 = vadd.f32 %v3037_v8, %v2869_v16  ;;  %v8648_v16 = vsub.f32 %v11512_v48, %v8259_v10  ;;  %v2935_v8 = vadd.f32 %v2934_v56, %v2898_v22  ;;  %v2974_v51 = vrot.slane %v2973_v38, 4 }
 0x519   :  { %11510 = vst [vmem:[#allocation32_spill] sm:$0xff] %v8640_v60  ;;  %v2885_v50 = vmul.f32 %v8640_v60, %v8640_v60 }
 0x51a   :  { %v3039_v9 = vadd.f32 %v3038_v2, %v2873_v30  ;;  %11513 = vst [vmem:[#allocation157_spill] sm:$0xff] %v8648_v16  ;;  %v2902_v30 = vmul.f32 %v11514_v13, %v11514_v13  ;;  %v3011_v2 = vrot.slane %v3010_v53, 4  ;;  %v2889_v57 = vmul.f32 %v8648_v16, %v8648_v16 }
 0x51b   :  { %v2975_v48 = vadd.f32 %v2974_v51, %v2973_v38  ;;  %v2901_v13 = vmul.f32 %v8297_v47, %v8297_v47 }
 0x51c   :  { %v3040_v63 = vadd.f32 %v3039_v9, %v2877_v24  ;;  %v2936_v10 = vadd.f32 %v2935_v8, %v2902_v30  ;;  %v3012_v56 = vadd.f32 %v3011_v2, %v3010_v53  ;;  %v2897_v9 = vmul.f32 %v8293_v32, %v8293_v32 }
 0x51d   :  { %v2905_v8 = vmul.f32 %v8305_v34, %v8305_v34 }
 0x51e   :  { %v3041_v52 = vadd.f32 %v3040_v63, %v2881_v62  ;;  %v2937_v62 = vrot.slane %v2936_v10, 4  ;;  %v2976_v63 = vrot.slane %v2975_v48, 2  ;;  %v3013_v44 = vrot.slane %v3012_v56, 2 }
 0x520   :  { %v3042_v39 = vadd.f32 %v3041_v52, %v2885_v50  ;;  %v2938_v51 = vadd.f32 %v2937_v62, %v2936_v10  ;;  %v2977_v50 = vadd.f32 %v2976_v63, %v2975_v48  ;;  %v3014_v30 = vadd.f32 %v3013_v44, %v3012_v56 }
 0x522   :  { %v3043_v24 = vadd.f32 %v3042_v39, %v2889_v57  ;;  %v2939_v2 = vrot.slane %v2938_v51, 2  ;;  %v2978_v57 = vrot.slane %v2977_v50, 1 }
 0x524   :  { %v3044_v22 = vadd.f32 %v3043_v24, %v2893_v21  ;;  %v3015_v21 = vrot.slane %v3014_v30, 1  ;;  %v2940_v32 = vadd.f32 %v2939_v2, %v2938_v51  ;;  %v2979_v5 = vadd.f32 %v2978_v57, %v2977_v50  ;;  %v6108_v51 = vld [vmem:[#allocation7 + $0x130] sm:$0xf]  ;;  %v6377_v50 = vld [vmem:[#allocation7 + $0x134] sm:$0xf0] }
 0x525   :  { %v6109_v2 = vor.u32 %v6377_v50, %v6108_v51  ;;  %v6393_v57 = vld [vmem:[#allocation7 + $0x1b4] sm:$0xf0]  ;;  %v6391_v51 = vld [vmem:[#allocation7 + $0x1a4] sm:$0xf0]  ;;  %v5972_v50 = vld [vmem:[#allocation7 + $0x20] sm:$0xf] }
 0x526   :  { %v3045_v60 = vadd.f32 %v3044_v22, %v2897_v9  ;;  %v3016_v47 = vadd.f32 %v3015_v21, %v3014_v30  ;;  %v2941_v22 = vrot.slane %v2940_v32, 1  ;;  %v3055_v55 = vmul.f32 0.00390625, %v2979_v5 }
 0x527   :  { %4157 = vmatpush.bf16.msra.mxu2 %v6109_v2  ;;  %v6165_v46 = vor.u32 %v6391_v51, %v6164_v23 }
 0x528   :  { %v3046_v38 = vadd.f32 %v3045_v60, %v2901_v13  ;;  %v3056_v34 = vmul.f32 0.00390625, %v3016_v47  ;;  %v2942_v13 = vadd.f32 %v2941_v22, %v2940_v32  ;;  %v8666_v10 = vadd.f32 1e-05, %v3055_v55  ;;  %v6361_v22 = vld [vmem:[#allocation7 + $0xb4] sm:$0xf0] }
 0x52a   :  { %v3047_v52 = vadd.f32 %v3046_v38, %v2905_v8  ;;  %v8670_v48 = vadd.f32 1e-05, %v3056_v34  ;;  %v3054_v56 = vmul.f32 0.00390625, %v2942_v13  ;;  %vm3078_vm4 = vweird.f32 %v8666_v10 }
 0x52c   :  { %v3048_v53 = vrot.slane %v3047_v52, 4  ;;  %v8675_v62 = vadd.f32 1e-05, %v3054_v56  ;;  %vm3088_vm7 = vweird.f32 %v8670_v48 }
 0x52e   :  { %v3049_v39 = vadd.f32 %v3048_v53, %v3047_v52  ;;  %v6172_v52 = vld [vmem:[#allocation7 + $0x1b0] sm:$0xf]  ;;  %vm3068_vm11 = vweird.f32 %v8675_v62 }
 0x52f   :  { %v6173_v21 = vor.u32 %v6393_v57, %v6172_v52  ;;  %v6343_v52 = vld [vmem:[#allocation7 + $0x24] sm:$0xf0] }
 0x530   :  { %v3050_v24 = vrot.slane %v3049_v39, 2  ;;  %v5973_v41 = vor.u32 %v6343_v52, %v5972_v50 }
 0x531   :  { %4246 = vmatpush.bf16.msra.mxu3 %v6173_v21 }
 0x532   :  { %v3051_v16 = vadd.f32 %v3050_v24, %v3049_v39  ;;  %v5980_v39 = vld [vmem:[#allocation7 + $0x30] sm:$0xf]  ;;  %v6345_v24 = vld [vmem:[#allocation7 + $0x34] sm:$0xf0] }
 0x533   :  { %v5981_v56 = vor.u32 %v6345_v24, %v5980_v39  ;;  %v6092_v24 = vld [vmem:[#allocation7 + $0x110] sm:$0xf] }
 0x534   :  { %v3052_v9 = vrot.slane %v3051_v16, 1 }
 0x535   :  { %3979 = vmatpush.bf16.msra.mxu0 %v5981_v56  ;;  %4247 = vmatpush.bf16.msra.mxu3 %v6165_v46  ;;  %v6389_v56 = vld [vmem:[#allocation7 + $0x194] sm:$0xf0] }
 0x536   :  { %v3053_v37 = vadd.f32 %v3052_v9, %v3051_v16  ;;  %v6044_v9 = vld [vmem:[#allocation7 + $0xb0] sm:$0xf] }
 0x538   :  { %v3057_v60 = vmul.f32 0.00390625, %v3053_v37 }
 0x539   :  { %3980 = vmatpush.bf16.msra.mxu0 %v5973_v41 }
 0x53a   :  { %v8668_v44 = vadd.f32 1e-05, %v3057_v60 }
 0x53c   :  { %6412 = vrsqrt.f32 %v8668_v44  ;;  %vm3098_vm3 = vweird.f32 %v8668_v44 }
 0x53d   :  { %6414 = vrsqrt.f32 %v8666_v10 }
 0x53e   :  { %6416 = vrsqrt.f32 %v8670_v48 }
 0x53f   :  { %6418 = vrsqrt.f32 %v8675_v62 }
 0x542   :  { %v8677_v5 = vpop.eup %6412 }
 0x543   :  { %v8679_v47 = vpop.eup %6414  ;;  %v3093_v34 = vmul.f32 %v8677_v5, %v8668_v44  ;;  %vm3099_vm0 = vweird.f32 %v8677_v5 }
 0x544   :  { %v8681_v32 = vpop.eup %6416  ;;  %v3073_v37 = vmul.f32 %v8679_v47, %v8666_v10  ;;  %vm3079_vm1 = vweird.f32 %v8679_v47  ;;  %vm3100_vm5 = vmor %vm3098_vm3, %vm3099_vm0 }
 0x545   :  { %v3083_v55 = vmul.f32 %v8681_v32, %v8670_v48  ;;  %v3094_v16 = vmul.f32 %v8677_v5, %v3093_v34  ;;  %v8691_v63 = vpop.eup %6418  ;;  %v6045_v34 = vor.u32 %v6361_v22, %v6044_v9  ;;  %v6373_v9 = vld [vmem:[#allocation7 + $0x114] sm:$0xf0]  ;;  %v6156_v22 = vld [vmem:[#allocation7 + $0x190] sm:$0xf]  ;;  %vm3089_vm2 = vweird.f32 %v8681_v32  ;;  %vm3080_vm6 = vmor %vm3078_vm4, %vm3079_vm1 }
 0x546   :  { %v3074_v8 = vmul.f32 %v8679_v47, %v3073_v37  ;;  %v3063_v30 = vmul.f32 %v8691_v63, %v8675_v62  ;;  %v6100_v37 = vld [vmem:[#allocation7 + $0x120] sm:$0xf]  ;;  %v6093_v23 = vor.u32 %v6373_v9, %v6092_v24  ;;  %vm3090_vm8 = vmor %vm3088_vm7, %vm3089_vm2  ;;  %vm3069_vm9 = vweird.f32 %v8691_v63 }
 0x547   :  { %v3084_v38 = vmul.f32 %v8681_v32, %v3083_v55  ;;  %v3095_v53 = vmul.f32 0.5, %v3094_v16  ;;  %v6375_v55 = vld [vmem:[#allocation7 + $0x124] sm:$0xf0]  ;;  %4068 = vmatpush.bf16.msra.mxu1 %v6045_v34  ;;  %vm3070_vm13 = vmor %vm3068_vm11, %vm3069_vm9 }
 0x548   :  { %v3075_v60 = vmul.f32 0.5, %v3074_v8  ;;  %v3064_v11 = vmul.f32 %v8691_v63, %v3063_v30  ;;  %v6101_v16 = vor.u32 %v6375_v55, %v6100_v37  ;;  %v6036_v8 = vld [vmem:[#allocation7 + $0xa0] sm:$0xf] }
 0x549   :  { %v3085_v13 = vmul.f32 0.5, %v3084_v38  ;;  %v3096_v57 = vsub.f32 1.5, %v3095_v53  ;;  %v6359_v38 = vld [vmem:[#allocation7 + $0xa4] sm:$0xf0]  ;;  %v6157_v53 = vor.u32 %v6389_v56, %v6156_v22 }
 0x54a   :  { %v3076_v2 = vsub.f32 1.5, %v3075_v60  ;;  %4158 = vmatpush.bf16.msra.mxu2 %v6101_v16  ;;  %v6037_v21 = vor.u32 %v6359_v38, %v6036_v8  ;;  %v3065_v30 = vmul.f32 0.5, %v3064_v11 }
 0x54b   :  { %v3086_v39 = vsub.f32 1.5, %v3085_v13  ;;  %v3097_v34 = vmul.f32 %v8677_v5, %v3096_v57  ;;  %4248 = vmatpush.bf16.msra.mxu3 %v6157_v53  ;;  %v11515_v53 = vld [vmem:[#allocation71_spill] sm:$0xff] }
 0x54c   :  { %4069 = vmatpush.bf16.msra.mxu1 %v6037_v21  ;;  %v3077_v60 = vmul.f32 %v8679_v47, %v3076_v2  ;;  %v3066_v41 = vsub.f32 1.5, %v3065_v30 }
 0x54d   :  { %v3087_v46 = vmul.f32 %v8681_v32, %v3086_v39  ;;  %v3101_v11 = vsel %vm3100_vm5, %v8677_v5, %v3097_v34  ;;  %vm5401_vm5 = vcmask 7168  }
 0x54e   :  { %4159 = vmatpush.bf16.msra.mxu2 %v6093_v23  ;;  %v3081_v13 = vsel %vm3080_vm6, %v8679_v47, %v3077_v60  ;;  %v3108_v55 = vrot.slane %v3101_v11, 2  ;;  %v3067_v16 = vmul.f32 %v8691_v63, %v3066_v41  ;;  %v2497_v47 = vld [vmem:[#allocation9] sm:$0xff] }
 0x54f   :  { %v3091_v37 = vsel %vm3090_vm8, %v8681_v32, %v3087_v46  ;;  %v3106_v10 = vrot.slane %v3081_v13, 6  ;;  %v3259_v2 = vperm.slane %v2497_v47, 1  ;;  %v3260_v39 = vperm.slane %v2497_v47, 3  ;;  %v11516_v46 = vld [vmem:[#allocation66_spill] sm:$0xff] }
 0x550   :  { %v3107_v44 = vrot.slane %v3091_v37, 4  ;;  %v3071_v5 = vsel %vm3070_vm13, %v8691_v63, %v3067_v16  ;;  %v3261_v21 = vperm.slane %v2497_v47, 5  ;;  %v3262_v24 = vperm.slane %v2497_v47, 7  ;;  %v11517_v11 = vld [vmem:[#allocation102_spill] sm:$0xff] }
 0x551   :  { %v3110_v51 = vsel %vm3109_vm12, %v3071_v5, %v3106_v10  ;;  %v8723_v30 = vperm.slane %v3259_v2, 1  ;;  %v8725_v56 = vperm.slane %v3260_v39, 1  ;;  %v11519_v10 = vld [vmem:[#allocation67_spill] sm:$0xff] }
 0x552   :  { %v3112_v48 = vsel %vm3111_vm10, %v3107_v44, %v3108_v55  ;;  %v8727_v34 = vperm.slane %v3261_v21, 1  ;;  %v8729_v23 = vperm.slane %v3262_v24, 1  ;;  %v11518_v55 = vld [vmem:[#allocation74_spill] sm:$0xff]  ;;  %v6371_v39 = vld [vmem:[#allocation7 + $0x104] sm:$0xf0] }
 0x553   :  { %v3114_v32 = vsel %vm3113_vm14, %v3110_v51, %v3112_v48  ;;  %v11520_v48 = vld [vmem:[#allocation85_spill] sm:$0xff]  ;;  %v6148_v21 = vld [vmem:[#allocation7 + $0x180] sm:$0xf]  ;;  %v6387_v24 = vld [vmem:[#allocation7 + $0x184] sm:$0xf0] }
 0x554   :  { %v3116_v50 = vmul.f32 %v3114_v32, %v2497_v47  ;;  %v5964_v47 = vld [vmem:[#allocation7 + $0x10] sm:$0xf]  ;;  %v6341_v32 = vld [vmem:[#allocation7 + $0x14] sm:$0xf0] }
 0x555   :  { %v5965_v6 = vor.u32 %v6341_v32, %v5964_v47 }
 0x556   :  { %v3118_v52 = vperm.slane %v3116_v50, 0  ;;  %v3119_v57 = vperm.slane %v3116_v50, 2  ;;  %v3120_v8 = vperm.slane %v3116_v50, 4  ;;  %v3121_v38 = vperm.slane %v3116_v50, 6  ;;  %v6028_v50 = vld [vmem:[#allocation7 + $0x90] sm:$0xf] }
 0x557   :  { %3981 = vmatpush.bf16.msra.mxu0 %v5965_v6  ;;  %v11521_v6 = vld [vmem:[#allocation57_spill] sm:$0xff] }
 0x558   :  { %v8715_v62 = vperm.slane %v3118_v52, 0  ;;  %v8717_v9 = vperm.slane %v3119_v57, 0  ;;  %v8719_v22 = vperm.slane %v3120_v8, 0  ;;  %v8721_v63 = vperm.slane %v3121_v38, 0  ;;  %v6357_v52 = vld [vmem:[#allocation7 + $0x94] sm:$0xf0] }
 0x559   :  { %v6084_v57 = vld [vmem:[#allocation7 + $0x100] sm:$0xf] }
 0x55a   :  { %v3130_v60 = vmul.f32 %v8715_v62, %v11515_v53  ;;  %v3131_v41 = vmul.f32 %v8717_v9, %v11516_v46  ;;  %v3132_v13 = vmul.f32 %v8719_v22, %v11517_v11  ;;  %v3133_v37 = vmul.f32 %v8721_v63, %v8311_v26 }
 0x55b   :  { %v3134_v16 = vmul.f32 %v8715_v62, %v11518_v55  ;;  %v3135_v44 = vmul.f32 %v8717_v9, %v11519_v10  ;;  %v3136_v5 = vmul.f32 %v8719_v22, %v11520_v48  ;;  %v3137_v51 = vmul.f32 %v8721_v63, %v8315_v3  ;;  %v5956_v55 = vld [vmem:[#allocation7] sm:$0xf]  ;;  %v6339_v10 = vld [vmem:[#allocation7 + $0x4] sm:$0xf0] }
 0x55c   :  { %v3271_v8 = vadd.f32 %v8723_v30, %v3130_v60  ;;  %v3272_v26 = vadd.f32 %v8725_v56, %v3131_v41  ;;  %v3273_v38 = vadd.f32 %v8727_v34, %v3132_v13  ;;  %v3274_v2 = vadd.f32 %v8729_v23, %v3133_v37  ;;  %v6020_v60 = vld [vmem:[#allocation7 + $0x80] sm:$0xf]  ;;  %v6355_v48 = vld [vmem:[#allocation7 + $0x84] sm:$0xf0]  ;;  %v6384_v41 = vld [vmem:[#allocation7 + $0x174] sm:$0xf] }
 0x55d   :  { %v3275_v53 = vadd.f32 %v8723_v30, %v3134_v16  ;;  %v3276_v3 = vadd.f32 %v8725_v56, %v3135_v44  ;;  %v3277_v46 = vadd.f32 %v8727_v34, %v3136_v5  ;;  %v3278_v11 = vadd.f32 %v8729_v23, %v3137_v51  ;;  %v6400_v13 = vld [vmem:[#allocation7 + $0x1f4] sm:$0xf]  ;;  %v6014_v5 = vld [vmem:[#allocation7 + $0x78] sm:$0xf0] }
 0x55e   :  { %v3401_v0 = vmax.f32 %v3273_v38, 0.0  ;;  %v3402_v37 = vmax.f32 %v3274_v2, 0.0  ;;  %v6029_v16 = vor.u32 %v6357_v52, %v6028_v50  ;;  %v6085_v18 = vor.u32 %v6371_v39, %v6084_v57  ;;  %v6350_v39 = vld [vmem:[#allocation7 + $0x64] sm:$0xf] }
 0x55f   :  { %v3405_v42 = vmax.f32 %v3277_v46, 0.0  ;;  %v3406_v14 = vmax.f32 %v3278_v11, 0.0  ;;  %v6149_v44 = vor.u32 %v6387_v24, %v6148_v21  ;;  %v3399_v51 = vmax.f32 %v3271_v8, 0.0  ;;  %v6006_v21 = vld [vmem:[#allocation7 + $0x68] sm:$0xf0] }
 0x560   :  { %v3400_v15 = vmax.f32 %v3272_v26, 0.0  ;;  %v3403_v7 = vmax.f32 %v3275_v53, 0.0  ;;  %v3404_v49 = vmax.f32 %v3276_v3, 0.0  ;;  %4070 = vmatpush.bf16.msra.mxu1 %v6029_v16  ;;  %v5957_v54 = vor.u32 %v6339_v10, %v5956_v55  ;;  %4160 = vmatpush.bf16.msra.mxu2 %v6085_v18  ;;  %v11523_v18 = vld [vmem:[#allocation78_spill] sm:$0xff]  ;;  %v11526_v26 = vld [vmem:[#allocation21_spill] sm:$0xff] }
 0x561   :  { %v6021_v38 = vor.u32 %v6355_v48, %v6020_v60  ;;  %v6145_v2 = vor.u32 %v6384_v41, %v6142_v20  ;;  %v8755_v46 = vpack.c.bf16 %v3405_v42, %v3401_v0  ;;  %v8757_v11 = vpack.c.bf16 %v3406_v14, %v3402_v37  ;;  %4249 = vmatpush.bf16.msra.mxu3 %v6149_v44  ;;  %v11524_v14 = vld [vmem:[#allocation146_spill] sm:$0xff]  ;;  %v11525_v0 = vld [vmem:[#allocation25_spill] sm:$0xff]  ;;  %v6070_v3 = vld [vmem:[#allocation7 + $0xe8] sm:$0xf0] }
 0x562   :  { %v6209_v47 = vor.u32 %v6400_v13, %v6206_v31  ;;  %v6017_v32 = vor.u32 %v6352_v1, %v6014_v5  ;;  %v6081_v50 = vor.u32 %v6368_v17, %v6078_v36  ;;  %v8759_v52 = vpack.c.bf16 %v3403_v7, %v3399_v51  ;;  %3982 = vmatpush.bf16.msra.mxu0 %v5957_v54  ;;  %v11522_v36 = vld [vmem:[#allocation89_spill] sm:$0xff]  ;;  %v6382_v54 = vld [vmem:[#allocation7 + $0x164] sm:$0xf]  ;;  %v6198_v1 = vld [vmem:[#allocation7 + $0x1e8] sm:$0xf0] }
 0x563   :  { %v8761_v57 = vpack.c.bf16 %v3404_v49, %v3400_v15  ;;  %4161 = vmatmul.bf16.vlgmr.msra.gmra.mxu2 %v8755_v46  ;;  %v3140_v42 = vmul.f32 %v8719_v22, %v11521_v6  ;;  %v3141_v20 = vmul.f32 %v8721_v63, %v8343_v19  ;;  %v3144_v7 = vmul.f32 %v8719_v22, %v11522_v36  ;;  %v6134_v15 = vld [vmem:[#allocation7 + $0x168] sm:$0xf0]  ;;  %v6398_v17 = vld [vmem:[#allocation7 + $0x1e4] sm:$0xf] }
 0x564   :  { %4509 = vmatpush.bf16.msrb.mxu2 %v6145_v2  ;;  %4071 = vmatpush.bf16.msra.mxu1 %v6021_v38  ;;  %v3145_v49 = vmul.f32 %v8721_v63, %v8369_v33  ;;  %v3138_v31 = vmul.f32 %v8715_v62, %v11523_v18  ;;  %v3139_v19 = vmul.f32 %v8717_v9, %v11524_v14  ;;  %v6366_v24 = vld [vmem:[#allocation7 + $0xe4] sm:$0xf] }
 0x565   :  { %4598 = vmatpush.bf16.msrb.mxu3 %v6209_v47  ;;  %3983 = vmatmul.bf16.vlgmr.msra.gmra.mxu0 %v8759_v52  ;;  %v3142_v8 = vmul.f32 %v8715_v62, %v11525_v0  ;;  %v3143_v33 = vmul.f32 %v8717_v9, %v11526_v26  ;;  %v6137_v53 = vor.u32 %v6382_v54, %v6134_v15  ;;  %v11527_v15 = vld [vmem:[#allocation60_spill] sm:$0xff]  ;;  %v11528_v18 = vld [vmem:[#allocation62_spill] sm:$0xff] }
 0x566   :  { %4250 = vmatmul.bf16.vlgmr.msra.gmra.mxu3 %v8757_v11  ;;  %4331 = vmatpush.bf16.msrb.mxu0 %v6017_v32  ;;  %v3281_v55 = vadd.f32 %v8727_v34, %v3140_v42  ;;  %v3285_v10 = vadd.f32 %v8727_v34, %v3144_v7  ;;  %v3282_v60 = vadd.f32 %v8729_v23, %v3141_v20 }
 0x567   :  { %4072 = vmatmul.bf16.vlgmr.msra.gmra.mxu1 %v8761_v57  ;;  %v3286_v48 = vadd.f32 %v8729_v23, %v3145_v49  ;;  %v6201_v41 = vor.u32 %v6398_v17, %v6198_v1  ;;  %v6009_v13 = vor.u32 %v6350_v39, %v6006_v21  ;;  %v6073_v37 = vor.u32 %v6366_v24, %v6070_v3 }
 0x568   :  { %4420 = vmatpush.bf16.msrb.mxu1 %v6081_v50  ;;  %4510 = vmatpush.bf16.msrb.mxu2 %v6137_v53  ;;  %v3279_v16 = vadd.f32 %v8723_v30, %v3138_v31  ;;  %v3283_v44 = vadd.f32 %v8723_v30, %v3142_v8  ;;  %v3280_v5 = vadd.f32 %v8725_v56, %v3139_v19  ;;  %v3409_v38 = vmax.f32 %v3281_v55, 0.0  ;;  %v11529_v19 = vld [vmem:[#allocation82_spill] sm:$0xff] }
 0x569   :  { %v3284_v51 = vadd.f32 %v8725_v56, %v3143_v33  ;;  %4599 = vmatpush.bf16.msrb.mxu3 %v6201_v41  ;;  %v3413_v2 = vmax.f32 %v3285_v10, 0.0  ;;  %v3410_v47 = vmax.f32 %v3282_v60, 0.0  ;;  %v3414_v32 = vmax.f32 %v3286_v48, 0.0  ;;  %v11530_v8 = vld [vmem:[#allocation150_spill] sm:$0xff]  ;;  %v11531_v33 = vld [vmem:[#allocation27_spill] sm:$0xff] }
 0x56a   :  { %4332 = vmatpush.bf16.msrb.mxu0 %v6009_v13  ;;  %v3407_v50 = vmax.f32 %v3279_v16, 0.0  ;;  %v3411_v6 = vmax.f32 %v3283_v44, 0.0  ;;  %v3408_v42 = vmax.f32 %v3280_v5, 0.0  ;;  %v3148_v17 = vmul.f32 %v8719_v22, %v11527_v15 }
 0x56b   :  { %v3412_v20 = vmax.f32 %v3284_v51, 0.0  ;;  %v8791_v36 = vpack.c.bf16 %v3413_v2, %v3409_v38  ;;  %v8793_v7 = vpack.c.bf16 %v3414_v32, %v3410_v47  ;;  %v3149_v1 = vmul.f32 %v8721_v63, %v8379_v29  ;;  %v11532_v29 = vld [vmem:[#allocation79_spill] sm:$0xff] }
 0x56c   :  { %4421 = vmatpush.bf16.msrb.mxu1 %v6073_v37  ;;  %v8795_v49 = vpack.c.bf16 %v3411_v6, %v3407_v50  ;;  %v3152_v31 = vmul.f32 %v8719_v22, %v11528_v18  ;;  %v3153_v14 = vmul.f32 %v8721_v63, %v8397_v25  ;;  %v3146_v0 = vmul.f32 %v8715_v62, %v11529_v19  ;;  %v6396_v18 = vld [vmem:[#allocation7 + $0x1d4] sm:$0xf] }
 0x56d   :  { %v8797_v54 = vpack.c.bf16 %v3412_v20, %v3408_v42  ;;  %v3147_v26 = vmul.f32 %v8717_v9, %v11530_v8  ;;  %v3150_v39 = vmul.f32 %v8715_v62, %v11531_v33  ;;  %v3151_v21 = vmul.f32 %v8717_v9, %v11532_v29  ;;  %v6348_v8 = vld [vmem:[#allocation7 + $0x54] sm:$0xf]  ;;  %v11536_v33 = vld [vmem:[#allocation83_spill] sm:$0xff] }
 0x56e   :  { %v3289_v24 = vadd.f32 %v8727_v34, %v3148_v17  ;;  %v3293_v25 = vadd.f32 %v8727_v34, %v3152_v31  ;;  %v3290_v53 = vadd.f32 %v8729_v23, %v3149_v1  ;;  %v3294_v3 = vadd.f32 %v8729_v23, %v3153_v14  ;;  %v6380_v17 = vld [vmem:[#allocation7 + $0x154] sm:$0xf]  ;;  %v6126_v1 = vld [vmem:[#allocation7 + $0x158] sm:$0xf0]  ;;  %v11533_v31 = vld [vmem:[#allocation86_spill] sm:$0xff] }
 0x56f   :  { %v3287_v55 = vadd.f32 %v8723_v30, %v3146_v0  ;;  %v3291_v10 = vadd.f32 %v8723_v30, %v3150_v39  ;;  %v3288_v60 = vadd.f32 %v8725_v56, %v3147_v26  ;;  %v3292_v48 = vadd.f32 %v8725_v56, %v3151_v21  ;;  %v6190_v0 = vld [vmem:[#allocation7 + $0x1d8] sm:$0xf0]  ;;  %v11535_v26 = vld [vmem:[#allocation90_spill] sm:$0xff] }
 0x570   :  { %v3417_v41 = vmax.f32 %v3289_v24, 0.0  ;;  %v3421_v13 = vmax.f32 %v3293_v25, 0.0  ;;  %v3418_v37 = vmax.f32 %v3290_v53, 0.0  ;;  %v3422_v16 = vmax.f32 %v3294_v3, 0.0  ;;  %v6364_v24 = vld [vmem:[#allocation7 + $0xd4] sm:$0xf] }
 0x571   :  { %v3415_v44 = vmax.f32 %v3287_v55, 0.0  ;;  %v3419_v5 = vmax.f32 %v3291_v10, 0.0  ;;  %v3416_v51 = vmax.f32 %v3288_v60, 0.0  ;;  %v3420_v38 = vmax.f32 %v3292_v48, 0.0  ;;  %v6062_v25 = vld [vmem:[#allocation7 + $0xd8] sm:$0xf0] }
 0x572   :  { %v8827_v2 = vpack.c.bf16 %v3421_v13, %v3417_v41  ;;  %v8829_v47 = vpack.c.bf16 %v3422_v16, %v3418_v37  ;;  %v3156_v6 = vmul.f32 %v8719_v22, %v8183_v61  ;;  %v3157_v42 = vmul.f32 %v8721_v63, %v8409_v43  ;;  %v11534_v61 = vld [vmem:[#allocation154_spill] sm:$0xff] }
 0x573   :  { %4166 = vmatmul.bf16.gmra.mxu2 %v8791_v36  ;;  %v8831_v32 = vpack.c.bf16 %v3419_v5, %v3415_v44  ;;  %v8833_v50 = vpack.c.bf16 %v3420_v38, %v3416_v51  ;;  %v3160_v20 = vmul.f32 %v8719_v22, %v8201_v12  ;;  %v3161_v15 = vmul.f32 %v8721_v63, %v8427_v28  ;;  %v5998_v12 = vld [vmem:[#allocation7 + $0x58] sm:$0xf0] }
 0x574   :  { %v3154_v14 = vmul.f32 %v8715_v62, %v11533_v31  ;;  %v3155_v19 = vmul.f32 %v8717_v9, %v11534_v61  ;;  %v6129_v43 = vor.u32 %v6380_v17, %v6126_v1  ;;  %v3158_v28 = vmul.f32 %v8715_v62, %v11535_v26 }
 0x575   :  { %3988 = vmatmul.bf16.gmra.mxu0 %v8795_v49  ;;  %v3159_v39 = vmul.f32 %v8717_v9, %v11536_v33  ;;  %v6193_v29 = vor.u32 %v6396_v18, %v6190_v0  ;;  %v6001_v21 = vor.u32 %v6348_v8, %v5998_v12  ;;  %v3297_v53 = vadd.f32 %v8727_v34, %v3156_v6  ;;  %v11538_v8 = vld [vmem:[#allocation87_spill] sm:$0xff] }
 0x576   :  { %4255 = vmatmul.bf16.gmra.mxu3 %v8793_v7  ;;  %4511 = vmatpush.bf16.msrb.mxu2 %v6129_v43  ;;  %v6065_v3 = vor.u32 %v6364_v24, %v6062_v25  ;;  %v3301_v55 = vadd.f32 %v8727_v34, %v3160_v20  ;;  %v3298_v10 = vadd.f32 %v8729_v23, %v3157_v42  ;;  %v11537_v43 = vld [vmem:[#allocation94_spill] sm:$0xff] }
 0x577   :  { %4077 = vmatmul.bf16.gmra.mxu1 %v8797_v54  ;;  %v3302_v60 = vadd.f32 %v8729_v23, %v3161_v15  ;;  %4600 = vmatpush.bf16.msrb.mxu3 %v6193_v29  ;;  %v3295_v48 = vadd.f32 %v8723_v30, %v3154_v14  ;;  %v3299_v41 = vadd.f32 %v8723_v30, %v3158_v28  ;;  %v3425_v16 = vmax.f32 %v3297_v53, 0.0 }
 0x578   :  { %4333 = vmatpush.bf16.msrb.mxu0 %v6001_v21  ;;  %4422 = vmatpush.bf16.msrb.mxu1 %v6065_v3  ;;  %v3296_v13 = vadd.f32 %v8725_v56, %v3155_v19  ;;  %v3300_v37 = vadd.f32 %v8725_v56, %v3159_v39  ;;  %v3429_v44 = vmax.f32 %v3301_v55, 0.0  ;;  %v3426_v5 = vmax.f32 %v3298_v10, 0.0 }
 0x579   :  { %v3430_v51 = vmax.f32 %v3302_v60, 0.0  ;;  %v3423_v38 = vmax.f32 %v3295_v48, 0.0  ;;  %v3427_v6 = vmax.f32 %v3299_v41, 0.0  ;;  %v3164_v31 = vmul.f32 %v8719_v22, %v8219_v40  ;;  %v11539_v40 = vld [vmem:[#allocation72_spill] sm:$0xff] }
 0x57a   :  { %v3424_v42 = vmax.f32 %v3296_v13, 0.0  ;;  %v3428_v20 = vmax.f32 %v3300_v37, 0.0  ;;  %v8863_v15 = vpack.c.bf16 %v3429_v44, %v3425_v16  ;;  %v3165_v14 = vmul.f32 %v8721_v63, %v8439_v59  ;;  %v11540_v59 = vld [vmem:[#allocation91_spill] sm:$0xff] }
 0x57b   :  { %v8865_v17 = vpack.c.bf16 %v3430_v51, %v3426_v5  ;;  %v8867_v1 = vpack.c.bf16 %v3427_v6, %v3423_v38  ;;  %v3168_v61 = vmul.f32 %v8719_v22, %v8237_v45  ;;  %v3169_v19 = vmul.f32 %v8721_v63, %v8457_v4 }
 0x57c   :  { %v8869_v18 = vpack.c.bf16 %v3428_v20, %v3424_v42  ;;  %v3162_v0 = vmul.f32 %v8715_v62, %v11537_v43  ;;  %v3163_v12 = vmul.f32 %v8717_v9, %v11538_v8  ;;  %v3166_v26 = vmul.f32 %v8715_v62, %v11539_v40  ;;  %v11543_v42 = vld [vmem:[#allocation147_spill] sm:$0xff]  ;;  %v11546_v40 = vld [vmem:[#allocation88_spill] sm:$0xff] }
 0x57d   :  { %v3167_v28 = vmul.f32 %v8717_v9, %v11540_v59  ;;  %v3305_v45 = vadd.f32 %v8727_v34, %v3164_v31  ;;  %v3309_v4 = vadd.f32 %v8727_v34, %v3168_v61  ;;  %v3306_v33 = vadd.f32 %v8729_v23, %v3165_v14  ;;  %v6378_v31 = vld [vmem:[#allocation7 + $0x144] sm:$0xf]  ;;  %v6118_v14 = vld [vmem:[#allocation7 + $0x148] sm:$0xf0]  ;;  %v11547_v59 = vld [vmem:[#allocation76_spill] sm:$0xff] }
 0x57e   :  { %v3310_v39 = vadd.f32 %v8729_v23, %v3169_v19  ;;  %v3303_v29 = vadd.f32 %v8723_v30, %v3162_v0  ;;  %v3307_v21 = vadd.f32 %v8723_v30, %v3166_v26  ;;  %v3304_v24 = vadd.f32 %v8725_v56, %v3163_v12  ;;  %v6394_v61 = vld [vmem:[#allocation7 + $0x1c4] sm:$0xf]  ;;  %v11544_v19 = vld [vmem:[#allocation80_spill] sm:$0xff]  ;;  %v6182_v8 = vld [vmem:[#allocation7 + $0x1c8] sm:$0xf0] }
 0x57f   :  { %v3308_v25 = vadd.f32 %v8725_v56, %v3167_v28  ;;  %v3433_v53 = vmax.f32 %v3305_v45, 0.0  ;;  %v3437_v3 = vmax.f32 %v3309_v4, 0.0  ;;  %v3434_v55 = vmax.f32 %v3306_v33, 0.0  ;;  %v6346_v12 = vld [vmem:[#allocation7 + $0x44] sm:$0xf] }
 0x580   :  { %v3438_v10 = vmax.f32 %v3310_v39, 0.0  ;;  %v3431_v60 = vmax.f32 %v3303_v29, 0.0  ;;  %v3435_v48 = vmax.f32 %v3307_v21, 0.0  ;;  %v3432_v41 = vmax.f32 %v3304_v24, 0.0  ;;  %v6362_v33 = vld [vmem:[#allocation7 + $0xc4] sm:$0xf] }
 0x581   :  { %v3436_v13 = vmax.f32 %v3308_v25, 0.0  ;;  %v8899_v37 = vpack.c.bf16 %v3437_v3, %v3433_v53  ;;  %v3172_v51 = vmul.f32 %v8719_v22, %v8251_v27  ;;  %v3173_v38 = vmul.f32 %v8721_v63, %v8469_v35  ;;  %v11545_v27 = vld [vmem:[#allocation95_spill] sm:$0xff] }
 0x582   :  { %v8901_v16 = vpack.c.bf16 %v3438_v10, %v3434_v55  ;;  %v8903_v44 = vpack.c.bf16 %v3435_v48, %v3431_v60  ;;  %v3176_v6 = vmul.f32 %v8719_v22, %v8271_v58  ;;  %v3177_v20 = vmul.f32 %v8721_v63, %v11543_v42  ;;  %v5990_v58 = vld [vmem:[#allocation7 + $0x48] sm:$0xf0] }
 0x583   :  { %4171 = vmatmul.bf16.gmra.mxu2 %v8827_v2  ;;  %v8905_v5 = vpack.c.bf16 %v3436_v13, %v3432_v41  ;;  %v3170_v43 = vmul.f32 %v8715_v62, %v11544_v19  ;;  %v3171_v0 = vmul.f32 %v8717_v9, %v11545_v27  ;;  %v6121_v35 = vor.u32 %v6378_v31, %v6118_v14  ;;  %v6054_v39 = vld [vmem:[#allocation7 + $0xc8] sm:$0xf0] }
 0x584   :  { %11541 = vst [vmem:[#allocation159_spill] sm:$0xff] %v8903_v44  ;;  %v3174_v26 = vmul.f32 %v8715_v62, %v11546_v40  ;;  %v3175_v28 = vmul.f32 %v8717_v9, %v11547_v59  ;;  %v6185_v45 = vor.u32 %v6394_v61, %v6182_v8  ;;  %v5993_v4 = vor.u32 %v6346_v12, %v5990_v58  ;;  %v11554_v8 = vld [vmem:[#allocation115_spill] sm:$0xff]  ;;  %v11555_v58 = vld [vmem:[#allocation149_spill] sm:$0xff] }
 0x585   :  { %3993 = vmatmul.bf16.gmra.mxu0 %v8831_v32  ;;  %11542 = vst [vmem:[#allocation34_spill] sm:$0xff] %v8905_v5  ;;  %v3313_v29 = vadd.f32 %v8727_v34, %v3172_v51  ;;  %4512 = vmatpush.bf16.msrb.mxu2 %v6121_v35  ;;  %v6057_v21 = vor.u32 %v6362_v33, %v6054_v39  ;;  %v11559_v39 = vld [vmem:[#allocation73_spill] sm:$0xff] }
 0x586   :  { %4260 = vmatmul.bf16.gmra.mxu3 %v8829_v47  ;;  %v3317_v24 = vadd.f32 %v8727_v34, %v3176_v6  ;;  %v3314_v25 = vadd.f32 %v8729_v23, %v3173_v38  ;;  %v3318_v53 = vadd.f32 %v8729_v23, %v3177_v20  ;;  %4334 = vmatpush.bf16.msrb.mxu0 %v5993_v4  ;;  %v11558_v4 = vld [vmem:[#allocation59_spill] sm:$0xff] }
 0x587   :  { %4082 = vmatmul.bf16.gmra.mxu1 %v8833_v50  ;;  %4601 = vmatpush.bf16.msrb.mxu3 %v6185_v45  ;;  %v3311_v3 = vadd.f32 %v8723_v30, %v3170_v43  ;;  %v3315_v55 = vadd.f32 %v8723_v30, %v3174_v26  ;;  %v3312_v10 = vadd.f32 %v8725_v56, %v3171_v0  ;;  %v3441_v48 = vmax.f32 %v3313_v29, 0.0  ;;  %v11552_v43 = vld [vmem:[#allocation116_spill] sm:$0xff] }
 0x588   :  { %4423 = vmatpush.bf16.msrb.mxu1 %v6057_v21  ;;  %v3316_v60 = vadd.f32 %v8725_v56, %v3175_v28  ;;  %v3445_v41 = vmax.f32 %v3317_v24, 0.0  ;;  %v3442_v13 = vmax.f32 %v3314_v25, 0.0  ;;  %v3446_v51 = vmax.f32 %v3318_v53, 0.0  ;;  %v11553_v0 = vld [vmem:[#allocation20_spill] sm:$0xff] }
 0x589   :  { %v3439_v6 = vmax.f32 %v3311_v3, 0.0  ;;  %v3443_v42 = vmax.f32 %v3315_v55, 0.0  ;;  %v3440_v38 = vmax.f32 %v3312_v10, 0.0  ;;  %v3180_v27 = vmul.f32 %v8719_v22, %v11552_v43  ;;  %v11556_v26 = vld [vmem:[#allocation104_spill] sm:$0xff] }
 0x58a   :  { %v3444_v31 = vmax.f32 %v3316_v60, 0.0  ;;  %v8935_v20 = vpack.c.bf16 %v3445_v41, %v3441_v48  ;;  %v8937_v14 = vpack.c.bf16 %v3446_v51, %v3442_v13  ;;  %v3181_v35 = vmul.f32 %v8721_v63, %v11553_v0  ;;  %v11557_v28 = vld [vmem:[#allocation84_spill] sm:$0xff] }
 0x58b   :  { %v8939_v61 = vpack.c.bf16 %v3443_v42, %v3439_v6  ;;  %v3184_v12 = vmul.f32 %v8719_v22, %v11554_v8  ;;  %v3185_v40 = vmul.f32 %v8721_v63, %v11555_v58  ;;  %v3178_v59 = vmul.f32 %v8715_v62, %v11556_v26  ;;  %v11564_v8 = vld [vmem:[#allocation139_spill] sm:$0xff]  ;;  %v11565_v58 = vld [vmem:[#allocation152_spill] sm:$0xff] }
 0x58c   :  { %11548 = vst [vmem:[#allocation158_spill] sm:$0xff] %v8935_v20  ;;  %v8941_v19 = vpack.c.bf16 %v3444_v31, %v3440_v38  ;;  %v3179_v45 = vmul.f32 %v8717_v9, %v11557_v28  ;;  %v3182_v33 = vmul.f32 %v8715_v62, %v11558_v4  ;;  %v3183_v29 = vmul.f32 %v8717_v9, %v11559_v39  ;;  %v11566_v26 = vld [vmem:[#allocation119_spill] sm:$0xff]  ;;  %v11567_v28 = vld [vmem:[#allocation106_spill] sm:$0xff]  ;;  %v6376_v4 = vld [vmem:[#allocation7 + $0x134] sm:$0xf] }
 0x58d   :  { %11549 = vst [vmem:[#allocation36_spill] sm:$0xff] %v8937_v14  ;;  %v3321_v21 = vadd.f32 %v8727_v34, %v3180_v27  ;;  %v3325_v24 = vadd.f32 %v8727_v34, %v3184_v12  ;;  %v3322_v25 = vadd.f32 %v8729_v23, %v3181_v35  ;;  %v3326_v53 = vadd.f32 %v8729_v23, %v3185_v40  ;;  %v6392_v39 = vld [vmem:[#allocation7 + $0x1b4] sm:$0xf] }
 0x58e   :  { %11550 = vst [vmem:[#allocation161_spill] sm:$0xff] %v8939_v61  ;;  %v3319_v3 = vadd.f32 %v8723_v30, %v3178_v59  ;;  %v3323_v55 = vadd.f32 %v8723_v30, %v3182_v33  ;;  %v3320_v10 = vadd.f32 %v8725_v56, %v3179_v45  ;;  %v3324_v60 = vadd.f32 %v8725_v56, %v3183_v29  ;;  %v6110_v33 = vld [vmem:[#allocation7 + $0x138] sm:$0xf0] }
 0x58f   :  { %11551 = vst [vmem:[#allocation163_spill] sm:$0xff] %v8941_v19  ;;  %v3449_v48 = vmax.f32 %v3321_v21, 0.0  ;;  %v3453_v41 = vmax.f32 %v3325_v24, 0.0  ;;  %v3450_v13 = vmax.f32 %v3322_v25, 0.0  ;;  %v3454_v51 = vmax.f32 %v3326_v53, 0.0  ;;  %v11568_v29 = vld [vmem:[#allocation93_spill] sm:$0xff] }
 0x590   :  { %v3447_v6 = vmax.f32 %v3319_v3, 0.0  ;;  %v3451_v42 = vmax.f32 %v3323_v55, 0.0  ;;  %v3448_v38 = vmax.f32 %v3320_v10, 0.0  ;;  %v3452_v31 = vmax.f32 %v3324_v60, 0.0  ;;  %v6174_v25 = vld [vmem:[#allocation7 + $0x1b8] sm:$0xf0] }
 0x591   :  { %v8971_v43 = vpack.c.bf16 %v3453_v41, %v3449_v48  ;;  %v8973_v27 = vpack.c.bf16 %v3454_v51, %v3450_v13  ;;  %v3188_v12 = vmul.f32 %v8719_v22, %v11564_v8  ;;  %v3189_v40 = vmul.f32 %v8721_v63, %v11565_v58  ;;  %v11569_v53 = vld [vmem:[#allocation108_spill] sm:$0xff]  ;;  %v11570_v55 = vld [vmem:[#allocation110_spill] sm:$0xff] }
 0x592   :  { %v8975_v0 = vpack.c.bf16 %v3451_v42, %v3447_v6  ;;  %v8977_v35 = vpack.c.bf16 %v3452_v31, %v3448_v38  ;;  %v3192_v59 = vmul.f32 %v8719_v22, %v11566_v26  ;;  %v3193_v45 = vmul.f32 %v8721_v63, %v11567_v28  ;;  %v11571_v60 = vld [vmem:[#allocation130_spill] sm:$0xff]  ;;  %v6344_v38 = vld [vmem:[#allocation7 + $0x34] sm:$0xf]  ;;  %v5982_v31 = vld [vmem:[#allocation7 + $0x38] sm:$0xf0] }
 0x593   :  { %4176 = vmatmul.bf16.gmra.mxu2 %v8863_v15  ;;  %11560 = vst [vmem:[#allocation33_spill] sm:$0xff] %v8971_v43  ;;  %v3186_v21 = vmul.f32 %v8715_v62, %v11568_v29  ;;  %v6113_v24 = vor.u32 %v6376_v4, %v6110_v33  ;;  %v3187_v3 = vmul.f32 %v8717_v9, %v11569_v53  ;;  %v6360_v8 = vld [vmem:[#allocation7 + $0xb4] sm:$0xf]  ;;  %v6046_v28 = vld [vmem:[#allocation7 + $0xb8] sm:$0xf0] }
 0x594   :  { %11561 = vst [vmem:[#allocation38_spill] sm:$0xff] %v8973_v27  ;;  %v3190_v10 = vmul.f32 %v8715_v62, %v11570_v55  ;;  %v3191_v48 = vmul.f32 %v8717_v9, %v11571_v60  ;;  %v6177_v41 = vor.u32 %v6392_v39, %v6174_v25  ;;  %v3329_v13 = vadd.f32 %v8727_v34, %v3188_v12 }
 0x595   :  { %3998 = vmatmul.bf16.gmra.mxu0 %v8867_v1  ;;  %11562 = vst [vmem:[#allocation40_spill] sm:$0xff] %v8975_v0  ;;  %4513 = vmatpush.bf16.msrb.mxu2 %v6113_v24  ;;  %v3333_v51 = vadd.f32 %v8727_v34, %v3192_v59  ;;  %v3330_v6 = vadd.f32 %v8729_v23, %v3189_v40 }
 0x596   :  { %4265 = vmatmul.bf16.gmra.mxu3 %v8865_v17  ;;  %11563 = vst [vmem:[#allocation35_spill] sm:$0xff] %v8977_v35  ;;  %v3334_v42 = vadd.f32 %v8729_v23, %v3193_v45  ;;  %v3327_v58 = vadd.f32 %v8723_v30, %v3186_v21  ;;  %v5985_v26 = vor.u32 %v6344_v38, %v5982_v31  ;;  %v3457_v59 = vmax.f32 %v3329_v13, 0.0  ;;  %v11577_v13 = vld [vmem:[#allocation43_spill] sm:$0xff] }
 0x597   :  { %4087 = vmatmul.bf16.gmra.mxu1 %v8869_v18  ;;  %4602 = vmatpush.bf16.msrb.mxu3 %v6177_v41  ;;  %v3331_v4 = vadd.f32 %v8723_v30, %v3190_v10  ;;  %v3328_v33 = vadd.f32 %v8725_v56, %v3187_v3  ;;  %v3332_v12 = vadd.f32 %v8725_v56, %v3191_v48  ;;  %v3461_v40 = vmax.f32 %v3333_v51, 0.0  ;;  %v11576_v48 = vld [vmem:[#allocation134_spill] sm:$0xff]  ;;  %v11579_v38 = vld [vmem:[#allocation151_spill] sm:$0xff] }
 0x598   :  { %v6049_v39 = vor.u32 %v6360_v8, %v6046_v28  ;;  %4335 = vmatpush.bf16.msrb.mxu0 %v5985_v26  ;;  %v3458_v29 = vmax.f32 %v3330_v6, 0.0  ;;  %v3462_v45 = vmax.f32 %v3334_v42, 0.0  ;;  %v3455_v24 = vmax.f32 %v3327_v58, 0.0  ;;  %v11578_v6 = vld [vmem:[#allocation143_spill] sm:$0xff]  ;;  %v11580_v8 = vld [vmem:[#allocation97_spill] sm:$0xff] }
 0x599   :  { %v3459_v25 = vmax.f32 %v3331_v4, 0.0  ;;  %v3456_v53 = vmax.f32 %v3328_v33, 0.0  ;;  %v3460_v55 = vmax.f32 %v3332_v12, 0.0  ;;  %v9007_v21 = vpack.c.bf16 %v3461_v40, %v3457_v59  ;;  %v11581_v26 = vld [vmem:[#allocation135_spill] sm:$0xff]  ;;  %v11583_v12 = vld [vmem:[#allocation117_spill] sm:$0xff] }
 0x59a   :  { %4424 = vmatpush.bf16.msrb.mxu1 %v6049_v39  ;;  %v9009_v60 = vpack.c.bf16 %v3462_v45, %v3458_v29  ;;  %v3196_v41 = vmul.f32 %v8719_v22, %v11576_v48  ;;  %v3197_v51 = vmul.f32 %v8721_v63, %v11577_v13  ;;  %v3200_v42 = vmul.f32 %v8719_v22, %v11578_v6  ;;  %v11582_v4 = vld [vmem:[#allocation99_spill] sm:$0xff] }
 0x59b   :  { %11572 = vst [vmem:[#allocation160_spill] sm:$0xff] %v9007_v21  ;;  %v9011_v10 = vpack.c.bf16 %v3459_v25, %v3455_v24  ;;  %v9013_v3 = vpack.c.bf16 %v3460_v55, %v3456_v53  ;;  %v3201_v31 = vmul.f32 %v8721_v63, %v11579_v38  ;;  %v3194_v58 = vmul.f32 %v8715_v62, %v11580_v8 }
 0x59c   :  { %11573 = vst [vmem:[#allocation162_spill] sm:$0xff] %v9009_v60  ;;  %v3195_v28 = vmul.f32 %v8717_v9, %v11581_v26  ;;  %v3198_v33 = vmul.f32 %v8715_v62, %v11582_v4  ;;  %v3199_v39 = vmul.f32 %v8717_v9, %v11583_v12  ;;  %v3337_v59 = vadd.f32 %v8727_v34, %v3196_v41 }
 0x59d   :  { %11574 = vst [vmem:[#allocation54_spill] sm:$0xff] %v9011_v10  ;;  %v3341_v40 = vadd.f32 %v8727_v34, %v3200_v42  ;;  %v3338_v29 = vadd.f32 %v8729_v23, %v3197_v51  ;;  %v3342_v45 = vadd.f32 %v8729_v23, %v3201_v31  ;;  %v3335_v24 = vadd.f32 %v8723_v30, %v3194_v58 }
 0x59e   :  { %11575 = vst [vmem:[#allocation37_spill] sm:$0xff] %v9013_v3  ;;  %v3339_v25 = vadd.f32 %v8723_v30, %v3198_v33  ;;  %v3336_v53 = vadd.f32 %v8725_v56, %v3195_v28  ;;  %v3340_v55 = vadd.f32 %v8725_v56, %v3199_v39  ;;  %v3465_v48 = vmax.f32 %v3337_v59, 0.0  ;;  %v11588_v39 = vld [vmem:[#allocation16_spill] sm:$0xff] }
 0x59f   :  { %v3469_v13 = vmax.f32 %v3341_v40, 0.0  ;;  %v3466_v6 = vmax.f32 %v3338_v29, 0.0  ;;  %v3470_v38 = vmax.f32 %v3342_v45, 0.0  ;;  %v3463_v8 = vmax.f32 %v3335_v24, 0.0  ;;  %v11589_v40 = vld [vmem:[#allocation29_spill] sm:$0xff] }
 0x5a0   :  { %v3467_v41 = vmax.f32 %v3339_v25, 0.0  ;;  %v3464_v26 = vmax.f32 %v3336_v53, 0.0  ;;  %v3468_v42 = vmax.f32 %v3340_v55, 0.0  ;;  %v3204_v59 = vmul.f32 %v8719_v22, %v11588_v39  ;;  %v11590_v45 = vld [vmem:[#allocation121_spill] sm:$0xff]  ;;  %v6374_v55 = vld [vmem:[#allocation7 + $0x124] sm:$0xf] }
 0x5a1   :  { %v9043_v4 = vpack.c.bf16 %v3469_v13, %v3465_v48  ;;  %v9045_v51 = vpack.c.bf16 %v3470_v38, %v3466_v6  ;;  %v3205_v29 = vmul.f32 %v8721_v63, %v11589_v40  ;;  %v3208_v24 = vmul.f32 %v8719_v22, %v11590_v45  ;;  %v11591_v25 = vld [vmem:[#allocation49_spill] sm:$0xff]  ;;  %v6102_v48 = vld [vmem:[#allocation7 + $0x128] sm:$0xf0]  ;;  %v6390_v13 = vld [vmem:[#allocation7 + $0x1a4] sm:$0xf] }
 0x5a2   :  { %v9047_v33 = vpack.c.bf16 %v3467_v41, %v3463_v8  ;;  %v9049_v28 = vpack.c.bf16 %v3468_v42, %v3464_v26  ;;  %v3209_v53 = vmul.f32 %v8721_v63, %v11591_v25  ;;  %v11592_v6 = vld [vmem:[#allocation101_spill] sm:$0xff]  ;;  %v11593_v8 = vld [vmem:[#allocation107_spill] sm:$0xff]  ;;  %v11594_v39 = vld [vmem:[#allocation114_spill] sm:$0xff] }
 0x5a3   :  { %4181 = vmatmul.bf16.gmra.mxu2 %v8899_v37  ;;  %11584 = vst [vmem:[#allocation123_spill] sm:$0xff] %v9043_v4  ;;  %v3202_v38 = vmul.f32 %v8715_v62, %v11592_v6  ;;  %v3203_v41 = vmul.f32 %v8717_v9, %v11593_v8  ;;  %v3206_v40 = vmul.f32 %v8715_v62, %v11594_v39  ;;  %v11595_v45 = vld [vmem:[#allocation113_spill] sm:$0xff] }
 0x5a4   :  { %11585 = vst [vmem:[#allocation142_spill] sm:$0xff] %v9045_v51  ;;  %v3207_v25 = vmul.f32 %v8717_v9, %v11595_v45  ;;  %v3349_v6 = vadd.f32 %v8727_v34, %v3208_v24  ;;  %v3346_v8 = vadd.f32 %v8729_v23, %v3205_v29  ;;  %v6038_v29 = vld [vmem:[#allocation7 + $0xa8] sm:$0xf0] }
 0x5a5   :  { %4003 = vmatmul.bf16.gmra.mxu0 %v8903_v44  ;;  %11586 = vst [vmem:[#allocation124_spill] sm:$0xff] %v9047_v33  ;;  %v3343_v39 = vadd.f32 %v8723_v30, %v3202_v38 }
 0x5a6   :  { %4270 = vmatmul.bf16.gmra.mxu3 %v8901_v16  ;;  %11587 = vst [vmem:[#allocation39_spill] sm:$0xff] %v9049_v28 }
 0x5a7   :  { %4092 = vmatmul.bf16.gmra.mxu1 %v8905_v5  ;;  %v3471_v38 = vmax.f32 %v3343_v39, 0.0 }
 0x5b3   :  { %4186 = vmatmul.bf16.gmra.mxu2 %v8935_v20 }
 0x5b5   :  { %4008 = vmatmul.bf16.gmra.mxu0 %v8939_v61 }
 0x5b6   :  { %4275 = vmatmul.bf16.gmra.mxu3 %v8937_v14 }
 0x5b7   :  { %4097 = vmatmul.bf16.gmra.mxu1 %v8941_v19 }
 0x5c3   :  { %4191 = vmatmul.bf16.gmra.mxu2 %v8971_v43 }
 0x5c5   :  { %4013 = vmatmul.bf16.gmra.mxu0 %v8975_v0 }
 0x5c6   :  { %4280 = vmatmul.bf16.gmra.mxu3 %v8973_v27 }
 0x5c7   :  { %4102 = vmatmul.bf16.gmra.mxu1 %v8977_v35 }
 0x5d3   :  { %4196 = vmatmul.bf16.gmra.mxu2 %v9007_v21 }
 0x5d5   :  { %4018 = vmatmul.bf16.gmra.mxu0 %v9011_v10 }
 0x5d6   :  { %4285 = vmatmul.bf16.gmra.mxu3 %v9009_v60 }
 0x5d7   :  { %4107 = vmatmul.bf16.gmra.mxu1 %v9013_v3 }
 0x5e2   :  { %v3984_v31 = vpop.f32.mrf.mxu0 }
 0x5e3   :  { %4201 = vmatmul.bf16.gmra.mxu2 %v9043_v4 }
 0x5e4   :  { %v4073_v58 = vpop.f32.mrf.mxu1 }
 0x5e5   :  { %v4074_v12 = vadd.f32 %v4073_v58, %v3984_v31  ;;  %4023 = vmatmul.bf16.gmra.mxu0 %v9047_v33  ;;  %v6105_v31 = vor.u32 %v6374_v55, %v6102_v48  ;;  %v6166_v58 = vld [vmem:[#allocation7 + $0x1a8] sm:$0xf0]  ;;  %v3350_v55 = vadd.f32 %v8729_v23, %v3209_v53  ;;  %v3474_v53 = vmax.f32 %v3346_v8, 0.0 }
 0x5e6   :  { %4290 = vmatmul.bf16.gmra.mxu3 %v9045_v51  ;;  %v4162_v26 = vpop.f32.mrf.mxu2  ;;  %v6169_v33 = vor.u32 %v6390_v13, %v6166_v58  ;;  %v3345_v51 = vadd.f32 %v8727_v34, %v3204_v59  ;;  %v3344_v13 = vadd.f32 %v8725_v56, %v3203_v41  ;;  %v3348_v59 = vadd.f32 %v8725_v56, %v3207_v25 }
 0x5e7   :  { %4112 = vmatmul.bf16.gmra.mxu1 %v9049_v28  ;;  %v4163_v28 = vadd.f32 %v4162_v26, %v4074_v12  ;;  %4514 = vmatpush.bf16.msrb.mxu2 %v6105_v31  ;;  %v3347_v12 = vadd.f32 %v8723_v30, %v3206_v40  ;;  %v5974_v26 = vld [vmem:[#allocation7 + $0x28] sm:$0xf0]  ;;  %v3477_v58 = vmax.f32 %v3349_v6, 0.0 }
 0x5e8   :  { %4603 = vmatpush.bf16.msrb.mxu3 %v6169_v33  ;;  %v3473_v24 = vmax.f32 %v3345_v51, 0.0  ;;  %v3478_v33 = vmax.f32 %v3350_v55, 0.0  ;;  %v3476_v41 = vmax.f32 %v3348_v59, 0.0  ;;  %v11603_v59 = vld [vmem:[#allocation153_spill] sm:$0xff] }
 0x5e9   :  { %v4251_v42 = vpop.f32.mrf.mxu3  ;;  %v3475_v40 = vmax.f32 %v3347_v12, 0.0  ;;  %v11602_v12 = vld [vmem:[#allocation18_spill] sm:$0xff] }
 0x5ea   :  { %v9072_v4 = vadd.f32 %v4251_v42, %v4163_v28  ;;  %v3986_v48 = vpop.f32.mrf.mxu0  ;;  %v6342_v28 = vld [vmem:[#allocation7 + $0x24] sm:$0xf]  ;;  %v9083_v35 = vpack.c.bf16 %v3477_v58, %v3473_v24  ;;  %v9085_v51 = vpack.c.bf16 %v3478_v33, %v3474_v53  ;;  %v11604_v24 = vld [vmem:[#allocation127_spill] sm:$0xff]  ;;  %v11605_v53 = vld [vmem:[#allocation132_spill] sm:$0xff] }
 0x5eb   :  { %v6358_v42 = vld [vmem:[#allocation7 + $0xa4] sm:$0xf]  ;;  %v5977_v31 = vor.u32 %v6342_v28, %v5974_v26  ;;  %v9087_v55 = vpack.c.bf16 %v3475_v40, %v3471_v38  ;;  %v3211_v33 = vmul.f32 %v8717_v9, %v11605_v53 }
 0x5ec   :  { %v4075_v3 = vpop.f32.mrf.mxu1  ;;  %v6041_v45 = vor.u32 %v6358_v42, %v6038_v29  ;;  %11596 = vst [vmem:[#allocation55_spill] sm:$0xff] %v9083_v35  ;;  %v3217_v42 = vmul.f32 %v8721_v63, %v11603_v59 }
 0x5ed   :  { %v4076_v10 = vadd.f32 %v4075_v3, %v3986_v48  ;;  %4336 = vmatpush.bf16.msrb.mxu0 %v5977_v31  ;;  %v3472_v48 = vmax.f32 %v3344_v13, 0.0  ;;  %11597 = vst [vmem:[#allocation56_spill] sm:$0xff] %v9085_v51  ;;  %v3216_v13 = vmul.f32 %v8719_v22, %v11602_v12  ;;  %v3210_v31 = vmul.f32 %v8715_v62, %v11604_v24 }
 0x5ee   :  { %v4164_v60 = vpop.f32.mrf.mxu2  ;;  %4425 = vmatpush.bf16.msrb.mxu1 %v6041_v45  ;;  %11598 = vst [vmem:[#allocation164_spill] sm:$0xff] %v9087_v55  ;;  %v11606_v45 = vld [vmem:[#allocation131_spill] sm:$0xff] }
 0x5ef   :  { %v4165_v3 = vadd.f32 %v4164_v60, %v4076_v10  ;;  %v9089_v26 = vpack.c.bf16 %v3476_v41, %v3472_v48  ;;  %v11600_v60 = vld [vmem:[#allocation140_spill] sm:$0xff]  ;;  %v3214_v38 = vmul.f32 %v8715_v62, %v11606_v45  ;;  %v3351_v24 = vadd.f32 %v8723_v30, %v3210_v31 }
 0x5f0   :  { %v3212_v10 = vmul.f32 %v8719_v22, %v11600_v60 }
 0x5f1   :  { %v4253_v21 = vpop.f32.mrf.mxu3  ;;  %11599 = vst [vmem:[#allocation141_spill] sm:$0xff] %v9089_v26  ;;  %v3355_v45 = vadd.f32 %v8723_v30, %v3214_v38 }
 0x5f2   :  { %v9081_v25 = vadd.f32 %v4253_v21, %v4165_v3  ;;  %v3989_v28 = vpop.f32.mrf.mxu0  ;;  %v11601_v21 = vld [vmem:[#allocation50_spill] sm:$0xff]  ;;  %v11607_v3 = vld [vmem:[#allocation120_spill] sm:$0xff]  ;;  %v3353_v41 = vadd.f32 %v8727_v34, %v3212_v10 }
 0x5f3   :  { %4206 = vmatmul.bf16.gmra.mxu2 %v9083_v35  ;;  %v3213_v39 = vmul.f32 %v8721_v63, %v11601_v21  ;;  %v3215_v40 = vmul.f32 %v8717_v9, %v11607_v3  ;;  %v3358_v21 = vadd.f32 %v8729_v23, %v3217_v42  ;;  %v3352_v3 = vadd.f32 %v8725_v56, %v3211_v33 }
 0x5f4   :  { %v4078_v6 = vpop.f32.mrf.mxu1  ;;  %v3481_v10 = vmax.f32 %v3353_v41, 0.0  ;;  %v3483_v42 = vmax.f32 %v3355_v45, 0.0 }
 0x5f5   :  { %v4079_v8 = vadd.f32 %v4078_v6, %v3989_v28  ;;  %4028 = vmatmul.bf16.gmra.mxu0 %v9087_v55  ;;  %v3357_v6 = vadd.f32 %v8727_v34, %v3216_v13  ;;  %v3354_v60 = vadd.f32 %v8729_v23, %v3213_v39  ;;  %v3479_v39 = vmax.f32 %v3351_v24, 0.0 }
 0x5f6   :  { %4295 = vmatmul.bf16.gmra.mxu3 %v9085_v51  ;;  %v4167_v29 = vpop.f32.mrf.mxu2  ;;  %v3480_v51 = vmax.f32 %v3352_v3, 0.0  ;;  %v6388_v3 = vld [vmem:[#allocation7 + $0x194] sm:$0xf] }
 0x5f7   :  { %4117 = vmatmul.bf16.gmra.mxu1 %v9089_v26  ;;  %v4168_v48 = vadd.f32 %v4167_v29, %v4079_v8  ;;  %v3356_v8 = vadd.f32 %v8725_v56, %v3215_v40  ;;  %v3485_v29 = vmax.f32 %v3357_v6, 0.0  ;;  %v9127_v41 = vpack.c.bf16 %v3483_v42, %v3479_v39  ;;  %v6158_v42 = vld [vmem:[#allocation7 + $0x198] sm:$0xf0] }
 0x5f9   :  { %v4256_v58 = vpop.f32.mrf.mxu3  ;;  %v3484_v35 = vmax.f32 %v3356_v8, 0.0  ;;  %v9123_v31 = vpack.c.bf16 %v3485_v29, %v3481_v10  ;;  %11610 = vst [vmem:[#allocation42_spill] sm:$0xff] %v9127_v41  ;;  %v11616_v8 = vld [vmem:[#allocation103_spill] sm:$0xff]  ;;  %v11617_v29 = vld [vmem:[#allocation138_spill] sm:$0xff] }
 0x5fa   :  { %v9112_v28 = vadd.f32 %v4256_v58, %v4168_v48  ;;  %v3991_v12 = vpop.f32.mrf.mxu0  ;;  %v3482_v58 = vmax.f32 %v3354_v60, 0.0  ;;  %v3486_v48 = vmax.f32 %v3358_v21, 0.0  ;;  %v11612_v60 = vld [vmem:[#allocation19_spill] sm:$0xff]  ;;  %v3218_v10 = vmul.f32 %v8715_v62, %v11616_v8 }
 0x5fb   :  { %11608 = vst [vmem:[#allocation129_spill] sm:$0xff] %v9123_v31  ;;  %v9129_v6 = vpack.c.bf16 %v3484_v35, %v3480_v51  ;;  %v3220_v21 = vmul.f32 %v8719_v22, %v11612_v60  ;;  %v6372_v35 = vld [vmem:[#allocation7 + $0x114] sm:$0xf]  ;;  %v6094_v51 = vld [vmem:[#allocation7 + $0x118] sm:$0xf0]  ;;  %v11619_v60 = vld [vmem:[#allocation122_spill] sm:$0xff] }
 0x5fc   :  { %v4080_v59 = vpop.f32.mrf.mxu1  ;;  %v9125_v38 = vpack.c.bf16 %v3486_v48, %v3482_v58  ;;  %v3219_v58 = vmul.f32 %v8717_v9, %v11617_v29  ;;  %v6097_v39 = vor.u32 %v6372_v35, %v6094_v51 }
 0x5fd   :  { %v4081_v53 = vadd.f32 %v4080_v59, %v3991_v12  ;;  %11611 = vst [vmem:[#allocation165_spill] sm:$0xff] %v9129_v6  ;;  %v11614_v59 = vld [vmem:[#allocation125_spill] sm:$0xff] }
 0x5fe   :  { %v4169_v13 = vpop.f32.mrf.mxu2  ;;  %11609 = vst [vmem:[#allocation41_spill] sm:$0xff] %v9125_v38  ;;  %v3224_v24 = vmul.f32 %v8719_v22, %v11614_v59  ;;  %4515 = vmatpush.bf16.msrb.mxu2 %v6097_v39  ;;  %v6356_v39 = vld [vmem:[#allocation7 + $0x94] sm:$0xf] }
 0x5ff   :  { %v4170_v55 = vadd.f32 %v4169_v13, %v4081_v53  ;;  %v11615_v53 = vld [vmem:[#allocation155_spill] sm:$0xff] }
 0x600   :  { %v3225_v45 = vmul.f32 %v8721_v63, %v11615_v53  ;;  %v6161_v53 = vor.u32 %v6388_v3, %v6158_v42  ;;  %v3365_v8 = vadd.f32 %v8727_v34, %v3224_v24  ;;  %v3360_v3 = vadd.f32 %v8725_v56, %v3219_v58 }
 0x601   :  { %v4258_v26 = vpop.f32.mrf.mxu3 }
 0x602   :  { %v9121_v0 = vadd.f32 %v4258_v26, %v4170_v55  ;;  %v3994_v33 = vpop.f32.mrf.mxu0  ;;  %v11613_v55 = vld [vmem:[#allocation31_spill] sm:$0xff]  ;;  %v3366_v35 = vadd.f32 %v8729_v23, %v3225_v45  ;;  %4604 = vmatpush.bf16.msrb.mxu3 %v6161_v53 }
 0x603   :  { %4211 = vmatmul.bf16.gmra.mxu2 %v9123_v31  ;;  %v3221_v26 = vmul.f32 %v8721_v63, %v11613_v55  ;;  %v3223_v55 = vmul.f32 %v8717_v9, %v11619_v60  ;;  %v3493_v60 = vmax.f32 %v3365_v8, 0.0 }
 0x604   :  { %v4083_v12 = vpop.f32.mrf.mxu1 }
 0x605   :  { %v4084_v40 = vadd.f32 %v4083_v12, %v3994_v33  ;;  %4033 = vmatmul.bf16.gmra.mxu0 %v9127_v41  ;;  %v11618_v33 = vld [vmem:[#allocation109_spill] sm:$0xff]  ;;  %v3362_v29 = vadd.f32 %v8729_v23, %v3221_v26 }
 0x606   :  { %4300 = vmatmul.bf16.gmra.mxu3 %v9125_v38  ;;  %v4172_v48 = vpop.f32.mrf.mxu2  ;;  %v3222_v12 = vmul.f32 %v8715_v62, %v11618_v33  ;;  %v3359_v33 = vadd.f32 %v8723_v30, %v3218_v10  ;;  %v6030_v26 = vld [vmem:[#allocation7 + $0x98] sm:$0xf0] }
 0x607   :  { %4122 = vmatmul.bf16.gmra.mxu1 %v9129_v6  ;;  %v4173_v59 = vadd.f32 %v4172_v48, %v4084_v40  ;;  %v3361_v6 = vadd.f32 %v8727_v34, %v3220_v21  ;;  %v3364_v21 = vadd.f32 %v8725_v56, %v3223_v55  ;;  %v6340_v48 = vld [vmem:[#allocation7 + $0x14] sm:$0xf]  ;;  %v3490_v45 = vmax.f32 %v3362_v29, 0.0 }
 0x608   :  { %v3363_v40 = vadd.f32 %v8723_v30, %v3222_v12  ;;  %v6033_v53 = vor.u32 %v6356_v39, %v6030_v26  ;;  %v3487_v10 = vmax.f32 %v3359_v33, 0.0 }
 0x609   :  { %v4261_v13 = vpop.f32.mrf.mxu3  ;;  %v3489_v24 = vmax.f32 %v3361_v6, 0.0  ;;  %v3492_v58 = vmax.f32 %v3364_v21, 0.0  ;;  %v11627_v21 = vld [vmem:[#allocation156_spill] sm:$0xff] }
 0x60a   :  { %v9152_v41 = vadd.f32 %v4261_v13, %v4173_v59  ;;  %v3996_v51 = vpop.f32.mrf.mxu0  ;;  %v5966_v13 = vld [vmem:[#allocation7 + $0x18] sm:$0xf0]  ;;  %v3494_v59 = vmax.f32 %v3366_v35, 0.0  ;;  %v3491_v12 = vmax.f32 %v3363_v40, 0.0  ;;  %4426 = vmatpush.bf16.msrb.mxu1 %v6033_v53  ;;  %v11626_v40 = vld [vmem:[#allocation23_spill] sm:$0xff]  ;;  %v3233_v39 = vmul.f32 %v8721_v63, %v11627_v21  ;;  %v11630_v53 = vld [vmem:[#allocation24_spill] sm:$0xff] }
 0x60b   :  { %v5969_v42 = vor.u32 %v6340_v48, %v5966_v13  ;;  %v9163_v19 = vpack.c.bf16 %v3493_v60, %v3489_v24  ;;  %v11628_v24 = vld [vmem:[#allocation133_spill] sm:$0xff] }
 0x60c   :  { %v4085_v38 = vpop.f32.mrf.mxu1  ;;  %v9165_v6 = vpack.c.bf16 %v3494_v59, %v3490_v45  ;;  %v9167_v35 = vpack.c.bf16 %v3491_v12, %v3487_v10  ;;  %v11629_v45 = vld [vmem:[#allocation144_spill] sm:$0xff]  ;;  %v3230_v10 = vmul.f32 %v8715_v62, %v11630_v53 }
 0x60d   :  { %v4086_v31 = vadd.f32 %v4085_v38, %v3996_v51  ;;  %4337 = vmatpush.bf16.msrb.mxu0 %v5969_v42  ;;  %v3488_v51 = vmax.f32 %v3360_v3, 0.0  ;;  %11620 = vst [vmem:[#allocation105_spill] sm:$0xff] %v9163_v19  ;;  %v3232_v3 = vmul.f32 %v8719_v22, %v11626_v40  ;;  %v3226_v42 = vmul.f32 %v8715_v62, %v11628_v24 }
 0x60e   :  { %v4174_v27 = vpop.f32.mrf.mxu2  ;;  %11621 = vst [vmem:[#allocation58_spill] sm:$0xff] %v9165_v6  ;;  %v3227_v59 = vmul.f32 %v8717_v9, %v11629_v45  ;;  %v3371_v53 = vadd.f32 %v8723_v30, %v3230_v10 }
 0x60f   :  { %v4175_v38 = vadd.f32 %v4174_v27, %v4086_v31  ;;  %11622 = vst [vmem:[#allocation63_spill] sm:$0xff] %v9167_v35  ;;  %v9169_v13 = vpack.c.bf16 %v3492_v58, %v3488_v51  ;;  %v11624_v27 = vld [vmem:[#allocation22_spill] sm:$0xff]  ;;  %v3367_v24 = vadd.f32 %v8723_v30, %v3226_v42 }
 0x610   :  { %v3228_v31 = vmul.f32 %v8719_v22, %v11624_v27 }
 0x611   :  { %v4263_v43 = vpop.f32.mrf.mxu3  ;;  %11623 = vst [vmem:[#allocation61_spill] sm:$0xff] %v9169_v13 }
 0x612   :  { %v9161_v55 = vadd.f32 %v4263_v43, %v4175_v38  ;;  %v3999_v48 = vpop.f32.mrf.mxu0  ;;  %v11625_v43 = vld [vmem:[#allocation30_spill] sm:$0xff]  ;;  %v11631_v38 = vld [vmem:[#allocation145_spill] sm:$0xff]  ;;  %v3369_v58 = vadd.f32 %v8727_v34, %v3228_v31 }
 0x613   :  { %4216 = vmatmul.bf16.gmra.mxu2 %v9163_v19  ;;  %v3229_v33 = vmul.f32 %v8721_v63, %v11625_v43  ;;  %v3231_v12 = vmul.f32 %v8717_v9, %v11631_v38  ;;  %v3374_v43 = vadd.f32 %v8729_v23, %v3233_v39  ;;  %v3368_v38 = vadd.f32 %v8725_v56, %v3227_v59 }
 0x614   :  { %v4088_v8 = vpop.f32.mrf.mxu1  ;;  %v3497_v31 = vmax.f32 %v3369_v58, 0.0  ;;  %v3499_v39 = vmax.f32 %v3371_v53, 0.0 }
 0x615   :  { %v4089_v29 = vadd.f32 %v4088_v8, %v3999_v48  ;;  %4038 = vmatmul.bf16.gmra.mxu0 %v9167_v35  ;;  %v3373_v8 = vadd.f32 %v8727_v34, %v3232_v3  ;;  %v3370_v27 = vadd.f32 %v8729_v23, %v3229_v33  ;;  %v3495_v33 = vmax.f32 %v3367_v24, 0.0 }
 0x616   :  { %4305 = vmatmul.bf16.gmra.mxu3 %v9165_v6  ;;  %v4177_v26 = vpop.f32.mrf.mxu2  ;;  %v3496_v6 = vmax.f32 %v3368_v38, 0.0  ;;  %v6386_v38 = vld [vmem:[#allocation7 + $0x184] sm:$0xf] }
 0x617   :  { %4127 = vmatmul.bf16.gmra.mxu1 %v9169_v13  ;;  %v4178_v51 = vadd.f32 %v4177_v26, %v4089_v29  ;;  %v3372_v29 = vadd.f32 %v8725_v56, %v3231_v12  ;;  %v3501_v26 = vmax.f32 %v3373_v8, 0.0  ;;  %v9207_v58 = vpack.c.bf16 %v3499_v39, %v3495_v33  ;;  %v6150_v39 = vld [vmem:[#allocation7 + $0x188] sm:$0xf0] }
 0x619   :  { %v4266_v60 = vpop.f32.mrf.mxu3  ;;  %v3500_v19 = vmax.f32 %v3372_v29, 0.0  ;;  %v9203_v42 = vpack.c.bf16 %v3501_v26, %v3497_v31  ;;  %11634 = vst [vmem:[#allocation65_spill] sm:$0xff] %v9207_v58  ;;  %v11640_v29 = vld [vmem:[#allocation45_spill] sm:$0xff]  ;;  %v11641_v26 = vld [vmem:[#allocation26_spill] sm:$0xff] }
 0x61a   :  { %v9192_v48 = vadd.f32 %v4266_v60, %v4178_v51  ;;  %v4001_v40 = vpop.f32.mrf.mxu0  ;;  %v3498_v60 = vmax.f32 %v3370_v27, 0.0  ;;  %v3502_v51 = vmax.f32 %v3374_v43, 0.0  ;;  %v11636_v27 = vld [vmem:[#allocation92_spill] sm:$0xff]  ;;  %v3234_v31 = vmul.f32 %v8715_v62, %v11640_v29 }
 0x61b   :  { %11632 = vst [vmem:[#allocation64_spill] sm:$0xff] %v9203_v42  ;;  %v9209_v8 = vpack.c.bf16 %v3500_v19, %v3496_v6  ;;  %v3236_v43 = vmul.f32 %v8719_v22, %v11636_v27  ;;  %v6370_v19 = vld [vmem:[#allocation7 + $0x104] sm:$0xf]  ;;  %v6086_v6 = vld [vmem:[#allocation7 + $0x108] sm:$0xf0]  ;;  %v11643_v27 = vld [vmem:[#allocation28_spill] sm:$0xff] }
 0x61c   :  { %v4090_v21 = vpop.f32.mrf.mxu1  ;;  %v9205_v10 = vpack.c.bf16 %v3502_v51, %v3498_v60  ;;  %v3235_v60 = vmul.f32 %v8717_v9, %v11641_v26  ;;  %v6089_v33 = vor.u32 %v6370_v19, %v6086_v6 }
 0x61d   :  { %v4091_v45 = vadd.f32 %v4090_v21, %v4001_v40  ;;  %11635 = vst [vmem:[#allocation68_spill] sm:$0xff] %v9209_v8  ;;  %v11638_v21 = vld [vmem:[#allocation77_spill] sm:$0xff] }
 0x61e   :  { %v4179_v3 = vpop.f32.mrf.mxu2  ;;  %11633 = vst [vmem:[#allocation136_spill] sm:$0xff] %v9205_v10  ;;  %v3240_v24 = vmul.f32 %v8719_v22, %v11638_v21  ;;  %4516 = vmatpush.bf16.msrb.mxu2 %v6089_v33  ;;  %v6354_v33 = vld [vmem:[#allocation7 + $0x84] sm:$0xf] }
 0x61f   :  { %v4180_v35 = vadd.f32 %v4179_v3, %v4091_v45  ;;  %v11639_v45 = vld [vmem:[#allocation157_spill] sm:$0xff] }
 0x620   :  { %v3241_v53 = vmul.f32 %v8721_v63, %v11639_v45  ;;  %v6153_v45 = vor.u32 %v6386_v38, %v6150_v39  ;;  %v3381_v29 = vadd.f32 %v8727_v34, %v3240_v24  ;;  %v3376_v38 = vadd.f32 %v8725_v56, %v3235_v60 }
 0x621   :  { %v4268_v13 = vpop.f32.mrf.mxu3 }
 0x622   :  { %v9201_v61 = vadd.f32 %v4268_v13, %v4180_v35  ;;  %v4004_v59 = vpop.f32.mrf.mxu0  ;;  %v11637_v35 = vld [vmem:[#allocation32_spill] sm:$0xff]  ;;  %v3382_v19 = vadd.f32 %v8729_v23, %v3241_v53  ;;  %4605 = vmatpush.bf16.msrb.mxu3 %v6153_v45 }
 0x623   :  { %4221 = vmatmul.bf16.gmra.mxu2 %v9203_v42  ;;  %v3237_v13 = vmul.f32 %v8721_v63, %v11637_v35  ;;  %v3239_v35 = vmul.f32 %v8717_v9, %v11643_v27  ;;  %v3509_v27 = vmax.f32 %v3381_v29, 0.0 }
 0x624   :  { %v4093_v40 = vpop.f32.mrf.mxu1 }
 0x625   :  { %v4094_v12 = vadd.f32 %v4093_v40, %v4004_v59  ;;  %4043 = vmatmul.bf16.gmra.mxu0 %v9207_v58  ;;  %v11642_v59 = vld [vmem:[#allocation46_spill] sm:$0xff]  ;;  %v3378_v26 = vadd.f32 %v8729_v23, %v3237_v13  ;;  %v6022_v13 = vld [vmem:[#allocation7 + $0x88] sm:$0xf0] }
 0x626   :  { %4310 = vmatmul.bf16.gmra.mxu3 %v9205_v10  ;;  %v4182_v51 = vpop.f32.mrf.mxu2  ;;  %v3238_v40 = vmul.f32 %v8715_v62, %v11642_v59  ;;  %v3375_v59 = vadd.f32 %v8723_v30, %v3234_v31  ;;  %v6025_v45 = vor.u32 %v6354_v33, %v6022_v13 }
 0x627   :  { %4132 = vmatmul.bf16.gmra.mxu1 %v9209_v8  ;;  %v4183_v21 = vadd.f32 %v4182_v51, %v4094_v12  ;;  %v3377_v8 = vadd.f32 %v8727_v34, %v3236_v43  ;;  %v3380_v43 = vadd.f32 %v8725_v56, %v3239_v35  ;;  %v6338_v51 = vld [vmem:[#allocation7 + $0x4] sm:$0xf]  ;;  %v3506_v53 = vmax.f32 %v3378_v26, 0.0 }
 0x628   :  { %v3379_v12 = vadd.f32 %v8723_v30, %v3238_v40  ;;  %v3503_v31 = vmax.f32 %v3375_v59, 0.0  ;;  %4427 = vmatpush.bf16.msrb.mxu1 %v6025_v45  ;;  %v11654_v45 = vld [vmem:[#allocation112_spill] sm:$0xff] }
 0x629   :  { %v4271_v3 = vpop.f32.mrf.mxu3  ;;  %v3505_v24 = vmax.f32 %v3377_v8, 0.0  ;;  %v3508_v60 = vmax.f32 %v3380_v43, 0.0  ;;  %v11651_v43 = vld [vmem:[#allocation126_spill] sm:$0xff] }
 0x62a   :  { %v9232_v58 = vadd.f32 %v4271_v3, %v4183_v21  ;;  %v4006_v6 = vpop.f32.mrf.mxu0  ;;  %v5958_v3 = vld [vmem:[#allocation7 + $0x8] sm:$0xf0]  ;;  %v3510_v21 = vmax.f32 %v3382_v19, 0.0  ;;  %v3507_v40 = vmax.f32 %v3379_v12, 0.0  ;;  %v11650_v12 = vld [vmem:[#allocation98_spill] sm:$0xff]  ;;  %v3249_v33 = vmul.f32 %v8721_v63, %v11651_v43 }
 0x62b   :  { %v5961_v39 = vor.u32 %v6338_v51, %v5958_v3  ;;  %v9243_v5 = vpack.c.bf16 %v3509_v27, %v3505_v24  ;;  %v11652_v24 = vld [vmem:[#allocation111_spill] sm:$0xff] }
 0x62c   :  { %v4095_v10 = vpop.f32.mrf.mxu1  ;;  %v9245_v8 = vpack.c.bf16 %v3510_v21, %v3506_v53  ;;  %v9247_v19 = vpack.c.bf16 %v3507_v40, %v3503_v31  ;;  %v11653_v53 = vld [vmem:[#allocation118_spill] sm:$0xff]  ;;  %v3246_v31 = vmul.f32 %v8715_v62, %v11654_v45 }
 0x62d   :  { %v4096_v42 = vadd.f32 %v4095_v10, %v4006_v6  ;;  %4338 = vmatpush.bf16.msrb.mxu0 %v5961_v39  ;;  %v3504_v6 = vmax.f32 %v3376_v38, 0.0  ;;  %11644 = vst [vmem:[#allocation69_spill] sm:$0xff] %v9243_v5  ;;  %v3248_v38 = vmul.f32 %v8719_v22, %v11650_v12  ;;  %v3242_v39 = vmul.f32 %v8715_v62, %v11652_v24 }
 0x62e   :  { %v4184_v14 = vpop.f32.mrf.mxu2  ;;  %11645 = vst [vmem:[#allocation70_spill] sm:$0xff] %v9245_v8  ;;  %v3243_v21 = vmul.f32 %v8717_v9, %v11653_v53  ;;  %v3387_v45 = vadd.f32 %v8723_v30, %v3246_v31 }
 0x62f   :  { %v4185_v10 = vadd.f32 %v4184_v14, %v4096_v42  ;;  %11646 = vst [vmem:[#allocation17_spill] sm:$0xff] %v9247_v19  ;;  %v9249_v3 = vpack.c.bf16 %v3508_v60, %v3504_v6  ;;  %v11648_v14 = vld [vmem:[#allocation96_spill] sm:$0xff]  ;;  %v3383_v24 = vadd.f32 %v8723_v30, %v3242_v39 }
 0x630   :  { %v3244_v42 = vmul.f32 %v8719_v22, %v11648_v14 }
 0x631   :  { %v4273_v20 = vpop.f32.mrf.mxu3  ;;  %11647 = vst [vmem:[#allocation148_spill] sm:$0xff] %v9249_v3 }
 0x632   :  { %v9241_v35 = vadd.f32 %v4273_v20, %v4185_v10  ;;  %v4009_v51 = vpop.f32.mrf.mxu0  ;;  %v11649_v20 = vld [vmem:[#allocation44_spill] sm:$0xff]  ;;  %v11655_v10 = vld [vmem:[#allocation51_spill] sm:$0xff]  ;;  %v3385_v60 = vadd.f32 %v8727_v34, %v3244_v42 }
 0x633   :  { %4226 = vmatmul.bf16.gmra.mxu2 %v9243_v5  ;;  %v3245_v59 = vmul.f32 %v8721_v63, %v11649_v20  ;;  %v3247_v40 = vmul.f32 %v8717_v9, %v11655_v10  ;;  %v3390_v20 = vadd.f32 %v8729_v23, %v3249_v33  ;;  %v3384_v10 = vadd.f32 %v8725_v56, %v3243_v21 }
 0x634   :  { %v4098_v29 = vpop.f32.mrf.mxu1  ;;  %v3513_v42 = vmax.f32 %v3385_v60, 0.0  ;;  %v3515_v33 = vmax.f32 %v3387_v45, 0.0 }
 0x635   :  { %v4099_v26 = vadd.f32 %v4098_v29, %v4009_v51  ;;  %4048 = vmatmul.bf16.gmra.mxu0 %v9247_v19  ;;  %v3389_v29 = vadd.f32 %v8727_v34, %v3248_v38  ;;  %v3386_v14 = vadd.f32 %v8729_v23, %v3245_v59  ;;  %v3511_v59 = vmax.f32 %v3383_v24, 0.0 }
 0x636   :  { %4315 = vmatmul.bf16.gmra.mxu3 %v9245_v8  ;;  %v4187_v13 = vpop.f32.mrf.mxu2  ;;  %v3512_v8 = vmax.f32 %v3384_v10, 0.0 }
 0x637   :  { %4137 = vmatmul.bf16.gmra.mxu1 %v9249_v3  ;;  %v4188_v6 = vadd.f32 %v4187_v13, %v4099_v26  ;;  %v3388_v26 = vadd.f32 %v8725_v56, %v3247_v40  ;;  %v3517_v13 = vmax.f32 %v3389_v29, 0.0  ;;  %v9287_v60 = vpack.c.bf16 %v3515_v33, %v3511_v59 }
 0x639   :  { %v4276_v27 = vpop.f32.mrf.mxu3  ;;  %v3516_v5 = vmax.f32 %v3388_v26, 0.0  ;;  %v9283_v39 = vpack.c.bf16 %v3517_v13, %v3513_v42  ;;  %v11661_v42 = vld [vmem:[#allocation52_spill] sm:$0xff] }
 0x63a   :  { %v9272_v51 = vadd.f32 %v4276_v27, %v4188_v6  ;;  %v4011_v12 = vpop.f32.mrf.mxu0  ;;  %v3514_v27 = vmax.f32 %v3386_v14, 0.0  ;;  %v3518_v6 = vmax.f32 %v3390_v20, 0.0  ;;  %v11656_v14 = vld [vmem:[#allocation81_spill] sm:$0xff]  ;;  %v3251_v13 = vmul.f32 %v8717_v9, %v11661_v42 }
 0x63b   :  { %v9289_v29 = vpack.c.bf16 %v3516_v5, %v3512_v8  ;;  %v3252_v20 = vmul.f32 %v8719_v22, %v11656_v14  ;;  %v11660_v5 = vld [vmem:[#allocation47_spill] sm:$0xff] }
 0x63c   :  { %v4100_v43 = vpop.f32.mrf.mxu1  ;;  %v9285_v31 = vpack.c.bf16 %v3518_v6, %v3514_v27  ;;  %v3250_v8 = vmul.f32 %v8715_v62, %v11660_v5  ;;  %v11662_v27 = vld [vmem:[#allocation48_spill] sm:$0xff] }
 0x63d   :  { %v4101_v53 = vadd.f32 %v4100_v43, %v4011_v12  ;;  %v11658_v43 = vld [vmem:[#allocation128_spill] sm:$0xff]  ;;  %v3254_v6 = vmul.f32 %v8715_v62, %v11662_v27 }
 0x63e   :  { %v4189_v38 = vpop.f32.mrf.mxu2  ;;  %v3253_v24 = vmul.f32 %v8721_v63, %v11658_v43 }
 0x63f   :  { %v4190_v19 = vadd.f32 %v4189_v38, %v4101_v53  ;;  %v11659_v53 = vld [vmem:[#allocation100_spill] sm:$0xff]  ;;  %v11663_v38 = vld [vmem:[#allocation53_spill] sm:$0xff]  ;;  %v3395_v62 = vadd.f32 %v8723_v30, %v3254_v6 }
 0x640   :  { %v3256_v45 = vmul.f32 %v8719_v22, %v11659_v53  ;;  %v3393_v22 = vadd.f32 %v8727_v34, %v3252_v20  ;;  %v3391_v53 = vadd.f32 %v8723_v30, %v3250_v8 }
 0x641   :  { %v4278_v3 = vpop.f32.mrf.mxu3 }
 0x642   :  { %v9281_v44 = vadd.f32 %v4278_v3, %v4190_v19  ;;  %v4014_v21 = vpop.f32.mrf.mxu0  ;;  %v11657_v19 = vld [vmem:[#allocation137_spill] sm:$0xff]  ;;  %v3521_v20 = vmax.f32 %v3393_v22, 0.0 }
 0x643   :  { %4231 = vmatmul.bf16.gmra.mxu2 %v9283_v39  ;;  %v3257_v3 = vmul.f32 %v8721_v63, %v11657_v19  ;;  %v3255_v63 = vmul.f32 %v8717_v9, %v11663_v38  ;;  %v3392_v9 = vadd.f32 %v8725_v56, %v3251_v13 }
 0x644   :  { %v4103_v12 = vpop.f32.mrf.mxu1 }
 0x645   :  { %v4104_v40 = vadd.f32 %v4103_v12, %v4014_v21  ;;  %4053 = vmatmul.bf16.gmra.mxu0 %v9287_v60  ;;  %v3397_v21 = vadd.f32 %v8727_v34, %v3256_v45  ;;  %v3394_v12 = vadd.f32 %v8729_v23, %v3253_v24  ;;  %v3398_v14 = vadd.f32 %v8729_v23, %v3257_v3 }
 0x646   :  { %4320 = vmatmul.bf16.gmra.mxu3 %v9285_v31  ;;  %v4192_v10 = vpop.f32.mrf.mxu2  ;;  %v3519_v24 = vmax.f32 %v3391_v53, 0.0  ;;  %v3523_v23 = vmax.f32 %v3395_v62, 0.0  ;;  %v3520_v3 = vmax.f32 %v3392_v9, 0.0 }
 0x647   :  { %4142 = vmatmul.bf16.gmra.mxu1 %v9289_v29  ;;  %v4193_v59 = vadd.f32 %v4192_v10, %v4104_v40  ;;  %v3396_v40 = vadd.f32 %v8725_v56, %v3255_v63  ;;  %v3525_v10 = vmax.f32 %v3397_v21, 0.0  ;;  %v3526_v42 = vmax.f32 %v3398_v14, 0.0 }
 0x648   :  { %v9327_v63 = vpack.c.bf16 %v3523_v23, %v3519_v24 }
 0x649   :  { %v4281_v26 = vpop.f32.mrf.mxu3  ;;  %v3524_v38 = vmax.f32 %v3396_v40, 0.0  ;;  %v9323_v8 = vpack.c.bf16 %v3525_v10, %v3521_v20 }
 0x64a   :  { %v9312_v33 = vadd.f32 %v4281_v26, %v4193_v59  ;;  %v4016_v19 = vpop.f32.mrf.mxu0  ;;  %v3522_v26 = vmax.f32 %v3394_v12, 0.0 }
 0x64b   :  { %v9329_v22 = vpack.c.bf16 %v3524_v38, %v3520_v3 }
 0x64c   :  { %v4105_v43 = vpop.f32.mrf.mxu1  ;;  %v9325_v30 = vpack.c.bf16 %v3526_v42, %v3522_v26 }
 0x64d   :  { %v4106_v5 = vadd.f32 %v4105_v43, %v4016_v19 }
 0x64e   :  { %v4194_v34 = vpop.f32.mrf.mxu2 }
 0x64f   :  { %v4195_v27 = vadd.f32 %v4194_v34, %v4106_v5 }
 0x651   :  { %v4283_v45 = vpop.f32.mrf.mxu3 }
 0x652   :  { %v9321_v59 = vadd.f32 %v4283_v45, %v4195_v27  ;;  %v4019_v13 = vpop.f32.mrf.mxu0 }
 0x653   :  { %4236 = vmatmul.bf16.gmra.mxu2 %v9323_v8 }
 0x654   :  { %v4108_v6 = vpop.f32.mrf.mxu1 }
 0x655   :  { %v4109_v56 = vadd.f32 %v4108_v6, %v4019_v13  ;;  %4058 = vmatmul.bf16.gmra.mxu0 %v9327_v63 }
 0x656   :  { %4325 = vmatmul.bf16.gmra.mxu3 %v9325_v30  ;;  %v4197_v21 = vpop.f32.mrf.mxu2 }
 0x657   :  { %4147 = vmatmul.bf16.gmra.mxu1 %v9329_v22  ;;  %v4198_v14 = vadd.f32 %v4197_v21, %v4109_v56 }
 0x659   :  { %v4286_v12 = vpop.f32.mrf.mxu3 }
 0x65a   :  { %v9335_v19 = vadd.f32 %v4286_v12, %v4198_v14  ;;  %v4021_v43 = vpop.f32.mrf.mxu0 }
 0x65c   :  { %v4110_v53 = vpop.f32.mrf.mxu1 }
 0x65d   :  { %v4111_v5 = vadd.f32 %v4110_v53, %v4021_v43 }
 0x65e   :  { %v4199_v62 = vpop.f32.mrf.mxu2 }
 0x65f   :  { %v4200_v40 = vadd.f32 %v4199_v62, %v4111_v5 }
 0x661   :  { %v4288_v9 = vpop.f32.mrf.mxu3 }
 0x662   :  { %v9337_v20 = vadd.f32 %v4288_v9, %v4200_v40  ;;  %v4024_v10 = vpop.f32.mrf.mxu0 }
 0x663   :  { %4517 = vmatmul.bf16.vlgmr.msrb.gmra.mxu2 %v8755_v46 }
 0x664   :  { %11664 = vst [vmem:[#allocation75_spill] sm:$0xff] %v9337_v20  ;;  %v4113_v26 = vpop.f32.mrf.mxu1 }
 0x665   :  { %v4114_v42 = vadd.f32 %v4113_v26, %v4024_v10  ;;  %4339 = vmatmul.bf16.vlgmr.msrb.gmra.mxu0 %v8759_v52 }
 0x666   :  { %4606 = vmatmul.bf16.vlgmr.msrb.gmra.mxu3 %v8757_v11  ;;  %v4202_v34 = vpop.f32.mrf.mxu2 }
 0x667   :  { %4428 = vmatmul.bf16.vlgmr.msrb.gmra.mxu1 %v8761_v57  ;;  %v4203_v24 = vadd.f32 %v4202_v34, %v4114_v42 }
 0x669   :  { %v4291_v45 = vpop.f32.mrf.mxu3 }
 0x66a   :  { %v9343_v27 = vadd.f32 %v4291_v45, %v4203_v24  ;;  %v4026_v23 = vpop.f32.mrf.mxu0 }
 0x66c   :  { %11665 = vst [vmem:[#allocation71_spill] sm:$0xff] %v9343_v27  ;;  %v4115_v3 = vpop.f32.mrf.mxu1 }
 0x66d   :  { %v4116_v38 = vadd.f32 %v4115_v3, %v4026_v23 }
 0x66e   :  { %v4204_v13 = vpop.f32.mrf.mxu2 }
 0x66f   :  { %v4205_v56 = vadd.f32 %v4204_v13, %v4116_v38 }
 0x671   :  { %v4293_v6 = vpop.f32.mrf.mxu3 }
 0x672   :  { %v9345_v21 = vadd.f32 %v4293_v6, %v4205_v56  ;;  %v4029_v46 = vpop.f32.mrf.mxu0  ;;  %v4688_v6 = vadd.f32 %v9081_v25, %v9072_v4 }
 0x673   :  { %4522 = vmatmul.bf16.gmra.mxu2 %v8791_v36 }
 0x674   :  { %11666 = vst [vmem:[#allocation66_spill] sm:$0xff] %v9345_v21  ;;  %v4118_v12 = vpop.f32.mrf.mxu1 }
 0x675   :  { %v4119_v11 = vadd.f32 %v4118_v12, %v4029_v46  ;;  %4344 = vmatmul.bf16.gmra.mxu0 %v8795_v49 }
 0x676   :  { %4611 = vmatmul.bf16.gmra.mxu3 %v8793_v7  ;;  %v4207_v52 = vpop.f32.mrf.mxu2 }
 0x677   :  { %4433 = vmatmul.bf16.gmra.mxu1 %v8797_v54  ;;  %v4208_v14 = vadd.f32 %v4207_v52, %v4119_v11 }
 0x679   :  { %v4296_v57 = vpop.f32.mrf.mxu3 }
 0x67a   :  { %v9351_v43 = vadd.f32 %v4296_v57, %v4208_v14  ;;  %v4031_v53 = vpop.f32.mrf.mxu0 }
 0x67c   :  { %11667 = vst [vmem:[#allocation102_spill] sm:$0xff] %v9351_v43  ;;  %v4120_v5 = vpop.f32.mrf.mxu1 }
 0x67d   :  { %v4121_v62 = vadd.f32 %v4120_v5, %v4031_v53 }
 0x67e   :  { %v4209_v9 = vpop.f32.mrf.mxu2 }
 0x67f   :  { %v4210_v10 = vadd.f32 %v4209_v9, %v4121_v62 }
 0x681   :  { %v4298_v40 = vpop.f32.mrf.mxu3 }
 0x682   :  { %v9353_v26 = vadd.f32 %v4298_v40, %v4210_v10  ;;  %v4034_v36 = vpop.f32.mrf.mxu0 }
 0x683   :  { %4527 = vmatmul.bf16.gmra.mxu2 %v8827_v2 }
 0x684   :  { %11668 = vst [vmem:[#allocation74_spill] sm:$0xff] %v9353_v26  ;;  %v4123_v42 = vpop.f32.mrf.mxu1 }
 0x685   :  { %v4124_v7 = vadd.f32 %v4123_v42, %v4034_v36  ;;  %4349 = vmatmul.bf16.gmra.mxu0 %v8831_v32 }
 0x686   :  { %4616 = vmatmul.bf16.gmra.mxu3 %v8829_v47  ;;  %v4212_v49 = vpop.f32.mrf.mxu2  ;;  %v4689_v47 = vadd.f32 %v4688_v6, %v9112_v28 }
 0x687   :  { %4438 = vmatmul.bf16.gmra.mxu1 %v8833_v50  ;;  %v4213_v34 = vadd.f32 %v4212_v49, %v4124_v7 }
 0x688   :  { %v4690_v46 = vadd.f32 %v4689_v47, %v9121_v0 }
 0x689   :  { %v4301_v54 = vpop.f32.mrf.mxu3 }
 0x68a   :  { %v9359_v45 = vadd.f32 %v4301_v54, %v4213_v34  ;;  %v4036_v24 = vpop.f32.mrf.mxu0  ;;  %v4691_v11 = vadd.f32 %v4690_v46, %v9152_v41 }
 0x68c   :  { %11669 = vst [vmem:[#allocation67_spill] sm:$0xff] %v9359_v45  ;;  %v4125_v23 = vpop.f32.mrf.mxu1  ;;  %v4692_v14 = vadd.f32 %v4691_v11, %v9161_v55 }
 0x68d   :  { %v4126_v3 = vadd.f32 %v4125_v23, %v4036_v24 }
 0x68e   :  { %v4214_v38 = vpop.f32.mrf.mxu2  ;;  %v4693_v5 = vadd.f32 %v4692_v14, %v9192_v48 }
 0x68f   :  { %v4215_v2 = vadd.f32 %v4214_v38, %v4126_v3  ;;  %v11673_v38 = vld [vmem:[#allocation159_spill] sm:$0xff] }
 0x691   :  { %v4303_v13 = vpop.f32.mrf.mxu3 }
 0x692   :  { %v9364_v56 = vadd.f32 %v4303_v13, %v4215_v2  ;;  %v4039_v32 = vpop.f32.mrf.mxu0  ;;  %v11674_v13 = vld [vmem:[#allocation34_spill] sm:$0xff] }
 0x693   :  { %4532 = vmatmul.bf16.gmra.mxu2 %v8863_v15  ;;  %v4694_v15 = vadd.f32 %v4693_v5, %v9201_v61 }
 0x694   :  { %11670 = vst [vmem:[#allocation85_spill] sm:$0xff] %v9364_v56  ;;  %v4128_v50 = vpop.f32.mrf.mxu1 }
 0x695   :  { %v4129_v12 = vadd.f32 %v4128_v50, %v4039_v32  ;;  %4354 = vmatmul.bf16.gmra.mxu0 %v8867_v1  ;;  %v4695_v10 = vadd.f32 %v4694_v15, %v9232_v58 }
 0x696   :  { %4621 = vmatmul.bf16.gmra.mxu3 %v8865_v17  ;;  %v4217_v52 = vpop.f32.mrf.mxu2 }
 0x697   :  { %4443 = vmatmul.bf16.gmra.mxu1 %v8869_v18  ;;  %v4218_v53 = vadd.f32 %v4217_v52, %v4129_v12  ;;  %v4696_v18 = vadd.f32 %v4695_v10, %v9241_v35 }
 0x699   :  { %v4306_v57 = vpop.f32.mrf.mxu3  ;;  %v4697_v7 = vadd.f32 %v4696_v18, %v9272_v51  ;;  %v11678_v18 = vld [vmem:[#allocation36_spill] sm:$0xff] }
 0x69a   :  { %v9374_v62 = vadd.f32 %v4306_v57, %v4218_v53  ;;  %v4041_v9 = vpop.f32.mrf.mxu0 }
 0x69b   :  { %v4698_v24 = vadd.f32 %v4697_v7, %v9281_v44  ;;  %v11679_v7 = vld [vmem:[#allocation161_spill] sm:$0xff] }
 0x69c   :  { %11671 = vst [vmem:[#allocation57_spill] sm:$0xff] %v9374_v62  ;;  %v4130_v40 = vpop.f32.mrf.mxu1 }
 0x69d   :  { %v4131_v17 = vadd.f32 %v4130_v40, %v4041_v9  ;;  %v4699_v3 = vadd.f32 %v4698_v24, %v9312_v33 }
 0x69e   :  { %v4219_v36 = vpop.f32.mrf.mxu2 }
 0x69f   :  { %v4220_v42 = vadd.f32 %v4219_v36, %v4131_v17  ;;  %v4700_v47 = vadd.f32 %v4699_v3, %v9321_v59 }
 0x6a1   :  { %v4308_v1 = vpop.f32.mrf.mxu3  ;;  %v4701_v50 = vadd.f32 %v4700_v47, %v9335_v19 }
 0x6a2   :  { %v9380_v49 = vadd.f32 %v4308_v1, %v4220_v42  ;;  %v4044_v54 = vpop.f32.mrf.mxu0  ;;  %v11677_v1 = vld [vmem:[#allocation158_spill] sm:$0xff] }
 0x6a3   :  { %4537 = vmatmul.bf16.gmra.mxu2 %v8899_v37  ;;  %v4702_v37 = vadd.f32 %v4701_v50, %v9337_v20 }
 0x6a4   :  { %11672 = vst [vmem:[#allocation89_spill] sm:$0xff] %v9380_v49  ;;  %v4133_v34 = vpop.f32.mrf.mxu1 }
 0x6a5   :  { %v4134_v23 = vadd.f32 %v4133_v34, %v4044_v54  ;;  %4359 = vmatmul.bf16.gmra.mxu0 %v11673_v38  ;;  %v4703_v52 = vadd.f32 %v4702_v37, %v9343_v27  ;;  %v11680_v54 = vld [vmem:[#allocation163_spill] sm:$0xff] }
 0x6a6   :  { %4626 = vmatmul.bf16.gmra.mxu3 %v8901_v16  ;;  %v4222_v6 = vpop.f32.mrf.mxu2 }
 0x6a7   :  { %4448 = vmatmul.bf16.gmra.mxu1 %v11674_v13  ;;  %v4223_v32 = vadd.f32 %v4222_v6, %v4134_v23  ;;  %v4704_v53 = vadd.f32 %v4703_v52, %v9345_v21 }
 0x6a9   :  { %v4311_v2 = vpop.f32.mrf.mxu3  ;;  %v4705_v9 = vadd.f32 %v4704_v53, %v9351_v43 }
 0x6aa   :  { %v9390_v46 = vadd.f32 %v4311_v2, %v4223_v32  ;;  %v4046_v12 = vpop.f32.mrf.mxu0 }
 0x6ab   :  { %v4706_v10 = vadd.f32 %v4705_v9, %v9353_v26 }
 0x6ac   :  { %11675 = vst [vmem:[#allocation78_spill] sm:$0xff] %v9390_v46  ;;  %v4135_v11 = vpop.f32.mrf.mxu1 }
 0x6ad   :  { %v4136_v16 = vadd.f32 %v4135_v11, %v4046_v12  ;;  %v4707_v42 = vadd.f32 %v4706_v10, %v9359_v45  ;;  %v11683_v10 = vld [vmem:[#allocation40_spill] sm:$0xff] }
 0x6ae   :  { %v4224_v57 = vpop.f32.mrf.mxu2 }
 0x6af   :  { %v4225_v5 = vadd.f32 %v4224_v57, %v4136_v16  ;;  %v4708_v23 = vadd.f32 %v4707_v42, %v9364_v56 }
 0x6b1   :  { %v4313_v14 = vpop.f32.mrf.mxu3  ;;  %v4709_v38 = vadd.f32 %v4708_v23, %v9374_v62 }
 0x6b2   :  { %v9396_v40 = vadd.f32 %v4313_v14, %v4225_v5  ;;  %v4049_v15 = vpop.f32.mrf.mxu0 }
 0x6b3   :  { %4542 = vmatmul.bf16.gmra.mxu2 %v11677_v1  ;;  %v4710_v47 = vadd.f32 %v4709_v38, %v9380_v49 }
 0x6b4   :  { %11676 = vst [vmem:[#allocation146_spill] sm:$0xff] %v9396_v40  ;;  %v4138_v17 = vpop.f32.mrf.mxu1 }
 0x6b5   :  { %v4139_v36 = vadd.f32 %v4138_v17, %v4049_v15  ;;  %4364 = vmatmul.bf16.gmra.mxu0 %v11679_v7  ;;  %v4711_v50 = vadd.f32 %v4710_v47, %v9390_v46  ;;  %v11681_v15 = vld [vmem:[#allocation33_spill] sm:$0xff]  ;;  %v11682_v17 = vld [vmem:[#allocation38_spill] sm:$0xff] }
 0x6b6   :  { %4631 = vmatmul.bf16.gmra.mxu3 %v11678_v18  ;;  %v4227_v34 = vpop.f32.mrf.mxu2 }
 0x6b7   :  { %4453 = vmatmul.bf16.gmra.mxu1 %v11680_v54  ;;  %v4228_v3 = vadd.f32 %v4227_v34, %v4139_v36  ;;  %v4712_v37 = vadd.f32 %v4711_v50, %v9396_v40  ;;  %v11684_v36 = vld [vmem:[#allocation35_spill] sm:$0xff] }
 0x6b9   :  { %v4316_v24 = vpop.f32.mrf.mxu3 }
 0x6ba   :  { %v9406_v13 = vadd.f32 %v4316_v24, %v4228_v3  ;;  %v4051_v6 = vpop.f32.mrf.mxu0 }
 0x6bc   :  { %v4140_v2 = vpop.f32.mrf.mxu1  ;;  %v4713_v52 = vadd.f32 %v4712_v37, %v9406_v13  ;;  %v11686_v37 = vld [vmem:[#allocation162_spill] sm:$0xff] }
 0x6bd   :  { %v4141_v32 = vadd.f32 %v4140_v2, %v4051_v6 }
 0x6be   :  { %v4229_v12 = vpop.f32.mrf.mxu2 }
 0x6bf   :  { %v4230_v16 = vadd.f32 %v4229_v12, %v4141_v32 }
 0x6c1   :  { %v4318_v11 = vpop.f32.mrf.mxu3 }
 0x6c2   :  { %v4319_v57 = vadd.f32 %v4318_v11, %v4230_v16  ;;  %v4054_v14 = vpop.f32.mrf.mxu0  ;;  %v11685_v11 = vld [vmem:[#allocation160_spill] sm:$0xff]  ;;  %v11687_v16 = vld [vmem:[#allocation54_spill] sm:$0xff] }
 0x6c3   :  { %4547 = vmatmul.bf16.gmra.mxu2 %v11681_v15 }
 0x6c4   :  { %v4143_v53 = vpop.f32.mrf.mxu1  ;;  %v4714_v5 = vadd.f32 %v4713_v52, %v4319_v57  ;;  %v11688_v52 = vld [vmem:[#allocation37_spill] sm:$0xff] }
 0x6c5   :  { %v4144_v9 = vadd.f32 %v4143_v53, %v4054_v14  ;;  %4369 = vmatmul.bf16.gmra.mxu0 %v11683_v10 }
 0x6c6   :  { %4636 = vmatmul.bf16.gmra.mxu3 %v11682_v17  ;;  %v4232_v1 = vpop.f32.mrf.mxu2 }
 0x6c7   :  { %4458 = vmatmul.bf16.gmra.mxu1 %v11684_v36  ;;  %v4233_v42 = vadd.f32 %v4232_v1, %v4144_v9 }
 0x6c9   :  { %v4321_v18 = vpop.f32.mrf.mxu3 }
 0x6ca   :  { %v4322_v7 = vadd.f32 %v4321_v18, %v4233_v42  ;;  %v4056_v54 = vpop.f32.mrf.mxu0 }
 0x6cc   :  { %v4145_v34 = vpop.f32.mrf.mxu1  ;;  %v4715_v24 = vadd.f32 %v4714_v5, %v4322_v7 }
 0x6cd   :  { %v4146_v23 = vadd.f32 %v4145_v34, %v4056_v54 }
 0x6ce   :  { %v4234_v3 = vpop.f32.mrf.mxu2 }
 0x6cf   :  { %v4235_v6 = vadd.f32 %v4234_v3, %v4146_v23  ;;  %v11690_v23 = vld [vmem:[#allocation142_spill] sm:$0xff] }
 0x6d1   :  { %v4323_v38 = vpop.f32.mrf.mxu3 }
 0x6d2   :  { %v4324_v2 = vadd.f32 %v4323_v38, %v4235_v6  ;;  %v4059_v47 = vpop.f32.mrf.mxu0  ;;  %v11691_v38 = vld [vmem:[#allocation124_spill] sm:$0xff]  ;;  %v11692_v6 = vld [vmem:[#allocation39_spill] sm:$0xff] }
 0x6d3   :  { %4552 = vmatmul.bf16.gmra.mxu2 %v11685_v11 }
 0x6d4   :  { %v4148_v32 = vpop.f32.mrf.mxu1  ;;  %v4716_v50 = vadd.f32 %v4715_v24, %v4324_v2  ;;  %v11689_v24 = vld [vmem:[#allocation123_spill] sm:$0xff] }
 0x6d5   :  { %v4149_v12 = vadd.f32 %v4148_v32, %v4059_v47  ;;  %4374 = vmatmul.bf16.gmra.mxu0 %v11687_v16  ;;  %v11694_v16 = vld [vmem:[#allocation56_spill] sm:$0xff] }
 0x6d6   :  { %4641 = vmatmul.bf16.gmra.mxu3 %v11686_v37  ;;  %v4237_v14 = vpop.f32.mrf.mxu2  ;;  %v11693_v37 = vld [vmem:[#allocation55_spill] sm:$0xff] }
 0x6d7   :  { %4463 = vmatmul.bf16.gmra.mxu1 %v11688_v52  ;;  %v4238_v5 = vadd.f32 %v4237_v14, %v4149_v12  ;;  %v11695_v14 = vld [vmem:[#allocation164_spill] sm:$0xff] }
 0x6d9   :  { %v4326_v53 = vpop.f32.mrf.mxu3 }
 0x6da   :  { %v4327_v9 = vadd.f32 %v4326_v53, %v4238_v5  ;;  %v4061_v15 = vpop.f32.mrf.mxu0  ;;  %v11696_v53 = vld [vmem:[#allocation141_spill] sm:$0xff] }
 0x6dc   :  { %v4150_v17 = vpop.f32.mrf.mxu1  ;;  %v4717_v10 = vadd.f32 %v4716_v50, %v4327_v9 }
 0x6dd   :  { %v4151_v36 = vadd.f32 %v4150_v17, %v4061_v15 }
 0x6de   :  { %v4239_v1 = vpop.f32.mrf.mxu2 }
 0x6df   :  { %v4240_v18 = vadd.f32 %v4239_v1, %v4151_v36 }
 0x6e1   :  { %v4328_v42 = vpop.f32.mrf.mxu3 }
 0x6e2   :  { %v4329_v54 = vadd.f32 %v4328_v42, %v4240_v18  ;;  %v11703_v18 = vld [vmem:[#allocation129_spill] sm:$0xff] }
 0x6e3   :  { %4557 = vmatmul.bf16.gmra.mxu2 %v11689_v24  ;;  %v11704_v42 = vld [vmem:[#allocation41_spill] sm:$0xff] }
 0x6e4   :  { %v4718_v34 = vadd.f32 %v4717_v10, %v4329_v54 }
 0x6e5   :  { %4379 = vmatmul.bf16.gmra.mxu0 %v11691_v38  ;;  %v11709_v38 = vld [vmem:[#allocation63_spill] sm:$0xff] }
 0x6e6   :  { %4646 = vmatmul.bf16.gmra.mxu3 %v11690_v23  ;;  %v4719_v3 = vrot.slane %v4718_v34, 4  ;;  %v11707_v23 = vld [vmem:[#allocation105_spill] sm:$0xff] }
 0x6e7   :  { %4468 = vmatmul.bf16.gmra.mxu1 %v11692_v6  ;;  %v11710_v6 = vld [vmem:[#allocation61_spill] sm:$0xff] }
 0x6e8   :  { %v4720_v47 = vadd.f32 %v4719_v3, %v4718_v34  ;;  %v4340_v34 = vpop.f32.mrf.mxu0 }
 0x6e9   :  { %v4607_v3 = vpop.f32.mrf.mxu3 }
 0x6ea   :  { %v4721_v32 = vrot.slane %v4720_v47, 2 }
 0x6ec   :  { %v4722_v12 = vadd.f32 %v4721_v32, %v4720_v47 }
 0x6ee   :  { %v4723_v11 = vrot.slane %v4722_v12, 1 }
 0x6f0   :  { %v4724_v50 = vadd.f32 %v4723_v11, %v4722_v12  ;;  %v4342_v47 = vpop.f32.mrf.mxu0 }
 0x6f2   :  { %v9426_v52 = vmul.f32 0.00390625, %v4724_v50 }
 0x6f3   :  { %4562 = vmatmul.bf16.gmra.mxu2 %v11693_v37  ;;  %v4609_v37 = vpop.f32.mrf.mxu3 }
 0x6f4   :  { %v9432_v5 = vsub.f32 %v9406_v13, %v9426_v52  ;;  %v9435_v15 = vsub.f32 %v4319_v57, %v9426_v52  ;;  %v9438_v17 = vsub.f32 %v4322_v7, %v9426_v52  ;;  %v9441_v10 = vsub.f32 %v4324_v2, %v9426_v52  ;;  %v11705_v13 = vld [vmem:[#allocation42_spill] sm:$0xff]  ;;  %v11706_v57 = vld [vmem:[#allocation165_spill] sm:$0xff]  ;;  %v4429_v7 = vpop.f32.mrf.mxu1 }
 0x6f5   :  { %4384 = vmatmul.bf16.gmra.mxu0 %v11695_v14  ;;  %v9444_v36 = vsub.f32 %v4327_v9, %v9426_v52  ;;  %v9447_v1 = vsub.f32 %v4329_v54, %v9426_v52  ;;  %v4430_v24 = vadd.f32 %v4429_v7, %v4340_v34  ;;  %v11708_v2 = vld [vmem:[#allocation58_spill] sm:$0xff]  ;;  %v4518_v9 = vpop.f32.mrf.mxu2  ;;  %v9573_v43 = vsub.f32 %v9121_v0, %v9426_v52 }
 0x6f6   :  { %4651 = vmatmul.bf16.gmra.mxu3 %v11694_v16  ;;  %11697 = vst [vmem:[#allocation25_spill] sm:$0xff] %v9432_v5 }
 0x6f7   :  { %4473 = vmatmul.bf16.gmra.mxu1 %v11696_v53  ;;  %11698 = vst [vmem:[#allocation21_spill] sm:$0xff] %v9435_v15  ;;  %v4519_v54 = vadd.f32 %v4518_v9, %v4430_v24  ;;  %v11715_v24 = vld [vmem:[#allocation65_spill] sm:$0xff]  ;;  %v4834_v0 = vmul.f32 %v9573_v43, %v9573_v43 }
 0x6f8   :  { %11699 = vst [vmem:[#allocation60_spill] sm:$0xff] %v9438_v17  ;;  %v4345_v14 = vpop.f32.mrf.mxu0 }
 0x6f9   :  { %11700 = vst [vmem:[#allocation62_spill] sm:$0xff] %v9441_v10  ;;  %v9457_v12 = vadd.f32 %v4607_v3, %v4519_v54 }
 0x6fa   :  { %11701 = vst [vmem:[#allocation82_spill] sm:$0xff] %v9444_v36 }
 0x6fb   :  { %11702 = vst [vmem:[#allocation150_spill] sm:$0xff] %v9447_v1  ;;  %v4612_v7 = vpop.f32.mrf.mxu3 }
 0x6fc   :  { %v4431_v32 = vpop.f32.mrf.mxu1  ;;  %11711 = vst [vmem:[#allocation27_spill] sm:$0xff] %v9457_v12 }
 0x6fd   :  { %v4432_v11 = vadd.f32 %v4431_v32, %v4342_v47  ;;  %v4520_v50 = vpop.f32.mrf.mxu2  ;;  %11730 = vst [vmem:[#allocation80_spill] sm:$0xff] %v9573_v43 }
 0x6ff   :  { %v4521_v16 = vadd.f32 %v4520_v50, %v4432_v11 }
 0x700   :  { %v4347_v9 = vpop.f32.mrf.mxu0 }
 0x703   :  { %4567 = vmatmul.bf16.gmra.mxu2 %v11703_v18  ;;  %v9459_v18 = vadd.f32 %v4609_v37, %v4521_v16  ;;  %v4614_v47 = vpop.f32.mrf.mxu3 }
 0x704   :  { %v4434_v53 = vpop.f32.mrf.mxu1 }
 0x705   :  { %4389 = vmatmul.bf16.gmra.mxu0 %v11705_v13  ;;  %11712 = vst [vmem:[#allocation79_spill] sm:$0xff] %v9459_v18  ;;  %v11713_v13 = vld [vmem:[#allocation64_spill] sm:$0xff]  ;;  %v4523_v34 = vpop.f32.mrf.mxu2  ;;  %v4725_v56 = vadd.f32 %v9459_v18, %v9457_v12 }
 0x706   :  { %4656 = vmatmul.bf16.gmra.mxu3 %v11704_v42  ;;  %v4435_v42 = vadd.f32 %v4434_v53, %v4345_v14  ;;  %v11717_v14 = vld [vmem:[#allocation69_spill] sm:$0xff]  ;;  %v11718_v53 = vld [vmem:[#allocation70_spill] sm:$0xff] }
 0x707   :  { %4478 = vmatmul.bf16.gmra.mxu1 %v11706_v57  ;;  %v11714_v57 = vld [vmem:[#allocation136_spill] sm:$0xff] }
 0x708   :  { %v4350_v11 = vpop.f32.mrf.mxu0 }
 0x70c   :  { %v4436_v3 = vpop.f32.mrf.mxu1 }
 0x70d   :  { %v4437_v54 = vadd.f32 %v4436_v3, %v4347_v9 }
 0x713   :  { %4572 = vmatmul.bf16.gmra.mxu2 %v11707_v23  ;;  %v4524_v23 = vadd.f32 %v4523_v34, %v4435_v42 }
 0x714   :  { %v4439_v50 = vpop.f32.mrf.mxu1 }
 0x715   :  { %4394 = vmatmul.bf16.gmra.mxu0 %v11709_v38  ;;  %v9465_v38 = vadd.f32 %v4612_v7, %v4524_v23  ;;  %v4440_v16 = vadd.f32 %v4439_v50, %v4350_v11  ;;  %v11720_v7 = vld [vmem:[#allocation148_spill] sm:$0xff] }
 0x716   :  { %4661 = vmatmul.bf16.gmra.mxu3 %v11708_v2  ;;  %v11716_v2 = vld [vmem:[#allocation68_spill] sm:$0xff] }
 0x717   :  { %4483 = vmatmul.bf16.gmra.mxu1 %v11710_v6  ;;  %v4525_v6 = vpop.f32.mrf.mxu2 }
 0x718   :  { %v4526_v32 = vadd.f32 %v4525_v6, %v4437_v54 }
 0x71a   :  { %v9467_v37 = vadd.f32 %v4614_v47, %v4526_v32 }
 0x71c   :  { %v4441_v23 = vpop.f32.mrf.mxu1 }
 0x71f   :  { %v4528_v42 = vpop.f32.mrf.mxu2 }
 0x720   :  { %v4529_v34 = vadd.f32 %v4528_v42, %v4440_v16 }
 0x723   :  { %4577 = vmatmul.bf16.gmra.mxu2 %v11713_v13  ;;  %v4617_v13 = vpop.f32.mrf.mxu3 }
 0x724   :  { %v4444_v32 = vpop.f32.mrf.mxu1 }
 0x725   :  { %4399 = vmatmul.bf16.gmra.mxu0 %v11715_v24  ;;  %v4352_v24 = vpop.f32.mrf.mxu0 }
 0x726   :  { %4666 = vmatmul.bf16.gmra.mxu3 %v11714_v57  ;;  %v11719_v57 = vld [vmem:[#allocation17_spill] sm:$0xff]  ;;  %v4442_v9 = vadd.f32 %v4441_v23, %v4352_v24 }
 0x727   :  { %4488 = vmatmul.bf16.gmra.mxu1 %v11716_v2  ;;  %v9473_v2 = vadd.f32 %v4617_v13, %v4529_v34  ;;  %v4530_v3 = vpop.f32.mrf.mxu2 }
 0x728   :  { %v4531_v6 = vadd.f32 %v4530_v3, %v4442_v9 }
 0x729   :  { %11721 = vst [vmem:[#allocation86_spill] sm:$0xff] %v9473_v2 }
 0x72b   :  { %v4619_v54 = vpop.f32.mrf.mxu3 }
 0x72c   :  { %v9475_v11 = vadd.f32 %v4619_v54, %v4531_v6  ;;  %v4446_v13 = vpop.f32.mrf.mxu1 }
 0x72d   :  { %v4355_v47 = vpop.f32.mrf.mxu0 }
 0x72e   :  { %11722 = vst [vmem:[#allocation154_spill] sm:$0xff] %v9475_v11  ;;  %v4445_v50 = vadd.f32 %v4444_v32, %v4355_v47 }
 0x72f   :  { %v4533_v16 = vpop.f32.mrf.mxu2 }
 0x733   :  { %4582 = vmatmul.bf16.gmra.mxu2 %v11717_v14  ;;  %v4622_v14 = vpop.f32.mrf.mxu3 }
 0x734   :  { %v4449_v3 = vpop.f32.mrf.mxu1 }
 0x735   :  { %4404 = vmatmul.bf16.gmra.mxu0 %v11719_v57  ;;  %v4357_v42 = vpop.f32.mrf.mxu0 }
 0x736   :  { %4671 = vmatmul.bf16.gmra.mxu3 %v11718_v53  ;;  %v4534_v53 = vadd.f32 %v4533_v16, %v4445_v50  ;;  %v4447_v34 = vadd.f32 %v4446_v13, %v4357_v42 }
 0x737   :  { %4493 = vmatmul.bf16.gmra.mxu1 %v11720_v7  ;;  %v4535_v7 = vpop.f32.mrf.mxu2 }
 0x738   :  { %v9481_v57 = vadd.f32 %v4622_v14, %v4534_v53  ;;  %v4536_v23 = vadd.f32 %v4535_v7, %v4447_v34 }
 0x73b   :  { %v4624_v24 = vpop.f32.mrf.mxu3 }
 0x73c   :  { %v4451_v47 = vpop.f32.mrf.mxu1 }
 0x73d   :  { %v4360_v9 = vpop.f32.mrf.mxu0 }
 0x743   :  { %4587 = vmatmul.bf16.gmra.mxu2 %v9283_v39  ;;  %v9483_v39 = vadd.f32 %v4624_v24, %v4536_v23  ;;  %v4627_v54 = vpop.f32.mrf.mxu3 }
 0x744   :  { %v4454_v13 = vpop.f32.mrf.mxu1 }
 0x745   :  { %4409 = vmatmul.bf16.gmra.mxu0 %v9287_v60  ;;  %v4538_v60 = vpop.f32.mrf.mxu2  ;;  %v4362_v6 = vpop.f32.mrf.mxu0 }
 0x746   :  { %4676 = vmatmul.bf16.gmra.mxu3 %v9285_v31  ;;  %v4450_v31 = vadd.f32 %v4449_v3, %v4360_v9  ;;  %v4452_v50 = vadd.f32 %v4451_v47, %v4362_v6 }
 0x747   :  { %4498 = vmatmul.bf16.gmra.mxu1 %v9289_v29 }
 0x748   :  { %v4539_v29 = vadd.f32 %v4538_v60, %v4450_v31 }
 0x74a   :  { %v9489_v32 = vadd.f32 %v4627_v54, %v4539_v29 }
 0x74b   :  { %v4629_v14 = vpop.f32.mrf.mxu3 }
 0x74c   :  { %11723 = vst [vmem:[#allocation90_spill] sm:$0xff] %v9489_v32  ;;  %v4456_v23 = vpop.f32.mrf.mxu1 }
 0x74d   :  { %v4540_v16 = vpop.f32.mrf.mxu2  ;;  %v4365_v42 = vpop.f32.mrf.mxu0 }
 0x74e   :  { %v4541_v53 = vadd.f32 %v4540_v16, %v4452_v50 }
 0x753   :  { %4592 = vmatmul.bf16.gmra.mxu2 %v9323_v8  ;;  %v9491_v8 = vadd.f32 %v4629_v14, %v4541_v53  ;;  %v4632_v7 = vpop.f32.mrf.mxu3 }
 0x754   :  { %v4459_v29 = vpop.f32.mrf.mxu1 }
 0x755   :  { %4414 = vmatmul.bf16.gmra.mxu0 %v9327_v63  ;;  %11724 = vst [vmem:[#allocation83_spill] sm:$0xff] %v9491_v8  ;;  %v4543_v34 = vpop.f32.mrf.mxu2  ;;  %v4367_v63 = vpop.f32.mrf.mxu0 }
 0x756   :  { %4681 = vmatmul.bf16.gmra.mxu3 %v9325_v30  ;;  %v4455_v30 = vadd.f32 %v4454_v13, %v4365_v42 }
 0x757   :  { %4503 = vmatmul.bf16.gmra.mxu1 %v9329_v22  ;;  %v4457_v22 = vadd.f32 %v4456_v23, %v4367_v63 }
 0x758   :  { %v4544_v24 = vadd.f32 %v4543_v34, %v4455_v30 }
 0x75a   :  { %v9493_v9 = vadd.f32 %v4632_v7, %v4544_v24 }
 0x75b   :  { %v4634_v31 = vpop.f32.mrf.mxu3 }
 0x75c   :  { %v4461_v42 = vpop.f32.mrf.mxu1 }
 0x75d   :  { %v4545_v3 = vpop.f32.mrf.mxu2  ;;  %v4370_v54 = vpop.f32.mrf.mxu0 }
 0x75e   :  { %v4546_v60 = vadd.f32 %v4545_v3, %v4457_v22  ;;  %v4460_v47 = vadd.f32 %v4459_v29, %v4370_v54 }
 0x760   :  { %v9495_v6 = vadd.f32 %v4634_v31, %v4546_v60 }
 0x763   :  { %v4637_v16 = vpop.f32.mrf.mxu3 }
 0x764   :  { %v4464_v23 = vpop.f32.mrf.mxu1 }
 0x765   :  { %v4548_v50 = vpop.f32.mrf.mxu2  ;;  %v4372_v53 = vpop.f32.mrf.mxu0 }
 0x766   :  { %v4549_v14 = vadd.f32 %v4548_v50, %v4460_v47  ;;  %v4462_v30 = vadd.f32 %v4461_v42, %v4372_v53 }
 0x768   :  { %v9497_v13 = vadd.f32 %v4637_v16, %v4549_v14 }
 0x76a   :  { %11725 = vst [vmem:[#allocation94_spill] sm:$0xff] %v9497_v13 }
 0x76b   :  { %v4639_v7 = vpop.f32.mrf.mxu3 }
 0x76c   :  { %v4466_v29 = vpop.f32.mrf.mxu1 }
 0x76d   :  { %v4550_v34 = vpop.f32.mrf.mxu2  ;;  %v4375_v63 = vpop.f32.mrf.mxu0 }
 0x76e   :  { %v4551_v24 = vadd.f32 %v4550_v34, %v4462_v30  ;;  %v4465_v22 = vadd.f32 %v4464_v23, %v4375_v63 }
 0x770   :  { %v9499_v1 = vadd.f32 %v4639_v7, %v4551_v24 }
 0x772   :  { %11726 = vst [vmem:[#allocation87_spill] sm:$0xff] %v9499_v1 }
 0x773   :  { %v4642_v31 = vpop.f32.mrf.mxu3 }
 0x774   :  { %v4469_v42 = vpop.f32.mrf.mxu1 }
 0x775   :  { %v4553_v3 = vpop.f32.mrf.mxu2  ;;  %v4377_v54 = vpop.f32.mrf.mxu0 }
 0x776   :  { %v4554_v60 = vadd.f32 %v4553_v3, %v4465_v22  ;;  %v4467_v47 = vadd.f32 %v4466_v29, %v4377_v54 }
 0x778   :  { %v9501_v36 = vadd.f32 %v4642_v31, %v4554_v60 }
 0x77b   :  { %v4644_v16 = vpop.f32.mrf.mxu3 }
 0x77c   :  { %v4471_v23 = vpop.f32.mrf.mxu1 }
 0x77d   :  { %v4555_v50 = vpop.f32.mrf.mxu2  ;;  %v4380_v53 = vpop.f32.mrf.mxu0 }
 0x77e   :  { %v4556_v14 = vadd.f32 %v4555_v50, %v4467_v47  ;;  %v4470_v30 = vadd.f32 %v4469_v42, %v4380_v53 }
 0x780   :  { %v9503_v10 = vadd.f32 %v4644_v16, %v4556_v14 }
 0x783   :  { %v4647_v7 = vpop.f32.mrf.mxu3 }
 0x784   :  { %v4474_v29 = vpop.f32.mrf.mxu1 }
 0x785   :  { %v4558_v34 = vpop.f32.mrf.mxu2  ;;  %v4382_v63 = vpop.f32.mrf.mxu0 }
 0x786   :  { %v4559_v24 = vadd.f32 %v4558_v34, %v4470_v30  ;;  %v4472_v22 = vadd.f32 %v4471_v23, %v4382_v63 }
 0x788   :  { %v9505_v17 = vadd.f32 %v4647_v7, %v4559_v24 }
 0x78b   :  { %v4649_v31 = vpop.f32.mrf.mxu3 }
 0x78c   :  { %v4476_v42 = vpop.f32.mrf.mxu1 }
 0x78d   :  { %v4560_v3 = vpop.f32.mrf.mxu2  ;;  %v4385_v54 = vpop.f32.mrf.mxu0 }
 0x78e   :  { %v4561_v60 = vadd.f32 %v4560_v3, %v4472_v22  ;;  %v4475_v47 = vadd.f32 %v4474_v29, %v4385_v54 }
 0x790   :  { %v9507_v15 = vadd.f32 %v4649_v31, %v4561_v60 }
 0x793   :  { %v4652_v16 = vpop.f32.mrf.mxu3 }
 0x794   :  { %v4479_v23 = vpop.f32.mrf.mxu1 }
 0x795   :  { %v4563_v50 = vpop.f32.mrf.mxu2  ;;  %v4387_v53 = vpop.f32.mrf.mxu0 }
 0x796   :  { %v4564_v14 = vadd.f32 %v4563_v50, %v4475_v47  ;;  %v4477_v30 = vadd.f32 %v4476_v42, %v4387_v53 }
 0x798   :  { %v9509_v5 = vadd.f32 %v4652_v16, %v4564_v14 }
 0x79b   :  { %v4654_v7 = vpop.f32.mrf.mxu3 }
 0x79c   :  { %v9515_v29 = vpop.f32.mrf.mxu1 }
 0x79d   :  { %v4565_v34 = vpop.f32.mrf.mxu2  ;;  %v4390_v63 = vpop.f32.mrf.mxu0 }
 0x79e   :  { %v4566_v24 = vadd.f32 %v4565_v34, %v4477_v30  ;;  %v4480_v22 = vadd.f32 %v4479_v23, %v4390_v63 }
 0x7a0   :  { %v9511_v40 = vadd.f32 %v4654_v7, %v4566_v24 }
 0x7a3   :  { %v4657_v31 = vpop.f32.mrf.mxu3 }
 0x7a4   :  { %v9525_v53 = vpop.f32.mrf.mxu1 }
 0x7a5   :  { %v4568_v3 = vpop.f32.mrf.mxu2  ;;  %v9513_v54 = vpop.f32.mrf.mxu0 }
 0x7a6   :  { %v4569_v60 = vadd.f32 %v4568_v3, %v4480_v22  ;;  %v9545_v3 = vsub.f32 %v9072_v4, %v9426_v52  ;;  %v9563_v4 = vsub.f32 %v9112_v28, %v9426_v52 }
 0x7a8   :  { %v9517_v47 = vadd.f32 %v4657_v31, %v4569_v60  ;;  %11727 = vst [vmem:[#allocation72_spill] sm:$0xff] %v9545_v3  ;;  %v9549_v31 = vsub.f32 %v9081_v25, %v9426_v52  ;;  %v4828_v60 = vmul.f32 %v9545_v3, %v9545_v3  ;;  %v4726_v3 = vadd.f32 %v4725_v56, %v9465_v38 }
 0x7a9   :  { %11729 = vst [vmem:[#allocation147_spill] sm:$0xff] %v9563_v4  ;;  %v4832_v18 = vmul.f32 %v9563_v4, %v9563_v4  ;;  %v9585_v56 = vsub.f32 %v9152_v41, %v9426_v52 }
 0x7aa   :  { %11728 = vst [vmem:[#allocation91_spill] sm:$0xff] %v9549_v31  ;;  %v4830_v46 = vmul.f32 %v9549_v31, %v9549_v31  ;;  %v4727_v31 = vadd.f32 %v4726_v3, %v9467_v37 }
 0x7ab   :  { %v9521_v16 = vpop.f32.mrf.mxu3  ;;  %11731 = vst [vmem:[#allocation95_spill] sm:$0xff] %v9585_v56  ;;  %v4836_v41 = vmul.f32 %v9585_v56, %v9585_v56 }
 0x7ac   :  { %v9533_v7 = vpop.f32.mrf.mxu1  ;;  %v4892_v26 = vadd.f32 %v4830_v46, %v4828_v60  ;;  %v4728_v12 = vadd.f32 %v4727_v31, %v9473_v2  ;;  %v9597_v60 = vsub.f32 %v9161_v55, %v9426_v52 }
 0x7ad   :  { %v9519_v50 = vpop.f32.mrf.mxu2  ;;  %v9523_v14 = vpop.f32.mrf.mxu0 }
 0x7ae   :  { %v4893_v28 = vadd.f32 %v4892_v26, %v4832_v18  ;;  %v4729_v20 = vadd.f32 %v4728_v12, %v9475_v11  ;;  %11732 = vst [vmem:[#allocation88_spill] sm:$0xff] %v9597_v60  ;;  %v4838_v55 = vmul.f32 %v9597_v60, %v9597_v60 }
 0x7b0   :  { %v4730_v31 = vadd.f32 %v4729_v20, %v9481_v57  ;;  %v4894_v26 = vadd.f32 %v4893_v28, %v4834_v0  ;;  %v9609_v20 = vsub.f32 %v9192_v48, %v9426_v52 }
 0x7b2   :  { %v4731_v18 = vadd.f32 %v4730_v31, %v9483_v39  ;;  %v4895_v4 = vadd.f32 %v4894_v26, %v4836_v41  ;;  %11733 = vst [vmem:[#allocation76_spill] sm:$0xff] %v9609_v20  ;;  %v4840_v41 = vmul.f32 %v9609_v20, %v9609_v20 }
 0x7b3   :  { %v9529_v30 = vpop.f32.mrf.mxu3 }
 0x7b4   :  { %v9541_v22 = vpop.f32.mrf.mxu1  ;;  %v4732_v12 = vadd.f32 %v4731_v18, %v9489_v32  ;;  %v4896_v56 = vadd.f32 %v4895_v4, %v4838_v55  ;;  %v9617_v18 = vsub.f32 %v9201_v61, %v9426_v52 }
 0x7b5   :  { %v9527_v42 = vpop.f32.mrf.mxu2  ;;  %v9531_v34 = vpop.f32.mrf.mxu0 }
 0x7b6   :  { %v4733_v2 = vadd.f32 %v4732_v12, %v9491_v8  ;;  %11734 = vst [vmem:[#allocation116_spill] sm:$0xff] %v9617_v18  ;;  %v4897_v12 = vadd.f32 %v4896_v56, %v4840_v41  ;;  %v4842_v4 = vmul.f32 %v9617_v18, %v9617_v18  ;;  %v9635_v56 = vsub.f32 %v9241_v35, %v9426_v52 }
 0x7b7   :  { %v9648_v35 = vsub.f32 %v9272_v51, %v9426_v52 }
 0x7b8   :  { %v4734_v31 = vadd.f32 %v4733_v2, %v9493_v9  ;;  %v9627_v2 = vsub.f32 %v9232_v58, %v9426_v52  ;;  %v4898_v20 = vadd.f32 %v4897_v12, %v4842_v4  ;;  %v4485_v4 = vadd.f32 %v9525_v53, %v9523_v14 }
 0x7ba   :  { %v4735_v26 = vadd.f32 %v4734_v31, %v9495_v6  ;;  %11735 = vst [vmem:[#allocation20_spill] sm:$0xff] %v9627_v2  ;;  %v4844_v41 = vmul.f32 %v9627_v2, %v9627_v2 }
 0x7bb   :  { %v9537_v63 = vpop.f32.mrf.mxu3 }
 0x7bc   :  { %v9567_v25 = vpop.f32.mrf.mxu1  ;;  %v4736_v48 = vadd.f32 %v4735_v26, %v9497_v13  ;;  %v4899_v18 = vadd.f32 %v4898_v20, %v4844_v41  ;;  %v4487_v20 = vadd.f32 %v9533_v7, %v9531_v34 }
 0x7bd   :  { %v9535_v24 = vpop.f32.mrf.mxu2  ;;  %v9539_v23 = vpop.f32.mrf.mxu0 }
 0x7be   :  { %v4737_v60 = vadd.f32 %v4736_v48, %v9499_v1  ;;  %v4482_v48 = vadd.f32 %v9515_v29, %v9513_v54  ;;  %v4574_v29 = vadd.f32 %v9527_v42, %v4485_v4  ;;  %v4576_v51 = vadd.f32 %v9535_v24, %v4487_v20 }
 0x7bf   :  { %v4490_v53 = vadd.f32 %v9541_v22, %v9539_v23  ;;  %v4848_v42 = vmul.f32 %v9648_v35, %v9648_v35  ;;  %v9700_v20 = vsub.f32 %v9321_v59, %v9426_v52 }
 0x7c0   :  { %v4738_v31 = vadd.f32 %v4737_v60, %v9501_v36  ;;  %v4571_v12 = vadd.f32 %v9519_v50, %v4482_v48  ;;  %v9671_v7 = vadd.f32 %v9529_v30, %v4574_v29  ;;  %v9685_v30 = vsub.f32 %v9312_v33, %v9426_v52 }
 0x7c2   :  { %v4739_v26 = vadd.f32 %v4738_v31, %v9503_v10  ;;  %v4846_v31 = vmul.f32 %v9635_v56, %v9635_v56  ;;  %v9658_v14 = vadd.f32 %v9521_v16, %v4571_v12 }
 0x7c3   :  { %v9557_v62 = vpop.f32.mrf.mxu3 }
 0x7c4   :  { %v9591_v3 = vpop.f32.mrf.mxu1  ;;  %v4740_v58 = vadd.f32 %v4739_v26, %v9505_v17  ;;  %v4900_v50 = vadd.f32 %v4899_v18, %v4846_v31 }
 0x7c5   :  { %v9555_v49 = vpop.f32.mrf.mxu2  ;;  %v9565_v45 = vpop.f32.mrf.mxu0 }
 0x7c6   :  { %v4741_v60 = vadd.f32 %v4740_v58, %v9507_v15  ;;  %v9665_v58 = vsub.f32 %v9281_v44, %v9426_v52  ;;  %v4579_v16 = vadd.f32 %v9555_v49, %v4490_v53  ;;  %v4492_v24 = vadd.f32 %v9567_v25, %v9565_v45 }
 0x7c7   :  { %v4901_v18 = vadd.f32 %v4900_v50, %v4848_v42  ;;  %v9678_v44 = vadd.f32 %v9537_v63, %v4576_v51  ;;  %v4852_v50 = vmul.f32 %v9685_v30, %v9685_v30  ;;  %v9714_v53 = vsub.f32 %v9335_v19, %v9426_v52 }
 0x7c8   :  { %v4742_v54 = vadd.f32 %v4741_v60, %v9509_v5  ;;  %v4850_v45 = vmul.f32 %v9665_v58, %v9665_v58  ;;  %v9691_v31 = vadd.f32 %v9557_v62, %v4579_v16 }
 0x7c9   :  { %v4856_v19 = vmul.f32 %v9714_v53, %v9714_v53 }
 0x7ca   :  { %v4743_v41 = vadd.f32 %v4742_v54, %v9511_v40  ;;  %v4902_v54 = vadd.f32 %v4901_v18, %v4850_v45  ;;  %v11736_v18 = vld [vmem:[#allocation75_spill] sm:$0xff] }
 0x7cb   :  { %v9580_v27 = vpop.f32.mrf.mxu3 }
 0x7cc   :  { %v4496_v0 = vpop.f32.mrf.mxu1  ;;  %v4744_v34 = vadd.f32 %v4743_v41, %v9517_v47  ;;  %v4903_v41 = vadd.f32 %v4902_v54, %v4852_v50  ;;  %v11738_v50 = vld [vmem:[#allocation66_spill] sm:$0xff] }
 0x7cd   :  { %v9578_v21 = vpop.f32.mrf.mxu2  ;;  %v9589_v46 = vpop.f32.mrf.mxu0 }
 0x7ce   :  { %v4745_v22 = vadd.f32 %v4744_v34, %v9658_v14  ;;  %v4581_v60 = vadd.f32 %v9578_v21, %v4492_v24  ;;  %v4495_v12 = vadd.f32 %v9591_v3, %v9589_v46 }
 0x7d0   :  { %v4746_v4 = vadd.f32 %v4745_v22, %v9671_v7  ;;  %v9696_v3 = vadd.f32 %v9580_v27, %v4581_v60 }
 0x7d2   :  { %v4747_v46 = vadd.f32 %v4746_v4, %v9678_v44 }
 0x7d3   :  { %v9604_v11 = vpop.f32.mrf.mxu3 }
 0x7d4   :  { %v4499_v55 = vpop.f32.mrf.mxu1  ;;  %v4748_v62 = vadd.f32 %v4747_v46, %v9691_v31 }
 0x7d5   :  { %v9602_v43 = vpop.f32.mrf.mxu2  ;;  %v4407_v28 = vpop.f32.mrf.mxu0 }
 0x7d6   :  { %v4584_v63 = vadd.f32 %v9602_v43, %v4495_v12  ;;  %v4497_v21 = vadd.f32 %v4496_v0, %v4407_v28 }
 0x7d8   :  { %v9706_v43 = vadd.f32 %v9604_v11, %v4584_v63  ;;  %v4854_v11 = vmul.f32 %v9700_v20, %v9700_v20 }
 0x7da   :  { %v4904_v16 = vadd.f32 %v4903_v41, %v4854_v11 }
 0x7db   :  { %v9622_v32 = vpop.f32.mrf.mxu3 }
 0x7dc   :  { %v4501_v2 = vpop.f32.mrf.mxu1  ;;  %v4905_v45 = vadd.f32 %v4904_v16, %v4856_v19 }
 0x7dd   :  { %v4585_v8 = vpop.f32.mrf.mxu2  ;;  %v4410_v61 = vpop.f32.mrf.mxu0 }
 0x7de   :  { %v4586_v33 = vadd.f32 %v4585_v8, %v4497_v21  ;;  %v4500_v29 = vadd.f32 %v4499_v55, %v4410_v61  ;;  %v4749_v8 = vadd.f32 %v4748_v62, %v9696_v3  ;;  %v9746_v62 = vsub.f32 %v11738_v50, %v9426_v52  ;;  %v11744_v50 = vld [vmem:[#allocation27_spill] sm:$0xff] }
 0x7e0   :  { %v9710_v61 = vadd.f32 %v9622_v32, %v4586_v33 }
 0x7e3   :  { %v4677_v13 = vpop.f32.mrf.mxu3 }
 0x7e4   :  { %v4504_v25 = vpop.f32.mrf.mxu1 }
 0x7e5   :  { %v4588_v1 = vpop.f32.mrf.mxu2  ;;  %v4412_v26 = vpop.f32.mrf.mxu0 }
 0x7e6   :  { %v4589_v28 = vadd.f32 %v4588_v1, %v4500_v29  ;;  %v4502_v0 = vadd.f32 %v4501_v2, %v4412_v26  ;;  %v4750_v1 = vadd.f32 %v4749_v8, %v9706_v43 }
 0x7e8   :  { %v9719_v2 = vadd.f32 %v4677_v13, %v4589_v28  ;;  %v4751_v32 = vadd.f32 %v4750_v1, %v9710_v61 }
 0x7ea   :  { %v4752_v22 = vadd.f32 %v4751_v32, %v9719_v2 }
 0x7eb   :  { %v4679_v23 = vpop.f32.mrf.mxu3 }
 0x7ec   :  { %v4506_v34 = vpop.f32.mrf.mxu1 }
 0x7ed   :  { %v4590_v48 = vpop.f32.mrf.mxu2  ;;  %v4415_v49 = vpop.f32.mrf.mxu0 }
 0x7ee   :  { %v4591_v59 = vadd.f32 %v4590_v48, %v4502_v0  ;;  %v4505_v55 = vadd.f32 %v4504_v25, %v4415_v49  ;;  %v9726_v48 = vsub.f32 %v11736_v18, %v9426_v52  ;;  %v11741_v18 = vld [vmem:[#allocation67_spill] sm:$0xff] }
 0x7ef   :  { %v9764_v19 = vsub.f32 %v11741_v18, %v9426_v52 }
 0x7f0   :  { %v9722_v24 = vadd.f32 %v4679_v23, %v4591_v59  ;;  %v11737_v23 = vld [vmem:[#allocation71_spill] sm:$0xff]  ;;  %v4858_v21 = vmul.f32 %v9726_v48, %v9726_v48  ;;  %v4862_v59 = vmul.f32 %v9746_v62, %v9746_v62 }
 0x7f1   :  { %v9736_v63 = vsub.f32 %v11737_v23, %v9426_v52 }
 0x7f2   :  { %v4753_v49 = vadd.f32 %v4752_v22, %v9722_v24  ;;  %v4906_v33 = vadd.f32 %v4905_v45, %v4858_v21  ;;  %v11742_v45 = vld [vmem:[#allocation85_spill] sm:$0xff] }
 0x7f3   :  { %v4682_v27 = vpop.f32.mrf.mxu3  ;;  %v4860_v28 = vmul.f32 %v9736_v63, %v9736_v63  ;;  %v11743_v21 = vld [vmem:[#allocation57_spill] sm:$0xff] }
 0x7f5   :  { %v4593_v51 = vpop.f32.mrf.mxu2  ;;  %v4417_v42 = vpop.f32.mrf.mxu0  ;;  %v4907_v41 = vadd.f32 %v4906_v33, %v4860_v28 }
 0x7f6   :  { %v4594_v26 = vadd.f32 %v4593_v51, %v4505_v55  ;;  %v4507_v13 = vadd.f32 %v4506_v34, %v4417_v42 }
 0x7f7   :  { %v4908_v11 = vadd.f32 %v4907_v41, %v4862_v59 }
 0x7f8   :  { %v9731_v60 = vadd.f32 %v4682_v27, %v4594_v26  ;;  %v11739_v27 = vld [vmem:[#allocation102_spill] sm:$0xff] }
 0x7f9   :  { %v9752_v8 = vsub.f32 %v11739_v27, %v9426_v52  ;;  %v11740_v26 = vld [vmem:[#allocation74_spill] sm:$0xff] }
 0x7fa   :  { %v4754_v54 = vadd.f32 %v4753_v49, %v9731_v60  ;;  %v9758_v42 = vsub.f32 %v11740_v26, %v9426_v52  ;;  %v9770_v49 = vsub.f32 %v11742_v45, %v9426_v52 }
 0x7fb   :  { %v4684_v4 = vpop.f32.mrf.mxu3  ;;  %v4864_v34 = vmul.f32 %v9752_v8, %v9752_v8 }
 0x7fc   :  { %v4866_v22 = vmul.f32 %v9758_v42, %v9758_v42  ;;  %v4870_v33 = vmul.f32 %v9770_v49, %v9770_v49 }
 0x7fd   :  { %v4595_v12 = vpop.f32.mrf.mxu2  ;;  %v4909_v16 = vadd.f32 %v4908_v11, %v4864_v34  ;;  %v11747_v34 = vld [vmem:[#allocation78_spill] sm:$0xff] }
 0x7fe   :  { %v4596_v25 = vadd.f32 %v4595_v12, %v4507_v13 }
 0x7ff   :  { %v4910_v13 = vadd.f32 %v4909_v16, %v4866_v22  ;;  %v9806_v16 = vsub.f32 %v11747_v34, %v9426_v52 }
 0x800   :  { %v9741_v46 = vadd.f32 %v4684_v4, %v4596_v25  ;;  %v4868_v25 = vmul.f32 %v9764_v19, %v9764_v19 }
 0x802   :  { %v4755_v29 = vadd.f32 %v4754_v54, %v9741_v46  ;;  %v4911_v4 = vadd.f32 %v4910_v13, %v4868_v25  ;;  %v9778_v54 = vsub.f32 %v11743_v21, %v9426_v52  ;;  %v11749_v25 = vld [vmem:[#allocation146_spill] sm:$0xff]  ;;  %v4876_v21 = vmul.f32 %v9806_v16, %v9806_v16 }
 0x804   :  { %v4756_v0 = vrot.slane %v4755_v29, 4  ;;  %v4872_v59 = vmul.f32 %v9778_v54, %v9778_v54 }
 0x806   :  { %v4757_v51 = vadd.f32 %v4756_v0, %v4755_v29  ;;  %v4912_v29 = vadd.f32 %v4911_v4, %v4870_v33  ;;  %v11745_v0 = vld [vmem:[#allocation79_spill] sm:$0xff]  ;;  %v9822_v4 = vsub.f32 %v11749_v25, %v9426_v52  ;;  %v11751_v33 = vld [vmem:[#allocation154_spill] sm:$0xff] }
 0x808   :  { %v4758_v55 = vrot.slane %v4757_v51, 2  ;;  %11750 = vst [vmem:[#allocation115_spill] sm:$0xff] %v9822_v4 }
 0x80a   :  { %v4759_v1 = vadd.f32 %v4758_v55, %v4757_v51  ;;  %v11746_v51 = vld [vmem:[#allocation89_spill] sm:$0xff]  ;;  %v4913_v55 = vadd.f32 %v4912_v29, %v4872_v59 }
 0x80b   :  { %v9792_v27 = vsub.f32 %v11746_v51, %v9426_v52 }
 0x80c   :  { %v4760_v32 = vrot.slane %v4759_v1, 1 }
 0x80e   :  { %v4761_v12 = vadd.f32 %v4760_v32, %v4759_v1  ;;  %v4874_v32 = vmul.f32 %v9792_v27, %v9792_v27 }
 0x810   :  { %v9774_v23 = vmul.f32 0.00390625, %v4761_v12  ;;  %v4914_v22 = vadd.f32 %v4913_v55, %v4874_v32  ;;  %v4878_v55 = vmul.f32 %v9822_v4, %v9822_v4 }
 0x812   :  { %v9784_v28 = vsub.f32 %v11744_v50, %v9774_v23  ;;  %v9788_v41 = vsub.f32 %v11745_v0, %v9774_v23  ;;  %v9798_v11 = vsub.f32 %v9465_v38, %v9774_v23  ;;  %v9812_v18 = vsub.f32 %v9467_v37, %v9774_v23  ;;  %v11748_v38 = vld [vmem:[#allocation86_spill] sm:$0xff] }
 0x813   :  { %v9816_v13 = vsub.f32 %v11748_v38, %v9774_v23  ;;  %v9828_v37 = vsub.f32 %v11751_v33, %v9774_v23  ;;  %v4915_v0 = vadd.f32 %v4914_v22, %v4876_v21  ;;  %v9834_v51 = vsub.f32 %v9481_v57, %v9774_v23  ;;  %v11752_v22 = vld [vmem:[#allocation90_spill] sm:$0xff]  ;;  %v11754_v21 = vld [vmem:[#allocation83_spill] sm:$0xff] }
 0x814   :  { %v4829_v1 = vmul.f32 %v9784_v28, %v9784_v28  ;;  %v4831_v26 = vmul.f32 %v9788_v41, %v9788_v41  ;;  %v4833_v12 = vmul.f32 %v9798_v11, %v9798_v11  ;;  %v4835_v29 = vmul.f32 %v9812_v18, %v9812_v18 }
 0x815   :  { %v4837_v52 = vmul.f32 %v9816_v13, %v9816_v13  ;;  %v4916_v32 = vadd.f32 %v4915_v0, %v4878_v55  ;;  %v9848_v57 = vsub.f32 %v11752_v22, %v9774_v23  ;;  %v4841_v38 = vmul.f32 %v9834_v51, %v9834_v51  ;;  %v11755_v55 = vld [vmem:[#allocation21_spill] sm:$0xff] }
 0x816   :  { %v4929_v45 = vadd.f32 %v4831_v26, %v4829_v1  ;;  %v9842_v1 = vsub.f32 %v9483_v39, %v9774_v23  ;;  %v4839_v26 = vmul.f32 %v9828_v37, %v9828_v37  ;;  %v9856_v39 = vsub.f32 %v11754_v21, %v9774_v23 }
 0x817   :  { %v9862_v0 = vsub.f32 %v9493_v9, %v9774_v23 }
 0x818   :  { %v4930_v50 = vadd.f32 %v4929_v45, %v4833_v12  ;;  %v11753_v45 = vld [vmem:[#allocation25_spill] sm:$0xff]  ;;  %v4843_v33 = vmul.f32 %v9842_v1, %v9842_v1  ;;  %v4847_v22 = vmul.f32 %v9856_v39, %v9856_v39 }
 0x819   :  { %v4880_v25 = vmul.f32 %v11753_v45, %v11753_v45 }
 0x81a   :  { %v4931_v59 = vadd.f32 %v4930_v50, %v4835_v29 }
 0x81b   :  { %v4917_v50 = vadd.f32 %v4916_v32, %v4880_v25  ;;  %v4849_v25 = vmul.f32 %v9862_v0, %v9862_v0 }
 0x81c   :  { %v4932_v34 = vadd.f32 %v4931_v59, %v4837_v52  ;;  %v4845_v52 = vmul.f32 %v9848_v57, %v9848_v57 }
 0x81e   :  { %v4933_v12 = vadd.f32 %v4932_v34, %v4839_v26  ;;  %v4882_v26 = vmul.f32 %v11755_v55, %v11755_v55  ;;  %v9870_v34 = vsub.f32 %v9495_v6, %v9774_v23  ;;  %v11758_v55 = vld [vmem:[#allocation87_spill] sm:$0xff] }
 0x81f   :  { %v9884_v6 = vsub.f32 %v11758_v55, %v9774_v23  ;;  %v9898_v55 = vsub.f32 %v9503_v10, %v9774_v23  ;;  %v9912_v10 = vsub.f32 %v9507_v15, %v9774_v23  ;;  %v9926_v15 = vsub.f32 %v9511_v40, %v9774_v23 }
 0x820   :  { %v4934_v29 = vadd.f32 %v4933_v12, %v4841_v38  ;;  %v4918_v32 = vadd.f32 %v4917_v50, %v4882_v26  ;;  %v11756_v12 = vld [vmem:[#allocation94_spill] sm:$0xff]  ;;  %v4851_v45 = vmul.f32 %v9870_v34, %v9870_v34 }
 0x821   :  { %v9876_v9 = vsub.f32 %v11756_v12, %v9774_v23  ;;  %v4867_v40 = vmul.f32 %v9926_v15, %v9926_v15 }
 0x822   :  { %v4935_v59 = vadd.f32 %v4934_v29, %v4843_v33  ;;  %v11757_v33 = vld [vmem:[#allocation60_spill] sm:$0xff] }
 0x823   :  { %v4884_v29 = vmul.f32 %v11757_v33, %v11757_v33  ;;  %v4853_v26 = vmul.f32 %v9876_v9, %v9876_v9  ;;  %v4855_v33 = vmul.f32 %v9884_v6, %v9884_v6 }
 0x824   :  { %v4936_v38 = vadd.f32 %v4935_v59, %v4845_v52  ;;  %v9890_v59 = vsub.f32 %v9501_v36, %v9774_v23  ;;  %v9904_v36 = vsub.f32 %v9505_v17, %v9774_v23  ;;  %v9918_v17 = vsub.f32 %v9509_v5, %v9774_v23 }
 0x825   :  { %v4919_v50 = vadd.f32 %v4918_v32, %v4884_v29  ;;  %v11760_v29 = vld [vmem:[#allocation82_spill] sm:$0xff]  ;;  %v9932_v5 = vsub.f32 %v9517_v47, %v9774_v23 }
 0x826   :  { %v4937_v21 = vadd.f32 %v4936_v38, %v4847_v22  ;;  %v11759_v38 = vld [vmem:[#allocation62_spill] sm:$0xff] }
 0x827   :  { %v4886_v12 = vmul.f32 %v11759_v38, %v11759_v38  ;;  %v4859_v38 = vmul.f32 %v9898_v55, %v9898_v55  ;;  %v4869_v47 = vmul.f32 %v9932_v5, %v9932_v5 }
 0x828   :  { %v4938_v52 = vadd.f32 %v4937_v21, %v4849_v25  ;;  %v4857_v21 = vmul.f32 %v9890_v59, %v9890_v59 }
 0x829   :  { %v4920_v32 = vadd.f32 %v4919_v50, %v4886_v12  ;;  %v11761_v12 = vld [vmem:[#allocation150_spill] sm:$0xff] }
 0x82a   :  { %v4939_v22 = vadd.f32 %v4938_v52, %v4851_v45  ;;  %v4888_v52 = vmul.f32 %v11760_v29, %v11760_v29  ;;  %v4863_v29 = vmul.f32 %v9912_v10, %v9912_v10 }
 0x82c   :  { %v4940_v25 = vadd.f32 %v4939_v22, %v4853_v26  ;;  %v4921_v50 = vadd.f32 %v4920_v32, %v4888_v52  ;;  %v4861_v22 = vmul.f32 %v9904_v36, %v9904_v36  ;;  %v9938_v52 = vsub.f32 %v9658_v14, %v9774_v23 }
 0x82e   :  { %v4941_v45 = vadd.f32 %v4940_v25, %v4855_v33  ;;  %v4890_v25 = vmul.f32 %v11761_v12, %v11761_v12  ;;  %v4871_v14 = vmul.f32 %v9938_v52, %v9938_v52 }
 0x830   :  { %v4942_v26 = vadd.f32 %v4941_v45, %v4857_v21  ;;  %v4922_v32 = vadd.f32 %v4921_v50, %v4890_v25  ;;  %v4865_v45 = vmul.f32 %v9918_v17, %v9918_v17  ;;  %v9944_v50 = vsub.f32 %v9671_v7, %v9774_v23 }
 0x832   :  { %v4943_v33 = vadd.f32 %v4942_v26, %v4859_v38  ;;  %v4923_v12 = vrot.slane %v4922_v32, 4  ;;  %v4873_v7 = vmul.f32 %v9944_v50, %v9944_v50 }
 0x834   :  { %v4944_v21 = vadd.f32 %v4943_v33, %v4861_v22  ;;  %v4924_v25 = vadd.f32 %v4923_v12, %v4922_v32  ;;  %v9968_v12 = vsub.f32 %v9706_v43, %v9774_v23 }
 0x836   :  { %v4945_v38 = vadd.f32 %v4944_v21, %v4863_v29  ;;  %v9950_v29 = vsub.f32 %v9678_v44, %v9774_v23  ;;  %v9956_v21 = vsub.f32 %v9691_v31, %v9774_v23  ;;  %11764 = vst [vmem:[#allocation84_spill] sm:$0xff] %v9968_v12  ;;  %v4881_v43 = vmul.f32 %v9968_v12, %v9968_v12 }
 0x838   :  { %v4946_v26 = vadd.f32 %v4945_v38, %v4865_v45  ;;  %11762 = vst [vmem:[#allocation149_spill] sm:$0xff] %v9956_v21  ;;  %v9962_v38 = vsub.f32 %v9696_v3, %v9774_v23  ;;  %v4875_v44 = vmul.f32 %v9950_v29, %v9950_v29  ;;  %v4877_v31 = vmul.f32 %v9956_v21, %v9956_v21 }
 0x83a   :  { %v4947_v22 = vadd.f32 %v4946_v26, %v4867_v40  ;;  %11763 = vst [vmem:[#allocation104_spill] sm:$0xff] %v9962_v38  ;;  %v4925_v26 = vrot.slane %v4924_v25, 2  ;;  %v4879_v3 = vmul.f32 %v9962_v38, %v9962_v38 }
 0x83c   :  { %v4948_v33 = vadd.f32 %v4947_v22, %v4869_v47  ;;  %v9974_v47 = vsub.f32 %v9710_v61, %v9774_v23 }
 0x83e   :  { %v4949_v45 = vadd.f32 %v4948_v33, %v4871_v14  ;;  %11765 = vst [vmem:[#allocation59_spill] sm:$0xff] %v9974_v47  ;;  %v4926_v14 = vadd.f32 %v4925_v26, %v4924_v25  ;;  %v9980_v33 = vsub.f32 %v9719_v2, %v9774_v23  ;;  %v4883_v61 = vmul.f32 %v9974_v47, %v9974_v47 }
 0x83f   :  { %v9992_v25 = vsub.f32 %v9731_v60, %v9774_v23 }
 0x840   :  { %v4950_v40 = vadd.f32 %v4949_v45, %v4873_v7  ;;  %11766 = vst [vmem:[#allocation73_spill] sm:$0xff] %v9980_v33  ;;  %v9986_v45 = vsub.f32 %v9722_v24, %v9774_v23  ;;  %v4885_v2 = vmul.f32 %v9980_v33, %v9980_v33 }
 0x842   :  { %v4951_v32 = vadd.f32 %v4950_v40, %v4875_v44  ;;  %11767 = vst [vmem:[#allocation139_spill] sm:$0xff] %v9986_v45  ;;  %v4927_v40 = vrot.slane %v4926_v14, 1  ;;  %v4887_v24 = vmul.f32 %v9986_v45, %v9986_v45 }
 0x844   :  { %v4952_v22 = vadd.f32 %v4951_v32, %v4877_v31  ;;  %v4827_v31 = vsub.f32 %v9741_v46, %v9774_v23 }
 0x846   :  { %v4953_v7 = vadd.f32 %v4952_v22, %v4879_v3  ;;  %v4928_v3 = vadd.f32 %v4927_v40, %v4926_v14  ;;  %v4889_v22 = vmul.f32 %v9992_v25, %v9992_v25 }
 0x848   :  { %v4954_v44 = vadd.f32 %v4953_v7, %v4881_v43  ;;  %v4891_v7 = vmul.f32 %v4827_v31, %v4827_v31  ;;  %v4966_v60 = vmul.f32 0.00390625, %v4928_v3 }
 0x84a   :  { %v4955_v26 = vadd.f32 %v4954_v44, %v4883_v61  ;;  %v4968_v4 = vadd.f32 1e-05, %v4966_v60 }
 0x84c   :  { %v4956_v32 = vadd.f32 %v4955_v26, %v4885_v2  ;;  %6420 = vrsqrt.f32 %v4968_v4  ;;  %vm4976_vm3 = vweird.f32 %v4968_v4 }
 0x84e   :  { %v4957_v43 = vadd.f32 %v4956_v32, %v4887_v24 }
 0x850   :  { %v4958_v47 = vadd.f32 %v4957_v43, %v4889_v22 }
 0x852   :  { %v4959_v12 = vadd.f32 %v4958_v47, %v4891_v7  ;;  %v6421_v21 = vpop.eup %6420 }
 0x853   :  { %v4971_v14 = vmul.f32 %v6421_v21, %v4968_v4  ;;  %vm4977_vm0 = vweird.f32 %v6421_v21 }
 0x854   :  { %v4960_v38 = vrot.slane %v4959_v12, 4  ;;  %vm4978_vm4 = vmor %vm4976_vm3, %vm4977_vm0 }
 0x855   :  { %v4972_v40 = vmul.f32 %v6421_v21, %v4971_v14 }
 0x856   :  { %v4961_v33 = vadd.f32 %v4960_v38, %v4959_v12 }
 0x857   :  { %v4973_v24 = vmul.f32 0.5, %v4972_v40 }
 0x858   :  { %v4962_v61 = vrot.slane %v4961_v33, 2 }
 0x859   :  { %v4974_v3 = vsub.f32 1.5, %v4973_v24 }
 0x85a   :  { %v4963_v44 = vadd.f32 %v4962_v61, %v4961_v33 }
 0x85b   :  { %v4975_v38 = vmul.f32 %v6421_v21, %v4974_v3 }
 0x85c   :  { %v4964_v46 = vrot.slane %v4963_v44, 1 }
 0x85d   :  { %v4979_v60 = vsel %vm4978_vm4, %v6421_v21, %v4975_v38 }
 0x85e   :  { %v4965_v23 = vadd.f32 %v4964_v46, %v4963_v44 }
 0x860   :  { %v4967_v45 = vmul.f32 0.00390625, %v4965_v23 }
 0x862   :  { %v4969_v2 = vadd.f32 1e-05, %v4967_v45  ;;  %v10002_v45 = vld [vmem:[#allocation10] sm:$0xff] }
 0x863   :  { %11768 = vst [vmem:[#allocation152_spill] sm:$0xff] %v10002_v45  ;;  %v5068_v14 = vperm.slane %v10002_v45, 1  ;;  %v5202_v4 = vperm.slane %v10002_v45, 2 }
 0x864   :  { %6422 = vrsqrt.f32 %v4969_v2  ;;  %vm4986_vm1 = vweird.f32 %v4969_v2 }
 0x865   :  { %v10021_v3 = vperm.slane %v5202_v4, 2  ;;  %v11775_v4 = vld [vmem:[#allocation88_spill] sm:$0xff] }
 0x86a   :  { %v6423_v26 = vpop.eup %6422 }
 0x86b   :  { %v4981_v32 = vmul.f32 %v6423_v26, %v4969_v2  ;;  %vm4987_vm15 = vweird.f32 %v6423_v26  ;;  %v5069_v2 = vperm.slane %v10002_v45, 5 }
 0x86c   :  { %vm4988_vm2 = vmor %vm4986_vm1, %vm4987_vm15 }
 0x86d   :  { %v4982_v22 = vmul.f32 %v6423_v26, %v4981_v32  ;;  %v10014_v32 = vperm.slane %v5068_v14, 1  ;;  %v11774_v14 = vld [vmem:[#allocation95_spill] sm:$0xff] }
 0x86f   :  { %v4983_v47 = vmul.f32 0.5, %v4982_v22  ;;  %v10019_v22 = vperm.slane %v5069_v2, 1 }
 0x871   :  { %v4984_v43 = vsub.f32 1.5, %v4983_v47 }
 0x873   :  { %v4985_v12 = vmul.f32 %v6423_v26, %v4984_v43  ;;  %v11770_v43 = vld [vmem:[#allocation72_spill] sm:$0xff] }
 0x875   :  { %v4989_v33 = vsel %vm4988_vm2, %v6423_v26, %v4985_v12  ;;  %v5203_v26 = vperm.slane %v10002_v45, 6 }
 0x876   :  { %v4992_v7 = vrot.slane %v4989_v33, 4  ;;  %v11771_v33 = vld [vmem:[#allocation91_spill] sm:$0xff] }
 0x877   :  { %v10023_v47 = vperm.slane %v5203_v26, 2 }
 0x878   :  { %v4993_v61 = vsel %vm3113_vm14, %v4979_v60, %v4992_v7  ;;  %v11772_v60 = vld [vmem:[#allocation147_spill] sm:$0xff] }
 0x879   :  { %v4995_v44 = vmul.f32 %v4993_v61, %v10002_v45  ;;  %v11788_v45 = vld [vmem:[#allocation115_spill] sm:$0xff] }
 0x87b   :  { %v4997_v46 = vperm.slane %v4995_v44, 0  ;;  %v4998_v23 = vperm.slane %v4995_v44, 4 }
 0x87d   :  { %v10007_v40 = vperm.slane %v4998_v23, 0  ;;  %v10012_v24 = vperm.slane %v4997_v46, 0  ;;  %v11773_v46 = vld [vmem:[#allocation80_spill] sm:$0xff] }
 0x87f   :  { %v10017_v21 = vmul.f32 %v10007_v40, %v4827_v31  ;;  %v5003_v38 = vmul.f32 %v10012_v24, %v11770_v43  ;;  %v5004_v12 = vmul.f32 %v10007_v40, %v9784_v28  ;;  %v10031_v7 = vmul.f32 %v10012_v24, %v11771_v33  ;;  %v11776_v43 = vld [vmem:[#allocation76_spill] sm:$0xff] }
 0x880   :  { %v10035_v31 = vmul.f32 %v10007_v40, %v9788_v41  ;;  %v5007_v61 = vmul.f32 %v10012_v24, %v11772_v60  ;;  %v5008_v44 = vmul.f32 %v10007_v40, %v9798_v11  ;;  %v10043_v23 = vmul.f32 %v10012_v24, %v11773_v46  ;;  %v11777_v60 = vld [vmem:[#allocation116_spill] sm:$0xff] }
 0x881   :  { %11769 = vst [vmem:[#allocation119_spill] sm:$0xff] %v10017_v21  ;;  %v10047_v28 = vmul.f32 %v10007_v40, %v9812_v18  ;;  %v5011_v2 = vmul.f32 %v10012_v24, %v11774_v14  ;;  %v5012_v41 = vmul.f32 %v10007_v40, %v9816_v13  ;;  %v5013_v26 = vmul.f32 %v10012_v24, %v11775_v4  ;;  %v11778_v14 = vld [vmem:[#allocation20_spill] sm:$0xff] }
 0x882   :  { %v5014_v11 = vmul.f32 %v10007_v40, %v9828_v37  ;;  %v10059_v33 = vmul.f32 %v10012_v24, %v11776_v43  ;;  %v10063_v18 = vmul.f32 %v10007_v40, %v9834_v51  ;;  %v10067_v46 = vmul.f32 %v10012_v24, %v11777_v60  ;;  %v11790_v21 = vld [vmem:[#allocation104_spill] sm:$0xff] }
 0x883   :  { %v10071_v13 = vmul.f32 %v10007_v40, %v9842_v1  ;;  %v10075_v4 = vmul.f32 %v10012_v24, %v11778_v14  ;;  %v10079_v37 = vmul.f32 %v10007_v40, %v9848_v57  ;;  %v10083_v51 = vmul.f32 %v10012_v24, %v9635_v56  ;;  %v11786_v14 = vld [vmem:[#allocation149_spill] sm:$0xff] }
 0x884   :  { %v10087_v43 = vmul.f32 %v10007_v40, %v9856_v39  ;;  %v10091_v1 = vmul.f32 %v10012_v24, %v9648_v35  ;;  %v10095_v60 = vmul.f32 %v10007_v40, %v9862_v0  ;;  %v10099_v57 = vmul.f32 %v10012_v24, %v9665_v58 }
 0x885   :  { %v10103_v56 = vmul.f32 %v10007_v40, %v9870_v34  ;;  %v10107_v39 = vmul.f32 %v10012_v24, %v9685_v30  ;;  %v10111_v35 = vmul.f32 %v10007_v40, %v9876_v9  ;;  %v10115_v0 = vmul.f32 %v10012_v24, %v9700_v20 }
 0x886   :  { %v10119_v58 = vmul.f32 %v10007_v40, %v9884_v6  ;;  %v10123_v34 = vmul.f32 %v10012_v24, %v9714_v53  ;;  %v10127_v30 = vmul.f32 %v10007_v40, %v9890_v59  ;;  %v10131_v9 = vmul.f32 %v10012_v24, %v9726_v48 }
 0x887   :  { %v10135_v20 = vmul.f32 %v10007_v40, %v9898_v55  ;;  %v10139_v6 = vmul.f32 %v10012_v24, %v9736_v63  ;;  %v10143_v53 = vmul.f32 %v10007_v40, %v9904_v36  ;;  %v10147_v59 = vmul.f32 %v10012_v24, %v9746_v62 }
 0x888   :  { %v10151_v48 = vmul.f32 %v10007_v40, %v9912_v10  ;;  %v10155_v55 = vmul.f32 %v10012_v24, %v9752_v8  ;;  %v10159_v63 = vmul.f32 %v10007_v40, %v9918_v17  ;;  %v10163_v36 = vmul.f32 %v10012_v24, %v9758_v42 }
 0x889   :  { %v10167_v62 = vmul.f32 %v10007_v40, %v9926_v15  ;;  %v10171_v10 = vmul.f32 %v10012_v24, %v9764_v19  ;;  %v10175_v8 = vmul.f32 %v10007_v40, %v9932_v5  ;;  %v10179_v17 = vmul.f32 %v10012_v24, %v9770_v49 }
 0x88a   :  { %v10183_v42 = vmul.f32 %v10007_v40, %v9938_v52  ;;  %v10187_v15 = vmul.f32 %v10012_v24, %v9778_v54  ;;  %v10191_v19 = vmul.f32 %v10007_v40, %v9944_v50  ;;  %v10195_v5 = vmul.f32 %v10012_v24, %v9792_v27 }
 0x88b   :  { %11779 = vst [vmem:[#allocation106_spill] sm:$0xff] %v10179_v17  ;;  %v10199_v49 = vmul.f32 %v10007_v40, %v9950_v29  ;;  %v10203_v52 = vmul.f32 %v10012_v24, %v9806_v16  ;;  %v10207_v54 = vmul.f32 %v10007_v40, %v11786_v14  ;;  %v10211_v50 = vmul.f32 %v10012_v24, %v11788_v45 }
 0x88c   :  { %11780 = vst [vmem:[#allocation93_spill] sm:$0xff] %v10183_v42  ;;  %v10215_v27 = vmul.f32 %v10007_v40, %v11790_v21  ;;  %v5082_v42 = vadd.f32 %v10014_v32, %v5011_v2  ;;  %v5083_v29 = vadd.f32 %v10019_v22, %v5012_v41  ;;  %v5078_v17 = vadd.f32 %v10014_v32, %v5007_v61 }
 0x88d   :  { %11781 = vst [vmem:[#allocation108_spill] sm:$0xff] %v10187_v15  ;;  %v5079_v16 = vadd.f32 %v10019_v22, %v5008_v44  ;;  %v5075_v14 = vadd.f32 %v10019_v22, %v5004_v12  ;;  %v5085_v45 = vadd.f32 %v10019_v22, %v5014_v11 }
 0x88e   :  { %11782 = vst [vmem:[#allocation110_spill] sm:$0xff] %v10191_v19  ;;  %v5147_v19 = vmax.f32 %v5083_v29, 0.0  ;;  %v5142_v21 = vmax.f32 %v5078_v17, 0.0 }
 0x88f   :  { %11783 = vst [vmem:[#allocation130_spill] sm:$0xff] %v10195_v5  ;;  %v5139_v2 = vmax.f32 %v5075_v14, 0.0  ;;  %v5149_v41 = vmax.f32 %v5085_v45, 0.0  ;;  %v11792_v5 = vld [vmem:[#allocation25_spill] sm:$0xff]  ;;  %v5090_v14 = vadd.f32 %v10014_v32, %v10075_v4 }
 0x890   :  { %11784 = vst [vmem:[#allocation134_spill] sm:$0xff] %v10199_v49  ;;  %v5217_v44 = vmul.f32 %v10023_v47, %v5147_v19  ;;  %v5081_v19 = vadd.f32 %v10019_v22, %v10047_v28 }
 0x891   :  { %11785 = vst [vmem:[#allocation43_spill] sm:$0xff] %v10203_v52  ;;  %v5074_v52 = vadd.f32 %v10014_v32, %v5003_v38  ;;  %v5212_v38 = vmul.f32 %v10021_v3, %v5142_v21  ;;  %v5209_v17 = vmul.f32 %v10023_v47, %v5139_v2  ;;  %v5088_v21 = vadd.f32 %v10014_v32, %v10067_v46 }
 0x892   :  { %11787 = vst [vmem:[#allocation143_spill] sm:$0xff] %v10207_v54  ;;  %v5084_v54 = vadd.f32 %v10014_v32, %v5013_v26  ;;  %v10231_v26 = vmul.f32 %v10012_v24, %v11792_v5  ;;  %v5076_v5 = vadd.f32 %v10014_v32, %v10031_v7  ;;  %v5089_v7 = vadd.f32 %v10019_v22, %v10071_v13 }
 0x893   :  { %11789 = vst [vmem:[#allocation151_spill] sm:$0xff] %v10211_v50  ;;  %v5146_v50 = vmax.f32 %v5082_v42, 0.0  ;;  %v5138_v15 = vmax.f32 %v5074_v52, 0.0 }
 0x894   :  { %11791 = vst [vmem:[#allocation97_spill] sm:$0xff] %v10215_v27  ;;  %v5143_v27 = vmax.f32 %v5079_v16, 0.0  ;;  %v5148_v49 = vmax.f32 %v5084_v54, 0.0  ;;  %v5145_v16 = vmax.f32 %v5081_v19, 0.0  ;;  %v5140_v28 = vmax.f32 %v5076_v5, 0.0 }
 0x895   :  { %v5216_v61 = vmul.f32 %v10021_v3, %v5146_v50  ;;  %v5208_v11 = vmul.f32 %v10021_v3, %v5138_v15  ;;  %v5080_v50 = vadd.f32 %v10014_v32, %v10043_v23  ;;  %v5077_v15 = vadd.f32 %v10019_v22, %v10035_v31 }
 0x896   :  { %v5213_v12 = vmul.f32 %v10023_v47, %v5143_v27  ;;  %v5218_v42 = vmul.f32 %v10021_v3, %v5148_v49  ;;  %v5219_v27 = vmul.f32 %v10023_v47, %v5149_v41  ;;  %v5091_v23 = vadd.f32 %v10019_v22, %v10079_v37  ;;  %v11794_v37 = vld [vmem:[#allocation21_spill] sm:$0xff] }
 0x897   :  { %v5284_v52 = vadd.f32 %v5217_v44, %v5216_v61  ;;  %v5272_v29 = vadd.f32 %v5209_v17, %v5208_v11  ;;  %v5144_v49 = vmax.f32 %v5080_v50, 0.0  ;;  %v5141_v45 = vmax.f32 %v5077_v15, 0.0  ;;  %v11793_v44 = vld [vmem:[#allocation84_spill] sm:$0xff]  ;;  %v11795_v11 = vld [vmem:[#allocation59_spill] sm:$0xff] }
 0x898   :  { %v5278_v54 = vadd.f32 %v5213_v12, %v5212_v38  ;;  %v5215_v2 = vmul.f32 %v10023_v47, %v5145_v16  ;;  %v5154_v41 = vmax.f32 %v5090_v14, 0.0  ;;  %v5155_v61 = vmax.f32 %v5091_v23, 0.0 }
 0x899   :  { %5285 = vadd.xlane.f32.xlu2 %v5284_v52  ;;  %5273 = vadd.xlane.f32.xlu0 %v5272_v29  ;;  %v5214_v31 = vmul.f32 %v10021_v3, %v5144_v49  ;;  %v10257_v4 = vmul.f32 %v10007_v40, %v11793_v44  ;;  %v10261_v38 = vmul.f32 %v10012_v24, %v11794_v37  ;;  %v5152_v17 = vmax.f32 %v5088_v21, 0.0 }
 0x89a   :  { %5279 = vadd.xlane.f32.xlu1 %v5278_v54  ;;  %v5210_v12 = vmul.f32 %v10021_v3, %v5140_v28  ;;  %v5211_v46 = vmul.f32 %v10023_v47, %v5141_v45  ;;  %v10267_v13 = vmul.f32 %v10007_v40, %v11795_v11  ;;  %v5153_v52 = vmax.f32 %v5089_v7, 0.0 }
 0x89b   :  { %v5086_v54 = vadd.f32 %v10014_v32, %v10059_v33  ;;  %v5287_v50 = vadd.f32 %v5219_v27, %v5218_v42  ;;  %v5281_v19 = vadd.f32 %v5215_v2, %v5214_v31  ;;  %v5224_v29 = vmul.f32 %v10021_v3, %v5154_v41 }
 0x89c   :  { %v5087_v5 = vadd.f32 %v10019_v22, %v10063_v18  ;;  %v5275_v15 = vadd.f32 %v5211_v46, %v5210_v12  ;;  %v5225_v49 = vmul.f32 %v10023_v47, %v5155_v61  ;;  %v5096_v16 = vadd.f32 %v10014_v32, %v10099_v57  ;;  %v11797_v61 = vld [vmem:[#allocation73_spill] sm:$0xff]  ;;  %v11798_v46 = vld [vmem:[#allocation62_spill] sm:$0xff] }
 0x89d   :  { %v5097_v14 = vadd.f32 %v10019_v22, %v10103_v56  ;;  %v5150_v23 = vmax.f32 %v5086_v54, 0.0  ;;  %v5094_v33 = vadd.f32 %v10014_v32, %v10091_v1  ;;  %v5095_v42 = vadd.f32 %v10019_v22, %v10095_v60  ;;  %v11796_v1 = vld [vmem:[#allocation60_spill] sm:$0xff] }
 0x89e   :  { %v5151_v28 = vmax.f32 %v5087_v5, 0.0  ;;  %v5222_v18 = vmul.f32 %v10021_v3, %v5152_v17  ;;  %v5223_v27 = vmul.f32 %v10023_v47, %v5153_v52  ;;  %v5092_v57 = vadd.f32 %v10014_v32, %v10083_v51 }
 0x89f   :  { %v5160_v45 = vmax.f32 %v5096_v16, 0.0  ;;  %v5161_v56 = vmax.f32 %v5097_v14, 0.0  ;;  %v5158_v21 = vmax.f32 %v5094_v33, 0.0  ;;  %v5093_v7 = vadd.f32 %v10019_v22, %v10087_v43 }
 0x8a0   :  { %v10291_v31 = vmul.f32 %v10012_v24, %v11796_v1  ;;  %v5159_v60 = vmax.f32 %v5095_v42, 0.0  ;;  %v5156_v2 = vmax.f32 %v5092_v57, 0.0  ;;  %v5102_v41 = vadd.f32 %v10014_v32, %v10123_v34 }
 0x8a1   :  { %5288 = vadd.xlane.f32.xlu2 %v5287_v50  ;;  %5276 = vadd.xlane.f32.xlu0 %v5275_v15  ;;  %v10297_v44 = vmul.f32 %v10007_v40, %v11797_v61  ;;  %v5220_v51 = vmul.f32 %v10021_v3, %v5150_v23  ;;  %v5221_v37 = vmul.f32 %v10023_v47, %v5151_v28  ;;  %v5157_v12 = vmax.f32 %v5093_v7, 0.0  ;;  %v11799_v28 = vld [vmem:[#allocation139_spill] sm:$0xff] }
 0x8a2   :  { %5282 = vadd.xlane.f32.xlu1 %v5281_v19  ;;  %v10303_v43 = vmul.f32 %v10012_v24, %v11798_v46  ;;  %v5296_v11 = vadd.f32 %v5225_v49, %v5224_v29  ;;  %v5293_v17 = vadd.f32 %v5223_v27, %v5222_v18  ;;  %v5103_v52 = vadd.f32 %v10019_v22, %v10127_v30 }
 0x8a3   :  { %v5230_v34 = vmul.f32 %v10021_v3, %v5160_v45  ;;  %v5231_v54 = vmul.f32 %v10023_v47, %v5161_v56  ;;  %v5228_v50 = vmul.f32 %v10021_v3, %v5158_v21  ;;  %v5100_v19 = vadd.f32 %v10014_v32, %v10115_v0  ;;  %v11800_v0 = vld [vmem:[#allocation82_spill] sm:$0xff] }
 0x8a4   :  { %v5229_v5 = vmul.f32 %v10023_v47, %v5159_v60  ;;  %v5226_v15 = vmul.f32 %v10021_v3, %v5156_v2  ;;  %v5227_v16 = vmul.f32 %v10023_v47, %v5157_v12  ;;  %v5166_v29 = vmax.f32 %v5102_v41, 0.0 }
 0x8a5   :  { %v5290_v49 = vadd.f32 %v5221_v37, %v5220_v51  ;;  %v5167_v14 = vmax.f32 %v5103_v52, 0.0  ;;  %v5101_v30 = vadd.f32 %v10019_v22, %v10119_v58  ;;  %v5098_v23 = vadd.f32 %v10014_v32, %v10107_v39 }
 0x8a6   :  { %v10321_v33 = vmul.f32 %v10007_v40, %v11799_v28  ;;  %v10325_v42 = vmul.f32 %v10012_v24, %v11800_v0  ;;  %v5164_v18 = vmax.f32 %v5100_v19, 0.0  ;;  %v5099_v27 = vadd.f32 %v10019_v22, %v10111_v35  ;;  %v11801_v0 = vld [vmem:[#allocation130_spill] sm:$0xff] }
 0x8a7   :  { %v10331_v58 = vmul.f32 %v10007_v40, %v9992_v25  ;;  %v5305_v39 = vadd.f32 %v5231_v54, %v5230_v34  ;;  %v5108_v57 = vadd.f32 %v10014_v32, %v10147_v59  ;;  %v5109_v45 = vadd.f32 %v10019_v22, %v10151_v48 }
 0x8a8   :  { %v5302_v56 = vadd.f32 %v5229_v5, %v5228_v50  ;;  %v5299_v21 = vadd.f32 %v5227_v16, %v5226_v15  ;;  %v5236_v7 = vmul.f32 %v10021_v3, %v5166_v29  ;;  %v5106_v1 = vadd.f32 %v10014_v32, %v10139_v6 }
 0x8a9   :  { %5297 = vadd.xlane.f32.xlu2 %v5296_v11  ;;  %5291 = vadd.xlane.f32.xlu0 %v5290_v49  ;;  %v5237_v35 = vmul.f32 %v10023_v47, %v5167_v14  ;;  %v5165_v60 = vmax.f32 %v5101_v30, 0.0  ;;  %v5162_v25 = vmax.f32 %v5098_v23, 0.0  ;;  %v5107_v40 = vadd.f32 %v10019_v22, %v10143_v53 }
 0x8aa   :  { %5294 = vadd.xlane.f32.xlu1 %v5293_v17  ;;  %v5234_v2 = vmul.f32 %v10021_v3, %v5164_v18  ;;  %v5163_v59 = vmax.f32 %v5099_v27, 0.0  ;;  %v5104_v48 = vadd.f32 %v10014_v32, %v10131_v9  ;;  %v5105_v41 = vadd.f32 %v10019_v22, %v10135_v20  ;;  %v11802_v27 = vld [vmem:[#allocation134_spill] sm:$0xff] }
 0x8ab   :  { %v5172_v61 = vmax.f32 %v5108_v57, 0.0  ;;  %v5173_v51 = vmax.f32 %v5109_v45, 0.0  ;;  %v5114_v6 = vadd.f32 %v10014_v32, %v10171_v10  ;;  %v5115_v37 = vadd.f32 %v10019_v22, %v10175_v8 }
 0x8ac   :  { %v5170_v12 = vmax.f32 %v5106_v1, 0.0  ;;  %v5171_v46 = vmax.f32 %v5107_v40, 0.0  ;;  %v5168_v53 = vmax.f32 %v5104_v48, 0.0  ;;  %v5112_v11 = vadd.f32 %v10014_v32, %v10163_v36 }
 0x8ad   :  { %v5169_v17 = vmax.f32 %v5105_v41, 0.0  ;;  %v5178_v52 = vmax.f32 %v5114_v6, 0.0  ;;  %v5179_v9 = vmax.f32 %v5115_v37, 0.0  ;;  %v5113_v20 = vadd.f32 %v10019_v22, %v10167_v62 }
 0x8ae   :  { %v5235_v34 = vmul.f32 %v10023_v47, %v5165_v60  ;;  %v5232_v10 = vmul.f32 %v10021_v3, %v5162_v25  ;;  %v5176_v54 = vmax.f32 %v5112_v11, 0.0  ;;  %v5110_v8 = vadd.f32 %v10014_v32, %v10155_v55  ;;  %v11804_v25 = vld [vmem:[#allocation108_spill] sm:$0xff] }
 0x8af   :  { %v5233_v50 = vmul.f32 %v10023_v47, %v5163_v59  ;;  %v5242_v36 = vmul.f32 %v10021_v3, %v5172_v61  ;;  %v5243_v19 = vmul.f32 %v10023_v47, %v5173_v51  ;;  %v5177_v5 = vmax.f32 %v5113_v20, 0.0  ;;  %v11805_v59 = vld [vmem:[#allocation110_spill] sm:$0xff]  ;;  %v11808_v20 = vld [vmem:[#allocation97_spill] sm:$0xff] }
 0x8b0   :  { %v5240_v62 = vmul.f32 %v10021_v3, %v5170_v12  ;;  %v5241_v15 = vmul.f32 %v10023_v47, %v5171_v46  ;;  %v5238_v16 = vmul.f32 %v10021_v3, %v5168_v53  ;;  %v5111_v29 = vadd.f32 %v10019_v22, %v10159_v63  ;;  %v11803_v63 = vld [vmem:[#allocation150_spill] sm:$0xff] }
 0x8b1   :  { %5306 = vadd.xlane.f32.xlu2 %v5305_v39  ;;  %5300 = vadd.xlane.f32.xlu0 %v5299_v21  ;;  %v5239_v49 = vmul.f32 %v10023_v47, %v5169_v17  ;;  %v5248_v55 = vmul.f32 %v10021_v3, %v5178_v52  ;;  %v5249_v14 = vmul.f32 %v10023_v47, %v5179_v9  ;;  %v5174_v28 = vmax.f32 %v5110_v8, 0.0  ;;  %v11806_v12 = vld [vmem:[#allocation106_spill] sm:$0xff]  ;;  %v11807_v52 = vld [vmem:[#allocation151_spill] sm:$0xff] }
 0x8b2   :  { %5303 = vadd.xlane.f32.xlu1 %v5302_v56  ;;  %v5246_v30 = vmul.f32 %v10021_v3, %v5176_v54  ;;  %v5247_v23 = vmul.f32 %v10023_v47, %v5177_v5  ;;  %v10375_v18 = vadd.f32 %v10014_v32, %v11801_v0  ;;  %v10379_v39 = vadd.f32 %v10019_v22, %v11802_v27  ;;  %v11809_v8 = vld [vmem:[#allocation43_spill] sm:$0xff] }
 0x8b3   :  { %v5065_v57 = vmul.f32 %v10012_v24, %v11803_v63  ;;  %v5314_v45 = vadd.f32 %v5237_v35, %v5236_v7  ;;  %v5311_v56 = vadd.f32 %v5235_v34, %v5234_v2  ;;  %v5175_v21 = vmax.f32 %v5111_v29, 0.0 }
 0x8b4   :  { %v5308_v1 = vadd.f32 %v5233_v50, %v5232_v10  ;;  %v5323_v60 = vadd.f32 %v5243_v19, %v5242_v36  ;;  %v10385_v40 = vadd.f32 %v10014_v32, %v11804_v25  ;;  %v10389_v48 = vadd.f32 %v10019_v22, %v11805_v59  ;;  %v11810_v36 = vld [vmem:[#allocation143_spill] sm:$0xff]  ;;  %v11811_v19 = vld [vmem:[#allocation93_spill] sm:$0xff] }
 0x8b5   :  { %v5320_v41 = vadd.f32 %v5241_v15, %v5240_v62  ;;  %v5317_v61 = vadd.f32 %v5239_v49, %v5238_v16  ;;  %v10391_v51 = vadd.f32 %v5249_v14, %v5248_v55  ;;  %v5126_v24 = vadd.f32 %v10014_v32, %v10231_v26 }
 0x8b6   :  { %v10395_v7 = vadd.f32 %v5247_v23, %v5246_v30  ;;  %v10398_v35 = vmul.f32 %v10021_v3, %v5174_v28  ;;  %v5184_v2 = vmax.f32 %v10375_v18, 0.0  ;;  %v5185_v6 = vmax.f32 %v10379_v39, 0.0  ;;  %v11813_v39 = vld [vmem:[#allocation152_spill] sm:$0xff] }
 0x8b7   :  { %v5245_v37 = vmul.f32 %v10023_v47, %v5175_v21  ;;  %v10405_v46 = vadd.f32 %v10014_v32, %v11806_v12  ;;  %v5127_v26 = vadd.f32 %v10019_v22, %v10257_v4  ;;  %v5190_v53 = vmax.f32 %v5126_v24, 0.0 }
 0x8b8   :  { %v5182_v11 = vmax.f32 %v10385_v40, 0.0  ;;  %v5183_v17 = vmax.f32 %v10389_v48, 0.0  ;;  %v5124_v9 = vadd.f32 %v10014_v32, %v11807_v52  ;;  %v5125_v34 = vadd.f32 %v10019_v22, %v11808_v20 }
 0x8b9   :  { %5315 = vadd.xlane.f32.xlu2 %v5314_v45  ;;  %5309 = vadd.xlane.f32.xlu0 %v5308_v1  ;;  %v5191_v10 = vmax.f32 %v5127_v26, 0.0  ;;  %v5260_v54 = vmul.f32 %v10021_v3, %v5190_v53  ;;  %v5122_v50 = vadd.f32 %v10014_v32, %v11809_v8  ;;  %v5123_v4 = vadd.f32 %v10019_v22, %v11810_v36  ;;  %v11812_v26 = vld [vmem:[#allocation119_spill] sm:$0xff] }
 0x8ba   :  { %5312 = vadd.xlane.f32.xlu1 %v5311_v56  ;;  %v10422_v5 = vadd.f32 %v10019_v22, %v11811_v19  ;;  %v5188_v62 = vmax.f32 %v5124_v9, 0.0  ;;  %v5189_v15 = vmax.f32 %v5125_v34, 0.0  ;;  %v5132_v16 = vadd.f32 %v10014_v32, %v10303_v43 }
 0x8bb   :  { %v5261_v29 = vmul.f32 %v10023_v47, %v5191_v10  ;;  %v5186_v49 = vmax.f32 %v5122_v50, 0.0  ;;  %v5187_v55 = vmax.f32 %v5123_v4, 0.0  ;;  %v5133_v14 = vadd.f32 %v10019_v22, %v10321_v33 }
 0x8bc   :  { %v5258_v30 = vmul.f32 %v10021_v3, %v5188_v62  ;;  %v5259_v23 = vmul.f32 %v10023_v47, %v5189_v15  ;;  %v5196_v28 = vmax.f32 %v5132_v16, 0.0  ;;  %v5130_v0 = vadd.f32 %v10014_v32, %v10291_v31 }
 0x8bd   :  { %v5350_v27 = vadd.f32 %v5261_v29, %v5260_v54  ;;  %v5256_v63 = vmul.f32 %v10021_v3, %v5186_v49  ;;  %v5257_v43 = vmul.f32 %v10023_v47, %v5187_v55  ;;  %v5197_v45 = vmax.f32 %v5133_v14, 0.0 }
 0x8be   :  { %v5347_v56 = vadd.f32 %v5259_v23, %v5258_v30  ;;  %v5266_v21 = vmul.f32 %v10021_v3, %v5196_v28  ;;  %v5131_v33 = vadd.f32 %v10019_v22, %v10297_v44  ;;  %v5194_v1 = vmax.f32 %v5130_v0, 0.0 }
 0x8bf   :  { %v5344_v25 = vadd.f32 %v5257_v43, %v5256_v63  ;;  %v5267_v59 = vmul.f32 %v10023_v47, %v5197_v45  ;;  %v5128_v31 = vadd.f32 %v10014_v32, %v10261_v38  ;;  %v5129_v24 = vadd.f32 %v10019_v22, %v10267_v13 }
 0x8c0   :  { %v5195_v12 = vmax.f32 %v5131_v33, 0.0  ;;  %v5137_v53 = vadd.f32 %v10019_v22, %v11812_v26  ;;  %v5134_v9 = vadd.f32 %v10014_v32, %v10325_v42  ;;  %v5135_v13 = vadd.f32 %v10019_v22, %v10331_v58 }
 0x8c1   :  { %5324 = vadd.xlane.f32.xlu2 %v5323_v60  ;;  %5318 = vadd.xlane.f32.xlu0 %v5317_v61  ;;  %v5264_v60 = vmul.f32 %v10021_v3, %v5194_v1  ;;  %v5359_v44 = vadd.f32 %v5267_v59, %v5266_v21  ;;  %v5192_v52 = vmax.f32 %v5128_v31, 0.0  ;;  %v5193_v61 = vmax.f32 %v5129_v24, 0.0 }
 0x8c2   :  { %5321 = vadd.xlane.f32.xlu1 %v5320_v41  ;;  %v5136_v41 = vadd.f32 %v10014_v32, %v5065_v57  ;;  %v5265_v20 = vmul.f32 %v10023_v47, %v5195_v12  ;;  %v5201_v34 = vmax.f32 %v5137_v53, 0.0  ;;  %v5180_v10 = vmax.f32 %v10405_v46, 0.0 }
 0x8c3   :  { %v5262_v57 = vmul.f32 %v10021_v3, %v5192_v52  ;;  %v5263_v54 = vmul.f32 %v10023_v47, %v5193_v61  ;;  %v5198_v8 = vmax.f32 %v5134_v9, 0.0  ;;  %v5199_v32 = vmax.f32 %v5135_v13, 0.0 }
 0x8c4   :  { %v5200_v38 = vmax.f32 %v5136_v41, 0.0  ;;  %v5356_v50 = vadd.f32 %v5265_v20, %v5264_v60  ;;  %v5271_v4 = vmul.f32 %v10023_v47, %v5201_v34  ;;  %v5326_v42 = vadd.f32 %v5245_v37, %v10398_v35 }
 0x8c5   :  { %v5181_v19 = vmax.f32 %v10422_v5, 0.0  ;;  %v5353_v62 = vadd.f32 %v5263_v54, %v5262_v57  ;;  %v5268_v22 = vmul.f32 %v10021_v3, %v5198_v8  ;;  %v5269_v46 = vmul.f32 %v10023_v47, %v5199_v32 }
 0x8c6   :  { %v5270_v36 = vmul.f32 %v10021_v3, %v5200_v38  ;;  %v5254_v15 = vmul.f32 %v10021_v3, %v5184_v2  ;;  %v5255_v35 = vmul.f32 %v10023_v47, %v5185_v6  ;;  %v5252_v37 = vmul.f32 %v10021_v3, %v5182_v11 }
 0x8c7   :  { %v5250_v5 = vmul.f32 %v10021_v3, %v5180_v10  ;;  %v5251_v16 = vmul.f32 %v10023_v47, %v5181_v19  ;;  %v10478_v40 = vperm.slane %v11813_v39, 3 }
 0x8c8   :  { %v5365_v58 = vadd.f32 %v5271_v4, %v5270_v36  ;;  %v5341_v18 = vadd.f32 %v5255_v35, %v5254_v15 }
 0x8c9   :  { %5333 = vadd.xlane.f32.xlu2 %v10391_v51  ;;  %5327 = vadd.xlane.f32.xlu0 %v5326_v42  ;;  %v5253_v51 = vmul.f32 %v10023_v47, %v5183_v17  ;;  %v5335_v2 = vadd.f32 %v5251_v16, %v5250_v5 }
 0x8ca   :  { %5330 = vadd.xlane.f32.xlu1 %v10395_v7  ;;  %v5362_v7 = vadd.f32 %v5269_v46, %v5268_v22 }
 0x8cb   :  { %v5338_v29 = vadd.f32 %v5253_v51, %v5252_v37 }
 0x8d1   :  { %5342 = vadd.xlane.f32.xlu2 %v5341_v18  ;;  %5336 = vadd.xlane.f32.xlu0 %v5335_v2 }
 0x8d2   :  { %5339 = vadd.xlane.f32.xlu1 %v5338_v29 }
 0x8d9   :  { %5351 = vadd.xlane.f32.xlu2 %v5350_v27  ;;  %5345 = vadd.xlane.f32.xlu0 %v5344_v25 }
 0x8da   :  { %5348 = vadd.xlane.f32.xlu1 %v5347_v56 }
 0x8e1   :  { %5360 = vadd.xlane.f32.xlu2 %v5359_v44  ;;  %5354 = vadd.xlane.f32.xlu0 %v5353_v62 }
 0x8e2   :  { %5357 = vadd.xlane.f32.xlu1 %v5356_v50 }
 0x8e9   :  { %5363 = vadd.xlane.f32.xlu0 %v5362_v7 }
 0x8ea   :  { %5366 = vadd.xlane.f32.xlu1 %v5365_v58 }
 0x90c   :  { %v5286_v3 = vpop.xlane.xlu2 %5285  ;;  %v5274_v11 = vpop.xlane.xlu0 %5273 }
 0x90d   :  { %v5280_v47 = vpop.xlane.xlu1 %5279  ;;  %v5373_v48 = vadd.f32 %v10478_v40, %v5286_v3  ;;  %v5369_v17 = vadd.f32 %v10478_v40, %v5274_v11 }
 0x90e   :  { %v5371_v6 = vadd.f32 %v10478_v40, %v5280_v47 }
 0x90f   :  { %5406 = vst.msk [vmem:[%s10646_s6 + $0x20] sm:$0xff] %vm5401_vm5, %v5373_v48 }
 0x910   :  { %5404 = vst.msk [vmem:[%s10646_s6 + $0x10] sm:$0xff] %vm5401_vm5, %v5371_v6 }
 0x911   :  { %5402 = vst.msk [vmem:[%s10646_s6] sm:$0xff] %vm5401_vm5, %v5369_v17 }
 0x914   :  { %v5289_v49 = vpop.xlane.xlu2 %5288  ;;  %v5277_v23 = vpop.xlane.xlu0 %5276 }
 0x915   :  { %v5283_v55 = vpop.xlane.xlu1 %5282  ;;  %v5374_v14 = vadd.f32 %v10478_v40, %v5289_v49  ;;  %v5370_v28 = vadd.f32 %v10478_v40, %v5277_v23 }
 0x916   :  { %v5372_v30 = vadd.f32 %v10478_v40, %v5283_v55 }
 0x917   :  { %5407 = vst.msk [vmem:[%s10646_s6 + $0x28] sm:$0xff] %vm5401_vm5, %v5374_v14 }
 0x918   :  { %5405 = vst.msk [vmem:[%s10646_s6 + $0x18] sm:$0xff] %vm5401_vm5, %v5372_v30 }
 0x919   :  { %5403 = vst.msk [vmem:[%s10646_s6 + $0x8] sm:$0xff] %vm5401_vm5, %v5370_v28 }
 0x91c   :  { %v5298_v0 = vpop.xlane.xlu2 %5297  ;;  %v5292_v45 = vpop.xlane.xlu0 %5291 }
 0x91d   :  { %v5295_v27 = vpop.xlane.xlu1 %5294  ;;  %v5377_v63 = vadd.f32 %v10478_v40, %v5298_v0  ;;  %v5375_v56 = vadd.f32 %v10478_v40, %v5292_v45 }
 0x91e   :  { %v5376_v43 = vadd.f32 %v10478_v40, %v5295_v27 }
 0x91f   :  { %5410 = vst.msk [vmem:[%s10646_s6 + $0x40] sm:$0xff] %vm5401_vm5, %v5377_v63 }
 0x920   :  { %5409 = vst.msk [vmem:[%s10646_s6 + $0x38] sm:$0xff] %vm5401_vm5, %v5376_v43 }
 0x921   :  { %5408 = vst.msk [vmem:[%s10646_s6 + $0x30] sm:$0xff] %vm5401_vm5, %v5375_v56 }
 0x924   :  { %v5307_v21 = vpop.xlane.xlu2 %5306  ;;  %v5301_v59 = vpop.xlane.xlu0 %5300 }
 0x925   :  { %v5304_v33 = vpop.xlane.xlu1 %5303  ;;  %v5380_v1 = vadd.f32 %v10478_v40, %v5307_v21  ;;  %v5378_v31 = vadd.f32 %v10478_v40, %v5301_v59 }
 0x926   :  { %v5379_v25 = vadd.f32 %v10478_v40, %v5304_v33 }
 0x927   :  { %5413 = vst.msk [vmem:[%s10646_s6 + $0x58] sm:$0xff] %vm5401_vm5, %v5380_v1 }
 0x928   :  { %5412 = vst.msk [vmem:[%s10646_s6 + $0x50] sm:$0xff] %vm5401_vm5, %v5379_v25 }
 0x929   :  { %5411 = vst.msk [vmem:[%s10646_s6 + $0x48] sm:$0xff] %vm5401_vm5, %v5378_v31 }
 0x92c   :  { %v5316_v24 = vpop.xlane.xlu2 %5315  ;;  %v5310_v26 = vpop.xlane.xlu0 %5309 }
 0x92d   :  { %v5313_v12 = vpop.xlane.xlu1 %5312  ;;  %v5383_v60 = vadd.f32 %v10478_v40, %v5316_v24  ;;  %v5381_v53 = vadd.f32 %v10478_v40, %v5310_v26 }
 0x92e   :  { %v5382_v41 = vadd.f32 %v10478_v40, %v5313_v12 }
 0x92f   :  { %5416 = vst.msk [vmem:[%s10646_s6 + $0x70] sm:$0xff] %vm5401_vm5, %v5383_v60 }
 0x930   :  { %5415 = vst.msk [vmem:[%s10646_s6 + $0x68] sm:$0xff] %vm5401_vm5, %v5382_v41 }
 0x931   :  { %5414 = vst.msk [vmem:[%s10646_s6 + $0x60] sm:$0xff] %vm5401_vm5, %v5381_v53 }
 0x934   :  { %v5325_v44 = vpop.xlane.xlu2 %5324  ;;  %v5319_v20 = vpop.xlane.xlu0 %5318 }
 0x935   :  { %v5322_v52 = vpop.xlane.xlu1 %5321  ;;  %v5386_v61 = vadd.f32 %v10478_v40, %v5325_v44  ;;  %v5384_v38 = vadd.f32 %v10478_v40, %v5319_v20 }
 0x936   :  { %v5385_v9 = vadd.f32 %v10478_v40, %v5322_v52 }
 0x937   :  { %5419 = vst.msk [vmem:[%s10646_s6 + $0x88] sm:$0xff] %vm5401_vm5, %v5386_v61 }
 0x938   :  { %5418 = vst.msk [vmem:[%s10646_s6 + $0x80] sm:$0xff] %vm5401_vm5, %v5385_v9 }
 0x939   :  { %5417 = vst.msk [vmem:[%s10646_s6 + $0x78] sm:$0xff] %vm5401_vm5, %v5384_v38 }
 0x93c   :  { %v5334_v34 = vpop.xlane.xlu2 %5333  ;;  %v5328_v54 = vpop.xlane.xlu0 %5327 }
 0x93d   :  { %v5331_v13 = vpop.xlane.xlu1 %5330  ;;  %v5389_v10 = vadd.f32 %v10478_v40, %v5334_v34  ;;  %v5387_v8 = vadd.f32 %v10478_v40, %v5328_v54 }
 0x93e   :  { %v5388_v57 = vadd.f32 %v10478_v40, %v5331_v13 }
 0x93f   :  { %5422 = vst.msk [vmem:[%s10646_s6 + $0xa0] sm:$0xff] %vm5401_vm5, %v5389_v10 }
 0x940   :  { %5421 = vst.msk [vmem:[%s10646_s6 + $0x98] sm:$0xff] %vm5401_vm5, %v5388_v57 }
 0x941   :  { %5420 = vst.msk [vmem:[%s10646_s6 + $0x90] sm:$0xff] %vm5401_vm5, %v5387_v8 }
 0x944   :  { %v5343_v50 = vpop.xlane.xlu2 %5342  ;;  %v5337_v42 = vpop.xlane.xlu0 %5336 }
 0x945   :  { %v5340_v36 = vpop.xlane.xlu1 %5339  ;;  %v5392_v4 = vadd.f32 %v10478_v40, %v5343_v50  ;;  %v5390_v19 = vadd.f32 %v10478_v40, %v5337_v42 }
 0x946   :  { %v5391_v32 = vadd.f32 %v10478_v40, %v5340_v36 }
 0x947   :  { %5425 = vst.msk [vmem:[%s10646_s6 + $0xb8] sm:$0xff] %vm5401_vm5, %v5392_v4 }
 0x948   :  { %5424 = vst.msk [vmem:[%s10646_s6 + $0xb0] sm:$0xff] %vm5401_vm5, %v5391_v32 }
 0x949   :  { %5423 = vst.msk [vmem:[%s10646_s6 + $0xa8] sm:$0xff] %vm5401_vm5, %v5390_v19 }
 0x94c   :  { %v5352_v62 = vpop.xlane.xlu2 %5351  ;;  %v5346_v15 = vpop.xlane.xlu0 %5345 }
 0x94d   :  { %v5349_v22 = vpop.xlane.xlu1 %5348  ;;  %v5395_v58 = vadd.f32 %v10478_v40, %v5352_v62  ;;  %v5393_v35 = vadd.f32 %v10478_v40, %v5346_v15 }
 0x94e   :  { %v5394_v46 = vadd.f32 %v10478_v40, %v5349_v22 }
 0x94f   :  { %5428 = vst.msk [vmem:[%s10646_s6 + $0xd0] sm:$0xff] %vm5401_vm5, %v5395_v58 }
 0x950   :  { %5427 = vst.msk [vmem:[%s10646_s6 + $0xc8] sm:$0xff] %vm5401_vm5, %v5394_v46 }
 0x951   :  { %5426 = vst.msk [vmem:[%s10646_s6 + $0xc0] sm:$0xff] %vm5401_vm5, %v5393_v35 }
 0x954   :  { %v5361_v37 = vpop.xlane.xlu2 %5360  ;;  %v5355_v16 = vpop.xlane.xlu0 %5354 }
 0x955   :  { %v5358_v51 = vpop.xlane.xlu1 %5357  ;;  %v5398_v7 = vadd.f32 %v10478_v40, %v5361_v37  ;;  %v5396_v18 = vadd.f32 %v10478_v40, %v5355_v16 }
 0x956   :  { %v5397_v5 = vadd.f32 %v10478_v40, %v5358_v51 }
 0x957   :  { %5431 = vst.msk [vmem:[%s10646_s6 + $0xe8] sm:$0xff] %vm5401_vm5, %v5398_v7 }
 0x958   :  { %5430 = vst.msk [vmem:[%s10646_s6 + $0xe0] sm:$0xff] %vm5401_vm5, %v5397_v5 }
 0x959   :  { %5429 = vst.msk [vmem:[%s10646_s6 + $0xd8] sm:$0xff] %vm5401_vm5, %v5396_v18 }
 0x95c   :  { %v5364_v39 = vpop.xlane.xlu0 %5363 }
 0x95d   :  { %v5367_v29 = vpop.xlane.xlu1 %5366  ;;  %v5399_v3 = vadd.f32 %v10478_v40, %v5364_v39 }
 0x95e   :  { %v5400_v2 = vadd.f32 %v10478_v40, %v5367_v29 }
 0x95f   :  { %5432 = vst.msk [vmem:[%s10646_s6 + $0xf0] sm:$0xff] %vm5401_vm5, %v5399_v3 }
 0x960   :  { %5433 = vst.msk [vmem:[%s10646_s6 + $0xf8] sm:$0xff] %vm5401_vm5, %v5400_v2 }
 0x961   :  { %5438 = vsyncpa [#allocation3], 1 }
 0x962   :  { %5439 = vsyncpa [#allocation5], 1 }
 0x963   :  { %5440 = vsyncpa [#allocation8], 1 }
 0x964   :  { %5441 = vsyncpa [#allocation11], 1 }

</bundles_post_ra>
